<compile_context>
chip_gen: v5e
topology: v5e:2x2
jax: 0.10.0
libtpu: 0.0.40
codegen_flags: <defaults>
</compile_context>

<pallas_src>
import functools

import jax
import jax.numpy as jnp
from jax.experimental import pallas as pl
from jax.experimental.pallas import tpu as pltpu

HDIM = 2048                    # hdim in Predictor.__init__
NG, NV, NC = 168, 11, 7
NFUSED = NG + NV + NC          # 186
NPAD = 256                     # fused head width padded to 2x128 lanes
_VMEM_LIMIT = 48 * 1024 * 1024


def _head_kernel(x_ref, w_ref, b_ref, o_ref, *, inv_hw):
    # x_ref: [TB, C, H*W]  (NCHW feature map with spatial flattened onto lanes).
    # adaptive_avg_pool2d(., 1).view(B, -1) == spatial sum scaled by 1/(H*W);
    # accumulate in f32 regardless of the feature-map dtype.
    h = jnp.sum(x_ref[...].astype(jnp.float32), axis=-1) * inv_hw          # [TB, C]
    # Fused (g | v | c) heads: single lane-dense [C, 256] MXU matmul + bias.
    o_ref[...] = (jnp.dot(h, w_ref[...], preferred_element_type=jnp.float32)
                  + b_ref[...])


def fuse_head_params(params):
    """Concatenate wg/wv/wc (each [C, n]) and biases into zero-padded [C,256]/[1,256]."""
    wg, bg, wv, bv, wc, bc = params
    w = jnp.zeros((HDIM, NPAD), jnp.float32)
    w = w.at[:, :NG].set(wg).at[:, NG:NG + NV].set(wv).at[:, NG + NV:NFUSED].set(wc)
    b = jnp.zeros((1, NPAD), jnp.float32)
    b = b.at[:, :NG].set(bg).at[:, NG:NG + NV].set(bv).at[:, NG + NV:NFUSED].set(bc)
    return w, b


def _pick_batch_tile(B, C, HW, itemsize):
    """Biggest batch tile (multiple of 8) that keeps double-buffered blocks in VMEM."""
    if B <= 8:
        return B
    lane_pad = ((max(HW, 128) + 127) // 128) * 128   # minor axis pads to 128 lanes
    per_row = C * lane_pad * itemsize                # bytes per batch row in VMEM
    resident = 2 * (HDIM * NPAD + NPAD) * 4          # fused weight + bias (dbl-buffered)
    avail = max(_VMEM_LIMIT - resident - (2 << 20), 2 * 8 * per_row)
    tb = (avail // (2 * per_row)) // 8 * 8           # double-buffered input blocks
    tb = int(max(8, min(tb, 64)))
    tb = min(tb, ((B + 7) // 8) * 8)                 # no point exceeding padded batch
    return tb


def predictor_heads(feats_nchw, fused_params):
    """feats_nchw: [B, 2048, H, W] (output of base_model.features, NCHW; f32 or bf16).

    Returns (h_g, h_v, h_c) exactly as Predictor.forward does after the backbone.
    """
    B, C, H, W = feats_nchw.shape
    assert C == HDIM
    HW = H * W
    w, b = fused_params

    # NCHW -> [B, C, H*W] is a free (contiguous) reshape; no transpose / extra HBM pass.
    x = feats_nchw.reshape(B, C, HW)

    itemsize = jnp.dtype(x.dtype).itemsize
    tb = _pick_batch_tile(B, C, HW, itemsize)
    grid = (pl.cdiv(B, tb),)

    cost = pl.CostEstimate(
        flops=2 * B * C * NPAD + B * C * HW,
        transcendentals=0,
        bytes_accessed=B * C * HW * itemsize
        + (HDIM * NPAD + NPAD) * 4
        + B * NPAD * 4,
    )

    out = pl.pallas_call(
        functools.partial(_head_kernel, inv_hw=1.0 / float(HW)),
        out_shape=jax.ShapeDtypeStruct((B, NPAD), jnp.float32),
        grid_spec=pltpu.PrefetchScalarGridSpec(
            num_scalar_prefetch=0,
            grid=grid,
            in_specs=[
                pl.BlockSpec((tb, C, HW), lambda i: (i, 0, 0)),    # streamed batch tile
                pl.BlockSpec((HDIM, NPAD), lambda i: (0, 0)),      # fused weight (resident)
                pl.BlockSpec((1, NPAD), lambda i: (0, 0)),         # fused bias (resident)
            ],
            out_specs=pl.BlockSpec((tb, NPAD), lambda i: (i, 0)),
        ),
        compiler_params=pltpu.CompilerParams(
            dimension_semantics=("parallel",),
            vmem_limit_bytes=_VMEM_LIMIT,   # above v5e/v6e scoped defaults, < v7x 64 MiB
        ),
        cost_estimate=cost,
    )(x, w, b)

    # Slice the zero-padded fused output back into the three heads.
    return out[:, :NG], out[:, NG:NG + NV], out[:, NG + NV:NFUSED]


def init_params(key):
    kg, kbg, kv, kbv, kc, kbc = jax.random.split(key, 6)
    scale = 0.02
    wg = jax.random.normal(kg, (HDIM, NG), jnp.float32) * scale
    bg = jax.random.normal(kbg, (1, NG), jnp.float32) * scale
    wv = jax.random.normal(kv, (HDIM, NV), jnp.float32) * scale
    bv = jax.random.normal(kbv, (1, NV), jnp.float32) * scale
    wc = jax.random.normal(kc, (HDIM, NC), jnp.float32) * scale
    bc = jax.random.normal(kbc, (1, NC), jnp.float32) * scale
    return (wg, bg, wv, bv, wc, bc)


if __name__ == "__main__":
    key = jax.random.PRNGKey(0)
    kx, kp = jax.random.split(key)

    # Small synthetic stand-in for base_model.features(x): [B, 2048, 4, 4] (NCHW).
    B, H, W = 2, 4, 4
    feats = jax.random.normal(kx, (B, HDIM, H, W), jnp.float32)
    params = init_params(kp)
    fused = fuse_head_params(params)

    out_g, out_v, out_c = predictor_heads(feats, fused)
    jax.block_until_ready((out_g, out_v, out_c))

    # Pure-JAX reference for correctness.
    wg, bg, wv, bv, wc, bc = params
    h_ref = feats.reshape(B, HDIM, H * W).mean(axis=-1)  # [B, 2048]
    rg = h_ref @ wg + bg
    rv = h_ref @ wv + bv
    rc = h_ref @ wc + bc

    assert out_g.shape == (B, NG) and out_v.shape == (B, NV) and out_c.shape == (B, NC)
    assert jnp.allclose(out_g, rg, rtol=1e-5, atol=1e-5)
    assert jnp.allclose(out_v, rv, rtol=1e-5, atol=1e-5)
    assert jnp.allclose(out_c, rc, rtol=1e-5, atol=1e-5)

    print("KERNEL_OK")
</pallas_src>

<mosaic_0001>
module attributes {stable_mosaic.version = 11 : i64} {
  func.func @_head_kernel(%arg0: i32, %arg1: memref<2x2048x16xf32, #tpu.memory_space<vmem>>, %arg2: memref<2048x256xf32, #tpu.memory_space<vmem>>, %arg3: memref<1x256xf32, #tpu.memory_space<vmem>>, %arg4: memref<2x256xf32, #tpu.memory_space<vmem>>) attributes {dimension_semantics = [#tpu.dimension_semantics<parallel>], iteration_bounds = array<i64: 1>, scalar_prefetch = 0 : i64, scratch_operands = 0 : i64, tpu.core_type = #tpu.core_type<tc>, window_params = [{transform_indices = @transform_0, window_bounds = array<i64: 2, 2048, 16>}, {pipeline_mode = #tpu.pipeline_mode<synchronous>, transform_indices = @transform_1, window_bounds = array<i64: 2048, 256>}, {pipeline_mode = #tpu.pipeline_mode<synchronous>, transform_indices = @transform_2, window_bounds = array<i64: 1, 256>}, {transform_indices = @transform_3, window_bounds = array<i64: 2, 256>}]} {
    %c0 = arith.constant 0 : index
    %c0_0 = arith.constant 0 : index
    %c0_1 = arith.constant 0 : index
    %0 = vector.load %arg1[%c0, %c0_0, %c0_1] : memref<2x2048x16xf32, #tpu.memory_space<vmem>>, vector<2x2048x16xf32>
    %cst = arith.constant dense<0.000000e+00> : vector<2x2048xf32>
    %1 = vector.multi_reduction <add>, %0, %cst [2] : vector<2x2048x16xf32> to vector<2x2048xf32>
    %cst_2 = arith.constant 6.250000e-02 : f32
    %2 = vector.broadcast %cst_2 : f32 to vector<2x2048xf32>
    %3 = arith.mulf %1, %2 : vector<2x2048xf32>
    %c0_3 = arith.constant 0 : index
    %c0_4 = arith.constant 0 : index
    %4 = vector.load %arg2[%c0_3, %c0_4] : memref<2048x256xf32, #tpu.memory_space<vmem>>, vector<2048x256xf32>
    %cst_5 = arith.constant dense<0.000000e+00> : vector<2x256xf32>
    %5 = tpu.matmul %3, %4, %cst_5 {dimension_numbers = #tpu.dot_dimension_numbers<[1], [0], [0], [1], [0, 0, 1, 1], [], []>} : vector<2x2048xf32>, vector<2048x256xf32>, vector<2x256xf32> -> vector<2x256xf32>
    %c0_6 = arith.constant 0 : index
    %c0_7 = arith.constant 0 : index
    %6 = vector.load %arg3[%c0_6, %c0_7] : memref<1x256xf32, #tpu.memory_space<vmem>>, vector<1x256xf32>
    %7 = vector.broadcast %6 : vector<1x256xf32> to vector<2x256xf32>
    %8 = arith.addf %5, %7 : vector<2x256xf32>
    %c0_8 = arith.constant 0 : index
    %c0_9 = arith.constant 0 : index
    %9 = vector.load %arg4[%c0_8, %c0_9] : memref<2x256xf32, #tpu.memory_space<vmem>>, vector<2x256xf32>
    tpu.vector_store %arg4[%c0_8, %c0_9], %8 {strides = array<i32>} : memref<2x256xf32, #tpu.memory_space<vmem>>, vector<2x256xf32>,
    return
  }
  func.func @transform_0(%arg0: i32) -> (i32, i32, i32) {
    %c0_i32 = arith.constant 0 : i32
    %c0_i32_0 = arith.constant 0 : i32
    %c0_i32_1 = arith.constant 0 : i32
    return %arg0, %c0_i32, %c0_i32_0 : i32, i32, i32
  }
  func.func @transform_1(%arg0: i32) -> (i32, i32) {
    %c0_i32 = arith.constant 0 : i32
    %c0_i32_0 = arith.constant 0 : i32
    %c0_i32_1 = arith.constant 0 : i32
    return %c0_i32, %c0_i32_0 : i32, i32
  }
  func.func @transform_2(%arg0: i32) -> (i32, i32) {
    %c0_i32 = arith.constant 0 : i32
    %c0_i32_0 = arith.constant 0 : i32
    %c0_i32_1 = arith.constant 0 : i32
    return %c0_i32, %c0_i32_0 : i32, i32
  }
  func.func @transform_3(%arg0: i32) -> (i32, i32) {
    %c0_i32 = arith.constant 0 : i32
    %c0_i32_0 = arith.constant 0 : i32
    return %arg0, %c0_i32 : i32, i32
  }
}

</mosaic_0001>

<bundles_post_ra>
// kernel: tpu_custom_call.1
= control target key start
LH: loop header
LB: loop body
LE: loop exit
PB: predicated region body
PF: predicated region fallthrough
CT: control target
= control target key end

     0   :  { %vm527_vm0 = vcmask 130048   ;;  %s11091_s0 = inlined_call_operand.vmem [shape: f32[2,2048,16], index: 0, kind: input, shape index: {}]   ;;  %s11092_s1 = inlined_call_operand.vmem [shape: f32[2048,256], index: 1, kind: input, shape index: {}]   ;;  %s11093_s2 = inlined_call_operand.vmem [shape: f32[1,256], index: 2, kind: input, shape index: {}]   ;;  %s11094_s3 = inlined_call_operand.hbm [shape: f32[2,256], index: 3, kind: output, shape index: {}]  }
   0x1   :  { %v19_v0 = vld [vmem:[%s11091_s0 + $0x20] sm:$0xff]  ;;  %v17_v1 = vld [vmem:[%s11091_s0 + $0x10] sm:$0xff]  ;;  %v20_v6 = vld [vmem:[%s11091_s0 + $0x28] sm:$0xff] }
   0x2   :  { %v15_v2 = vld [vmem:[%s11091_s0] sm:$0xff]  ;;  %v540_v3 = vsel %vm527_vm0, %v19_v0, 0.0  ;;  %v534_v4 = vsel %vm527_vm0, %v17_v1, 0.0  ;;  %v18_v7 = vld [vmem:[%s11091_s0 + $0x18] sm:$0xff]  ;;  %v16_v8 = vld [vmem:[%s11091_s0 + $0x8] sm:$0xff] }
   0x3   :  { %v528_v5 = vsel %vm527_vm0, %v15_v2, 0.0  ;;  %541 = vadd.xlane.f32.xlu2 %v540_v3  ;;  %535 = vadd.xlane.f32.xlu1 %v534_v4 }
   0x4   :  { %529 = vadd.xlane.f32.xlu0 %v528_v5 }
   0x5   :  { %8 = vsyncpa [#allocation3], 0  ;;  %v543_v9 = vsel %vm527_vm0, %v20_v6, 0.0  ;;  %v537_v10 = vsel %vm527_vm0, %v18_v7, 0.0  ;;  %v531_v11 = vsel %vm527_vm0, %v16_v8, 0.0  ;;  %v23_v12 = vld [vmem:[%s11091_s0 + $0x40] sm:$0xff] }
   0x6   :  { %v22_v13 = vld [vmem:[%s11091_s0 + $0x38] sm:$0xff]  ;;  %v21_v14 = vld [vmem:[%s11091_s0 + $0x30] sm:$0xff]  ;;  %v552_v15 = vsel %vm527_vm0, %v23_v12, 0.0  ;;  %v24_v20 = vld [vmem:[%s11091_s0 + $0x48] sm:$0xff]  ;;  %vm3611_vm1 = vcmask 130112   ;;  %vm3615_vm2 = vcmask 195712  }
   0x7   :  { %v549_v16 = vsel %vm527_vm0, %v22_v13, 0.0  ;;  %v546_v17 = vsel %vm527_vm0, %v21_v14, 0.0  ;;  %v26_v18 = vld [vmem:[%s11091_s0 + $0x58] sm:$0xff]  ;;  %v25_v19 = vld [vmem:[%s11091_s0 + $0x50] sm:$0xff]  ;;  %v555_v23 = vsel %vm527_vm0, %v24_v20, 0.0  ;;  %v28_v25 = vld [vmem:[%s11091_s0 + $0x68] sm:$0xff] }
   0x8   :  { %v561_v21 = vsel %vm527_vm0, %v26_v18, 0.0  ;;  %v558_v22 = vsel %vm527_vm0, %v25_v19, 0.0  ;;  %v29_v24 = vld [vmem:[%s11091_s0 + $0x70] sm:$0xff]  ;;  %v27_v26 = vld [vmem:[%s11091_s0 + $0x60] sm:$0xff]  ;;  %v567_v28 = vsel %vm527_vm0, %v28_v25, 0.0  ;;  %v32_v30 = vld [vmem:[%s11091_s0 + $0x88] sm:$0xff] }
   0x9   :  { %v570_v27 = vsel %vm527_vm0, %v29_v24, 0.0  ;;  %v564_v29 = vsel %vm527_vm0, %v27_v26, 0.0  ;;  %v31_v31 = vld [vmem:[%s11091_s0 + $0x80] sm:$0xff]  ;;  %v30_v32 = vld [vmem:[%s11091_s0 + $0x78] sm:$0xff]  ;;  %v579_v33 = vsel %vm527_vm0, %v32_v30, 0.0  ;;  %v33_v38 = vld [vmem:[%s11091_s0 + $0x90] sm:$0xff] }
   0xa   :  { %v576_v34 = vsel %vm527_vm0, %v31_v31, 0.0  ;;  %v573_v35 = vsel %vm527_vm0, %v30_v32, 0.0  ;;  %v35_v36 = vld [vmem:[%s11091_s0 + $0xa0] sm:$0xff]  ;;  %v34_v37 = vld [vmem:[%s11091_s0 + $0x98] sm:$0xff]  ;;  %v582_v41 = vsel %vm527_vm0, %v33_v38, 0.0  ;;  %v37_v43 = vld [vmem:[%s11091_s0 + $0xb0] sm:$0xff] }
   0xb   :  { %544 = vadd.xlane.f32.xlu2 %v543_v9  ;;  %538 = vadd.xlane.f32.xlu1 %v537_v10  ;;  %v588_v39 = vsel %vm527_vm0, %v35_v36, 0.0  ;;  %v585_v40 = vsel %vm527_vm0, %v34_v37, 0.0  ;;  %v38_v42 = vld [vmem:[%s11091_s0 + $0xb8] sm:$0xff]  ;;  %v36_v44 = vld [vmem:[%s11091_s0 + $0xa8] sm:$0xff]  ;;  %v594_v46 = vsel %vm527_vm0, %v37_v43, 0.0  ;;  %v41_v48 = vld [vmem:[%s11091_s0 + $0xd0] sm:$0xff] }
   0xc   :  { %532 = vadd.xlane.f32.xlu0 %v531_v11  ;;  %v597_v45 = vsel %vm527_vm0, %v38_v42, 0.0  ;;  %v591_v47 = vsel %vm527_vm0, %v36_v44, 0.0  ;;  %v40_v49 = vld [vmem:[%s11091_s0 + $0xc8] sm:$0xff]  ;;  %v39_v50 = vld [vmem:[%s11091_s0 + $0xc0] sm:$0xff]  ;;  %v606_v51 = vsel %vm527_vm0, %v41_v48, 0.0  ;;  %v42_v56 = vld [vmem:[%s11091_s0 + $0xd8] sm:$0xff] }
   0xd   :  { %v603_v52 = vsel %vm527_vm0, %v40_v49, 0.0  ;;  %v600_v53 = vsel %vm527_vm0, %v39_v50, 0.0  ;;  %v44_v54 = vld [vmem:[%s11091_s0 + $0xe8] sm:$0xff]  ;;  %v43_v55 = vld [vmem:[%s11091_s0 + $0xe0] sm:$0xff]  ;;  %v609_v59 = vsel %vm527_vm0, %v42_v56, 0.0  ;;  %v46_v61 = vld [vmem:[%s11091_s0 + $0xf8] sm:$0xff] }
   0xe   :  { %v615_v57 = vsel %vm527_vm0, %v44_v54, 0.0  ;;  %v612_v58 = vsel %vm527_vm0, %v43_v55, 0.0  ;;  %v47_v60 = vld [vmem:[%s11091_s0 + $0x100] sm:$0xff]  ;;  %v45_v62 = vld [vmem:[%s11091_s0 + $0xf0] sm:$0xff]  ;;  %v621_v0 = vsel %vm527_vm0, %v46_v61, 0.0  ;;  %v50_v2 = vld [vmem:[%s11091_s0 + $0x118] sm:$0xff] }
   0xf   :  { %v624_v63 = vsel %vm527_vm0, %v47_v60, 0.0  ;;  %v618_v1 = vsel %vm527_vm0, %v45_v62, 0.0  ;;  %v49_v3 = vld [vmem:[%s11091_s0 + $0x110] sm:$0xff]  ;;  %v48_v4 = vld [vmem:[%s11091_s0 + $0x108] sm:$0xff]  ;;  %v633_v5 = vsel %vm527_vm0, %v50_v2, 0.0  ;;  %v51_v10 = vld [vmem:[%s11091_s0 + $0x120] sm:$0xff] }
  0x10   :  { %v630_v6 = vsel %vm527_vm0, %v49_v3, 0.0  ;;  %v627_v7 = vsel %vm527_vm0, %v48_v4, 0.0  ;;  %v53_v8 = vld [vmem:[%s11091_s0 + $0x130] sm:$0xff]  ;;  %v52_v9 = vld [vmem:[%s11091_s0 + $0x128] sm:$0xff]  ;;  %v636_v13 = vsel %vm527_vm0, %v51_v10, 0.0  ;;  %v59_v20 = vld [vmem:[%s11091_s0 + $0x160] sm:$0xff] }
  0x11   :  { %v642_v11 = vsel %vm527_vm0, %v53_v8, 0.0  ;;  %v639_v12 = vsel %vm527_vm0, %v52_v9, 0.0  ;;  %v56_v14 = vld [vmem:[%s11091_s0 + $0x148] sm:$0xff]  ;;  %v62_v26 = vld [vmem:[%s11091_s0 + $0x178] sm:$0xff]  ;;  %vm3619_vm3 = vcmask 261312   ;;  %vm3623_vm4 = vcmask 326912  }
  0x12   :  { %v60_v30 = vld [vmem:[%s11091_s0 + $0x168] sm:$0xff]  ;;  %v669_v32 = vsel %vm527_vm0, %v62_v26, 0.0  ;;  %v66_v48 = vld [vmem:[%s11091_s0 + $0x198] sm:$0xff]  ;;  %vm3627_vm5 = vcmask 392512   ;;  %vm3631_vm6 = vcmask 458112   ;;  %vm3635_vm7 = vcmask 523712  }
  0x13   :  { %553 = vadd.xlane.f32.xlu2 %v552_v15  ;;  %550 = vadd.xlane.f32.xlu1 %v549_v16  ;;  %v55_v15 = vld [vmem:[%s11091_s0 + $0x140] sm:$0xff]  ;;  %v54_v16 = vld [vmem:[%s11091_s0 + $0x138] sm:$0xff]  ;;  %v64_v36 = vld [vmem:[%s11091_s0 + $0x188] sm:$0xff]  ;;  %vm11098_vm8 = vcmask 589312   ;;  %vm11097_vm9 = vcmask 654912   ;;  %vm11096_vm10 = vcmask 720512  }
  0x14   :  { %547 = vadd.xlane.f32.xlu0 %v546_v17  ;;  %v651_v17 = vsel %vm527_vm0, %v56_v14, 0.0  ;;  %v648_v18 = vsel %vm527_vm0, %v55_v15, 0.0  ;;  %v645_v19 = vsel %vm527_vm0, %v54_v16, 0.0  ;;  %v675_v42 = vsel %vm527_vm0, %v64_v36, 0.0  ;;  %v68_v44 = vld [vmem:[%s11091_s0 + $0x1a8] sm:$0xff]  ;;  %v70_v54 = vld [vmem:[%s11091_s0 + $0x1b8] sm:$0xff] }
  0x15   :  { %v687_v50 = vsel %vm527_vm0, %v68_v44, 0.0  ;;  %v693_v60 = vsel %vm527_vm0, %v70_v54, 0.0  ;;  %v74_v62 = vld [vmem:[%s11091_s0 + $0x1d8] sm:$0xff]  ;;  %v72_v2 = vld [vmem:[%s11091_s0 + $0x1c8] sm:$0xff]  ;;  %vm3651_vm11 = vcmask 786112   ;;  %vm11095_vm12 = vcmask 851712  }
  0x16   :  { %v705_v4 = vsel %vm527_vm0, %v74_v62, 0.0  ;;  %v76_v8 = vld [vmem:[%s11091_s0 + $0x1e8] sm:$0xff]  ;;  %v82_v26 = vld [vmem:[%s11091_s0 + $0x218] sm:$0xff]  ;;  %vm3659_vm13 = vcmask 917312   ;;  %vm3663_vm14 = vcmask 982912   ;;  %vm3667_vm15 = vcmask 1048512  }
  0x17   :  { %v711_v14 = vsel %vm527_vm0, %v76_v8, 0.0  ;;  %v80_v16 = vld [vmem:[%s11091_s0 + $0x208] sm:$0xff] }
  0x18   :  { %v84_v44 = vld [vmem:[%s11091_s0 + $0x228] sm:$0xff] }
  0x1b   :  { %562 = vadd.xlane.f32.xlu2 %v561_v21  ;;  %559 = vadd.xlane.f32.xlu1 %v558_v22  ;;  %v58_v21 = vld [vmem:[%s11091_s0 + $0x158] sm:$0xff]  ;;  %v57_v22 = vld [vmem:[%s11091_s0 + $0x150] sm:$0xff] }
  0x1c   :  { %556 = vadd.xlane.f32.xlu0 %v555_v23  ;;  %v660_v23 = vsel %vm527_vm0, %v59_v20, 0.0  ;;  %v657_v24 = vsel %vm527_vm0, %v58_v21, 0.0  ;;  %v654_v25 = vsel %vm527_vm0, %v57_v22, 0.0  ;;  %v78_v20 = vld [vmem:[%s11091_s0 + $0x1f8] sm:$0xff]  ;;  %v723_v22 = vsel %vm527_vm0, %v80_v16, 0.0 }
  0x1d   :  { %v94_v16 = vld [vmem:[%s11091_s0 + $0x278] sm:$0xff] }
  0x23   :  { %571 = vadd.xlane.f32.xlu2 %v570_v27  ;;  %568 = vadd.xlane.f32.xlu1 %v567_v28  ;;  %v61_v27 = vld [vmem:[%s11091_s0 + $0x170] sm:$0xff] }
  0x24   :  { %565 = vadd.xlane.f32.xlu0 %v564_v29 }
  0x2b   :  { %580 = vadd.xlane.f32.xlu2 %v579_v33  ;;  %577 = vadd.xlane.f32.xlu1 %v576_v34  ;;  %v666_v33 = vsel %vm527_vm0, %v61_v27, 0.0  ;;  %v663_v34 = vsel %vm527_vm0, %v60_v30, 0.0 }
  0x2c   :  { %574 = vadd.xlane.f32.xlu0 %v573_v35  ;;  %v65_v35 = vld [vmem:[%s11091_s0 + $0x190] sm:$0xff] }
  0x33   :  { %589 = vadd.xlane.f32.xlu2 %v588_v39  ;;  %586 = vadd.xlane.f32.xlu1 %v585_v40  ;;  %v63_v39 = vld [vmem:[%s11091_s0 + $0x180] sm:$0xff] }
  0x34   :  { %583 = vadd.xlane.f32.xlu0 %v582_v41  ;;  %v678_v41 = vsel %vm527_vm0, %v65_v35, 0.0  ;;  %v672_v43 = vsel %vm527_vm0, %v63_v39, 0.0  ;;  %v729_v35 = vsel %vm527_vm0, %v82_v26, 0.0  ;;  %v86_v39 = vld [vmem:[%s11091_s0 + $0x238] sm:$0xff] }
  0x3b   :  { %598 = vadd.xlane.f32.xlu2 %v597_v45  ;;  %595 = vadd.xlane.f32.xlu1 %v594_v46  ;;  %v67_v45 = vld [vmem:[%s11091_s0 + $0x1a0] sm:$0xff] }
  0x3c   :  { %592 = vadd.xlane.f32.xlu0 %v591_v47 }
  0x43   :  { %607 = vadd.xlane.f32.xlu2 %v606_v51  ;;  %604 = vadd.xlane.f32.xlu1 %v603_v52  ;;  %v684_v51 = vsel %vm527_vm0, %v67_v45, 0.0  ;;  %v681_v52 = vsel %vm527_vm0, %v66_v48, 0.0  ;;  %v741_v48 = vsel %vm527_vm0, %v86_v39, 0.0  ;;  %v96_v39 = vld [vmem:[%s11091_s0 + $0x288] sm:$0xff] }
  0x44   :  { %601 = vadd.xlane.f32.xlu0 %v600_v53  ;;  %v71_v53 = vld [vmem:[%s11091_s0 + $0x1c0] sm:$0xff] }
  0x4b   :  { %616 = vadd.xlane.f32.xlu2 %v615_v57  ;;  %613 = vadd.xlane.f32.xlu1 %v612_v58  ;;  %v69_v57 = vld [vmem:[%s11091_s0 + $0x1b0] sm:$0xff] }
  0x4c   :  { %610 = vadd.xlane.f32.xlu0 %v609_v59  ;;  %v696_v59 = vsel %vm527_vm0, %v71_v53, 0.0  ;;  %v690_v61 = vsel %vm527_vm0, %v69_v57, 0.0  ;;  %v88_v53 = vld [vmem:[%s11091_s0 + $0x248] sm:$0xff] }
  0x4d   :  { %v747_v62 = vsel %vm527_vm0, %v88_v53, 0.0 }
  0x53   :  { %625 = vadd.xlane.f32.xlu2 %v624_v63  ;;  %622 = vadd.xlane.f32.xlu1 %v621_v0  ;;  %v73_v63 = vld [vmem:[%s11091_s0 + $0x1d0] sm:$0xff] }
  0x54   :  { %619 = vadd.xlane.f32.xlu0 %v618_v1 }
  0x5b   :  { %634 = vadd.xlane.f32.xlu2 %v633_v5  ;;  %631 = vadd.xlane.f32.xlu1 %v630_v6  ;;  %v702_v5 = vsel %vm527_vm0, %v73_v63, 0.0  ;;  %v699_v6 = vsel %vm527_vm0, %v72_v2, 0.0  ;;  %v92_v2 = vld [vmem:[%s11091_s0 + $0x268] sm:$0xff] }
  0x5c   :  { %628 = vadd.xlane.f32.xlu0 %v627_v7  ;;  %v77_v7 = vld [vmem:[%s11091_s0 + $0x1f0] sm:$0xff] }
  0x63   :  { %643 = vadd.xlane.f32.xlu2 %v642_v11  ;;  %640 = vadd.xlane.f32.xlu1 %v639_v12  ;;  %v75_v11 = vld [vmem:[%s11091_s0 + $0x1e0] sm:$0xff] }
  0x64   :  { %637 = vadd.xlane.f32.xlu0 %v636_v13  ;;  %v714_v13 = vsel %vm527_vm0, %v77_v7, 0.0  ;;  %v708_v15 = vsel %vm527_vm0, %v75_v11, 0.0  ;;  %v90_v7 = vld [vmem:[%s11091_s0 + $0x258] sm:$0xff]  ;;  %v759_v11 = vsel %vm527_vm0, %v92_v2, 0.0 }
  0x6b   :  { %652 = vadd.xlane.f32.xlu2 %v651_v17  ;;  %649 = vadd.xlane.f32.xlu1 %v648_v18  ;;  %v79_v17 = vld [vmem:[%s11091_s0 + $0x200] sm:$0xff] }
  0x6c   :  { %646 = vadd.xlane.f32.xlu0 %v645_v19 }
  0x73   :  { %661 = vadd.xlane.f32.xlu2 %v660_v23  ;;  %658 = vadd.xlane.f32.xlu1 %v657_v24  ;;  %v720_v23 = vsel %vm527_vm0, %v79_v17, 0.0  ;;  %v717_v24 = vsel %vm527_vm0, %v78_v20, 0.0 }
  0x74   :  { %655 = vadd.xlane.f32.xlu0 %v654_v25  ;;  %v83_v25 = vld [vmem:[%s11091_s0 + $0x220] sm:$0xff] }
  0x76   :  { %v5560_v28 = vpop.xlane.xlu2 %541  ;;  %v5562_v29 = vpop.xlane.xlu1 %535 }
  0x77   :  { %v5567_v31 = vpop.xlane.xlu0 %529 }
  0x7b   :  { %670 = vadd.xlane.f32.xlu2 %v669_v32  ;;  %667 = vadd.xlane.f32.xlu1 %v666_v33  ;;  %v81_v32 = vld [vmem:[%s11091_s0 + $0x210] sm:$0xff] }
  0x7c   :  { %664 = vadd.xlane.f32.xlu0 %v663_v34  ;;  %v732_v34 = vsel %vm527_vm0, %v83_v25, 0.0  ;;  %v726_v36 = vsel %vm527_vm0, %v81_v32, 0.0  ;;  %v765_v25 = vsel %vm527_vm0, %v94_v16, 0.0  ;;  %v98_v32 = vld [vmem:[%s11091_s0 + $0x298] sm:$0xff] }
  0x7e   :  { %v5578_v37 = vpop.xlane.xlu2 %544  ;;  %v5580_v38 = vpop.xlane.xlu1 %538 }
  0x7f   :  { %v5585_v40 = vpop.xlane.xlu0 %532 }
  0x83   :  { %679 = vadd.xlane.f32.xlu2 %v678_v41  ;;  %676 = vadd.xlane.f32.xlu1 %v675_v42  ;;  %v85_v41 = vld [vmem:[%s11091_s0 + $0x230] sm:$0xff] }
  0x84   :  { %673 = vadd.xlane.f32.xlu0 %v672_v43 }
  0x86   :  { %v5596_v46 = vpop.xlane.xlu2 %553  ;;  %v5598_v47 = vpop.xlane.xlu1 %550 }
  0x87   :  { %v5603_v49 = vpop.xlane.xlu0 %547 }
  0x8b   :  { %688 = vadd.xlane.f32.xlu2 %v687_v50  ;;  %685 = vadd.xlane.f32.xlu1 %v684_v51  ;;  %v738_v50 = vsel %vm527_vm0, %v85_v41, 0.0  ;;  %v735_v51 = vsel %vm527_vm0, %v84_v44, 0.0  ;;  %v777_v44 = vsel %vm527_vm0, %v98_v32, 0.0  ;;  %v106_v32 = vld [vmem:[%s11091_s0 + $0x2d8] sm:$0xff] }
  0x8c   :  { %682 = vadd.xlane.f32.xlu0 %v681_v52  ;;  %v89_v52 = vld [vmem:[%s11091_s0 + $0x250] sm:$0xff] }
  0x8e   :  { %v5614_v55 = vpop.xlane.xlu2 %562  ;;  %v5616_v56 = vpop.xlane.xlu1 %559 }
  0x8f   :  { %v5621_v58 = vpop.xlane.xlu0 %556 }
  0x93   :  { %697 = vadd.xlane.f32.xlu2 %v696_v59  ;;  %694 = vadd.xlane.f32.xlu1 %v693_v60  ;;  %v87_v59 = vld [vmem:[%s11091_s0 + $0x240] sm:$0xff] }
  0x94   :  { %691 = vadd.xlane.f32.xlu0 %v690_v61  ;;  %v750_v61 = vsel %vm527_vm0, %v89_v52, 0.0  ;;  %v744_v63 = vsel %vm527_vm0, %v87_v59, 0.0  ;;  %v100_v52 = vld [vmem:[%s11091_s0 + $0x2a8] sm:$0xff] }
  0x95   :  { %v783_v2 = vsel %vm527_vm0, %v100_v52, 0.0 }
  0x96   :  { %v5632_v0 = vpop.xlane.xlu2 %571  ;;  %v5634_v1 = vpop.xlane.xlu1 %568 }
  0x97   :  { %v5639_v3 = vpop.xlane.xlu0 %565 }
  0x9b   :  { %706 = vadd.xlane.f32.xlu2 %v705_v4  ;;  %703 = vadd.xlane.f32.xlu1 %v702_v5  ;;  %v91_v4 = vld [vmem:[%s11091_s0 + $0x260] sm:$0xff] }
  0x9c   :  { %700 = vadd.xlane.f32.xlu0 %v699_v6 }
  0x9e   :  { %v5650_v9 = vpop.xlane.xlu2 %580  ;;  %v5652_v10 = vpop.xlane.xlu1 %577 }
  0x9f   :  { %v5657_v12 = vpop.xlane.xlu0 %574 }
  0xa3   :  { %715 = vadd.xlane.f32.xlu2 %v714_v13  ;;  %712 = vadd.xlane.f32.xlu1 %v711_v14  ;;  %v756_v13 = vsel %vm527_vm0, %v91_v4, 0.0  ;;  %v753_v14 = vsel %vm527_vm0, %v90_v7, 0.0  ;;  %v104_v7 = vld [vmem:[%s11091_s0 + $0x2c8] sm:$0xff] }
  0xa4   :  { %709 = vadd.xlane.f32.xlu0 %v708_v15  ;;  %v95_v15 = vld [vmem:[%s11091_s0 + $0x280] sm:$0xff] }
  0xa6   :  { %v5668_v18 = vpop.xlane.xlu2 %589  ;;  %v5670_v19 = vpop.xlane.xlu1 %586 }
  0xa7   :  { %v5675_v21 = vpop.xlane.xlu0 %583 }
  0xab   :  { %724 = vadd.xlane.f32.xlu2 %v723_v22  ;;  %721 = vadd.xlane.f32.xlu1 %v720_v23  ;;  %v93_v22 = vld [vmem:[%s11091_s0 + $0x270] sm:$0xff] }
  0xac   :  { %718 = vadd.xlane.f32.xlu0 %v717_v24  ;;  %v768_v24 = vsel %vm527_vm0, %v95_v15, 0.0  ;;  %v762_v26 = vsel %vm527_vm0, %v93_v22, 0.0  ;;  %v102_v15 = vld [vmem:[%s11091_s0 + $0x2b8] sm:$0xff]  ;;  %v795_v22 = vsel %vm527_vm0, %v104_v7, 0.0  ;;  %v108_v7 = vld [vmem:[%s11091_s0 + $0x2e8] sm:$0xff] }
  0xae   :  { %v5686_v27 = vpop.xlane.xlu2 %598  ;;  %v5688_v30 = vpop.xlane.xlu1 %595 }
  0xaf   :  { %v5693_v33 = vpop.xlane.xlu0 %592 }
  0xb3   :  { %733 = vadd.xlane.f32.xlu2 %v732_v34  ;;  %730 = vadd.xlane.f32.xlu1 %v729_v35  ;;  %v97_v34 = vld [vmem:[%s11091_s0 + $0x290] sm:$0xff] }
  0xb4   :  { %727 = vadd.xlane.f32.xlu0 %v726_v36 }
  0xb6   :  { %v5704_v42 = vpop.xlane.xlu2 %607  ;;  %v5706_v43 = vpop.xlane.xlu1 %604 }
  0xb7   :  { %v5711_v45 = vpop.xlane.xlu0 %601 }
  0xbb   :  { %742 = vadd.xlane.f32.xlu2 %v741_v48  ;;  %739 = vadd.xlane.f32.xlu1 %v738_v50  ;;  %v774_v48 = vsel %vm527_vm0, %v97_v34, 0.0  ;;  %v771_v50 = vsel %vm527_vm0, %v96_v39, 0.0 }
  0xbc   :  { %736 = vadd.xlane.f32.xlu0 %v735_v51  ;;  %v101_v51 = vld [vmem:[%s11091_s0 + $0x2b0] sm:$0xff] }
  0xbe   :  { %v5722_v54 = vpop.xlane.xlu2 %616  ;;  %v5724_v57 = vpop.xlane.xlu1 %613 }
  0xbf   :  { %v5729_v60 = vpop.xlane.xlu0 %610 }
  0xc3   :  { %751 = vadd.xlane.f32.xlu2 %v750_v61  ;;  %748 = vadd.xlane.f32.xlu1 %v747_v62  ;;  %v99_v61 = vld [vmem:[%s11091_s0 + $0x2a0] sm:$0xff] }
  0xc4   :  { %745 = vadd.xlane.f32.xlu0 %v744_v63  ;;  %v786_v63 = vsel %vm527_vm0, %v101_v51, 0.0  ;;  %v780_v4 = vsel %vm527_vm0, %v99_v61, 0.0  ;;  %v801_v51 = vsel %vm527_vm0, %v106_v32, 0.0  ;;  %v110_v61 = vld [vmem:[%s11091_s0 + $0x2f8] sm:$0xff] }
  0xc6   :  { %v5740_v5 = vpop.xlane.xlu2 %625  ;;  %v5742_v6 = vpop.xlane.xlu1 %622 }
  0xc7   :  { %v5747_v8 = vpop.xlane.xlu0 %619 }
  0xcb   :  { %760 = vadd.xlane.f32.xlu2 %v759_v11  ;;  %757 = vadd.xlane.f32.xlu1 %v756_v13  ;;  %v103_v11 = vld [vmem:[%s11091_s0 + $0x2c0] sm:$0xff] }
  0xcc   :  { %754 = vadd.xlane.f32.xlu0 %v753_v14 }
  0xce   :  { %v5758_v17 = vpop.xlane.xlu2 %634  ;;  %v5760_v20 = vpop.xlane.xlu1 %631 }
  0xcf   :  { %v5765_v23 = vpop.xlane.xlu0 %628 }
  0xd3   :  { %769 = vadd.xlane.f32.xlu2 %v768_v24  ;;  %766 = vadd.xlane.f32.xlu1 %v765_v25  ;;  %v792_v24 = vsel %vm527_vm0, %v103_v11, 0.0  ;;  %v789_v25 = vsel %vm527_vm0, %v102_v15, 0.0  ;;  %v813_v15 = vsel %vm527_vm0, %v110_v61, 0.0 }
  0xd4   :  { %763 = vadd.xlane.f32.xlu0 %v762_v26  ;;  %v107_v26 = vld [vmem:[%s11091_s0 + $0x2e0] sm:$0xff] }
  0xd6   :  { %v5776_v35 = vpop.xlane.xlu2 %643  ;;  %v5778_v36 = vpop.xlane.xlu1 %640 }
  0xd7   :  { %11108 = vst [vmem:[#allocation5_spill] sm:$0xff] %v5776_v35  ;;  %v5783_v41 = vpop.xlane.xlu0 %637 }
  0xdb   :  { %778 = vadd.xlane.f32.xlu2 %v777_v44  ;;  %775 = vadd.xlane.f32.xlu1 %v774_v48  ;;  %v105_v44 = vld [vmem:[%s11091_s0 + $0x2d0] sm:$0xff] }
  0xdc   :  { %772 = vadd.xlane.f32.xlu0 %v771_v50  ;;  %v804_v50 = vsel %vm527_vm0, %v107_v26, 0.0  ;;  %v798_v52 = vsel %vm527_vm0, %v105_v44, 0.0  ;;  %v112_v26 = vld [vmem:[%s11091_s0 + $0x308] sm:$0xff] }
  0xdd   :  { %v819_v61 = vsel %vm527_vm0, %v112_v26, 0.0 }
  0xde   :  { %v5794_v53 = vpop.xlane.xlu2 %652  ;;  %v5796_v59 = vpop.xlane.xlu1 %649 }
  0xdf   :  { %11109 = vst [vmem:[#allocation6_spill] sm:$0xff] %v5794_v53  ;;  %v5801_v62 = vpop.xlane.xlu0 %646 }
  0xe0   :  { %11110 = vst [vmem:[#allocation7_spill] sm:$0xff] %v5796_v59 }
  0xe1   :  { %11111 = vst [vmem:[#allocation8_spill] sm:$0xff] %v5801_v62 }
  0xe3   :  { %787 = vadd.xlane.f32.xlu2 %v786_v63  ;;  %784 = vadd.xlane.f32.xlu1 %v783_v2  ;;  %v109_v63 = vld [vmem:[%s11091_s0 + $0x2f0] sm:$0xff] }
  0xe4   :  { %781 = vadd.xlane.f32.xlu0 %v780_v4 }
  0xe6   :  { %v5812_v13 = vpop.xlane.xlu2 %661  ;;  %v5814_v14 = vpop.xlane.xlu1 %658 }
  0xe7   :  { %11112 = vst [vmem:[#allocation9_spill] sm:$0xff] %v5812_v13  ;;  %v5819_v16 = vpop.xlane.xlu0 %655 }
  0xe8   :  { %11113 = vst [vmem:[#allocation10_spill] sm:$0xff] %v5814_v14 }
  0xe9   :  { %11114 = vst [vmem:[#allocation11_spill] sm:$0xff] %v5819_v16  ;;  %v2070_v16 = vmul.f32 0.0625, %v5603_v49 }
  0xeb   :  { %796 = vadd.xlane.f32.xlu2 %v795_v22  ;;  %793 = vadd.xlane.f32.xlu1 %v792_v24  ;;  %v810_v22 = vsel %vm527_vm0, %v109_v63, 0.0  ;;  %v807_v24 = vsel %vm527_vm0, %v108_v7, 0.0  ;;  %v116_v7 = vld [vmem:[%s11091_s0 + $0x328] sm:$0xff] }
  0xec   :  { %790 = vadd.xlane.f32.xlu0 %v789_v25  ;;  %v113_v25 = vld [vmem:[%s11091_s0 + $0x310] sm:$0xff] }
  0xee   :  { %v5830_v34 = vpop.xlane.xlu2 %670  ;;  %v5832_v39 = vpop.xlane.xlu1 %667 }
  0xef   :  { %11115 = vst [vmem:[#allocation12_spill] sm:$0xff] %v5830_v34  ;;  %v5837_v48 = vpop.xlane.xlu0 %664  ;;  %v2066_v34 = vmul.f32 0.0625, %v5562_v29  ;;  %v2578_v29 = vld [vmem:[%s11092_s1 + $0x10] sm:$0xff] }
  0xf0   :  { %11116 = vst [vmem:[#allocation13_spill] sm:$0xff] %v5832_v39 }
  0xf1   :  { %11117 = vst [vmem:[#allocation14_spill] sm:$0xff] %v5837_v48 }
  0xf3   :  { %805 = vadd.xlane.f32.xlu2 %v804_v50  ;;  %802 = vadd.xlane.f32.xlu1 %v801_v51  ;;  %v111_v50 = vld [vmem:[%s11091_s0 + $0x300] sm:$0xff] }
  0xf4   :  { %799 = vadd.xlane.f32.xlu0 %v798_v52  ;;  %v822_v52 = vsel %vm527_vm0, %v113_v25, 0.0  ;;  %v816_v63 = vsel %vm527_vm0, %v111_v50, 0.0  ;;  %v114_v25 = vld [vmem:[%s11091_s0 + $0x318] sm:$0xff]  ;;  %v831_v50 = vsel %vm527_vm0, %v116_v7, 0.0  ;;  %v117_v7 = vld [vmem:[%s11091_s0 + $0x330] sm:$0xff] }
  0xf6   :  { %v5848_v2 = vpop.xlane.xlu2 %679  ;;  %v5850_v4 = vpop.xlane.xlu1 %676 }
  0xf7   :  { %11118 = vst [vmem:[#allocation15_spill] sm:$0xff] %v5848_v2  ;;  %v5855_v11 = vpop.xlane.xlu0 %673  ;;  %v2588_v2 = vld [vmem:[%s11092_s1 + $0x60] sm:$0xff] }
  0xf8   :  { %11119 = vst [vmem:[#allocation16_spill] sm:$0xff] %v5850_v4  ;;  %v2582_v4 = vld [vmem:[%s11092_s1 + $0x30] sm:$0xff] }
  0xf9   :  { %11120 = vst [vmem:[#allocation17_spill] sm:$0xff] %v5855_v11 }
  0xfb   :  { %814 = vadd.xlane.f32.xlu2 %v813_v15  ;;  %811 = vadd.xlane.f32.xlu1 %v810_v22  ;;  %v115_v15 = vld [vmem:[%s11091_s0 + $0x320] sm:$0xff] }
  0xfc   :  { %808 = vadd.xlane.f32.xlu0 %v807_v24 }
  0xfe   :  { %v5866_v32 = vpop.xlane.xlu2 %688  ;;  %v5868_v44 = vpop.xlane.xlu1 %685 }
  0xff   :  { %11121 = vst [vmem:[#allocation18_spill] sm:$0xff] %v5866_v32  ;;  %v5873_v51 = vpop.xlane.xlu0 %682 }
 0x100   :  { %11122 = vst [vmem:[#allocation19_spill] sm:$0xff] %v5868_v44 }
 0x101   :  { %11123 = vst [vmem:[#allocation20_spill] sm:$0xff] %v5873_v51 }
 0x103   :  { %823 = vadd.xlane.f32.xlu2 %v822_v52  ;;  %820 = vadd.xlane.f32.xlu1 %v819_v61  ;;  %v828_v52 = vsel %vm527_vm0, %v115_v15, 0.0  ;;  %v825_v61 = vsel %vm527_vm0, %v114_v25, 0.0 }
 0x104   :  { %817 = vadd.xlane.f32.xlu0 %v816_v63  ;;  %v119_v63 = vld [vmem:[%s11091_s0 + $0x340] sm:$0xff] }
 0x105   :  { %v840_v25 = vsel %vm527_vm0, %v119_v63, 0.0 }
 0x106   :  { %v5884_v22 = vpop.xlane.xlu2 %697  ;;  %v5886_v24 = vpop.xlane.xlu1 %694 }
 0x107   :  { %11124 = vst [vmem:[#allocation21_spill] sm:$0xff] %v5884_v22  ;;  %v5891_v26 = vpop.xlane.xlu0 %691  ;;  %v118_v22 = vld [vmem:[%s11091_s0 + $0x338] sm:$0xff] }
 0x108   :  { %11125 = vst [vmem:[#allocation22_spill] sm:$0xff] %v5886_v24 }
 0x109   :  { %11126 = vst [vmem:[#allocation23_spill] sm:$0xff] %v5891_v26 }
 0x10b   :  { %832 = vadd.xlane.f32.xlu2 %v831_v50  ;;  %829 = vadd.xlane.f32.xlu1 %v828_v52  ;;  %v837_v50 = vsel %vm527_vm0, %v118_v22, 0.0  ;;  %v834_v52 = vsel %vm527_vm0, %v117_v7, 0.0  ;;  %v120_v22 = vld [vmem:[%s11091_s0 + $0x348] sm:$0xff] }
 0x10c   :  { %826 = vadd.xlane.f32.xlu0 %v825_v61  ;;  %v122_v61 = vld [vmem:[%s11091_s0 + $0x358] sm:$0xff] }
 0x10d   :  { %v849_v7 = vsel %vm527_vm0, %v122_v61, 0.0 }
 0x10e   :  { %v5902_v24 = vpop.xlane.xlu2 %706  ;;  %v5904_v26 = vpop.xlane.xlu1 %703 }
 0x10f   :  { %11127 = vst [vmem:[#allocation24_spill] sm:$0xff] %v5902_v24  ;;  %v5909_v15 = vpop.xlane.xlu0 %700  ;;  %v121_v24 = vld [vmem:[%s11091_s0 + $0x350] sm:$0xff] }
 0x110   :  { %11128 = vst [vmem:[#allocation25_spill] sm:$0xff] %v5904_v26 }
 0x111   :  { %11129 = vst [vmem:[#allocation26_spill] sm:$0xff] %v5909_v15 }
 0x113   :  { %841 = vadd.xlane.f32.xlu2 %v840_v25  ;;  %838 = vadd.xlane.f32.xlu1 %v837_v50  ;;  %v846_v25 = vsel %vm527_vm0, %v121_v24, 0.0  ;;  %v843_v50 = vsel %vm527_vm0, %v120_v22, 0.0  ;;  %v123_v24 = vld [vmem:[%s11091_s0 + $0x360] sm:$0xff] }
 0x114   :  { %835 = vadd.xlane.f32.xlu0 %v834_v52  ;;  %v125_v52 = vld [vmem:[%s11091_s0 + $0x370] sm:$0xff] }
 0x115   :  { %v858_v22 = vsel %vm527_vm0, %v125_v52, 0.0 }
 0x116   :  { %v5920_v26 = vpop.xlane.xlu2 %715  ;;  %v5922_v15 = vpop.xlane.xlu1 %712 }
 0x117   :  { %11130 = vst [vmem:[#allocation27_spill] sm:$0xff] %v5920_v26  ;;  %v5927_v63 = vpop.xlane.xlu0 %709  ;;  %v124_v26 = vld [vmem:[%s11091_s0 + $0x368] sm:$0xff] }
 0x118   :  { %11131 = vst [vmem:[#allocation28_spill] sm:$0xff] %v5922_v15 }
 0x119   :  { %11132 = vst [vmem:[#allocation29_spill] sm:$0xff] %v5927_v63 }
 0x11b   :  { %850 = vadd.xlane.f32.xlu2 %v849_v7  ;;  %847 = vadd.xlane.f32.xlu1 %v846_v25  ;;  %v855_v7 = vsel %vm527_vm0, %v124_v26, 0.0  ;;  %v852_v25 = vsel %vm527_vm0, %v123_v24, 0.0  ;;  %v126_v26 = vld [vmem:[%s11091_s0 + $0x378] sm:$0xff] }
 0x11c   :  { %844 = vadd.xlane.f32.xlu0 %v843_v50  ;;  %v128_v50 = vld [vmem:[%s11091_s0 + $0x388] sm:$0xff] }
 0x11d   :  { %v867_v24 = vsel %vm527_vm0, %v128_v50, 0.0 }
 0x11e   :  { %v5938_v15 = vpop.xlane.xlu2 %724  ;;  %v5940_v63 = vpop.xlane.xlu1 %721 }
 0x11f   :  { %11133 = vst [vmem:[#allocation30_spill] sm:$0xff] %v5938_v15  ;;  %v5945_v61 = vpop.xlane.xlu0 %718 }
 0x120   :  { %11134 = vst [vmem:[#allocation31_spill] sm:$0xff] %v5940_v63  ;;  %v127_v63 = vld [vmem:[%s11091_s0 + $0x380] sm:$0xff] }
 0x121   :  { %11135 = vst [vmem:[#allocation32_spill] sm:$0xff] %v5945_v61 }
 0x123   :  { %859 = vadd.xlane.f32.xlu2 %v858_v22  ;;  %856 = vadd.xlane.f32.xlu1 %v855_v7  ;;  %v864_v22 = vsel %vm527_vm0, %v127_v63, 0.0  ;;  %v861_v7 = vsel %vm527_vm0, %v126_v26, 0.0  ;;  %v129_v63 = vld [vmem:[%s11091_s0 + $0x390] sm:$0xff] }
 0x124   :  { %853 = vadd.xlane.f32.xlu0 %v852_v25  ;;  %v131_v25 = vld [vmem:[%s11091_s0 + $0x3a0] sm:$0xff] }
 0x125   :  { %v876_v26 = vsel %vm527_vm0, %v131_v25, 0.0 }
 0x126   :  { %v5956_v15 = vpop.xlane.xlu2 %733  ;;  %v5958_v61 = vpop.xlane.xlu1 %730 }
 0x127   :  { %11136 = vst [vmem:[#allocation33_spill] sm:$0xff] %v5956_v15  ;;  %v5963_v52 = vpop.xlane.xlu0 %727  ;;  %v130_v15 = vld [vmem:[%s11091_s0 + $0x398] sm:$0xff] }
 0x128   :  { %11137 = vst [vmem:[#allocation34_spill] sm:$0xff] %v5958_v61 }
 0x129   :  { %11138 = vst [vmem:[#allocation35_spill] sm:$0xff] %v5963_v52 }
 0x12b   :  { %868 = vadd.xlane.f32.xlu2 %v867_v24  ;;  %865 = vadd.xlane.f32.xlu1 %v864_v22  ;;  %v873_v24 = vsel %vm527_vm0, %v130_v15, 0.0  ;;  %v870_v22 = vsel %vm527_vm0, %v129_v63, 0.0  ;;  %v132_v15 = vld [vmem:[%s11091_s0 + $0x3a8] sm:$0xff] }
 0x12c   :  { %862 = vadd.xlane.f32.xlu0 %v861_v7  ;;  %v134_v7 = vld [vmem:[%s11091_s0 + $0x3b8] sm:$0xff] }
 0x12d   :  { %v885_v63 = vsel %vm527_vm0, %v134_v7, 0.0 }
 0x12e   :  { %v5974_v61 = vpop.xlane.xlu2 %742  ;;  %v5976_v52 = vpop.xlane.xlu1 %739 }
 0x12f   :  { %11139 = vst [vmem:[#allocation36_spill] sm:$0xff] %v5974_v61  ;;  %v5981_v50 = vpop.xlane.xlu0 %736  ;;  %v133_v61 = vld [vmem:[%s11091_s0 + $0x3b0] sm:$0xff] }
 0x130   :  { %11140 = vst [vmem:[#allocation37_spill] sm:$0xff] %v5976_v52 }
 0x131   :  { %11141 = vst [vmem:[#allocation38_spill] sm:$0xff] %v5981_v50 }
 0x133   :  { %877 = vadd.xlane.f32.xlu2 %v876_v26  ;;  %874 = vadd.xlane.f32.xlu1 %v873_v24  ;;  %v882_v26 = vsel %vm527_vm0, %v133_v61, 0.0  ;;  %v879_v24 = vsel %vm527_vm0, %v132_v15, 0.0  ;;  %v135_v61 = vld [vmem:[%s11091_s0 + $0x3c0] sm:$0xff] }
 0x134   :  { %871 = vadd.xlane.f32.xlu0 %v870_v22  ;;  %v137_v22 = vld [vmem:[%s11091_s0 + $0x3d0] sm:$0xff] }
 0x135   :  { %v894_v15 = vsel %vm527_vm0, %v137_v22, 0.0 }
 0x136   :  { %v5992_v52 = vpop.xlane.xlu2 %751  ;;  %v5994_v50 = vpop.xlane.xlu1 %748 }
 0x137   :  { %11142 = vst [vmem:[#allocation39_spill] sm:$0xff] %v5992_v52  ;;  %v5999_v25 = vpop.xlane.xlu0 %745  ;;  %v136_v52 = vld [vmem:[%s11091_s0 + $0x3c8] sm:$0xff] }
 0x138   :  { %11143 = vst [vmem:[#allocation40_spill] sm:$0xff] %v5994_v50 }
 0x139   :  { %11144 = vst [vmem:[#allocation41_spill] sm:$0xff] %v5999_v25 }
 0x13b   :  { %886 = vadd.xlane.f32.xlu2 %v885_v63  ;;  %883 = vadd.xlane.f32.xlu1 %v882_v26  ;;  %v891_v63 = vsel %vm527_vm0, %v136_v52, 0.0  ;;  %v888_v26 = vsel %vm527_vm0, %v135_v61, 0.0  ;;  %v138_v52 = vld [vmem:[%s11091_s0 + $0x3d8] sm:$0xff] }
 0x13c   :  { %880 = vadd.xlane.f32.xlu0 %v879_v24  ;;  %v140_v24 = vld [vmem:[%s11091_s0 + $0x3e8] sm:$0xff] }
 0x13d   :  { %v903_v61 = vsel %vm527_vm0, %v140_v24, 0.0 }
 0x13e   :  { %v6010_v50 = vpop.xlane.xlu2 %760  ;;  %v6012_v25 = vpop.xlane.xlu1 %757 }
 0x13f   :  { %11145 = vst [vmem:[#allocation42_spill] sm:$0xff] %v6010_v50  ;;  %v6017_v7 = vpop.xlane.xlu0 %754  ;;  %v139_v50 = vld [vmem:[%s11091_s0 + $0x3e0] sm:$0xff] }
 0x140   :  { %11146 = vst [vmem:[#allocation43_spill] sm:$0xff] %v6012_v25 }
 0x141   :  { %11147 = vst [vmem:[#allocation44_spill] sm:$0xff] %v6017_v7 }
 0x143   :  { %895 = vadd.xlane.f32.xlu2 %v894_v15  ;;  %892 = vadd.xlane.f32.xlu1 %v891_v63  ;;  %v900_v15 = vsel %vm527_vm0, %v139_v50, 0.0  ;;  %v897_v63 = vsel %vm527_vm0, %v138_v52, 0.0  ;;  %v141_v50 = vld [vmem:[%s11091_s0 + $0x3f0] sm:$0xff] }
 0x144   :  { %889 = vadd.xlane.f32.xlu0 %v888_v26  ;;  %v143_v26 = vld [vmem:[%s11091_s0 + $0x400] sm:$0xff] }
 0x145   :  { %v912_v52 = vsel %vm527_vm0, %v143_v26, 0.0 }
 0x146   :  { %v6028_v25 = vpop.xlane.xlu2 %769  ;;  %v6030_v7 = vpop.xlane.xlu1 %766 }
 0x147   :  { %11148 = vst [vmem:[#allocation45_spill] sm:$0xff] %v6028_v25  ;;  %v6035_v22 = vpop.xlane.xlu0 %763  ;;  %v142_v25 = vld [vmem:[%s11091_s0 + $0x3f8] sm:$0xff] }
 0x148   :  { %11149 = vst [vmem:[#allocation46_spill] sm:$0xff] %v6030_v7 }
 0x149   :  { %11150 = vst [vmem:[#allocation47_spill] sm:$0xff] %v6035_v22 }
 0x14b   :  { %904 = vadd.xlane.f32.xlu2 %v903_v61  ;;  %901 = vadd.xlane.f32.xlu1 %v900_v15  ;;  %v909_v61 = vsel %vm527_vm0, %v142_v25, 0.0  ;;  %v906_v15 = vsel %vm527_vm0, %v141_v50, 0.0  ;;  %v144_v25 = vld [vmem:[%s11091_s0 + $0x408] sm:$0xff] }
 0x14c   :  { %898 = vadd.xlane.f32.xlu0 %v897_v63  ;;  %v146_v63 = vld [vmem:[%s11091_s0 + $0x418] sm:$0xff] }
 0x14d   :  { %v921_v50 = vsel %vm527_vm0, %v146_v63, 0.0 }
 0x14e   :  { %v6046_v7 = vpop.xlane.xlu2 %778  ;;  %v6048_v22 = vpop.xlane.xlu1 %775 }
 0x14f   :  { %11151 = vst [vmem:[#allocation48_spill] sm:$0xff] %v6046_v7  ;;  %v6053_v24 = vpop.xlane.xlu0 %772  ;;  %v145_v7 = vld [vmem:[%s11091_s0 + $0x410] sm:$0xff] }
 0x150   :  { %11152 = vst [vmem:[#allocation49_spill] sm:$0xff] %v6048_v22 }
 0x151   :  { %11153 = vst [vmem:[#allocation50_spill] sm:$0xff] %v6053_v24 }
 0x153   :  { %913 = vadd.xlane.f32.xlu2 %v912_v52  ;;  %910 = vadd.xlane.f32.xlu1 %v909_v61  ;;  %v918_v52 = vsel %vm527_vm0, %v145_v7, 0.0  ;;  %v915_v61 = vsel %vm527_vm0, %v144_v25, 0.0  ;;  %v147_v7 = vld [vmem:[%s11091_s0 + $0x420] sm:$0xff] }
 0x154   :  { %907 = vadd.xlane.f32.xlu0 %v906_v15  ;;  %v149_v15 = vld [vmem:[%s11091_s0 + $0x430] sm:$0xff] }
 0x155   :  { %v930_v25 = vsel %vm527_vm0, %v149_v15, 0.0 }
 0x156   :  { %v6064_v22 = vpop.xlane.xlu2 %787  ;;  %v6066_v24 = vpop.xlane.xlu1 %784 }
 0x157   :  { %11154 = vst [vmem:[#allocation51_spill] sm:$0xff] %v6064_v22  ;;  %v6071_v26 = vpop.xlane.xlu0 %781  ;;  %v148_v22 = vld [vmem:[%s11091_s0 + $0x428] sm:$0xff] }
 0x158   :  { %11155 = vst [vmem:[#allocation52_spill] sm:$0xff] %v6066_v24 }
 0x159   :  { %11156 = vst [vmem:[#allocation53_spill] sm:$0xff] %v6071_v26 }
 0x15b   :  { %922 = vadd.xlane.f32.xlu2 %v921_v50  ;;  %919 = vadd.xlane.f32.xlu1 %v918_v52  ;;  %v927_v50 = vsel %vm527_vm0, %v148_v22, 0.0  ;;  %v924_v52 = vsel %vm527_vm0, %v147_v7, 0.0  ;;  %v150_v22 = vld [vmem:[%s11091_s0 + $0x438] sm:$0xff] }
 0x15c   :  { %916 = vadd.xlane.f32.xlu0 %v915_v61  ;;  %v152_v61 = vld [vmem:[%s11091_s0 + $0x448] sm:$0xff] }
 0x15d   :  { %v939_v7 = vsel %vm527_vm0, %v152_v61, 0.0 }
 0x15e   :  { %v6082_v24 = vpop.xlane.xlu2 %796  ;;  %v6084_v26 = vpop.xlane.xlu1 %793 }
 0x15f   :  { %11157 = vst [vmem:[#allocation54_spill] sm:$0xff] %v6082_v24  ;;  %v6089_v63 = vpop.xlane.xlu0 %790  ;;  %v151_v24 = vld [vmem:[%s11091_s0 + $0x440] sm:$0xff] }
 0x160   :  { %11158 = vst [vmem:[#allocation55_spill] sm:$0xff] %v6084_v26 }
 0x161   :  { %11159 = vst [vmem:[#allocation56_spill] sm:$0xff] %v6089_v63 }
 0x163   :  { %931 = vadd.xlane.f32.xlu2 %v930_v25  ;;  %928 = vadd.xlane.f32.xlu1 %v927_v50  ;;  %v936_v25 = vsel %vm527_vm0, %v151_v24, 0.0  ;;  %v933_v50 = vsel %vm527_vm0, %v150_v22, 0.0  ;;  %v153_v24 = vld [vmem:[%s11091_s0 + $0x450] sm:$0xff] }
 0x164   :  { %925 = vadd.xlane.f32.xlu0 %v924_v52  ;;  %v155_v52 = vld [vmem:[%s11091_s0 + $0x460] sm:$0xff] }
 0x165   :  { %v948_v22 = vsel %vm527_vm0, %v155_v52, 0.0 }
 0x166   :  { %v6100_v26 = vpop.xlane.xlu2 %805  ;;  %v6102_v63 = vpop.xlane.xlu1 %802 }
 0x167   :  { %11160 = vst [vmem:[#allocation57_spill] sm:$0xff] %v6100_v26  ;;  %v6107_v15 = vpop.xlane.xlu0 %799  ;;  %v154_v26 = vld [vmem:[%s11091_s0 + $0x458] sm:$0xff] }
 0x168   :  { %11161 = vst [vmem:[#allocation58_spill] sm:$0xff] %v6102_v63 }
 0x169   :  { %11162 = vst [vmem:[#allocation59_spill] sm:$0xff] %v6107_v15 }
 0x16b   :  { %940 = vadd.xlane.f32.xlu2 %v939_v7  ;;  %937 = vadd.xlane.f32.xlu1 %v936_v25  ;;  %v945_v7 = vsel %vm527_vm0, %v154_v26, 0.0  ;;  %v942_v25 = vsel %vm527_vm0, %v153_v24, 0.0  ;;  %v156_v26 = vld [vmem:[%s11091_s0 + $0x468] sm:$0xff] }
 0x16c   :  { %934 = vadd.xlane.f32.xlu0 %v933_v50  ;;  %v158_v50 = vld [vmem:[%s11091_s0 + $0x478] sm:$0xff] }
 0x16d   :  { %v957_v24 = vsel %vm527_vm0, %v158_v50, 0.0 }
 0x16e   :  { %v6118_v63 = vpop.xlane.xlu2 %814  ;;  %v6120_v15 = vpop.xlane.xlu1 %811 }
 0x16f   :  { %11163 = vst [vmem:[#allocation60_spill] sm:$0xff] %v6118_v63  ;;  %v6125_v61 = vpop.xlane.xlu0 %808  ;;  %v157_v63 = vld [vmem:[%s11091_s0 + $0x470] sm:$0xff] }
 0x170   :  { %11164 = vst [vmem:[#allocation61_spill] sm:$0xff] %v6120_v15 }
 0x171   :  { %11165 = vst [vmem:[#allocation62_spill] sm:$0xff] %v6125_v61 }
 0x173   :  { %949 = vadd.xlane.f32.xlu2 %v948_v22  ;;  %946 = vadd.xlane.f32.xlu1 %v945_v7  ;;  %v954_v22 = vsel %vm527_vm0, %v157_v63, 0.0  ;;  %v951_v7 = vsel %vm527_vm0, %v156_v26, 0.0  ;;  %v159_v63 = vld [vmem:[%s11091_s0 + $0x480] sm:$0xff] }
 0x174   :  { %943 = vadd.xlane.f32.xlu0 %v942_v25  ;;  %v161_v25 = vld [vmem:[%s11091_s0 + $0x490] sm:$0xff] }
 0x175   :  { %v966_v26 = vsel %vm527_vm0, %v161_v25, 0.0 }
 0x176   :  { %v6136_v15 = vpop.xlane.xlu2 %823  ;;  %v6138_v61 = vpop.xlane.xlu1 %820 }
 0x177   :  { %11166 = vst [vmem:[#allocation63_spill] sm:$0xff] %v6136_v15  ;;  %v6143_v52 = vpop.xlane.xlu0 %817  ;;  %v160_v15 = vld [vmem:[%s11091_s0 + $0x488] sm:$0xff] }
 0x178   :  { %11167 = vst [vmem:[#allocation64_spill] sm:$0xff] %v6138_v61 }
 0x179   :  { %11168 = vst [vmem:[#allocation65_spill] sm:$0xff] %v6143_v52 }
 0x17b   :  { %958 = vadd.xlane.f32.xlu2 %v957_v24  ;;  %955 = vadd.xlane.f32.xlu1 %v954_v22  ;;  %v963_v24 = vsel %vm527_vm0, %v160_v15, 0.0  ;;  %v960_v22 = vsel %vm527_vm0, %v159_v63, 0.0  ;;  %v162_v15 = vld [vmem:[%s11091_s0 + $0x498] sm:$0xff] }
 0x17c   :  { %952 = vadd.xlane.f32.xlu0 %v951_v7  ;;  %v164_v7 = vld [vmem:[%s11091_s0 + $0x4a8] sm:$0xff] }
 0x17d   :  { %v975_v63 = vsel %vm527_vm0, %v164_v7, 0.0 }
 0x17e   :  { %v6154_v61 = vpop.xlane.xlu2 %832  ;;  %v6156_v52 = vpop.xlane.xlu1 %829 }
 0x17f   :  { %11169 = vst [vmem:[#allocation66_spill] sm:$0xff] %v6154_v61  ;;  %v6161_v50 = vpop.xlane.xlu0 %826  ;;  %v163_v61 = vld [vmem:[%s11091_s0 + $0x4a0] sm:$0xff] }
 0x180   :  { %11170 = vst [vmem:[#allocation67_spill] sm:$0xff] %v6156_v52 }
 0x181   :  { %11171 = vst [vmem:[#allocation68_spill] sm:$0xff] %v6161_v50 }
 0x183   :  { %967 = vadd.xlane.f32.xlu2 %v966_v26  ;;  %964 = vadd.xlane.f32.xlu1 %v963_v24  ;;  %v972_v26 = vsel %vm527_vm0, %v163_v61, 0.0  ;;  %v969_v24 = vsel %vm527_vm0, %v162_v15, 0.0  ;;  %v165_v61 = vld [vmem:[%s11091_s0 + $0x4b0] sm:$0xff] }
 0x184   :  { %961 = vadd.xlane.f32.xlu0 %v960_v22  ;;  %v167_v22 = vld [vmem:[%s11091_s0 + $0x4c0] sm:$0xff] }
 0x185   :  { %v984_v15 = vsel %vm527_vm0, %v167_v22, 0.0 }
 0x186   :  { %v6172_v52 = vpop.xlane.xlu2 %841  ;;  %v6174_v50 = vpop.xlane.xlu1 %838 }
 0x187   :  { %11172 = vst [vmem:[#allocation69_spill] sm:$0xff] %v6172_v52  ;;  %v6179_v25 = vpop.xlane.xlu0 %835  ;;  %v166_v52 = vld [vmem:[%s11091_s0 + $0x4b8] sm:$0xff] }
 0x188   :  { %11173 = vst [vmem:[#allocation70_spill] sm:$0xff] %v6174_v50 }
 0x189   :  { %11174 = vst [vmem:[#allocation71_spill] sm:$0xff] %v6179_v25 }
 0x18b   :  { %976 = vadd.xlane.f32.xlu2 %v975_v63  ;;  %973 = vadd.xlane.f32.xlu1 %v972_v26  ;;  %v981_v63 = vsel %vm527_vm0, %v166_v52, 0.0  ;;  %v978_v26 = vsel %vm527_vm0, %v165_v61, 0.0  ;;  %v168_v52 = vld [vmem:[%s11091_s0 + $0x4c8] sm:$0xff] }
 0x18c   :  { %970 = vadd.xlane.f32.xlu0 %v969_v24  ;;  %v170_v24 = vld [vmem:[%s11091_s0 + $0x4d8] sm:$0xff] }
 0x18d   :  { %v993_v61 = vsel %vm527_vm0, %v170_v24, 0.0 }
 0x18e   :  { %v6190_v50 = vpop.xlane.xlu2 %850  ;;  %v6192_v25 = vpop.xlane.xlu1 %847 }
 0x18f   :  { %11175 = vst [vmem:[#allocation72_spill] sm:$0xff] %v6190_v50  ;;  %v6197_v7 = vpop.xlane.xlu0 %844  ;;  %v169_v50 = vld [vmem:[%s11091_s0 + $0x4d0] sm:$0xff] }
 0x190   :  { %11176 = vst [vmem:[#allocation73_spill] sm:$0xff] %v6192_v25 }
 0x191   :  { %11177 = vst [vmem:[#allocation74_spill] sm:$0xff] %v6197_v7 }
 0x193   :  { %985 = vadd.xlane.f32.xlu2 %v984_v15  ;;  %982 = vadd.xlane.f32.xlu1 %v981_v63  ;;  %v990_v15 = vsel %vm527_vm0, %v169_v50, 0.0  ;;  %v987_v63 = vsel %vm527_vm0, %v168_v52, 0.0  ;;  %v171_v50 = vld [vmem:[%s11091_s0 + $0x4e0] sm:$0xff] }
 0x194   :  { %979 = vadd.xlane.f32.xlu0 %v978_v26  ;;  %v173_v26 = vld [vmem:[%s11091_s0 + $0x4f0] sm:$0xff] }
 0x195   :  { %v1002_v52 = vsel %vm527_vm0, %v173_v26, 0.0 }
 0x196   :  { %v6208_v25 = vpop.xlane.xlu2 %859  ;;  %v6210_v7 = vpop.xlane.xlu1 %856 }
 0x197   :  { %11178 = vst [vmem:[#allocation75_spill] sm:$0xff] %v6208_v25  ;;  %v6215_v22 = vpop.xlane.xlu0 %853  ;;  %v172_v25 = vld [vmem:[%s11091_s0 + $0x4e8] sm:$0xff] }
 0x198   :  { %11179 = vst [vmem:[#allocation76_spill] sm:$0xff] %v6210_v7 }
 0x199   :  { %11180 = vst [vmem:[#allocation77_spill] sm:$0xff] %v6215_v22 }
 0x19b   :  { %994 = vadd.xlane.f32.xlu2 %v993_v61  ;;  %991 = vadd.xlane.f32.xlu1 %v990_v15  ;;  %v999_v61 = vsel %vm527_vm0, %v172_v25, 0.0  ;;  %v996_v15 = vsel %vm527_vm0, %v171_v50, 0.0  ;;  %v174_v25 = vld [vmem:[%s11091_s0 + $0x4f8] sm:$0xff] }
 0x19c   :  { %988 = vadd.xlane.f32.xlu0 %v987_v63  ;;  %v176_v63 = vld [vmem:[%s11091_s0 + $0x508] sm:$0xff] }
 0x19d   :  { %v1011_v50 = vsel %vm527_vm0, %v176_v63, 0.0 }
 0x19e   :  { %v6226_v7 = vpop.xlane.xlu2 %868  ;;  %v6228_v22 = vpop.xlane.xlu1 %865 }
 0x19f   :  { %11181 = vst [vmem:[#allocation78_spill] sm:$0xff] %v6226_v7  ;;  %v6233_v24 = vpop.xlane.xlu0 %862 }
 0x1a0   :  { %11182 = vst [vmem:[#allocation79_spill] sm:$0xff] %v6228_v22  ;;  %v175_v22 = vld [vmem:[%s11091_s0 + $0x500] sm:$0xff] }
 0x1a1   :  { %11183 = vst [vmem:[#allocation80_spill] sm:$0xff] %v6233_v24 }
 0x1a3   :  { %1003 = vadd.xlane.f32.xlu2 %v1002_v52  ;;  %1000 = vadd.xlane.f32.xlu1 %v999_v61  ;;  %v1008_v52 = vsel %vm527_vm0, %v175_v22, 0.0  ;;  %v1005_v61 = vsel %vm527_vm0, %v174_v25, 0.0  ;;  %v177_v22 = vld [vmem:[%s11091_s0 + $0x510] sm:$0xff] }
 0x1a4   :  { %997 = vadd.xlane.f32.xlu0 %v996_v15  ;;  %v179_v15 = vld [vmem:[%s11091_s0 + $0x520] sm:$0xff] }
 0x1a5   :  { %v1020_v25 = vsel %vm527_vm0, %v179_v15, 0.0 }
 0x1a6   :  { %v6244_v7 = vpop.xlane.xlu2 %877  ;;  %v6246_v24 = vpop.xlane.xlu1 %874 }
 0x1a7   :  { %11184 = vst [vmem:[#allocation81_spill] sm:$0xff] %v6244_v7  ;;  %v6251_v26 = vpop.xlane.xlu0 %871  ;;  %v178_v7 = vld [vmem:[%s11091_s0 + $0x518] sm:$0xff] }
 0x1a8   :  { %11185 = vst [vmem:[#allocation82_spill] sm:$0xff] %v6246_v24 }
 0x1a9   :  { %11186 = vst [vmem:[#allocation83_spill] sm:$0xff] %v6251_v26 }
 0x1ab   :  { %1012 = vadd.xlane.f32.xlu2 %v1011_v50  ;;  %1009 = vadd.xlane.f32.xlu1 %v1008_v52  ;;  %v1017_v50 = vsel %vm527_vm0, %v178_v7, 0.0  ;;  %v1014_v52 = vsel %vm527_vm0, %v177_v22, 0.0  ;;  %v180_v7 = vld [vmem:[%s11091_s0 + $0x528] sm:$0xff] }
 0x1ac   :  { %1006 = vadd.xlane.f32.xlu0 %v1005_v61  ;;  %v182_v61 = vld [vmem:[%s11091_s0 + $0x538] sm:$0xff] }
 0x1ad   :  { %v1029_v22 = vsel %vm527_vm0, %v182_v61, 0.0 }
 0x1ae   :  { %v6262_v24 = vpop.xlane.xlu2 %886  ;;  %v6264_v26 = vpop.xlane.xlu1 %883 }
 0x1af   :  { %11187 = vst [vmem:[#allocation84_spill] sm:$0xff] %v6262_v24  ;;  %v6269_v63 = vpop.xlane.xlu0 %880  ;;  %v181_v24 = vld [vmem:[%s11091_s0 + $0x530] sm:$0xff] }
 0x1b0   :  { %11188 = vst [vmem:[#allocation85_spill] sm:$0xff] %v6264_v26 }
 0x1b1   :  { %11189 = vst [vmem:[#allocation86_spill] sm:$0xff] %v6269_v63 }
 0x1b3   :  { %1021 = vadd.xlane.f32.xlu2 %v1020_v25  ;;  %1018 = vadd.xlane.f32.xlu1 %v1017_v50  ;;  %v1026_v25 = vsel %vm527_vm0, %v181_v24, 0.0  ;;  %v1023_v50 = vsel %vm527_vm0, %v180_v7, 0.0  ;;  %v183_v24 = vld [vmem:[%s11091_s0 + $0x540] sm:$0xff] }
 0x1b4   :  { %1015 = vadd.xlane.f32.xlu0 %v1014_v52  ;;  %v185_v52 = vld [vmem:[%s11091_s0 + $0x550] sm:$0xff] }
 0x1b5   :  { %v1038_v7 = vsel %vm527_vm0, %v185_v52, 0.0 }
 0x1b6   :  { %v6280_v26 = vpop.xlane.xlu2 %895  ;;  %v6282_v63 = vpop.xlane.xlu1 %892 }
 0x1b7   :  { %11190 = vst [vmem:[#allocation87_spill] sm:$0xff] %v6280_v26  ;;  %v6287_v15 = vpop.xlane.xlu0 %889  ;;  %v184_v26 = vld [vmem:[%s11091_s0 + $0x548] sm:$0xff] }
 0x1b8   :  { %11191 = vst [vmem:[#allocation88_spill] sm:$0xff] %v6282_v63 }
 0x1b9   :  { %11192 = vst [vmem:[#allocation89_spill] sm:$0xff] %v6287_v15 }
 0x1bb   :  { %1030 = vadd.xlane.f32.xlu2 %v1029_v22  ;;  %1027 = vadd.xlane.f32.xlu1 %v1026_v25  ;;  %v1035_v22 = vsel %vm527_vm0, %v184_v26, 0.0  ;;  %v1032_v25 = vsel %vm527_vm0, %v183_v24, 0.0  ;;  %v186_v26 = vld [vmem:[%s11091_s0 + $0x558] sm:$0xff] }
 0x1bc   :  { %1024 = vadd.xlane.f32.xlu0 %v1023_v50  ;;  %v188_v50 = vld [vmem:[%s11091_s0 + $0x568] sm:$0xff] }
 0x1bd   :  { %v1047_v24 = vsel %vm527_vm0, %v188_v50, 0.0 }
 0x1be   :  { %v6298_v63 = vpop.xlane.xlu2 %904  ;;  %v6300_v15 = vpop.xlane.xlu1 %901 }
 0x1bf   :  { %11193 = vst [vmem:[#allocation90_spill] sm:$0xff] %v6298_v63  ;;  %v6305_v61 = vpop.xlane.xlu0 %898  ;;  %v187_v63 = vld [vmem:[%s11091_s0 + $0x560] sm:$0xff] }
 0x1c0   :  { %11194 = vst [vmem:[#allocation91_spill] sm:$0xff] %v6300_v15 }
 0x1c1   :  { %11195 = vst [vmem:[#allocation92_spill] sm:$0xff] %v6305_v61 }
 0x1c3   :  { %1039 = vadd.xlane.f32.xlu2 %v1038_v7  ;;  %1036 = vadd.xlane.f32.xlu1 %v1035_v22  ;;  %v1044_v7 = vsel %vm527_vm0, %v187_v63, 0.0  ;;  %v1041_v22 = vsel %vm527_vm0, %v186_v26, 0.0  ;;  %v189_v63 = vld [vmem:[%s11091_s0 + $0x570] sm:$0xff] }
 0x1c4   :  { %1033 = vadd.xlane.f32.xlu0 %v1032_v25  ;;  %v191_v25 = vld [vmem:[%s11091_s0 + $0x580] sm:$0xff] }
 0x1c5   :  { %v1056_v26 = vsel %vm527_vm0, %v191_v25, 0.0 }
 0x1c6   :  { %v6316_v15 = vpop.xlane.xlu2 %913  ;;  %v6318_v61 = vpop.xlane.xlu1 %910 }
 0x1c7   :  { %11196 = vst [vmem:[#allocation93_spill] sm:$0xff] %v6316_v15  ;;  %v6323_v52 = vpop.xlane.xlu0 %907  ;;  %v190_v15 = vld [vmem:[%s11091_s0 + $0x578] sm:$0xff] }
 0x1c8   :  { %11197 = vst [vmem:[#allocation94_spill] sm:$0xff] %v6318_v61 }
 0x1c9   :  { %11198 = vst [vmem:[#allocation95_spill] sm:$0xff] %v6323_v52 }
 0x1cb   :  { %1048 = vadd.xlane.f32.xlu2 %v1047_v24  ;;  %1045 = vadd.xlane.f32.xlu1 %v1044_v7  ;;  %v1053_v24 = vsel %vm527_vm0, %v190_v15, 0.0  ;;  %v1050_v7 = vsel %vm527_vm0, %v189_v63, 0.0  ;;  %v192_v15 = vld [vmem:[%s11091_s0 + $0x588] sm:$0xff] }
 0x1cc   :  { %1042 = vadd.xlane.f32.xlu0 %v1041_v22  ;;  %v194_v22 = vld [vmem:[%s11091_s0 + $0x598] sm:$0xff] }
 0x1cd   :  { %v1065_v63 = vsel %vm527_vm0, %v194_v22, 0.0 }
 0x1ce   :  { %v6334_v61 = vpop.xlane.xlu2 %922  ;;  %v6336_v52 = vpop.xlane.xlu1 %919 }
 0x1cf   :  { %11199 = vst [vmem:[#allocation96_spill] sm:$0xff] %v6334_v61  ;;  %v6341_v50 = vpop.xlane.xlu0 %916  ;;  %v193_v61 = vld [vmem:[%s11091_s0 + $0x590] sm:$0xff] }
 0x1d0   :  { %11200 = vst [vmem:[#allocation97_spill] sm:$0xff] %v6336_v52 }
 0x1d1   :  { %11201 = vst [vmem:[#allocation98_spill] sm:$0xff] %v6341_v50 }
 0x1d3   :  { %1057 = vadd.xlane.f32.xlu2 %v1056_v26  ;;  %1054 = vadd.xlane.f32.xlu1 %v1053_v24  ;;  %v1062_v26 = vsel %vm527_vm0, %v193_v61, 0.0  ;;  %v1059_v24 = vsel %vm527_vm0, %v192_v15, 0.0  ;;  %v195_v61 = vld [vmem:[%s11091_s0 + $0x5a0] sm:$0xff] }
 0x1d4   :  { %1051 = vadd.xlane.f32.xlu0 %v1050_v7  ;;  %v197_v7 = vld [vmem:[%s11091_s0 + $0x5b0] sm:$0xff] }
 0x1d5   :  { %v1074_v15 = vsel %vm527_vm0, %v197_v7, 0.0 }
 0x1d6   :  { %v6352_v52 = vpop.xlane.xlu2 %931  ;;  %v6354_v50 = vpop.xlane.xlu1 %928 }
 0x1d7   :  { %11202 = vst [vmem:[#allocation99_spill] sm:$0xff] %v6352_v52  ;;  %v6359_v25 = vpop.xlane.xlu0 %925  ;;  %v196_v52 = vld [vmem:[%s11091_s0 + $0x5a8] sm:$0xff] }
 0x1d8   :  { %11203 = vst [vmem:[#allocation100_spill] sm:$0xff] %v6354_v50 }
 0x1d9   :  { %11204 = vst [vmem:[#allocation101_spill] sm:$0xff] %v6359_v25 }
 0x1db   :  { %1066 = vadd.xlane.f32.xlu2 %v1065_v63  ;;  %1063 = vadd.xlane.f32.xlu1 %v1062_v26  ;;  %v1071_v63 = vsel %vm527_vm0, %v196_v52, 0.0  ;;  %v1068_v26 = vsel %vm527_vm0, %v195_v61, 0.0  ;;  %v198_v52 = vld [vmem:[%s11091_s0 + $0x5b8] sm:$0xff] }
 0x1dc   :  { %1060 = vadd.xlane.f32.xlu0 %v1059_v24  ;;  %v200_v24 = vld [vmem:[%s11091_s0 + $0x5c8] sm:$0xff] }
 0x1dd   :  { %v1083_v61 = vsel %vm527_vm0, %v200_v24, 0.0 }
 0x1de   :  { %v6370_v50 = vpop.xlane.xlu2 %940  ;;  %v6372_v25 = vpop.xlane.xlu1 %937 }
 0x1df   :  { %11205 = vst [vmem:[#allocation102_spill] sm:$0xff] %v6370_v50  ;;  %v6377_v22 = vpop.xlane.xlu0 %934  ;;  %v199_v50 = vld [vmem:[%s11091_s0 + $0x5c0] sm:$0xff] }
 0x1e0   :  { %11206 = vst [vmem:[#allocation103_spill] sm:$0xff] %v6372_v25 }
 0x1e1   :  { %11207 = vst [vmem:[#allocation104_spill] sm:$0xff] %v6377_v22 }
 0x1e3   :  { %1075 = vadd.xlane.f32.xlu2 %v1074_v15  ;;  %1072 = vadd.xlane.f32.xlu1 %v1071_v63  ;;  %v1080_v15 = vsel %vm527_vm0, %v199_v50, 0.0  ;;  %v1077_v63 = vsel %vm527_vm0, %v198_v52, 0.0  ;;  %v201_v50 = vld [vmem:[%s11091_s0 + $0x5d0] sm:$0xff] }
 0x1e4   :  { %1069 = vadd.xlane.f32.xlu0 %v1068_v26  ;;  %v203_v26 = vld [vmem:[%s11091_s0 + $0x5e0] sm:$0xff] }
 0x1e5   :  { %v1092_v52 = vsel %vm527_vm0, %v203_v26, 0.0 }
 0x1e6   :  { %v6388_v25 = vpop.xlane.xlu2 %949  ;;  %v6390_v22 = vpop.xlane.xlu1 %946 }
 0x1e7   :  { %11208 = vst [vmem:[#allocation105_spill] sm:$0xff] %v6388_v25  ;;  %v6395_v7 = vpop.xlane.xlu0 %943  ;;  %v202_v25 = vld [vmem:[%s11091_s0 + $0x5d8] sm:$0xff] }
 0x1e8   :  { %11209 = vst [vmem:[#allocation106_spill] sm:$0xff] %v6390_v22 }
 0x1e9   :  { %11210 = vst [vmem:[#allocation107_spill] sm:$0xff] %v6395_v7 }
 0x1eb   :  { %1084 = vadd.xlane.f32.xlu2 %v1083_v61  ;;  %1081 = vadd.xlane.f32.xlu1 %v1080_v15  ;;  %v1089_v61 = vsel %vm527_vm0, %v202_v25, 0.0  ;;  %v1086_v15 = vsel %vm527_vm0, %v201_v50, 0.0  ;;  %v204_v25 = vld [vmem:[%s11091_s0 + $0x5e8] sm:$0xff] }
 0x1ec   :  { %1078 = vadd.xlane.f32.xlu0 %v1077_v63  ;;  %v206_v63 = vld [vmem:[%s11091_s0 + $0x5f8] sm:$0xff] }
 0x1ed   :  { %v1101_v50 = vsel %vm527_vm0, %v206_v63, 0.0 }
 0x1ee   :  { %v6406_v22 = vpop.xlane.xlu2 %958  ;;  %v6408_v7 = vpop.xlane.xlu1 %955 }
 0x1ef   :  { %11211 = vst [vmem:[#allocation108_spill] sm:$0xff] %v6406_v22  ;;  %v6413_v24 = vpop.xlane.xlu0 %952  ;;  %v205_v22 = vld [vmem:[%s11091_s0 + $0x5f0] sm:$0xff] }
 0x1f0   :  { %11212 = vst [vmem:[#allocation109_spill] sm:$0xff] %v6408_v7 }
 0x1f1   :  { %11213 = vst [vmem:[#allocation110_spill] sm:$0xff] %v6413_v24 }
 0x1f3   :  { %1093 = vadd.xlane.f32.xlu2 %v1092_v52  ;;  %1090 = vadd.xlane.f32.xlu1 %v1089_v61  ;;  %v1098_v52 = vsel %vm527_vm0, %v205_v22, 0.0  ;;  %v1095_v61 = vsel %vm527_vm0, %v204_v25, 0.0  ;;  %v207_v22 = vld [vmem:[%s11091_s0 + $0x600] sm:$0xff] }
 0x1f4   :  { %1087 = vadd.xlane.f32.xlu0 %v1086_v15  ;;  %v209_v15 = vld [vmem:[%s11091_s0 + $0x610] sm:$0xff] }
 0x1f5   :  { %v1110_v25 = vsel %vm527_vm0, %v209_v15, 0.0 }
 0x1f6   :  { %v6424_v7 = vpop.xlane.xlu2 %967  ;;  %v6426_v24 = vpop.xlane.xlu1 %964 }
 0x1f7   :  { %11214 = vst [vmem:[#allocation111_spill] sm:$0xff] %v6424_v7  ;;  %v6431_v26 = vpop.xlane.xlu0 %961  ;;  %v208_v7 = vld [vmem:[%s11091_s0 + $0x608] sm:$0xff] }
 0x1f8   :  { %11215 = vst [vmem:[#allocation112_spill] sm:$0xff] %v6426_v24 }
 0x1f9   :  { %11216 = vst [vmem:[#allocation113_spill] sm:$0xff] %v6431_v26 }
 0x1fb   :  { %1102 = vadd.xlane.f32.xlu2 %v1101_v50  ;;  %1099 = vadd.xlane.f32.xlu1 %v1098_v52  ;;  %v1107_v50 = vsel %vm527_vm0, %v208_v7, 0.0  ;;  %v1104_v52 = vsel %vm527_vm0, %v207_v22, 0.0  ;;  %v210_v7 = vld [vmem:[%s11091_s0 + $0x618] sm:$0xff] }
 0x1fc   :  { %1096 = vadd.xlane.f32.xlu0 %v1095_v61  ;;  %v212_v61 = vld [vmem:[%s11091_s0 + $0x628] sm:$0xff] }
 0x1fd   :  { %v1119_v22 = vsel %vm527_vm0, %v212_v61, 0.0 }
 0x1fe   :  { %v6442_v24 = vpop.xlane.xlu2 %976  ;;  %v6444_v26 = vpop.xlane.xlu1 %973 }
 0x1ff   :  { %11217 = vst [vmem:[#allocation114_spill] sm:$0xff] %v6442_v24  ;;  %v6449_v63 = vpop.xlane.xlu0 %970  ;;  %v211_v24 = vld [vmem:[%s11091_s0 + $0x620] sm:$0xff] }
 0x200   :  { %11218 = vst [vmem:[#allocation115_spill] sm:$0xff] %v6444_v26 }
 0x201   :  { %11219 = vst [vmem:[#allocation116_spill] sm:$0xff] %v6449_v63 }
 0x203   :  { %1111 = vadd.xlane.f32.xlu2 %v1110_v25  ;;  %1108 = vadd.xlane.f32.xlu1 %v1107_v50  ;;  %v1116_v25 = vsel %vm527_vm0, %v211_v24, 0.0  ;;  %v1113_v50 = vsel %vm527_vm0, %v210_v7, 0.0  ;;  %v213_v24 = vld [vmem:[%s11091_s0 + $0x630] sm:$0xff] }
 0x204   :  { %1105 = vadd.xlane.f32.xlu0 %v1104_v52  ;;  %v215_v52 = vld [vmem:[%s11091_s0 + $0x640] sm:$0xff] }
 0x205   :  { %v1128_v7 = vsel %vm527_vm0, %v215_v52, 0.0 }
 0x206   :  { %v6460_v26 = vpop.xlane.xlu2 %985  ;;  %v6462_v63 = vpop.xlane.xlu1 %982 }
 0x207   :  { %11220 = vst [vmem:[#allocation117_spill] sm:$0xff] %v6460_v26  ;;  %v6467_v15 = vpop.xlane.xlu0 %979  ;;  %v214_v26 = vld [vmem:[%s11091_s0 + $0x638] sm:$0xff] }
 0x208   :  { %11221 = vst [vmem:[#allocation118_spill] sm:$0xff] %v6462_v63 }
 0x209   :  { %11222 = vst [vmem:[#allocation119_spill] sm:$0xff] %v6467_v15 }
 0x20b   :  { %1120 = vadd.xlane.f32.xlu2 %v1119_v22  ;;  %1117 = vadd.xlane.f32.xlu1 %v1116_v25  ;;  %v1125_v22 = vsel %vm527_vm0, %v214_v26, 0.0  ;;  %v1122_v25 = vsel %vm527_vm0, %v213_v24, 0.0  ;;  %v216_v26 = vld [vmem:[%s11091_s0 + $0x648] sm:$0xff] }
 0x20c   :  { %1114 = vadd.xlane.f32.xlu0 %v1113_v50  ;;  %v218_v50 = vld [vmem:[%s11091_s0 + $0x658] sm:$0xff] }
 0x20d   :  { %v1137_v24 = vsel %vm527_vm0, %v218_v50, 0.0 }
 0x20e   :  { %v6478_v63 = vpop.xlane.xlu2 %994  ;;  %v6480_v15 = vpop.xlane.xlu1 %991 }
 0x20f   :  { %11223 = vst [vmem:[#allocation120_spill] sm:$0xff] %v6478_v63  ;;  %v6485_v61 = vpop.xlane.xlu0 %988  ;;  %v217_v63 = vld [vmem:[%s11091_s0 + $0x650] sm:$0xff] }
 0x210   :  { %11224 = vst [vmem:[#allocation121_spill] sm:$0xff] %v6480_v15 }
 0x211   :  { %11225 = vst [vmem:[#allocation122_spill] sm:$0xff] %v6485_v61 }
 0x213   :  { %1129 = vadd.xlane.f32.xlu2 %v1128_v7  ;;  %1126 = vadd.xlane.f32.xlu1 %v1125_v22  ;;  %v1134_v7 = vsel %vm527_vm0, %v217_v63, 0.0  ;;  %v1131_v22 = vsel %vm527_vm0, %v216_v26, 0.0  ;;  %v219_v63 = vld [vmem:[%s11091_s0 + $0x660] sm:$0xff] }
 0x214   :  { %1123 = vadd.xlane.f32.xlu0 %v1122_v25  ;;  %v221_v25 = vld [vmem:[%s11091_s0 + $0x670] sm:$0xff] }
 0x215   :  { %v1146_v26 = vsel %vm527_vm0, %v221_v25, 0.0 }
 0x216   :  { %v6496_v15 = vpop.xlane.xlu2 %1003  ;;  %v6498_v61 = vpop.xlane.xlu1 %1000 }
 0x217   :  { %11226 = vst [vmem:[#allocation123_spill] sm:$0xff] %v6496_v15  ;;  %v6503_v52 = vpop.xlane.xlu0 %997  ;;  %v220_v15 = vld [vmem:[%s11091_s0 + $0x668] sm:$0xff] }
 0x218   :  { %11227 = vst [vmem:[#allocation124_spill] sm:$0xff] %v6498_v61 }
 0x219   :  { %11228 = vst [vmem:[#allocation125_spill] sm:$0xff] %v6503_v52 }
 0x21b   :  { %1138 = vadd.xlane.f32.xlu2 %v1137_v24  ;;  %1135 = vadd.xlane.f32.xlu1 %v1134_v7  ;;  %v1143_v24 = vsel %vm527_vm0, %v220_v15, 0.0  ;;  %v1140_v7 = vsel %vm527_vm0, %v219_v63, 0.0  ;;  %v222_v15 = vld [vmem:[%s11091_s0 + $0x678] sm:$0xff] }
 0x21c   :  { %1132 = vadd.xlane.f32.xlu0 %v1131_v22  ;;  %v224_v22 = vld [vmem:[%s11091_s0 + $0x688] sm:$0xff] }
 0x21d   :  { %v1155_v63 = vsel %vm527_vm0, %v224_v22, 0.0 }
 0x21e   :  { %v6514_v61 = vpop.xlane.xlu2 %1012  ;;  %v6516_v52 = vpop.xlane.xlu1 %1009 }
 0x21f   :  { %11229 = vst [vmem:[#allocation126_spill] sm:$0xff] %v6514_v61  ;;  %v6521_v50 = vpop.xlane.xlu0 %1006 }
 0x220   :  { %11230 = vst [vmem:[#allocation127_spill] sm:$0xff] %v6516_v52  ;;  %v223_v52 = vld [vmem:[%s11091_s0 + $0x680] sm:$0xff] }
 0x221   :  { %11231 = vst [vmem:[#allocation128_spill] sm:$0xff] %v6521_v50 }
 0x223   :  { %1147 = vadd.xlane.f32.xlu2 %v1146_v26  ;;  %1144 = vadd.xlane.f32.xlu1 %v1143_v24  ;;  %v1152_v26 = vsel %vm527_vm0, %v223_v52, 0.0  ;;  %v1149_v24 = vsel %vm527_vm0, %v222_v15, 0.0  ;;  %v225_v52 = vld [vmem:[%s11091_s0 + $0x690] sm:$0xff] }
 0x224   :  { %1141 = vadd.xlane.f32.xlu0 %v1140_v7  ;;  %v227_v7 = vld [vmem:[%s11091_s0 + $0x6a0] sm:$0xff] }
 0x225   :  { %v1164_v15 = vsel %vm527_vm0, %v227_v7, 0.0 }
 0x226   :  { %v6532_v61 = vpop.xlane.xlu2 %1021  ;;  %v6534_v50 = vpop.xlane.xlu1 %1018 }
 0x227   :  { %11232 = vst [vmem:[#allocation129_spill] sm:$0xff] %v6532_v61  ;;  %v6539_v25 = vpop.xlane.xlu0 %1015  ;;  %v226_v61 = vld [vmem:[%s11091_s0 + $0x698] sm:$0xff] }
 0x228   :  { %11233 = vst [vmem:[#allocation130_spill] sm:$0xff] %v6534_v50 }
 0x229   :  { %11234 = vst [vmem:[#allocation131_spill] sm:$0xff] %v6539_v25 }
 0x22b   :  { %1156 = vadd.xlane.f32.xlu2 %v1155_v63  ;;  %1153 = vadd.xlane.f32.xlu1 %v1152_v26  ;;  %v1161_v63 = vsel %vm527_vm0, %v226_v61, 0.0  ;;  %v1158_v26 = vsel %vm527_vm0, %v225_v52, 0.0  ;;  %v228_v61 = vld [vmem:[%s11091_s0 + $0x6a8] sm:$0xff] }
 0x22c   :  { %1150 = vadd.xlane.f32.xlu0 %v1149_v24  ;;  %v230_v24 = vld [vmem:[%s11091_s0 + $0x6b8] sm:$0xff] }
 0x22d   :  { %v1173_v52 = vsel %vm527_vm0, %v230_v24, 0.0 }
 0x22e   :  { %v6550_v50 = vpop.xlane.xlu2 %1030  ;;  %v6552_v25 = vpop.xlane.xlu1 %1027 }
 0x22f   :  { %11235 = vst [vmem:[#allocation132_spill] sm:$0xff] %v6550_v50  ;;  %v6557_v22 = vpop.xlane.xlu0 %1024  ;;  %v229_v50 = vld [vmem:[%s11091_s0 + $0x6b0] sm:$0xff] }
 0x230   :  { %11236 = vst [vmem:[#allocation133_spill] sm:$0xff] %v6552_v25 }
 0x231   :  { %11237 = vst [vmem:[#allocation134_spill] sm:$0xff] %v6557_v22 }
 0x233   :  { %1165 = vadd.xlane.f32.xlu2 %v1164_v15  ;;  %1162 = vadd.xlane.f32.xlu1 %v1161_v63  ;;  %v1170_v15 = vsel %vm527_vm0, %v229_v50, 0.0  ;;  %v1167_v63 = vsel %vm527_vm0, %v228_v61, 0.0  ;;  %v231_v50 = vld [vmem:[%s11091_s0 + $0x6c0] sm:$0xff] }
 0x234   :  { %1159 = vadd.xlane.f32.xlu0 %v1158_v26  ;;  %v233_v26 = vld [vmem:[%s11091_s0 + $0x6d0] sm:$0xff] }
 0x235   :  { %v1182_v61 = vsel %vm527_vm0, %v233_v26, 0.0 }
 0x236   :  { %v6568_v25 = vpop.xlane.xlu2 %1039  ;;  %v6570_v22 = vpop.xlane.xlu1 %1036 }
 0x237   :  { %11238 = vst [vmem:[#allocation135_spill] sm:$0xff] %v6568_v25  ;;  %v6575_v7 = vpop.xlane.xlu0 %1033  ;;  %v232_v25 = vld [vmem:[%s11091_s0 + $0x6c8] sm:$0xff] }
 0x238   :  { %11239 = vst [vmem:[#allocation136_spill] sm:$0xff] %v6570_v22 }
 0x239   :  { %11240 = vst [vmem:[#allocation137_spill] sm:$0xff] %v6575_v7 }
 0x23b   :  { %1174 = vadd.xlane.f32.xlu2 %v1173_v52  ;;  %1171 = vadd.xlane.f32.xlu1 %v1170_v15  ;;  %v1179_v52 = vsel %vm527_vm0, %v232_v25, 0.0  ;;  %v1176_v15 = vsel %vm527_vm0, %v231_v50, 0.0  ;;  %v234_v25 = vld [vmem:[%s11091_s0 + $0x6d8] sm:$0xff] }
 0x23c   :  { %1168 = vadd.xlane.f32.xlu0 %v1167_v63  ;;  %v236_v63 = vld [vmem:[%s11091_s0 + $0x6e8] sm:$0xff] }
 0x23d   :  { %v1191_v50 = vsel %vm527_vm0, %v236_v63, 0.0 }
 0x23e   :  { %v6586_v22 = vpop.xlane.xlu2 %1048  ;;  %v6588_v7 = vpop.xlane.xlu1 %1045 }
 0x23f   :  { %11241 = vst [vmem:[#allocation138_spill] sm:$0xff] %v6586_v22  ;;  %v6593_v24 = vpop.xlane.xlu0 %1042  ;;  %v235_v22 = vld [vmem:[%s11091_s0 + $0x6e0] sm:$0xff] }
 0x240   :  { %11242 = vst [vmem:[#allocation139_spill] sm:$0xff] %v6588_v7 }
 0x241   :  { %11243 = vst [vmem:[#allocation140_spill] sm:$0xff] %v6593_v24 }
 0x243   :  { %1183 = vadd.xlane.f32.xlu2 %v1182_v61  ;;  %1180 = vadd.xlane.f32.xlu1 %v1179_v52  ;;  %v1188_v61 = vsel %vm527_vm0, %v235_v22, 0.0  ;;  %v1185_v52 = vsel %vm527_vm0, %v234_v25, 0.0  ;;  %v237_v22 = vld [vmem:[%s11091_s0 + $0x6f0] sm:$0xff] }
 0x244   :  { %1177 = vadd.xlane.f32.xlu0 %v1176_v15  ;;  %v239_v15 = vld [vmem:[%s11091_s0 + $0x700] sm:$0xff] }
 0x245   :  { %v1200_v25 = vsel %vm527_vm0, %v239_v15, 0.0 }
 0x246   :  { %v6604_v7 = vpop.xlane.xlu2 %1057  ;;  %v6606_v24 = vpop.xlane.xlu1 %1054 }
 0x247   :  { %11244 = vst [vmem:[#allocation141_spill] sm:$0xff] %v6604_v7  ;;  %v6611_v26 = vpop.xlane.xlu0 %1051 }
 0x248   :  { %11245 = vst [vmem:[#allocation142_spill] sm:$0xff] %v6606_v24  ;;  %v238_v24 = vld [vmem:[%s11091_s0 + $0x6f8] sm:$0xff] }
 0x249   :  { %11246 = vst [vmem:[#allocation143_spill] sm:$0xff] %v6611_v26 }
 0x24b   :  { %1192 = vadd.xlane.f32.xlu2 %v1191_v50  ;;  %1189 = vadd.xlane.f32.xlu1 %v1188_v61  ;;  %v1197_v50 = vsel %vm527_vm0, %v238_v24, 0.0  ;;  %v1194_v61 = vsel %vm527_vm0, %v237_v22, 0.0  ;;  %v240_v24 = vld [vmem:[%s11091_s0 + $0x708] sm:$0xff] }
 0x24c   :  { %1186 = vadd.xlane.f32.xlu0 %v1185_v52  ;;  %v242_v52 = vld [vmem:[%s11091_s0 + $0x718] sm:$0xff] }
 0x24d   :  { %v1209_v22 = vsel %vm527_vm0, %v242_v52, 0.0 }
 0x24e   :  { %v6622_v7 = vpop.xlane.xlu2 %1066  ;;  %v6624_v26 = vpop.xlane.xlu1 %1063 }
 0x24f   :  { %11247 = vst [vmem:[#allocation144_spill] sm:$0xff] %v6622_v7  ;;  %v6629_v63 = vpop.xlane.xlu0 %1060 }
 0x250   :  { %11248 = vst [vmem:[#allocation145_spill] sm:$0xff] %v6624_v26  ;;  %v241_v26 = vld [vmem:[%s11091_s0 + $0x710] sm:$0xff] }
 0x251   :  { %11249 = vst [vmem:[#allocation146_spill] sm:$0xff] %v6629_v63 }
 0x253   :  { %1201 = vadd.xlane.f32.xlu2 %v1200_v25  ;;  %1198 = vadd.xlane.f32.xlu1 %v1197_v50  ;;  %v1206_v25 = vsel %vm527_vm0, %v241_v26, 0.0  ;;  %v1203_v50 = vsel %vm527_vm0, %v240_v24, 0.0  ;;  %v243_v26 = vld [vmem:[%s11091_s0 + $0x720] sm:$0xff] }
 0x254   :  { %1195 = vadd.xlane.f32.xlu0 %v1194_v61  ;;  %v245_v61 = vld [vmem:[%s11091_s0 + $0x730] sm:$0xff] }
 0x255   :  { %v1218_v24 = vsel %vm527_vm0, %v245_v61, 0.0 }
 0x256   :  { %v6640_v7 = vpop.xlane.xlu2 %1075  ;;  %v6642_v63 = vpop.xlane.xlu1 %1072 }
 0x257   :  { %11250 = vst [vmem:[#allocation147_spill] sm:$0xff] %v6640_v7  ;;  %v6647_v15 = vpop.xlane.xlu0 %1069  ;;  %v244_v7 = vld [vmem:[%s11091_s0 + $0x728] sm:$0xff] }
 0x258   :  { %11251 = vst [vmem:[#allocation148_spill] sm:$0xff] %v6642_v63 }
 0x259   :  { %11252 = vst [vmem:[#allocation149_spill] sm:$0xff] %v6647_v15 }
 0x25b   :  { %1210 = vadd.xlane.f32.xlu2 %v1209_v22  ;;  %1207 = vadd.xlane.f32.xlu1 %v1206_v25  ;;  %v1215_v22 = vsel %vm527_vm0, %v244_v7, 0.0  ;;  %v1212_v25 = vsel %vm527_vm0, %v243_v26, 0.0  ;;  %v246_v7 = vld [vmem:[%s11091_s0 + $0x738] sm:$0xff] }
 0x25c   :  { %1204 = vadd.xlane.f32.xlu0 %v1203_v50  ;;  %v248_v50 = vld [vmem:[%s11091_s0 + $0x748] sm:$0xff] }
 0x25d   :  { %v1227_v26 = vsel %vm527_vm0, %v248_v50, 0.0 }
 0x25e   :  { %v6658_v63 = vpop.xlane.xlu2 %1084  ;;  %v6660_v15 = vpop.xlane.xlu1 %1081 }
 0x25f   :  { %11253 = vst [vmem:[#allocation150_spill] sm:$0xff] %v6658_v63  ;;  %v6665_v52 = vpop.xlane.xlu0 %1078  ;;  %v247_v63 = vld [vmem:[%s11091_s0 + $0x740] sm:$0xff] }
 0x260   :  { %11254 = vst [vmem:[#allocation151_spill] sm:$0xff] %v6660_v15 }
 0x261   :  { %11255 = vst [vmem:[#allocation152_spill] sm:$0xff] %v6665_v52 }
 0x263   :  { %1219 = vadd.xlane.f32.xlu2 %v1218_v24  ;;  %1216 = vadd.xlane.f32.xlu1 %v1215_v22  ;;  %v1224_v24 = vsel %vm527_vm0, %v247_v63, 0.0  ;;  %v1221_v22 = vsel %vm527_vm0, %v246_v7, 0.0  ;;  %v249_v63 = vld [vmem:[%s11091_s0 + $0x750] sm:$0xff] }
 0x264   :  { %1213 = vadd.xlane.f32.xlu0 %v1212_v25  ;;  %v251_v25 = vld [vmem:[%s11091_s0 + $0x760] sm:$0xff] }
 0x265   :  { %v1236_v7 = vsel %vm527_vm0, %v251_v25, 0.0 }
 0x266   :  { %v6676_v15 = vpop.xlane.xlu2 %1093  ;;  %v6678_v52 = vpop.xlane.xlu1 %1090 }
 0x267   :  { %11256 = vst [vmem:[#allocation153_spill] sm:$0xff] %v6676_v15  ;;  %v6683_v61 = vpop.xlane.xlu0 %1087  ;;  %v250_v15 = vld [vmem:[%s11091_s0 + $0x758] sm:$0xff] }
 0x268   :  { %11257 = vst [vmem:[#allocation154_spill] sm:$0xff] %v6678_v52 }
 0x269   :  { %11258 = vst [vmem:[#allocation155_spill] sm:$0xff] %v6683_v61 }
 0x26b   :  { %1228 = vadd.xlane.f32.xlu2 %v1227_v26  ;;  %1225 = vadd.xlane.f32.xlu1 %v1224_v24  ;;  %v1233_v26 = vsel %vm527_vm0, %v250_v15, 0.0  ;;  %v1230_v24 = vsel %vm527_vm0, %v249_v63, 0.0  ;;  %v252_v15 = vld [vmem:[%s11091_s0 + $0x768] sm:$0xff] }
 0x26c   :  { %1222 = vadd.xlane.f32.xlu0 %v1221_v22  ;;  %v254_v22 = vld [vmem:[%s11091_s0 + $0x778] sm:$0xff] }
 0x26d   :  { %v1245_v63 = vsel %vm527_vm0, %v254_v22, 0.0 }
 0x26e   :  { %v6694_v52 = vpop.xlane.xlu2 %1102  ;;  %v6696_v61 = vpop.xlane.xlu1 %1099 }
 0x26f   :  { %11259 = vst [vmem:[#allocation156_spill] sm:$0xff] %v6694_v52  ;;  %v6701_v50 = vpop.xlane.xlu0 %1096  ;;  %v253_v52 = vld [vmem:[%s11091_s0 + $0x770] sm:$0xff] }
 0x270   :  { %11260 = vst [vmem:[#allocation157_spill] sm:$0xff] %v6696_v61 }
 0x271   :  { %11261 = vst [vmem:[#allocation158_spill] sm:$0xff] %v6701_v50 }
 0x273   :  { %1237 = vadd.xlane.f32.xlu2 %v1236_v7  ;;  %1234 = vadd.xlane.f32.xlu1 %v1233_v26  ;;  %v1242_v7 = vsel %vm527_vm0, %v253_v52, 0.0  ;;  %v1239_v26 = vsel %vm527_vm0, %v252_v15, 0.0  ;;  %v255_v52 = vld [vmem:[%s11091_s0 + $0x780] sm:$0xff] }
 0x274   :  { %1231 = vadd.xlane.f32.xlu0 %v1230_v24  ;;  %v257_v24 = vld [vmem:[%s11091_s0 + $0x790] sm:$0xff] }
 0x275   :  { %v1254_v15 = vsel %vm527_vm0, %v257_v24, 0.0 }
 0x276   :  { %v6712_v61 = vpop.xlane.xlu2 %1111  ;;  %v6714_v50 = vpop.xlane.xlu1 %1108 }
 0x277   :  { %11262 = vst [vmem:[#allocation159_spill] sm:$0xff] %v6712_v61  ;;  %v6719_v25 = vpop.xlane.xlu0 %1105  ;;  %v256_v61 = vld [vmem:[%s11091_s0 + $0x788] sm:$0xff] }
 0x278   :  { %11263 = vst [vmem:[#allocation160_spill] sm:$0xff] %v6714_v50 }
 0x279   :  { %11264 = vst [vmem:[#allocation161_spill] sm:$0xff] %v6719_v25 }
 0x27b   :  { %1246 = vadd.xlane.f32.xlu2 %v1245_v63  ;;  %1243 = vadd.xlane.f32.xlu1 %v1242_v7  ;;  %v1251_v63 = vsel %vm527_vm0, %v256_v61, 0.0  ;;  %v1248_v7 = vsel %vm527_vm0, %v255_v52, 0.0  ;;  %v258_v61 = vld [vmem:[%s11091_s0 + $0x798] sm:$0xff] }
 0x27c   :  { %1240 = vadd.xlane.f32.xlu0 %v1239_v26  ;;  %v260_v26 = vld [vmem:[%s11091_s0 + $0x7a8] sm:$0xff] }
 0x27d   :  { %v1263_v52 = vsel %vm527_vm0, %v260_v26, 0.0 }
 0x27e   :  { %v6730_v50 = vpop.xlane.xlu2 %1120  ;;  %v6732_v25 = vpop.xlane.xlu1 %1117 }
 0x27f   :  { %11265 = vst [vmem:[#allocation162_spill] sm:$0xff] %v6730_v50  ;;  %v6737_v22 = vpop.xlane.xlu0 %1114  ;;  %v259_v50 = vld [vmem:[%s11091_s0 + $0x7a0] sm:$0xff] }
 0x280   :  { %11266 = vst [vmem:[#allocation163_spill] sm:$0xff] %v6732_v25 }
 0x281   :  { %11267 = vst [vmem:[#allocation164_spill] sm:$0xff] %v6737_v22 }
 0x283   :  { %1255 = vadd.xlane.f32.xlu2 %v1254_v15  ;;  %1252 = vadd.xlane.f32.xlu1 %v1251_v63  ;;  %v1260_v15 = vsel %vm527_vm0, %v259_v50, 0.0  ;;  %v1257_v63 = vsel %vm527_vm0, %v258_v61, 0.0  ;;  %v261_v50 = vld [vmem:[%s11091_s0 + $0x7b0] sm:$0xff] }
 0x284   :  { %1249 = vadd.xlane.f32.xlu0 %v1248_v7  ;;  %v263_v7 = vld [vmem:[%s11091_s0 + $0x7c0] sm:$0xff] }
 0x285   :  { %v1272_v61 = vsel %vm527_vm0, %v263_v7, 0.0 }
 0x286   :  { %v6748_v25 = vpop.xlane.xlu2 %1129  ;;  %v6750_v22 = vpop.xlane.xlu1 %1126 }
 0x287   :  { %11268 = vst [vmem:[#allocation165_spill] sm:$0xff] %v6748_v25  ;;  %v6755_v24 = vpop.xlane.xlu0 %1123  ;;  %v262_v25 = vld [vmem:[%s11091_s0 + $0x7b8] sm:$0xff] }
 0x288   :  { %11269 = vst [vmem:[#allocation166_spill] sm:$0xff] %v6750_v22 }
 0x289   :  { %11270 = vst [vmem:[#allocation167_spill] sm:$0xff] %v6755_v24 }
 0x28b   :  { %1264 = vadd.xlane.f32.xlu2 %v1263_v52  ;;  %1261 = vadd.xlane.f32.xlu1 %v1260_v15  ;;  %v1269_v52 = vsel %vm527_vm0, %v262_v25, 0.0  ;;  %v1266_v15 = vsel %vm527_vm0, %v261_v50, 0.0  ;;  %v264_v25 = vld [vmem:[%s11091_s0 + $0x7c8] sm:$0xff] }
 0x28c   :  { %1258 = vadd.xlane.f32.xlu0 %v1257_v63  ;;  %v266_v63 = vld [vmem:[%s11091_s0 + $0x7d8] sm:$0xff] }
 0x28d   :  { %v1281_v50 = vsel %vm527_vm0, %v266_v63, 0.0 }
 0x28e   :  { %v6766_v22 = vpop.xlane.xlu2 %1138  ;;  %v6768_v24 = vpop.xlane.xlu1 %1135 }
 0x28f   :  { %11271 = vst [vmem:[#allocation168_spill] sm:$0xff] %v6766_v22  ;;  %v6773_v26 = vpop.xlane.xlu0 %1132  ;;  %v265_v22 = vld [vmem:[%s11091_s0 + $0x7d0] sm:$0xff] }
 0x290   :  { %11272 = vst [vmem:[#allocation169_spill] sm:$0xff] %v6768_v24 }
 0x291   :  { %11273 = vst [vmem:[#allocation170_spill] sm:$0xff] %v6773_v26 }
 0x293   :  { %1273 = vadd.xlane.f32.xlu2 %v1272_v61  ;;  %1270 = vadd.xlane.f32.xlu1 %v1269_v52  ;;  %v1278_v61 = vsel %vm527_vm0, %v265_v22, 0.0  ;;  %v1275_v52 = vsel %vm527_vm0, %v264_v25, 0.0  ;;  %v267_v22 = vld [vmem:[%s11091_s0 + $0x7e0] sm:$0xff] }
 0x294   :  { %1267 = vadd.xlane.f32.xlu0 %v1266_v15  ;;  %v269_v15 = vld [vmem:[%s11091_s0 + $0x7f0] sm:$0xff] }
 0x295   :  { %v1290_v25 = vsel %vm527_vm0, %v269_v15, 0.0 }
 0x296   :  { %v6784_v24 = vpop.xlane.xlu2 %1147  ;;  %v6786_v26 = vpop.xlane.xlu1 %1144 }
 0x297   :  { %11274 = vst [vmem:[#allocation171_spill] sm:$0xff] %v6784_v24  ;;  %v6791_v7 = vpop.xlane.xlu0 %1141 }
 0x298   :  { %11275 = vst [vmem:[#allocation172_spill] sm:$0xff] %v6786_v26  ;;  %v268_v26 = vld [vmem:[%s11091_s0 + $0x7e8] sm:$0xff] }
 0x299   :  { %11276 = vst [vmem:[#allocation173_spill] sm:$0xff] %v6791_v7 }
 0x29b   :  { %1282 = vadd.xlane.f32.xlu2 %v1281_v50  ;;  %1279 = vadd.xlane.f32.xlu1 %v1278_v61  ;;  %v1287_v50 = vsel %vm527_vm0, %v268_v26, 0.0  ;;  %v1284_v61 = vsel %vm527_vm0, %v267_v22, 0.0  ;;  %v270_v26 = vld [vmem:[%s11091_s0 + $0x7f8] sm:$0xff] }
 0x29c   :  { %1276 = vadd.xlane.f32.xlu0 %v1275_v52  ;;  %v272_v52 = vld [vmem:[%s11091_s0 + $0x808] sm:$0xff] }
 0x29d   :  { %v1299_v22 = vsel %vm527_vm0, %v272_v52, 0.0 }
 0x29e   :  { %v6802_v24 = vpop.xlane.xlu2 %1156  ;;  %v6804_v7 = vpop.xlane.xlu1 %1153 }
 0x29f   :  { %11277 = vst [vmem:[#allocation174_spill] sm:$0xff] %v6802_v24  ;;  %v6809_v63 = vpop.xlane.xlu0 %1150 }
 0x2a0   :  { %11278 = vst [vmem:[#allocation175_spill] sm:$0xff] %v6804_v7  ;;  %v271_v7 = vld [vmem:[%s11091_s0 + $0x800] sm:$0xff] }
 0x2a1   :  { %11279 = vst [vmem:[#allocation176_spill] sm:$0xff] %v6809_v63 }
 0x2a3   :  { %1291 = vadd.xlane.f32.xlu2 %v1290_v25  ;;  %1288 = vadd.xlane.f32.xlu1 %v1287_v50  ;;  %v1296_v25 = vsel %vm527_vm0, %v271_v7, 0.0  ;;  %v1293_v50 = vsel %vm527_vm0, %v270_v26, 0.0  ;;  %v273_v7 = vld [vmem:[%s11091_s0 + $0x810] sm:$0xff] }
 0x2a4   :  { %1285 = vadd.xlane.f32.xlu0 %v1284_v61  ;;  %v275_v61 = vld [vmem:[%s11091_s0 + $0x820] sm:$0xff] }
 0x2a5   :  { %v1308_v26 = vsel %vm527_vm0, %v275_v61, 0.0 }
 0x2a6   :  { %v6820_v24 = vpop.xlane.xlu2 %1165  ;;  %v6822_v63 = vpop.xlane.xlu1 %1162 }
 0x2a7   :  { %11280 = vst [vmem:[#allocation177_spill] sm:$0xff] %v6820_v24  ;;  %v6827_v15 = vpop.xlane.xlu0 %1159  ;;  %v274_v24 = vld [vmem:[%s11091_s0 + $0x818] sm:$0xff] }
 0x2a8   :  { %11281 = vst [vmem:[#allocation178_spill] sm:$0xff] %v6822_v63 }
 0x2a9   :  { %11282 = vst [vmem:[#allocation179_spill] sm:$0xff] %v6827_v15 }
 0x2ab   :  { %1300 = vadd.xlane.f32.xlu2 %v1299_v22  ;;  %1297 = vadd.xlane.f32.xlu1 %v1296_v25  ;;  %v1305_v22 = vsel %vm527_vm0, %v274_v24, 0.0  ;;  %v1302_v25 = vsel %vm527_vm0, %v273_v7, 0.0  ;;  %v276_v24 = vld [vmem:[%s11091_s0 + $0x828] sm:$0xff] }
 0x2ac   :  { %1294 = vadd.xlane.f32.xlu0 %v1293_v50  ;;  %v278_v50 = vld [vmem:[%s11091_s0 + $0x838] sm:$0xff] }
 0x2ad   :  { %v1317_v7 = vsel %vm527_vm0, %v278_v50, 0.0 }
 0x2ae   :  { %v6838_v63 = vpop.xlane.xlu2 %1174  ;;  %v6840_v15 = vpop.xlane.xlu1 %1171 }
 0x2af   :  { %11283 = vst [vmem:[#allocation180_spill] sm:$0xff] %v6838_v63  ;;  %v6845_v52 = vpop.xlane.xlu0 %1168  ;;  %v277_v63 = vld [vmem:[%s11091_s0 + $0x830] sm:$0xff] }
 0x2b0   :  { %11284 = vst [vmem:[#allocation181_spill] sm:$0xff] %v6840_v15 }
 0x2b1   :  { %11285 = vst [vmem:[#allocation182_spill] sm:$0xff] %v6845_v52 }
 0x2b3   :  { %1309 = vadd.xlane.f32.xlu2 %v1308_v26  ;;  %1306 = vadd.xlane.f32.xlu1 %v1305_v22  ;;  %v1314_v26 = vsel %vm527_vm0, %v277_v63, 0.0  ;;  %v1311_v22 = vsel %vm527_vm0, %v276_v24, 0.0  ;;  %v279_v63 = vld [vmem:[%s11091_s0 + $0x840] sm:$0xff] }
 0x2b4   :  { %1303 = vadd.xlane.f32.xlu0 %v1302_v25  ;;  %v281_v25 = vld [vmem:[%s11091_s0 + $0x850] sm:$0xff] }
 0x2b5   :  { %v1326_v24 = vsel %vm527_vm0, %v281_v25, 0.0 }
 0x2b6   :  { %v6856_v15 = vpop.xlane.xlu2 %1183  ;;  %v6858_v52 = vpop.xlane.xlu1 %1180 }
 0x2b7   :  { %11286 = vst [vmem:[#allocation183_spill] sm:$0xff] %v6856_v15  ;;  %v6863_v61 = vpop.xlane.xlu0 %1177  ;;  %v280_v15 = vld [vmem:[%s11091_s0 + $0x848] sm:$0xff] }
 0x2b8   :  { %11287 = vst [vmem:[#allocation184_spill] sm:$0xff] %v6858_v52 }
 0x2b9   :  { %11288 = vst [vmem:[#allocation185_spill] sm:$0xff] %v6863_v61 }
 0x2bb   :  { %1318 = vadd.xlane.f32.xlu2 %v1317_v7  ;;  %1315 = vadd.xlane.f32.xlu1 %v1314_v26  ;;  %v1323_v7 = vsel %vm527_vm0, %v280_v15, 0.0  ;;  %v1320_v26 = vsel %vm527_vm0, %v279_v63, 0.0  ;;  %v282_v15 = vld [vmem:[%s11091_s0 + $0x858] sm:$0xff] }
 0x2bc   :  { %1312 = vadd.xlane.f32.xlu0 %v1311_v22  ;;  %v284_v22 = vld [vmem:[%s11091_s0 + $0x868] sm:$0xff] }
 0x2bd   :  { %v1335_v63 = vsel %vm527_vm0, %v284_v22, 0.0 }
 0x2be   :  { %v6874_v52 = vpop.xlane.xlu2 %1192  ;;  %v6876_v61 = vpop.xlane.xlu1 %1189 }
 0x2bf   :  { %11289 = vst [vmem:[#allocation186_spill] sm:$0xff] %v6874_v52  ;;  %v6881_v50 = vpop.xlane.xlu0 %1186  ;;  %v283_v52 = vld [vmem:[%s11091_s0 + $0x860] sm:$0xff] }
 0x2c0   :  { %11290 = vst [vmem:[#allocation187_spill] sm:$0xff] %v6876_v61 }
 0x2c1   :  { %11291 = vst [vmem:[#allocation188_spill] sm:$0xff] %v6881_v50 }
 0x2c3   :  { %1327 = vadd.xlane.f32.xlu2 %v1326_v24  ;;  %1324 = vadd.xlane.f32.xlu1 %v1323_v7  ;;  %v1332_v24 = vsel %vm527_vm0, %v283_v52, 0.0  ;;  %v1329_v7 = vsel %vm527_vm0, %v282_v15, 0.0  ;;  %v285_v52 = vld [vmem:[%s11091_s0 + $0x870] sm:$0xff] }
 0x2c4   :  { %1321 = vadd.xlane.f32.xlu0 %v1320_v26  ;;  %v287_v26 = vld [vmem:[%s11091_s0 + $0x880] sm:$0xff] }
 0x2c5   :  { %v1344_v15 = vsel %vm527_vm0, %v287_v26, 0.0 }
 0x2c6   :  { %v6892_v61 = vpop.xlane.xlu2 %1201  ;;  %v6894_v50 = vpop.xlane.xlu1 %1198 }
 0x2c7   :  { %11292 = vst [vmem:[#allocation189_spill] sm:$0xff] %v6892_v61  ;;  %v6899_v25 = vpop.xlane.xlu0 %1195 }
 0x2c8   :  { %11293 = vst [vmem:[#allocation190_spill] sm:$0xff] %v6894_v50  ;;  %v286_v50 = vld [vmem:[%s11091_s0 + $0x878] sm:$0xff] }
 0x2c9   :  { %11294 = vst [vmem:[#allocation191_spill] sm:$0xff] %v6899_v25 }
 0x2cb   :  { %1336 = vadd.xlane.f32.xlu2 %v1335_v63  ;;  %1333 = vadd.xlane.f32.xlu1 %v1332_v24  ;;  %v1341_v63 = vsel %vm527_vm0, %v286_v50, 0.0  ;;  %v1338_v24 = vsel %vm527_vm0, %v285_v52, 0.0  ;;  %v288_v50 = vld [vmem:[%s11091_s0 + $0x888] sm:$0xff] }
 0x2cc   :  { %1330 = vadd.xlane.f32.xlu0 %v1329_v7  ;;  %v290_v7 = vld [vmem:[%s11091_s0 + $0x898] sm:$0xff] }
 0x2cd   :  { %v1353_v52 = vsel %vm527_vm0, %v290_v7, 0.0 }
 0x2ce   :  { %v6910_v61 = vpop.xlane.xlu2 %1210  ;;  %v6912_v25 = vpop.xlane.xlu1 %1207 }
 0x2cf   :  { %11295 = vst [vmem:[#allocation192_spill] sm:$0xff] %v6910_v61  ;;  %v6917_v22 = vpop.xlane.xlu0 %1204  ;;  %v289_v61 = vld [vmem:[%s11091_s0 + $0x890] sm:$0xff] }
 0x2d0   :  { %11296 = vst [vmem:[#allocation193_spill] sm:$0xff] %v6912_v25 }
 0x2d1   :  { %11297 = vst [vmem:[#allocation194_spill] sm:$0xff] %v6917_v22 }
 0x2d3   :  { %1345 = vadd.xlane.f32.xlu2 %v1344_v15  ;;  %1342 = vadd.xlane.f32.xlu1 %v1341_v63  ;;  %v1350_v15 = vsel %vm527_vm0, %v289_v61, 0.0  ;;  %v1347_v63 = vsel %vm527_vm0, %v288_v50, 0.0  ;;  %v291_v61 = vld [vmem:[%s11091_s0 + $0x8a0] sm:$0xff] }
 0x2d4   :  { %1339 = vadd.xlane.f32.xlu0 %v1338_v24  ;;  %v293_v24 = vld [vmem:[%s11091_s0 + $0x8b0] sm:$0xff] }
 0x2d5   :  { %v1362_v50 = vsel %vm527_vm0, %v293_v24, 0.0 }
 0x2d6   :  { %v6928_v25 = vpop.xlane.xlu2 %1219  ;;  %v6930_v22 = vpop.xlane.xlu1 %1216 }
 0x2d7   :  { %11298 = vst [vmem:[#allocation195_spill] sm:$0xff] %v6928_v25  ;;  %v6935_v26 = vpop.xlane.xlu0 %1213  ;;  %v292_v25 = vld [vmem:[%s11091_s0 + $0x8a8] sm:$0xff] }
 0x2d8   :  { %11299 = vst [vmem:[#allocation196_spill] sm:$0xff] %v6930_v22 }
 0x2d9   :  { %11300 = vst [vmem:[#allocation197_spill] sm:$0xff] %v6935_v26 }
 0x2db   :  { %1354 = vadd.xlane.f32.xlu2 %v1353_v52  ;;  %1351 = vadd.xlane.f32.xlu1 %v1350_v15  ;;  %v1359_v52 = vsel %vm527_vm0, %v292_v25, 0.0  ;;  %v1356_v15 = vsel %vm527_vm0, %v291_v61, 0.0  ;;  %v294_v25 = vld [vmem:[%s11091_s0 + $0x8b8] sm:$0xff] }
 0x2dc   :  { %1348 = vadd.xlane.f32.xlu0 %v1347_v63  ;;  %v296_v63 = vld [vmem:[%s11091_s0 + $0x8c8] sm:$0xff] }
 0x2dd   :  { %v1371_v61 = vsel %vm527_vm0, %v296_v63, 0.0 }
 0x2de   :  { %v6946_v22 = vpop.xlane.xlu2 %1228  ;;  %v6948_v26 = vpop.xlane.xlu1 %1225 }
 0x2df   :  { %11301 = vst [vmem:[#allocation198_spill] sm:$0xff] %v6946_v22  ;;  %v6953_v7 = vpop.xlane.xlu0 %1222  ;;  %v295_v22 = vld [vmem:[%s11091_s0 + $0x8c0] sm:$0xff] }
 0x2e0   :  { %11302 = vst [vmem:[#allocation199_spill] sm:$0xff] %v6948_v26 }
 0x2e1   :  { %11303 = vst [vmem:[#allocation200_spill] sm:$0xff] %v6953_v7 }
 0x2e3   :  { %1363 = vadd.xlane.f32.xlu2 %v1362_v50  ;;  %1360 = vadd.xlane.f32.xlu1 %v1359_v52  ;;  %v1368_v50 = vsel %vm527_vm0, %v295_v22, 0.0  ;;  %v1365_v52 = vsel %vm527_vm0, %v294_v25, 0.0  ;;  %v297_v22 = vld [vmem:[%s11091_s0 + $0x8d0] sm:$0xff] }
 0x2e4   :  { %1357 = vadd.xlane.f32.xlu0 %v1356_v15  ;;  %v299_v15 = vld [vmem:[%s11091_s0 + $0x8e0] sm:$0xff] }
 0x2e5   :  { %v1380_v25 = vsel %vm527_vm0, %v299_v15, 0.0 }
 0x2e6   :  { %v6964_v26 = vpop.xlane.xlu2 %1237  ;;  %v6966_v7 = vpop.xlane.xlu1 %1234 }
 0x2e7   :  { %11304 = vst [vmem:[#allocation201_spill] sm:$0xff] %v6964_v26  ;;  %v6971_v24 = vpop.xlane.xlu0 %1231  ;;  %v298_v26 = vld [vmem:[%s11091_s0 + $0x8d8] sm:$0xff] }
 0x2e8   :  { %11305 = vst [vmem:[#allocation202_spill] sm:$0xff] %v6966_v7 }
 0x2e9   :  { %11306 = vst [vmem:[#allocation203_spill] sm:$0xff] %v6971_v24 }
 0x2eb   :  { %1372 = vadd.xlane.f32.xlu2 %v1371_v61  ;;  %1369 = vadd.xlane.f32.xlu1 %v1368_v50  ;;  %v1377_v61 = vsel %vm527_vm0, %v298_v26, 0.0  ;;  %v1374_v50 = vsel %vm527_vm0, %v297_v22, 0.0  ;;  %v300_v26 = vld [vmem:[%s11091_s0 + $0x8e8] sm:$0xff] }
 0x2ec   :  { %1366 = vadd.xlane.f32.xlu0 %v1365_v52  ;;  %v302_v52 = vld [vmem:[%s11091_s0 + $0x8f8] sm:$0xff] }
 0x2ed   :  { %v1389_v22 = vsel %vm527_vm0, %v302_v52, 0.0 }
 0x2ee   :  { %v6982_v7 = vpop.xlane.xlu2 %1246  ;;  %v6984_v24 = vpop.xlane.xlu1 %1243 }
 0x2ef   :  { %11307 = vst [vmem:[#allocation204_spill] sm:$0xff] %v6982_v7  ;;  %v6989_v63 = vpop.xlane.xlu0 %1240  ;;  %v301_v7 = vld [vmem:[%s11091_s0 + $0x8f0] sm:$0xff] }
 0x2f0   :  { %11308 = vst [vmem:[#allocation205_spill] sm:$0xff] %v6984_v24 }
 0x2f1   :  { %11309 = vst [vmem:[#allocation206_spill] sm:$0xff] %v6989_v63 }
 0x2f3   :  { %1381 = vadd.xlane.f32.xlu2 %v1380_v25  ;;  %1378 = vadd.xlane.f32.xlu1 %v1377_v61  ;;  %v1386_v25 = vsel %vm527_vm0, %v301_v7, 0.0  ;;  %v1383_v61 = vsel %vm527_vm0, %v300_v26, 0.0  ;;  %v303_v7 = vld [vmem:[%s11091_s0 + $0x900] sm:$0xff] }
 0x2f4   :  { %1375 = vadd.xlane.f32.xlu0 %v1374_v50  ;;  %v305_v50 = vld [vmem:[%s11091_s0 + $0x910] sm:$0xff] }
 0x2f5   :  { %v1398_v26 = vsel %vm527_vm0, %v305_v50, 0.0 }
 0x2f6   :  { %v7000_v24 = vpop.xlane.xlu2 %1255  ;;  %v7002_v63 = vpop.xlane.xlu1 %1252 }
 0x2f7   :  { %11310 = vst [vmem:[#allocation207_spill] sm:$0xff] %v7000_v24  ;;  %v7007_v15 = vpop.xlane.xlu0 %1249  ;;  %v304_v24 = vld [vmem:[%s11091_s0 + $0x908] sm:$0xff] }
 0x2f8   :  { %11311 = vst [vmem:[#allocation208_spill] sm:$0xff] %v7002_v63 }
 0x2f9   :  { %11312 = vst [vmem:[#allocation209_spill] sm:$0xff] %v7007_v15 }
 0x2fb   :  { %1390 = vadd.xlane.f32.xlu2 %v1389_v22  ;;  %1387 = vadd.xlane.f32.xlu1 %v1386_v25  ;;  %v1395_v22 = vsel %vm527_vm0, %v304_v24, 0.0  ;;  %v1392_v25 = vsel %vm527_vm0, %v303_v7, 0.0  ;;  %v306_v24 = vld [vmem:[%s11091_s0 + $0x918] sm:$0xff] }
 0x2fc   :  { %1384 = vadd.xlane.f32.xlu0 %v1383_v61  ;;  %v308_v61 = vld [vmem:[%s11091_s0 + $0x928] sm:$0xff] }
 0x2fd   :  { %v1407_v7 = vsel %vm527_vm0, %v308_v61, 0.0 }
 0x2fe   :  { %v7018_v63 = vpop.xlane.xlu2 %1264  ;;  %v7020_v15 = vpop.xlane.xlu1 %1261 }
 0x2ff   :  { %11313 = vst [vmem:[#allocation210_spill] sm:$0xff] %v7018_v63  ;;  %v7025_v52 = vpop.xlane.xlu0 %1258  ;;  %v307_v63 = vld [vmem:[%s11091_s0 + $0x920] sm:$0xff] }
 0x300   :  { %11314 = vst [vmem:[#allocation211_spill] sm:$0xff] %v7020_v15 }
 0x301   :  { %11315 = vst [vmem:[#allocation212_spill] sm:$0xff] %v7025_v52 }
 0x303   :  { %1399 = vadd.xlane.f32.xlu2 %v1398_v26  ;;  %1396 = vadd.xlane.f32.xlu1 %v1395_v22  ;;  %v1404_v26 = vsel %vm527_vm0, %v307_v63, 0.0  ;;  %v1401_v22 = vsel %vm527_vm0, %v306_v24, 0.0  ;;  %v309_v63 = vld [vmem:[%s11091_s0 + $0x930] sm:$0xff] }
 0x304   :  { %1393 = vadd.xlane.f32.xlu0 %v1392_v25  ;;  %v311_v25 = vld [vmem:[%s11091_s0 + $0x940] sm:$0xff]  ;;  %v2606_v24 = vld [vmem:[%s11092_s1 + $0xf0] sm:$0xff] }
 0x305   :  { %4663 = vmatpush.msra.mxu0 %v2606_v24 }
 0x306   :  { %v7036_v15 = vpop.xlane.xlu2 %1273  ;;  %v7038_v52 = vpop.xlane.xlu1 %1270 }
 0x307   :  { %11316 = vst [vmem:[#allocation213_spill] sm:$0xff] %v7036_v15  ;;  %v7043_v50 = vpop.xlane.xlu0 %1267  ;;  %v310_v15 = vld [vmem:[%s11091_s0 + $0x938] sm:$0xff] }
 0x308   :  { %11317 = vst [vmem:[#allocation214_spill] sm:$0xff] %v7038_v52 }
 0x309   :  { %11318 = vst [vmem:[#allocation215_spill] sm:$0xff] %v7043_v50 }
 0x30b   :  { %1408 = vadd.xlane.f32.xlu2 %v1407_v7  ;;  %1405 = vadd.xlane.f32.xlu1 %v1404_v26  ;;  %v1416_v7 = vsel %vm527_vm0, %v311_v25, 0.0  ;;  %v1413_v26 = vsel %vm527_vm0, %v310_v15, 0.0  ;;  %v314_v15 = vld [vmem:[%s11091_s0 + $0x958] sm:$0xff]  ;;  %v313_v25 = vld [vmem:[%s11091_s0 + $0x950] sm:$0xff] }
 0x30c   :  { %1402 = vadd.xlane.f32.xlu0 %v1401_v22  ;;  %v1410_v22 = vsel %vm527_vm0, %v309_v63, 0.0 }
 0x30e   :  { %v7054_v52 = vpop.xlane.xlu2 %1282  ;;  %v7056_v50 = vpop.xlane.xlu1 %1279 }
 0x30f   :  { %11319 = vst [vmem:[#allocation216_spill] sm:$0xff] %v7054_v52  ;;  %v7061_v61 = vpop.xlane.xlu0 %1276  ;;  %v2604_v52 = vld [vmem:[%s11092_s1 + $0xe0] sm:$0xff] }
 0x310   :  { %11320 = vst [vmem:[#allocation217_spill] sm:$0xff] %v7056_v50  ;;  %4664 = vmatpush.msra.mxu0 %v2604_v52  ;;  %v2602_v50 = vld [vmem:[%s11092_s1 + $0xd0] sm:$0xff]  ;;  %v2600_v52 = vld [vmem:[%s11092_s1 + $0xc0] sm:$0xff] }
 0x311   :  { %11321 = vst [vmem:[#allocation218_spill] sm:$0xff] %v7061_v61  ;;  %v1422_v61 = vsel %vm527_vm0, %v313_v25, 0.0  ;;  %v316_v25 = vld [vmem:[%s11091_s0 + $0x968] sm:$0xff] }
 0x312   :  { %4665 = vmatpush.msra.mxu0 %v2602_v50  ;;  %v312_v50 = vld [vmem:[%s11091_s0 + $0x948] sm:$0xff]  ;;  %v1431_v32 = vsel %vm527_vm0, %v316_v25, 0.0  ;;  %v2064_v25 = vmul.f32 0.0625, %v5567_v31 }
 0x313   :  { %1417 = vadd.xlane.f32.xlu2 %v1416_v7  ;;  %1414 = vadd.xlane.f32.xlu1 %v1413_v26  ;;  %v2598_v26 = vld [vmem:[%s11092_s1 + $0xb0] sm:$0xff] }
 0x314   :  { %1411 = vadd.xlane.f32.xlu0 %v1410_v22  ;;  %4666 = vmatpush.msra.mxu0 %v2600_v52  ;;  %v1425_v22 = vsel %vm527_vm0, %v314_v15, 0.0  ;;  %v2594_v52 = vld [vmem:[%s11092_s1 + $0x90] sm:$0xff] }
 0x315   :  { %v317_v15 = vld [vmem:[%s11091_s0 + $0x970] sm:$0xff] }
 0x316   :  { %v7084_v63 = vpop.xlane.xlu2 %1291  ;;  %v7086_v24 = vpop.xlane.xlu1 %1288  ;;  %4667 = vmatpush.msra.mxu0 %v2598_v26 }
 0x317   :  { %11322 = vst [vmem:[#allocation219_spill] sm:$0xff] %v7084_v63  ;;  %v7091_v7 = vpop.xlane.xlu0 %1285  ;;  %v1419_v63 = vsel %vm527_vm0, %v312_v50, 0.0 }
 0x318   :  { %11323 = vst [vmem:[#allocation220_spill] sm:$0xff] %v7086_v24  ;;  %v2596_v24 = vld [vmem:[%s11092_s1 + $0xa0] sm:$0xff] }
 0x319   :  { %11324 = vst [vmem:[#allocation221_spill] sm:$0xff] %v7091_v7  ;;  %4668 = vmatpush.msra.mxu0 %v2596_v24  ;;  %v3606_v7 = vlaneseq  ;;  %v2592_v24 = vld [vmem:[%s11092_s1 + $0x80] sm:$0xff] }
 0x31b   :  { %1426 = vadd.xlane.f32.xlu2 %v1425_v22  ;;  %1423 = vadd.xlane.f32.xlu1 %v1422_v61  ;;  %v2590_v22 = vld [vmem:[%s11092_s1 + $0x70] sm:$0xff]  ;;  %v7124_v44 = vand.u32 127, %v3606_v7  ;;  %v2584_v7 = vld [vmem:[%s11092_s1 + $0x40] sm:$0xff] }
 0x31c   :  { %1420 = vadd.xlane.f32.xlu0 %v1419_v63  ;;  %4669 = vmatpush.msra.mxu0 %v2594_v52  ;;  %v315_v63 = vld [vmem:[%s11091_s0 + $0x960] sm:$0xff]  ;;  %v1434_v52 = vsel %vm527_vm0, %v317_v15, 0.0  ;;  %v2586_v15 = vld [vmem:[%s11092_s1 + $0x50] sm:$0xff] }
 0x31d   :  { %v1428_v51 = vsel %vm527_vm0, %v315_v63, 0.0  ;;  %v7162_v14 = vadd.s32 4294967272, %v7124_v44  ;;  %v7212_v49 = vadd.s32 4294967240, %v7124_v44 }
 0x31e   :  { %v1301_v61 = vpop.xlane.xlu2 %1300  ;;  %v1298_v50 = vpop.xlane.xlu1 %1297  ;;  %4670 = vmatpush.msra.mxu0 %v2592_v24  ;;  %v7131_v24 = vadd.s32 4294967288, %v7124_v44 }
 0x31f   :  { %v7117_v26 = vpop.xlane.xlu0 %1294 }
 0x320   :  { %11325 = vst [vmem:[#allocation222_spill] sm:$0xff] %v7117_v26  ;;  %4671 = vmatpush.msra.mxu0 %v2590_v22  ;;  %v2065_v26 = vmul.f32 0.0625, %v5585_v40  ;;  %v319_v40 = vld [vmem:[%s11091_s0 + $0x980] sm:$0xff]  ;;  %v318_v22 = vld [vmem:[%s11091_s0 + $0x978] sm:$0xff] }
 0x321   :  { %v1440_v13 = vsel %vm527_vm0, %v319_v40, 0.0 }
 0x322   :  { %4672 = vmatpush.msra.mxu0 %v2588_v2  ;;  %v320_v2 = vld [vmem:[%s11091_s0 + $0x988] sm:$0xff]  ;;  %v3610_v31 = vperm.slane %v2065_v26, %v7131_v24  ;;  %v2580_v26 = vld [vmem:[%s11092_s1 + $0x20] sm:$0xff] }
 0x323   :  { %1435 = vadd.xlane.f32.xlu2 %v1434_v52  ;;  %1432 = vadd.xlane.f32.xlu1 %v1431_v32  ;;  %v7148_v32 = vadd.s32 4294967280, %v7124_v44  ;;  %v2321_v52 = vmul.f32 0.0625, %v1301_v61  ;;  %v1443_v48 = vsel %vm527_vm0, %v320_v2, 0.0  ;;  %v2067_v61 = vmul.f32 0.0625, %v5580_v38 }
 0x324   :  { %1429 = vadd.xlane.f32.xlu0 %v1428_v51  ;;  %4673 = vmatpush.msra.mxu0 %v2586_v15  ;;  %v2320_v15 = vmul.f32 0.0625, %v1298_v50  ;;  %v1437_v50 = vsel %vm527_vm0, %v318_v22, 0.0  ;;  %v2576_v22 = vld [vmem:[%s11092_s1] sm:$0xff] }
 0x325   :  { %v3614_v38 = vperm.slane %v2066_v34, %v7148_v32  ;;  %v322_v34 = vld [vmem:[%s11091_s0 + $0x998] sm:$0xff] }
 0x326   :  { %v1310_v63 = vpop.xlane.xlu2 %1309  ;;  %v1307_v51 = vpop.xlane.xlu1 %1306  ;;  %4674 = vmatpush.msra.mxu0 %v2584_v7  ;;  %v3608_v7 = vperm.slane %v2064_v25, %v7124_v44  ;;  %v4134_v25 = vperm.slane %v2320_v15, %v7124_v44  ;;  %v1449_v62 = vsel %vm527_vm0, %v322_v34, 0.0 }
 0x327   :  { %v1304_v11 = vpop.xlane.xlu0 %1303  ;;  %v2323_v2 = vmul.f32 0.0625, %v1307_v51  ;;  %v3618_v51 = vperm.slane %v2067_v61, %v7162_v14  ;;  %v2324_v15 = vmul.f32 0.0625, %v1310_v63  ;;  %v321_v61 = vld [vmem:[%s11091_s0 + $0x990] sm:$0xff] }
 0x328   :  { %v2322_v39 = vmul.f32 0.0625, %v1304_v11  ;;  %4675 = vmatpush.msra.mxu0 %v2582_v4  ;;  %v3612_v4 = vsel %vm3611_vm1, %v3610_v31, %v3608_v7  ;;  %v4135_v11 = vperm.slane %v2321_v52, %v7131_v24  ;;  %v7184_v31 = vadd.s32 4294967256, %v7124_v44 }
 0x329   :  { %v7196_v52 = vadd.s32 4294967248, %v7124_v44 }
 0x32a   :  { %4676 = vmatpush.msra.mxu0 %v2580_v26  ;;  %v4137_v40 = vperm.slane %v2322_v39, %v7148_v32  ;;  %v7181_v26 = vadd.s32 4294967264, %v7124_v44  ;;  %v2068_v39 = vmul.f32 0.0625, %v5560_v28  ;;  %v4136_v53 = vsel %vm3611_vm1, %v4135_v11, %v4134_v25 }
 0x32b   :  { %1444 = vadd.xlane.f32.xlu2 %v1443_v48  ;;  %1441 = vadd.xlane.f32.xlu1 %v1440_v13  ;;  %v323_v13 = vld [vmem:[%s11091_s0 + $0x9a0] sm:$0xff]  ;;  %v3616_v48 = vsel %vm3615_vm2, %v3614_v38, %v3612_v4  ;;  %v4139_v28 = vperm.slane %v2323_v2, %v7162_v14  ;;  %v2071_v2 = vmul.f32 0.0625, %v5598_v47  ;;  %v3630_v34 = vperm.slane %v2070_v16, %v7196_v52  ;;  %v326_v47 = vld [vmem:[%s11091_s0 + $0x9b8] sm:$0xff] }
 0x32c   :  { %1438 = vadd.xlane.f32.xlu0 %v1437_v50  ;;  %4677 = vmatpush.msra.mxu0 %v2578_v29  ;;  %v2069_v29 = vmul.f32 0.0625, %v5578_v37  ;;  %v4138_v38 = vsel %vm3615_vm2, %v4137_v40, %v4136_v53  ;;  %v1452_v63 = vsel %vm527_vm0, %v323_v13, 0.0  ;;  %v3620_v35 = vsel %vm3619_vm3, %v3618_v51, %v3616_v48 }
 0x32d   :  { %v3622_v37 = vperm.slane %v2068_v39, %v7181_v26  ;;  %v4141_v11 = vperm.slane %v2324_v15, %v7181_v26  ;;  %v4140_v40 = vsel %vm3619_vm3, %v4139_v28, %v4138_v38  ;;  %v7222_v39 = vadd.s32 4294967232, %v7124_v44 }
 0x32e   :  { %v1319_v7 = vpop.xlane.xlu2 %1318  ;;  %v1316_v50 = vpop.xlane.xlu1 %1315  ;;  %4678 = vmatpush.msra.mxu0 %v2576_v22  ;;  %v1446_v22 = vsel %vm527_vm0, %v321_v61, 0.0  ;;  %v3626_v53 = vperm.slane %v2069_v29, %v7184_v31  ;;  %v3634_v29 = vperm.slane %v2071_v2, %v7212_v49  ;;  %v7250_v2 = vadd.s32 4294967216, %v7124_v44 }
 0x32f   :  { %v1313_v4 = vpop.xlane.xlu0 %1312  ;;  %v2326_v25 = vmul.f32 0.0625, %v1316_v50  ;;  %v3624_v51 = vsel %vm3623_vm4, %v3622_v37, %v3620_v35  ;;  %v2327_v48 = vmul.f32 0.0625, %v1319_v7  ;;  %v2072_v35 = vmul.f32 0.0625, %v5596_v46  ;;  %v324_v7 = vld [vmem:[%s11091_s0 + $0x9a8] sm:$0xff] }
 0x330   :  { %v2325_v59 = vmul.f32 0.0625, %v1313_v4  ;;  %v4142_v15 = vsel %vm3623_vm4, %v4141_v11, %v4140_v40  ;;  %v3628_v28 = vsel %vm3627_vm5, %v3626_v53, %v3624_v51  ;;  %v2073_v4 = vmul.f32 0.0625, %v5621_v58 }
 0x331   :  { %v4145_v16 = vperm.slane %v2326_v25, %v7196_v52  ;;  %v1461_v37 = vsel %vm527_vm0, %v326_v47, 0.0  ;;  %v2638_v25 = vld [vmem:[%s11092_s1 + $0x1f0] sm:$0xff]  ;;  %v4147_v53 = vperm.slane %v2327_v48, %v7212_v49  ;;  %v1455_v40 = vsel %vm527_vm0, %v324_v7, 0.0 }
 0x332   :  { %v4143_v13 = vperm.slane %v2325_v59, %v7184_v31  ;;  %v325_v59 = vld [vmem:[%s11091_s0 + $0x9b0] sm:$0xff]  ;;  %4683 = vmatpush.msra.mxu1 %v2638_v25  ;;  %v2074_v51 = vmul.f32 0.0625, %v5616_v56  ;;  %v2075_v7 = vmul.f32 0.0625, %v5614_v55  ;;  %v2076_v55 = vmul.f32 0.0625, %v5639_v3  ;;  %v327_v25 = vld [vmem:[%s11091_s0 + $0x9c0] sm:$0xff] }
 0x333   :  { %1453 = vadd.xlane.f32.xlu2 %v1452_v63  ;;  %1450 = vadd.xlane.f32.xlu1 %v1449_v62  ;;  %v7232_v62 = vadd.s32 4294967224, %v7124_v44  ;;  %v3632_v63 = vsel %vm3631_vm6, %v3630_v34, %v3628_v28  ;;  %v1458_v11 = vsel %vm527_vm0, %v325_v59, 0.0  ;;  %v2636_v59 = vld [vmem:[%s11092_s1 + $0x1e0] sm:$0xff] }
 0x334   :  { %1447 = vadd.xlane.f32.xlu0 %v1446_v22  ;;  %v4144_v46 = vsel %vm3627_vm5, %v4143_v13, %v4142_v15  ;;  %v3638_v13 = vperm.slane %v2072_v35, %v7222_v39  ;;  %v3636_v15 = vsel %vm3635_vm7, %v3634_v29, %v3632_v63  ;;  %v329_v35 = vld [vmem:[%s11091_s0 + $0x9d0] sm:$0xff]  ;;  %4684 = vmatpush.msra.mxu1 %v2636_v59  ;;  %v7274_v29 = vadd.s32 4294967200, %v7124_v44 }
 0x335   :  { %v4146_v34 = vsel %vm3631_vm6, %v4145_v16, %v4144_v46  ;;  %v3642_v48 = vperm.slane %v2073_v4, %v7232_v62  ;;  %v2634_v16 = vld [vmem:[%s11092_s1 + $0x1d0] sm:$0xff]  ;;  %v2632_v46 = vld [vmem:[%s11092_s1 + $0x1c0] sm:$0xff] }
 0x336   :  { %v1328_v50 = vpop.xlane.xlu2 %1327  ;;  %v1325_v61 = vpop.xlane.xlu1 %1324  ;;  %v4148_v4 = vsel %vm3635_vm7, %v4147_v53, %v4146_v34  ;;  %v3640_v63 = vsel %vm11098_vm8, %v3638_v13, %v3636_v15  ;;  %4685 = vmatpush.msra.mxu1 %v2634_v16  ;;  %v1470_v13 = vsel %vm527_vm0, %v329_v35, 0.0  ;;  %v2630_v59 = vld [vmem:[%s11092_s1 + $0x1b0] sm:$0xff] }
 0x337   :  { %v1322_v38 = vpop.xlane.xlu0 %1321  ;;  %v2329_v58 = vmul.f32 0.0625, %v1325_v61  ;;  %v7264_v61 = vadd.s32 4294967208, %v7124_v44  ;;  %v2330_v56 = vmul.f32 0.0625, %v1328_v50  ;;  %v328_v50 = vld [vmem:[%s11091_s0 + $0x9c8] sm:$0xff]  ;;  %v3644_v53 = vsel %vm11097_vm9, %v3642_v48, %v3640_v63 }
 0x338   :  { %v2328_v22 = vmul.f32 0.0625, %v1322_v38  ;;  %v3646_v38 = vperm.slane %v2074_v51, %v7250_v2  ;;  %4686 = vmatpush.msra.mxu1 %v2632_v46  ;;  %v2077_v48 = vmul.f32 0.0625, %v5634_v1  ;;  %v2628_v46 = vld [vmem:[%s11092_s1 + $0x1a0] sm:$0xff]  ;;  %v2078_v1 = vmul.f32 0.0625, %v5632_v0 }
 0x339   :  { %v4151_v28 = vperm.slane %v2329_v58, %v7232_v62  ;;  %v7293_v58 = vadd.s32 4294967192, %v7124_v44  ;;  %v4153_v3 = vperm.slane %v2330_v56, %v7250_v2  ;;  %v3650_v15 = vperm.slane %v2075_v7, %v7264_v61 }
 0x33a   :  { %v4149_v47 = vperm.slane %v2328_v22, %v7222_v39  ;;  %v3648_v35 = vsel %vm11096_vm10, %v3646_v38, %v3644_v53  ;;  %v3654_v56 = vperm.slane %v2076_v55, %v7274_v29  ;;  %4687 = vmatpush.msra.mxu1 %v2630_v59  ;;  %v7312_v7 = vadd.s32 4294967184, %v7124_v44  ;;  %v332_v53 = vld [vmem:[%s11091_s0 + $0x9e8] sm:$0xff] }
 0x33b   :  { %1462 = vadd.xlane.f32.xlu2 %v1461_v37  ;;  %1459 = vadd.xlane.f32.xlu1 %v1458_v11  ;;  %v7316_v38 = vadd.s32 4294967176, %v7124_v44  ;;  %v3652_v0 = vsel %vm3651_vm11, %v3650_v15, %v3648_v35 }
 0x33c   :  { %1456 = vadd.xlane.f32.xlu0 %v1455_v40  ;;  %v4150_v22 = vsel %vm11098_vm8, %v4149_v47, %v4148_v4  ;;  %v1467_v47 = vsel %vm527_vm0, %v328_v50, 0.0  ;;  %v1464_v4 = vsel %vm527_vm0, %v327_v25, 0.0  ;;  %4688 = vmatpush.msra.mxu1 %v2628_v46 }
 0x33d   :  { %v4152_v16 = vsel %vm11097_vm9, %v4151_v28, %v4150_v22  ;;  %v2626_v22 = vld [vmem:[%s11092_s1 + $0x190] sm:$0xff] }
 0x33e   :  { %v1337_v37 = vpop.xlane.xlu2 %1336  ;;  %v1334_v11 = vpop.xlane.xlu1 %1333  ;;  %v4154_v55 = vsel %vm11096_vm10, %v4153_v3, %v4152_v16  ;;  %v3656_v3 = vsel %vm11095_vm12, %v3654_v56, %v3652_v0  ;;  %4689 = vmatpush.msra.mxu1 %v2626_v22  ;;  %v2081_v22 = vmul.f32 0.0625, %v5650_v9 }
 0x33f   :  { %v1331_v40 = vpop.xlane.xlu0 %1330  ;;  %v2332_v51 = vmul.f32 0.0625, %v1334_v11  ;;  %v2333_v28 = vmul.f32 0.0625, %v1337_v37  ;;  %v3658_v11 = vperm.slane %v2077_v48, %v7293_v58  ;;  %v2079_v37 = vmul.f32 0.0625, %v5657_v12  ;;  %v330_v12 = vld [vmem:[%s11091_s0 + $0x9d8] sm:$0xff] }
 0x340   :  { %v2331_v34 = vmul.f32 0.0625, %v1331_v40  ;;  %v331_v40 = vld [vmem:[%s11091_s0 + $0x9e0] sm:$0xff] }
 0x341   :  { %v4157_v63 = vperm.slane %v2332_v51, %v7274_v29  ;;  %v4159_v59 = vperm.slane %v2333_v28, %v7293_v58  ;;  %v1476_v35 = vsel %vm527_vm0, %v331_v40, 0.0  ;;  %v3666_v46 = vperm.slane %v2079_v37, %v7316_v38  ;;  %v2618_v40 = vld [vmem:[%s11092_s1 + $0x150] sm:$0xff] }
 0x342   :  { %v4155_v50 = vperm.slane %v2331_v34, %v7264_v61  ;;  %v1473_v28 = vsel %vm527_vm0, %v330_v12, 0.0  ;;  %v2082_v37 = vmul.f32 0.0625, %v5675_v21  ;;  %v335_v21 = vld [vmem:[%s11091_s0 + $0xa00] sm:$0xff] }
 0x343   :  { %1471 = vadd.xlane.f32.xlu2 %v1470_v13  ;;  %1468 = vadd.xlane.f32.xlu1 %v1467_v47  ;;  %v2624_v13 = vld [vmem:[%s11092_s1 + $0x180] sm:$0xff]  ;;  %v3662_v47 = vperm.slane %v2078_v1, %v7312_v7 }
 0x344   :  { %1465 = vadd.xlane.f32.xlu0 %v1464_v4  ;;  %v4156_v25 = vsel %vm3651_vm11, %v4155_v50, %v4154_v55  ;;  %v1479_v4 = vsel %vm527_vm0, %v332_v53, 0.0  ;;  %4690 = vmatpush.msra.mxu1 %v2624_v13  ;;  %v2622_v50 = vld [vmem:[%s11092_s1 + $0x170] sm:$0xff]  ;;  %v3660_v55 = vsel %vm3659_vm13, %v3658_v11, %v3656_v3  ;;  %v334_v3 = vld [vmem:[%s11091_s0 + $0x9f8] sm:$0xff] }
 0x345   :  { %v4158_v56 = vsel %vm11095_vm12, %v4157_v63, %v4156_v25  ;;  %v2620_v63 = vld [vmem:[%s11092_s1 + $0x160] sm:$0xff]  ;;  %v2080_v25 = vmul.f32 0.0625, %v5652_v10  ;;  %vm4630_vm12 = vcmask 1041409   ;;  %v3664_v9 = vsel %vm3663_vm14, %v3662_v47, %v3660_v55  ;;  %v2614_v55 = vld [vmem:[%s11092_s1 + $0x130] sm:$0xff] }
 0x346   :  { %v1346_v51 = vpop.xlane.xlu2 %1345  ;;  %v1343_v34 = vpop.xlane.xlu1 %1342  ;;  %4691 = vmatpush.msra.mxu1 %v2622_v50  ;;  %v4160_v53 = vsel %vm3659_vm13, %v4159_v59, %v4158_v56  ;;  %v3668_v13 = vsel %vm3667_vm15, %v3666_v46, %v3664_v9 }
 0x347   :  { %v2335_v15 = vmul.f32 0.0625, %v1343_v34  ;;  %v1340_v48 = vpop.xlane.xlu0 %1339  ;;  %v2616_v34 = vld [vmem:[%s11092_s1 + $0x140] sm:$0xff]  ;;  %v2336_v50 = vmul.f32 0.0625, %v1346_v51 }
 0x348   :  { %v2334_v16 = vmul.f32 0.0625, %v1340_v48  ;;  %4692 = vmatpush.msra.mxu1 %v2620_v63  ;;  %v3670_v48 = vperm.slane %v2081_v22, %v7131_v24 }
 0x349   :  { %v4163_v1 = vperm.slane %v2335_v15, %v7316_v38  ;;  %v333_v15 = vld [vmem:[%s11091_s0 + $0x9f0] sm:$0xff]  ;;  %v4165_v9 = vperm.slane %v2336_v50, %v7124_v44 }
 0x34a   :  { %v4161_v0 = vperm.slane %v2334_v16, %v7312_v7  ;;  %4693 = vmatpush.msra.mxu1 %v2618_v40  ;;  %v3669_v16 = vperm.slane %v2080_v25, %v7124_v44  ;;  %v1482_v22 = vsel %vm527_vm0, %v333_v15, 0.0  ;;  %v2085_v25 = vmul.f32 0.0625, %v5693_v33  ;;  %v338_v40 = vld [vmem:[%s11091_s0 + $0xa18] sm:$0xff]  ;;  %v337_v33 = vld [vmem:[%s11091_s0 + $0xa10] sm:$0xff] }
 0x34b   :  { %1480 = vadd.xlane.f32.xlu2 %v1479_v4  ;;  %1477 = vadd.xlane.f32.xlu1 %v1476_v35  ;;  %v2083_v4 = vmul.f32 0.0625, %v5670_v19  ;;  %v3672_v35 = vperm.slane %v2082_v37, %v7148_v32  ;;  %v2084_v19 = vmul.f32 0.0625, %v5668_v18 }
 0x34c   :  { %1474 = vadd.xlane.f32.xlu0 %v1473_v28  ;;  %v4162_v11 = vsel %vm3663_vm14, %v4161_v0, %v4160_v53  ;;  %v1485_v28 = vsel %vm527_vm0, %v334_v3, 0.0  ;;  %4694 = vmatpush.msra.mxu1 %v2616_v34  ;;  %v2612_v0 = vld [vmem:[%s11092_s1 + $0x120] sm:$0xff]  ;;  %v3671_v51 = vsel %vm3611_vm1, %v3670_v48, %v3669_v16  ;;  %v2086_v48 = vmul.f32 0.0625, %v5688_v30 }
 0x34d   :  { %v4164_v10 = vsel %vm3667_vm15, %v4163_v1, %v4162_v11  ;;  %v1488_v1 = vsel %vm527_vm0, %v335_v21, 0.0  ;;  %v3674_v63 = vperm.slane %v2083_v4, %v7162_v14  ;;  %v3673_v53 = vsel %vm3615_vm2, %v3672_v35, %v3671_v51  ;;  %v2610_v11 = vld [vmem:[%s11092_s1 + $0x110] sm:$0xff] }
 0x34e   :  { %v1355_v12 = vpop.xlane.xlu2 %1354  ;;  %v1352_v47 = vpop.xlane.xlu1 %1351  ;;  %v7377_v59 = vsel %vm4630_vm12, %v4164_v10, %v3668_v13  ;;  %4695 = vmatpush.msra.mxu1 %v2614_v55  ;;  %v2608_v13 = vld [vmem:[%s11092_s1 + $0x100] sm:$0xff]  ;;  %v3676_v10 = vperm.slane %v2084_v19, %v7181_v26  ;;  %v3678_v16 = vperm.slane %v2085_v25, %v7184_v31  ;;  %v3680_v19 = vperm.slane %v2086_v48, %v7196_v52 }
 0x34f   :  { %4679 = vmatmul.f32.vlgmr.msra.gmra.mxu0 %v7377_v59  ;;  %v1349_v56 = vpop.xlane.xlu0 %1348  ;;  %v2338_v37 = vmul.f32 0.0625, %v1352_v47  ;;  %v2339_v21 = vmul.f32 0.0625, %v1355_v12  ;;  %v336_v47 = vld [vmem:[%s11091_s0 + $0xa08] sm:$0xff]  ;;  %v3675_v15 = vsel %vm3619_vm3, %v3674_v63, %v3673_v53  ;;  %v1497_v12 = vsel %vm527_vm0, %v338_v40, 0.0  ;;  %v341_v53 = vld [vmem:[%s11091_s0 + $0xa30] sm:$0xff] }
 0x350   :  { %v2337_v46 = vmul.f32 0.0625, %v1349_v56  ;;  %4696 = vmatpush.msra.mxu1 %v2612_v0  ;;  %v2088_v25 = vmul.f32 0.0625, %v5711_v45  ;;  %v339_v45 = vld [vmem:[%s11091_s0 + $0xa20] sm:$0xff] }
 0x351   :  { %v4168_v4 = vperm.slane %v2338_v37, %v7148_v32  ;;  %v4170_v55 = vperm.slane %v2339_v21, %v7162_v14 }
 0x352   :  { %v4166_v18 = vperm.slane %v2337_v46, %v7131_v24  ;;  %4697 = vmatpush.msra.mxu1 %v2610_v11  ;;  %v1494_v46 = vsel %vm527_vm0, %v337_v33, 0.0 }
 0x353   :  { %1489 = vadd.xlane.f32.xlu2 %v1488_v1  ;;  %1486 = vadd.xlane.f32.xlu1 %v1485_v28  ;;  %v1491_v1 = vsel %vm527_vm0, %v336_v47, 0.0  ;;  %v3677_v28 = vsel %vm3623_vm4, %v3676_v10, %v3675_v15  ;;  %v2089_v10 = vmul.f32 0.0625, %v5706_v43  ;;  %v1506_v15 = vsel %vm527_vm0, %v341_v53, 0.0  ;;  %v342_v53 = vld [vmem:[%s11091_s0 + $0xa38] sm:$0xff] }
 0x354   :  { %1483 = vadd.xlane.f32.xlu0 %v1482_v22  ;;  %v4167_v56 = vsel %vm3611_vm1, %v4166_v18, %v4165_v9  ;;  %4698 = vmatpush.msra.mxu1 %v2608_v13  ;;  %v2087_v22 = vmul.f32 0.0625, %v5686_v27  ;;  %v3679_v63 = vsel %vm3627_vm5, %v3678_v16, %v3677_v28  ;;  %v340_v27 = vld [vmem:[%s11091_s0 + $0xa28] sm:$0xff] }
 0x355   :  { %v4169_v0 = vsel %vm3615_vm2, %v4168_v4, %v4167_v56  ;;  %v3681_v13 = vsel %vm3631_vm6, %v3680_v19, %v3679_v63  ;;  %v1503_v48 = vsel %vm527_vm0, %v340_v27, 0.0  ;;  %v2090_v56 = vmul.f32 0.0625, %v5704_v42  ;;  %v344_v42 = vld [vmem:[%s11091_s0 + $0xa48] sm:$0xff]  ;;  %v343_v19 = vld [vmem:[%s11091_s0 + $0xa40] sm:$0xff] }
 0x356   :  { %v1364_v3 = vpop.xlane.xlu2 %1363  ;;  %v1361_v34 = vpop.xlane.xlu1 %1360  ;;  %v4171_v18 = vsel %vm3619_vm3, %v4170_v55, %v4169_v0  ;;  %v3682_v33 = vperm.slane %v2087_v22, %v7212_v49 }
 0x357   :  { %v1358_v35 = vpop.xlane.xlu0 %1357  ;;  %v2341_v30 = vmul.f32 0.0625, %v1361_v34  ;;  %v2342_v37 = vmul.f32 0.0625, %v1364_v3  ;;  %v3684_v34 = vperm.slane %v2088_v25, %v7222_v39  ;;  %v3688_v0 = vperm.slane %v2090_v56, %v7250_v2 }
 0x358   :  { %v2340_v50 = vmul.f32 0.0625, %v1358_v35  ;;  %v1500_v35 = vsel %vm527_vm0, %v339_v45, 0.0 }
 0x359   :  { %v4174_v9 = vperm.slane %v2341_v30, %v7184_v31  ;;  %v4176_v16 = vperm.slane %v2342_v37, %v7196_v52 }
 0x35a   :  { %v4172_v51 = vperm.slane %v2340_v50, %v7181_v26 }
 0x35b   :  { %1498 = vadd.xlane.f32.xlu2 %v1497_v12  ;;  %1495 = vadd.xlane.f32.xlu1 %v1494_v46  ;;  %v3686_v12 = vperm.slane %v2089_v10, %v7232_v62  ;;  %v3683_v46 = vsel %vm3635_vm7, %v3682_v33, %v3681_v13  ;;  %v1512_v33 = vsel %vm527_vm0, %v343_v19, 0.0  ;;  %v2668_v13 = vld [vmem:[%s11092_s1 + $0x2e0] sm:$0xff] }
 0x35c   :  { %1492 = vadd.xlane.f32.xlu0 %v1491_v1  ;;  %v4173_v21 = vsel %vm3623_vm4, %v4172_v51, %v4171_v18  ;;  %v2091_v1 = vmul.f32 0.0625, %v5729_v60  ;;  %v3685_v28 = vsel %vm11098_vm8, %v3684_v34, %v3683_v46  ;;  %v2670_v60 = vld [vmem:[%s11092_s1 + $0x2f0] sm:$0xff]  ;;  %v2092_v51 = vmul.f32 0.0625, %v5724_v57 }
 0x35d   :  { %v4175_v50 = vsel %vm3627_vm5, %v4174_v9, %v4173_v21  ;;  %4703 = vmatpush.msra.mxu2 %v2670_v60  ;;  %v3687_v27 = vsel %vm11097_vm9, %v3686_v12, %v3685_v28  ;;  %v1509_v21 = vsel %vm527_vm0, %v342_v53, 0.0  ;;  %v347_v12 = vld [vmem:[%s11091_s0 + $0xa60] sm:$0xff]  ;;  %v2662_v46 = vld [vmem:[%s11092_s1 + $0x2b0] sm:$0xff]  ;;  %v2095_v28 = vmul.f32 0.0625, %v5742_v6 }
 0x35e   :  { %v1373_v11 = vpop.xlane.xlu2 %1372  ;;  %v1370_v40 = vpop.xlane.xlu1 %1369  ;;  %v4177_v22 = vsel %vm3631_vm6, %v4176_v16, %v4175_v50  ;;  %v3690_v9 = vperm.slane %v2091_v1, %v7264_v61  ;;  %v3692_v34 = vperm.slane %v2092_v51, %v7274_v29  ;;  %v2664_v50 = vld [vmem:[%s11092_s1 + $0x2c0] sm:$0xff]  ;;  %v1524_v6 = vsel %vm527_vm0, %v347_v12, 0.0 }
 0x35f   :  { %v1367_v3 = vpop.xlane.xlu0 %1366  ;;  %v2344_v4 = vmul.f32 0.0625, %v1370_v40  ;;  %v2345_v55 = vmul.f32 0.0625, %v1373_v11  ;;  %v1515_v11 = vsel %vm527_vm0, %v344_v42, 0.0  ;;  %4704 = vmatpush.msra.mxu2 %v2668_v13 }
 0x360   :  { %v2343_v47 = vmul.f32 0.0625, %v1367_v3  ;;  %v2093_v3 = vmul.f32 0.0625, %v5722_v54 }
 0x361   :  { %v4180_v30 = vperm.slane %v2344_v4, %v7222_v39  ;;  %v4182_v40 = vperm.slane %v2345_v55, %v7232_v62  ;;  %v2094_v4 = vmul.f32 0.0625, %v5747_v8  ;;  %v346_v8 = vld [vmem:[%s11091_s0 + $0xa58] sm:$0xff] }
 0x362   :  { %v4178_v43 = vperm.slane %v2343_v47, %v7212_v49  ;;  %v3689_v47 = vsel %vm11096_vm10, %v3688_v0, %v3687_v27  ;;  %v3694_v1 = vperm.slane %v2093_v3, %v7293_v58  ;;  %v1521_v53 = vsel %vm527_vm0, %v346_v8, 0.0  ;;  %v2660_v27 = vld [vmem:[%s11092_s1 + $0x2a0] sm:$0xff] }
 0x363   :  { %1507 = vadd.xlane.f32.xlu2 %v1506_v15  ;;  %1504 = vadd.xlane.f32.xlu1 %v1503_v48  ;;  %v2666_v48 = vld [vmem:[%s11092_s1 + $0x2d0] sm:$0xff]  ;;  %v3691_v16 = vsel %vm3651_vm11, %v3690_v9, %v3689_v47  ;;  %v3696_v19 = vperm.slane %v2094_v4, %v7312_v7  ;;  %v2656_v3 = vld [vmem:[%s11092_s1 + $0x280] sm:$0xff]  ;;  %v350_v47 = vld [vmem:[%s11091_s0 + $0xa78] sm:$0xff] }
 0x364   :  { %1501 = vadd.xlane.f32.xlu0 %v1500_v35  ;;  %v4179_v63 = vsel %vm3635_vm7, %v4178_v43, %v4177_v22  ;;  %4705 = vmatpush.msra.mxu2 %v2666_v48  ;;  %v2654_v48 = vld [vmem:[%s11092_s1 + $0x270] sm:$0xff] }
 0x365   :  { %v4181_v10 = vsel %vm11098_vm8, %v4180_v30, %v4179_v63  ;;  %v345_v30 = vld [vmem:[%s11091_s0 + $0xa50] sm:$0xff] }
 0x366   :  { %v1382_v25 = vpop.xlane.xlu2 %1381  ;;  %v1379_v37 = vpop.xlane.xlu1 %1378  ;;  %v4183_v54 = vsel %vm11097_vm9, %v4182_v40, %v4181_v10  ;;  %4706 = vmatpush.msra.mxu2 %v2664_v50  ;;  %v2096_v50 = vmul.f32 0.0625, %v5740_v5  ;;  %v2650_v5 = vld [vmem:[%s11092_s1 + $0x250] sm:$0xff] }
 0x367   :  { %v1376_v18 = vpop.xlane.xlu0 %1375  ;;  %v2347_v45 = vmul.f32 0.0625, %v1379_v37  ;;  %v2348_v35 = vmul.f32 0.0625, %v1382_v25 }
 0x368   :  { %v2346_v57 = vmul.f32 0.0625, %v1376_v18  ;;  %4707 = vmatpush.msra.mxu2 %v2662_v46  ;;  %v1518_v18 = vsel %vm527_vm0, %v345_v30, 0.0  ;;  %v1533_v46 = vsel %vm527_vm0, %v350_v47, 0.0  ;;  %v2101_v47 = vmul.f32 0.0625, %v5778_v36  ;;  %v356_v36 = vld [vmem:[%s11091_s0 + $0xaa8] sm:$0xff] }
 0x369   :  { %v4186_v56 = vperm.slane %v2347_v45, %v7264_v61  ;;  %v4188_v60 = vperm.slane %v2348_v35, %v7274_v29 }
 0x36a   :  { %v4184_v15 = vperm.slane %v2346_v57, %v7250_v2  ;;  %4708 = vmatpush.msra.mxu2 %v2660_v27 }
 0x36b   :  { %1516 = vadd.xlane.f32.xlu2 %v1515_v11  ;;  %1513 = vadd.xlane.f32.xlu1 %v1512_v33  ;;  %v3698_v11 = vperm.slane %v2095_v28, %v7316_v38  ;;  %v2658_v33 = vld [vmem:[%s11092_s1 + $0x290] sm:$0xff]  ;;  %v2652_v28 = vld [vmem:[%s11092_s1 + $0x260] sm:$0xff] }
 0x36c   :  { %1510 = vadd.xlane.f32.xlu0 %v1509_v21  ;;  %v4185_v43 = vsel %vm11096_vm10, %v4184_v15, %v4183_v54  ;;  %vm11326_vm10 = vcmask 851712   ;;  %4709 = vmatpush.msra.mxu2 %v2658_v33  ;;  %v349_v15 = vld [vmem:[%s11091_s0 + $0xa70] sm:$0xff]  ;;  %v348_v54 = vld [vmem:[%s11091_s0 + $0xa68] sm:$0xff]  ;;  %v2644_v33 = vld [vmem:[%s11092_s1 + $0x220] sm:$0xff] }
 0x36d   :  { %v3693_v22 = vsel %vm11326_vm10, %v3692_v34, %v3691_v16  ;;  %v4187_v25 = vsel %vm3651_vm11, %v4186_v56, %v4185_v43  ;;  %v2097_v43 = vmul.f32 0.0625, %v5765_v23  ;;  %v3700_v23 = vperm.slane %v2096_v50, %v7124_v44 }
 0x36e   :  { %v1391_v55 = vpop.xlane.xlu2 %1390  ;;  %v1388_v42 = vpop.xlane.xlu1 %1387  ;;  %v3695_v57 = vsel %vm3659_vm13, %v3694_v1, %v3693_v22  ;;  %v4189_v10 = vsel %vm11326_vm10, %v4188_v60, %v4187_v25  ;;  %4710 = vmatpush.msra.mxu2 %v2656_v3  ;;  %v1530_v1 = vsel %vm527_vm0, %v349_v15, 0.0  ;;  %v353_v60 = vld [vmem:[%s11091_s0 + $0xa90] sm:$0xff]  ;;  %vm11336_vm10 = vcmask 720512  }
 0x36f   :  { %v2351_v0 = vmul.f32 0.0625, %v1391_v55  ;;  %v2350_v51 = vmul.f32 0.0625, %v1388_v42  ;;  %v1385_v63 = vpop.xlane.xlu0 %1384  ;;  %v3697_v13 = vsel %vm3663_vm14, %v3696_v19, %v3695_v57  ;;  %v1527_v55 = vsel %vm527_vm0, %v348_v54, 0.0  ;;  %v2642_v3 = vld [vmem:[%s11092_s1 + $0x210] sm:$0xff]  ;;  %v11328_v54 = vld [vmem:[#allocation5_spill] sm:$0xff] }
 0x370   :  { %v2349_v37 = vmul.f32 0.0625, %v1385_v63  ;;  %v3699_v35 = vsel %vm3667_vm15, %v3698_v11, %v3697_v13  ;;  %4711 = vmatpush.msra.mxu2 %v2654_v48  ;;  %v2098_v42 = vmul.f32 0.0625, %v5760_v20  ;;  %v3701_v30 = vperm.slane %v2097_v43, %v7131_v24  ;;  %v352_v20 = vld [vmem:[%s11091_s0 + $0xa88] sm:$0xff] }
 0x371   :  { %v4192_v9 = vperm.slane %v2350_v51, %v7312_v7  ;;  %v4194_v40 = vperm.slane %v2351_v0, %v7316_v38  ;;  %v2648_v0 = vld [vmem:[%s11092_s1 + $0x240] sm:$0xff]  ;;  %v2646_v51 = vld [vmem:[%s11092_s1 + $0x230] sm:$0xff]  ;;  %v2099_v63 = vmul.f32 0.0625, %v5758_v17  ;;  %v1542_v11 = vsel %vm527_vm0, %v353_v60, 0.0 }
 0x372   :  { %v4190_v45 = vperm.slane %v2349_v37, %v7293_v58  ;;  %4712 = vmatpush.msra.mxu2 %v2652_v28  ;;  %v3702_v27 = vsel %vm3611_vm1, %v3701_v30, %v3700_v23  ;;  %v1539_v57 = vsel %vm527_vm0, %v352_v20, 0.0  ;;  %v2100_v13 = vmul.f32 0.0625, %v5783_v41  ;;  %v354_v28 = vld [vmem:[%s11091_s0 + $0xa98] sm:$0xff] }
 0x373   :  { %1525 = vadd.xlane.f32.xlu2 %v1524_v6  ;;  %1522 = vadd.xlane.f32.xlu1 %v1521_v53  ;;  %v351_v6 = vld [vmem:[%s11091_s0 + $0xa80] sm:$0xff]  ;;  %v3703_v53 = vperm.slane %v2098_v42, %v7148_v32  ;;  %v2102_v50 = vmul.f32 0.0625, %v11328_v54 }
 0x374   :  { %1519 = vadd.xlane.f32.xlu0 %v1518_v18  ;;  %v4191_v21 = vsel %vm3659_vm13, %v4190_v45, %v4189_v10  ;;  %4713 = vmatpush.msra.mxu2 %v2650_v5  ;;  %v1536_v10 = vsel %vm527_vm0, %v351_v6, 0.0  ;;  %v11329_v5 = vld [vmem:[#allocation8_spill] sm:$0xff] }
 0x375   :  { %v4193_v34 = vsel %vm3663_vm14, %v4192_v9, %v4191_v21  ;;  %v3705_v21 = vperm.slane %v2099_v63, %v7162_v14  ;;  %v2103_v23 = vmul.f32 0.0625, %v11329_v5  ;;  %v1545_v63 = vsel %vm527_vm0, %v354_v28, 0.0  ;;  %v2700_v28 = vld [vmem:[%s11092_s1 + $0x3e0] sm:$0xff]  ;;  %v11333_v5 = vld [vmem:[#allocation10_spill] sm:$0xff] }
 0x376   :  { %v1400_v16 = vpop.xlane.xlu2 %1399  ;;  %v1397_v4 = vpop.xlane.xlu1 %1396  ;;  %v4195_v56 = vsel %vm3667_vm15, %v4194_v40, %v4193_v34  ;;  %4714 = vmatpush.msra.mxu2 %v2648_v0  ;;  %v3704_v34 = vsel %vm3615_vm2, %v3703_v53, %v3702_v27  ;;  %v1551_v0 = vsel %vm527_vm0, %v356_v36, 0.0  ;;  %v3711_v6 = vperm.slane %v2102_v50, %v7196_v52  ;;  %v11330_v53 = vld [vmem:[#allocation7_spill] sm:$0xff] }
 0x377   :  { %v1394_v12 = vpop.xlane.xlu0 %1393  ;;  %v7560_v8 = vsel %vm4630_vm12, %v4195_v56, %v3699_v35  ;;  %v2353_v22 = vmul.f32 0.0625, %v1397_v4  ;;  %v2354_v9 = vmul.f32 0.0625, %v1400_v16  ;;  %v2640_v4 = vld [vmem:[%s11092_s1 + $0x200] sm:$0xff]  ;;  %v3707_v35 = vperm.slane %v2100_v13, %v7181_v26  ;;  %v2702_v36 = vld [vmem:[%s11092_s1 + $0x3f0] sm:$0xff] }
 0x378   :  { %11327 = vst [vmem:[#allocation223_spill] sm:$0xff] %v7560_v8  ;;  %4699 = vmatmul.f32.vlgmr.msra.gmra.mxu1 %v7560_v8  ;;  %v2352_v19 = vmul.f32 0.0625, %v1394_v12  ;;  %4715 = vmatpush.msra.mxu2 %v2646_v51  ;;  %v355_v56 = vld [vmem:[%s11091_s0 + $0xaa0] sm:$0xff]  ;;  %v3706_v43 = vsel %vm3619_vm3, %v3705_v21, %v3704_v34  ;;  %v2104_v27 = vmul.f32 0.0625, %v11330_v53 }
 0x379   :  { %v4197_v40 = vperm.slane %v2353_v22, %v7131_v24  ;;  %v4199_v15 = vperm.slane %v2354_v9, %v7148_v32  ;;  %v1548_v20 = vsel %vm527_vm0, %v355_v56, 0.0  ;;  %v3708_v51 = vsel %vm3623_vm4, %v3707_v35, %v3706_v43  ;;  %4723 = vmatpush.msra.mxu3 %v2702_v36  ;;  %v2696_v53 = vld [vmem:[%s11092_s1 + $0x3c0] sm:$0xff] }
 0x37a   :  { %v4196_v45 = vperm.slane %v2352_v19, %v7124_v44  ;;  %4716 = vmatpush.msra.mxu2 %v2644_v33  ;;  %v11331_v33 = vld [vmem:[#allocation6_spill] sm:$0xff]  ;;  %v2692_v36 = vld [vmem:[%s11092_s1 + $0x3a0] sm:$0xff] }
 0x37b   :  { %1534 = vadd.xlane.f32.xlu2 %v1533_v46  ;;  %1531 = vadd.xlane.f32.xlu1 %v1530_v1  ;;  %v2105_v13 = vmul.f32 0.0625, %v11331_v33 }
 0x37c   :  { %1528 = vadd.xlane.f32.xlu0 %v1527_v55  ;;  %v4198_v41 = vsel %vm3611_vm1, %v4197_v40, %v4196_v45  ;;  %4717 = vmatpush.msra.mxu2 %v2642_v3  ;;  %v3709_v55 = vperm.slane %v2101_v47, %v7184_v31  ;;  %v3713_v40 = vperm.slane %v2103_v23, %v7212_v49  ;;  %v357_v47 = vld [vmem:[%s11091_s0 + $0xab0] sm:$0xff]  ;;  %v2107_v23 = vmul.f32 0.0625, %v11333_v5 }
 0x37d   :  { %v4200_v30 = vsel %vm3615_vm2, %v4199_v15, %v4198_v41  ;;  %v3715_v15 = vperm.slane %v2104_v27, %v7222_v39  ;;  %v11332_v41 = vld [vmem:[#allocation11_spill] sm:$0xff]  ;;  %4724 = vmatpush.msra.mxu3 %v2700_v28 }
 0x37e   :  { %v1409_v25 = vpop.xlane.xlu2 %1408  ;;  %v1406_v37 = vpop.xlane.xlu1 %1405  ;;  %4718 = vmatpush.msra.mxu2 %v2640_v4  ;;  %v3721_v27 = vperm.slane %v2107_v23, %v7264_v61 }
 0x37f   :  { %v1403_v18 = vpop.xlane.xlu0 %1402  ;;  %v2356_v48 = vmul.f32 0.0625, %v1406_v37  ;;  %v2357_v12 = vmul.f32 0.0625, %v1409_v25 }
 0x380   :  { %v2355_v17 = vmul.f32 0.0625, %v1403_v18 }
 0x381   :  { %v4203_v42 = vperm.slane %v2356_v48, %v7181_v26  ;;  %v4205_v25 = vperm.slane %v2357_v12, %v7184_v31 }
 0x382   :  { %v4201_v16 = vperm.slane %v2355_v17, %v7162_v14  ;;  %v359_v17 = vld [vmem:[%s11091_s0 + $0xac0] sm:$0xff] }
 0x383   :  { %1543 = vadd.xlane.f32.xlu2 %v1542_v11  ;;  %1540 = vadd.xlane.f32.xlu1 %v1539_v57  ;;  %v3710_v11 = vsel %vm3627_vm5, %v3709_v55, %v3708_v51  ;;  %v358_v57 = vld [vmem:[%s11091_s0 + $0xab8] sm:$0xff]  ;;  %v1560_v50 = vsel %vm527_vm0, %v359_v17, 0.0  ;;  %v3717_v55 = vperm.slane %v2105_v13, %v7232_v62  ;;  %v11334_v51 = vld [vmem:[#allocation9_spill] sm:$0xff] }
 0x384   :  { %1537 = vadd.xlane.f32.xlu0 %v1536_v10  ;;  %v4202_v19 = vsel %vm3619_vm3, %v4201_v16, %v4200_v30  ;;  %v3712_v48 = vsel %vm3631_vm6, %v3711_v6, %v3710_v11  ;;  %v2106_v16 = vmul.f32 0.0625, %v11332_v41  ;;  %v1557_v43 = vsel %vm527_vm0, %v358_v57, 0.0  ;;  %v361_v6 = vld [vmem:[%s11091_s0 + $0xad0] sm:$0xff]  ;;  %v360_v57 = vld [vmem:[%s11091_s0 + $0xac8] sm:$0xff] }
 0x385   :  { %v4204_v9 = vsel %vm3623_vm4, %v4203_v42, %v4202_v19  ;;  %v3714_v56 = vsel %vm3635_vm7, %v3713_v40, %v3712_v48  ;;  %v11337_v41 = vld [vmem:[#allocation13_spill] sm:$0xff] }
 0x386   :  { %v1418_v46 = vpop.xlane.xlu2 %1417  ;;  %v1415_v1 = vpop.xlane.xlu1 %1414  ;;  %v4206_v21 = vsel %vm3627_vm5, %v4205_v25, %v4204_v9  ;;  %v3719_v19 = vperm.slane %v2106_v16, %v7250_v2  ;;  %v2110_v16 = vmul.f32 0.0625, %v11337_v41  ;;  %v368_v41 = vld [vmem:[%s11091_s0 + $0xb08] sm:$0xff] }
 0x387   :  { %v1412_v22 = vpop.xlane.xlu0 %1411  ;;  %v2359_v37 = vmul.f32 0.0625, %v1415_v1  ;;  %v2360_v45 = vmul.f32 0.0625, %v1418_v46  ;;  %v1554_v1 = vsel %vm527_vm0, %v357_v47, 0.0 }
 0x388   :  { %v2358_v60 = vmul.f32 0.0625, %v1412_v22  ;;  %v3716_v22 = vsel %vm11098_vm8, %v3715_v15, %v3714_v56  ;;  %v1566_v15 = vsel %vm527_vm0, %v361_v6, 0.0  ;;  %v3727_v5 = vperm.slane %v2110_v16, %v7312_v7  ;;  %v2686_v6 = vld [vmem:[%s11092_s1 + $0x370] sm:$0xff]  ;;  %v367_v16 = vld [vmem:[%s11091_s0 + $0xb00] sm:$0xff] }
 0x389   :  { %v4209_v10 = vperm.slane %v2359_v37, %v7212_v49  ;;  %v4211_v12 = vperm.slane %v2360_v45, %v7222_v39  ;;  %v3718_v9 = vsel %vm11097_vm9, %v3717_v55, %v3716_v22 }
 0x38a   :  { %v4207_v18 = vperm.slane %v2358_v60, %v7196_v52  ;;  %v2698_v60 = vld [vmem:[%s11092_s1 + $0x3d0] sm:$0xff]  ;;  %v3720_v33 = vsel %vm11336_vm10, %v3719_v19, %v3718_v9  ;;  %v2688_v19 = vld [vmem:[%s11092_s1 + $0x380] sm:$0xff] }
 0x38b   :  { %1552 = vadd.xlane.f32.xlu2 %v1551_v0  ;;  %1549 = vadd.xlane.f32.xlu1 %v1548_v20  ;;  %v362_v20 = vld [vmem:[%s11091_s0 + $0xad8] sm:$0xff]  ;;  %v3722_v56 = vsel %vm3651_vm11, %v3721_v27, %v3720_v33  ;;  %v11343_v33 = vld [vmem:[#allocation17_spill] sm:$0xff] }
 0x38c   :  { %1546 = vadd.xlane.f32.xlu0 %v1545_v63  ;;  %v4208_v4 = vsel %vm3631_vm6, %v4207_v18, %v4206_v21  ;;  %4725 = vmatpush.msra.mxu3 %v2698_v60  ;;  %v2108_v63 = vmul.f32 0.0625, %v11334_v51  ;;  %v11335_v18 = vld [vmem:[#allocation14_spill] sm:$0xff] }
 0x38d   :  { %v4210_v42 = vsel %vm3635_vm7, %v4209_v10, %v4208_v4  ;;  %v2109_v11 = vmul.f32 0.0625, %v11335_v18  ;;  %v1569_v10 = vsel %vm527_vm0, %v362_v20, 0.0  ;;  %v2694_v21 = vld [vmem:[%s11092_s1 + $0x3b0] sm:$0xff]  ;;  %v363_v20 = vld [vmem:[%s11091_s0 + $0xae0] sm:$0xff] }
 0x38e   :  { %v1427_v3 = vpop.xlane.xlu2 %1426  ;;  %v1424_v34 = vpop.xlane.xlu1 %1423  ;;  %v4212_v37 = vsel %vm11098_vm8, %v4211_v12, %v4210_v42  ;;  %4726 = vmatpush.msra.mxu3 %v2696_v53  ;;  %v3723_v48 = vperm.slane %v2108_v63, %v7274_v29  ;;  %v365_v42 = vld [vmem:[%s11091_s0 + $0xaf0] sm:$0xff] }
 0x38f   :  { %v1421_v35 = vpop.xlane.xlu0 %1420  ;;  %v2362_v46 = vmul.f32 0.0625, %v1424_v34  ;;  %v2363_v0 = vmul.f32 0.0625, %v1427_v3  ;;  %v1578_v27 = vsel %vm527_vm0, %v365_v42, 0.0  ;;  %v11345_v42 = vld [vmem:[#allocation20_spill] sm:$0xff] }
 0x390   :  { %v2361_v54 = vmul.f32 0.0625, %v1421_v35  ;;  %4727 = vmatpush.msra.mxu3 %v2694_v21  ;;  %v1563_v35 = vsel %vm527_vm0, %v360_v57, 0.0 }
 0x391   :  { %v4215_v25 = vperm.slane %v2362_v46, %v7250_v2  ;;  %v4217_v3 = vperm.slane %v2363_v0, %v7264_v61 }
 0x392   :  { %v4213_v30 = vperm.slane %v2361_v54, %v7232_v62  ;;  %v3725_v54 = vperm.slane %v2109_v11, %v7293_v58  ;;  %4728 = vmatpush.msra.mxu3 %v2692_v36  ;;  %v1572_v11 = vsel %vm527_vm0, %v363_v20, 0.0  ;;  %v2674_v20 = vld [vmem:[%s11092_s1 + $0x310] sm:$0xff] }
 0x393   :  { %1561 = vadd.xlane.f32.xlu2 %v1560_v50  ;;  %1558 = vadd.xlane.f32.xlu1 %v1557_v43  ;;  %v11339_v43 = vld [vmem:[#allocation12_spill] sm:$0xff] }
 0x394   :  { %1555 = vadd.xlane.f32.xlu0 %v1554_v1  ;;  %v4214_v40 = vsel %vm11097_vm9, %v4213_v30, %v4212_v37  ;;  %vm11338_vm9 = vmmov %vm11336_vm10  ;;  %v2111_v12 = vmul.f32 0.0625, %v11339_v43  ;;  %v2690_v1 = vld [vmem:[%s11092_s1 + $0x390] sm:$0xff]  ;;  %v364_v30 = vld [vmem:[%s11091_s0 + $0xae8] sm:$0xff] }
 0x395   :  { %v4216_v4 = vsel %vm11338_vm9, %v4215_v25, %v4214_v40  ;;  %4729 = vmatpush.msra.mxu3 %v2690_v1  ;;  %vm11340_vm9 = vcmask 851712   ;;  %v1575_v9 = vsel %vm527_vm0, %v364_v30, 0.0  ;;  %v366_v43 = vld [vmem:[%s11091_s0 + $0xaf8] sm:$0xff]  ;;  %v2115_v30 = vmul.f32 0.0625, %v11345_v42 }
 0x396   :  { %v1436_v45 = vpop.xlane.xlu2 %1435  ;;  %v1433_v17 = vpop.xlane.xlu1 %1432  ;;  %v4218_v55 = vsel %vm3651_vm11, %v4217_v3, %v4216_v4  ;;  %vm11341_vm10 = vmmov %vm11340_vm9  ;;  %v3729_v63 = vperm.slane %v2111_v12, %v7316_v38  ;;  %v2682_v3 = vld [vmem:[%s11092_s1 + $0x350] sm:$0xff] }
 0x397   :  { %v1430_v13 = vpop.xlane.xlu0 %1429  ;;  %v2365_v34 = vmul.f32 0.0625, %v1433_v17  ;;  %v2366_v46 = vmul.f32 0.0625, %v1436_v45  ;;  %v3724_v22 = vsel %vm11341_vm10, %v3723_v48, %v3722_v56  ;;  %4730 = vmatpush.msra.mxu3 %v2688_v19  ;;  %v2684_v45 = vld [vmem:[%s11092_s1 + $0x360] sm:$0xff]  ;;  %v11344_v4 = vld [vmem:[#allocation15_spill] sm:$0xff] }
 0x398   :  { %v2364_v47 = vmul.f32 0.0625, %v1430_v13  ;;  %v3726_v51 = vsel %vm3659_vm13, %v3725_v54, %v3724_v22  ;;  %v11342_v17 = vld [vmem:[#allocation16_spill] sm:$0xff]  ;;  %v2112_v13 = vmul.f32 0.0625, %v11343_v33  ;;  %v1581_v22 = vsel %vm527_vm0, %v366_v43, 0.0 }
 0x399   :  { %v4221_v28 = vperm.slane %v2365_v34, %v7293_v58  ;;  %v4223_v25 = vperm.slane %v2366_v46, %v7312_v7  ;;  %4731 = vmatpush.msra.mxu3 %v2686_v6  ;;  %v3728_v40 = vsel %vm3663_vm14, %v3727_v5, %v3726_v51  ;;  %v2113_v57 = vmul.f32 0.0625, %v11342_v17  ;;  %v2676_v19 = vld [vmem:[%s11092_s1 + $0x320] sm:$0xff]  ;;  %v11346_v51 = vld [vmem:[#allocation19_spill] sm:$0xff] }
 0x39a   :  { %v4219_v50 = vperm.slane %v2364_v47, %v7274_v29  ;;  %v3730_v34 = vsel %vm3667_vm15, %v3729_v63, %v3728_v40  ;;  %v3731_v56 = vperm.slane %v2112_v13, %v7124_v44  ;;  %v1587_v5 = vsel %vm527_vm0, %v368_v41, 0.0  ;;  %v11347_v40 = vld [vmem:[#allocation18_spill] sm:$0xff] }
 0x39b   :  { %1570 = vadd.xlane.f32.xlu2 %v1569_v10  ;;  %1567 = vadd.xlane.f32.xlu1 %v1566_v15  ;;  %v2680_v15 = vld [vmem:[%s11092_s1 + $0x340] sm:$0xff]  ;;  %v3732_v36 = vperm.slane %v2113_v57, %v7131_v24  ;;  %v2116_v63 = vmul.f32 0.0625, %v11346_v51 }
 0x39c   :  { %1564 = vadd.xlane.f32.xlu0 %v1563_v35  ;;  %v4220_v23 = vsel %vm11340_vm9, %v4219_v50, %v4218_v55  ;;  %4732 = vmatpush.msra.mxu3 %v2684_v45  ;;  %v2114_v35 = vmul.f32 0.0625, %v11344_v4  ;;  %v2117_v45 = vmul.f32 0.0625, %v11347_v40  ;;  %vm11355_vm9 = vcmask 654912  }
 0x39d   :  { %v4222_v18 = vsel %vm3659_vm13, %v4221_v28, %v4220_v23  ;;  %v2678_v28 = vld [vmem:[%s11092_s1 + $0x330] sm:$0xff]  ;;  %v1584_v23 = vsel %vm527_vm0, %v367_v16, 0.0  ;;  %vm11357_vm10 = vmmov %vm11355_vm9 }
 0x39e   :  { %v1445_v60 = vpop.xlane.xlu2 %1444  ;;  %v1442_v0 = vpop.xlane.xlu1 %1441  ;;  %v4224_v21 = vsel %vm3663_vm14, %v4223_v25, %v4222_v18  ;;  %4733 = vmatpush.msra.mxu3 %v2682_v3  ;;  %v370_v18 = vld [vmem:[%s11091_s0 + $0xb18] sm:$0xff] }
 0x39f   :  { %v1439_v37 = vpop.xlane.xlu0 %1438  ;;  %v2369_v12 = vmul.f32 0.0625, %v1445_v60  ;;  %v2368_v46 = vmul.f32 0.0625, %v1442_v0  ;;  %v3734_v60 = vperm.slane %v2114_v35, %v7148_v32  ;;  %v3733_v0 = vsel %vm3611_vm1, %v3732_v36, %v3731_v56  ;;  %v11348_v3 = vld [vmem:[#allocation23_spill] sm:$0xff] }
 0x3a0   :  { %v2367_v53 = vmul.f32 0.0625, %v1439_v37  ;;  %4734 = vmatpush.msra.mxu3 %v2680_v15  ;;  %v1593_v36 = vsel %vm527_vm0, %v370_v18, 0.0 }
 0x3a1   :  { %v4228_v25 = vperm.slane %v2369_v12, %v7131_v24  ;;  %v4227_v37 = vperm.slane %v2368_v46, %v7124_v44  ;;  %v3735_v17 = vsel %vm3615_vm2, %v3734_v60, %v3733_v0  ;;  %v3740_v12 = vperm.slane %v2117_v45, %v7184_v31  ;;  %v11349_v46 = vld [vmem:[#allocation22_spill] sm:$0xff] }
 0x3a2   :  { %v4225_v10 = vperm.slane %v2367_v53, %v7316_v38  ;;  %4735 = vmatpush.msra.mxu3 %v2678_v28 }
 0x3a3   :  { %1579 = vadd.xlane.f32.xlu2 %v1578_v27  ;;  %1576 = vadd.xlane.f32.xlu1 %v1575_v9  ;;  %v3736_v27 = vperm.slane %v2115_v30, %v7162_v14  ;;  %v371_v9 = vld [vmem:[%s11091_s0 + $0xb20] sm:$0xff]  ;;  %v374_v30 = vld [vmem:[%s11091_s0 + $0xb38] sm:$0xff] }
 0x3a4   :  { %1573 = vadd.xlane.f32.xlu0 %v1572_v11  ;;  %v4226_v47 = vsel %vm3667_vm15, %v4225_v10, %v4224_v21  ;;  %4736 = vmatpush.msra.mxu3 %v2676_v19  ;;  %v2672_v11 = vld [vmem:[%s11092_s1 + $0x300] sm:$0xff]  ;;  %v369_v10 = vld [vmem:[%s11091_s0 + $0xb10] sm:$0xff]  ;;  %v3738_v21 = vperm.slane %v2116_v63, %v7181_v26  ;;  %v1596_v35 = vsel %vm527_vm0, %v371_v9, 0.0  ;;  %v1605_v45 = vsel %vm527_vm0, %v374_v30, 0.0 }
 0x3a5   :  { %v7762_v48 = vsel %vm4630_vm12, %v4226_v47, %v3730_v34  ;;  %v2118_v34 = vmul.f32 0.0625, %v11348_v3  ;;  %v4229_v47 = vsel %vm3611_vm1, %v4228_v25, %v4227_v37  ;;  %v3737_v56 = vsel %vm3619_vm3, %v3736_v27, %v3735_v17  ;;  %v11350_v19 = vld [vmem:[#allocation21_spill] sm:$0xff] }
 0x3a6   :  { %4719 = vmatmul.f32.vlgmr.msra.gmra.mxu2 %v7762_v48  ;;  %v1454_v54 = vpop.xlane.xlu2 %1453  ;;  %v1451_v50 = vpop.xlane.xlu1 %1450  ;;  %4737 = vmatpush.msra.mxu3 %v2674_v20  ;;  %v2120_v60 = vmul.f32 0.0625, %v11350_v19  ;;  %v372_v25 = vld [vmem:[%s11091_s0 + $0xb28] sm:$0xff]  ;;  %v375_v19 = vld [vmem:[%s11091_s0 + $0xb40] sm:$0xff] }
 0x3a7   :  { %v1448_v1 = vpop.xlane.xlu0 %1447  ;;  %v2371_v6 = vmul.f32 0.0625, %v1451_v50  ;;  %v2372_v57 = vmul.f32 0.0625, %v1454_v54  ;;  %v1590_v54 = vsel %vm527_vm0, %v369_v10, 0.0  ;;  %v1599_v10 = vsel %vm527_vm0, %v372_v25, 0.0  ;;  %v11352_v3 = vld [vmem:[#allocation25_spill] sm:$0xff] }
 0x3a8   :  { %v2370_v55 = vmul.f32 0.0625, %v1448_v1  ;;  %4738 = vmatpush.msra.mxu3 %v2672_v11  ;;  %v2119_v1 = vmul.f32 0.0625, %v11349_v46  ;;  %v376_v46 = vld [vmem:[%s11091_s0 + $0xb48] sm:$0xff] }
 0x3a9   :  { %v4232_v15 = vperm.slane %v2371_v6, %v7162_v14  ;;  %v4234_v50 = vperm.slane %v2372_v57, %v7181_v26  ;;  %v2734_v57 = vld [vmem:[%s11092_s1 + $0x4f0] sm:$0xff] }
 0x3aa   :  { %v4230_v53 = vperm.slane %v2370_v55, %v7148_v32  ;;  %v3744_v37 = vperm.slane %v2119_v1, %v7212_v49  ;;  %4743 = vmatpush.msrb.mxu0 %v2734_v57  ;;  %v2728_v1 = vld [vmem:[%s11092_s1 + $0x4c0] sm:$0xff] }
 0x3ab   :  { %1588 = vadd.xlane.f32.xlu2 %v1587_v5  ;;  %1585 = vadd.xlane.f32.xlu1 %v1584_v23  ;;  %v3739_v5 = vsel %vm3623_vm4, %v3738_v21, %v3737_v56  ;;  %v3742_v23 = vperm.slane %v2118_v34, %v7196_v52  ;;  %v3746_v21 = vperm.slane %v2120_v60, %v7222_v39  ;;  %v2122_v34 = vmul.f32 0.0625, %v11352_v3  ;;  %v2730_v56 = vld [vmem:[%s11092_s1 + $0x4d0] sm:$0xff]  ;;  %v2724_v57 = vld [vmem:[%s11092_s1 + $0x4a0] sm:$0xff] }
 0x3ac   :  { %1582 = vadd.xlane.f32.xlu0 %v1581_v22  ;;  %v4231_v16 = vsel %vm3615_vm2, %v4230_v53, %v4229_v47  ;;  %v373_v22 = vld [vmem:[%s11091_s0 + $0xb30] sm:$0xff]  ;;  %v3741_v6 = vsel %vm3627_vm5, %v3740_v12, %v3739_v5  ;;  %v11354_v5 = vld [vmem:[#allocation29_spill] sm:$0xff] }
 0x3ad   :  { %v4233_v28 = vsel %vm3619_vm3, %v4232_v15, %v4231_v16  ;;  %v11351_v53 = vld [vmem:[#allocation26_spill] sm:$0xff]  ;;  %v3743_v11 = vsel %vm3631_vm6, %v3742_v23, %v3741_v6  ;;  %v1602_v17 = vsel %vm527_vm0, %v373_v22, 0.0  ;;  %v2124_v23 = vmul.f32 0.0625, %v11354_v5 }
 0x3ae   :  { %v1463_v33 = vpop.xlane.xlu2 %1462  ;;  %v1460_v13 = vpop.xlane.xlu1 %1459  ;;  %v4235_v20 = vsel %vm3623_vm4, %v4234_v50, %v4233_v28  ;;  %v2121_v27 = vmul.f32 0.0625, %v11351_v53  ;;  %v3745_v16 = vsel %vm3635_vm7, %v3744_v37, %v3743_v11  ;;  %v3750_v28 = vperm.slane %v2122_v34, %v7250_v2  ;;  %v2726_v6 = vld [vmem:[%s11092_s1 + $0x4b0] sm:$0xff] }
 0x3af   :  { %v1457_v41 = vpop.xlane.xlu0 %1456  ;;  %v2374_v43 = vmul.f32 0.0625, %v1460_v13  ;;  %v2375_v42 = vmul.f32 0.0625, %v1463_v33  ;;  %v1611_v37 = vsel %vm527_vm0, %v376_v46, 0.0  ;;  %v1608_v11 = vsel %vm527_vm0, %v375_v19, 0.0  ;;  %v2722_v34 = vld [vmem:[%s11092_s1 + $0x490] sm:$0xff] }
 0x3b0   :  { %v2373_v4 = vmul.f32 0.0625, %v1457_v41  ;;  %v2732_v41 = vld [vmem:[%s11092_s1 + $0x4e0] sm:$0xff] }
 0x3b1   :  { %v4238_v0 = vperm.slane %v2374_v43, %v7196_v52  ;;  %v4240_v33 = vperm.slane %v2375_v42, %v7212_v49  ;;  %4744 = vmatpush.msrb.mxu0 %v2732_v41  ;;  %v11361_v41 = vld [vmem:[#allocation32_spill] sm:$0xff] }
 0x3b2   :  { %v4236_v55 = vperm.slane %v2373_v4, %v7184_v31  ;;  %v3748_v4 = vperm.slane %v2121_v27, %v7232_v62  ;;  %v11356_v27 = vld [vmem:[#allocation28_spill] sm:$0xff] }
 0x3b3   :  { %1597 = vadd.xlane.f32.xlu2 %v1596_v35  ;;  %1594 = vadd.xlane.f32.xlu1 %v1593_v36  ;;  %v377_v36 = vld [vmem:[%s11091_s0 + $0xb50] sm:$0xff] }
 0x3b4   :  { %1591 = vadd.xlane.f32.xlu0 %v1590_v54  ;;  %v4237_v9 = vsel %vm3627_vm5, %v4236_v55, %v4235_v20  ;;  %v11353_v54 = vld [vmem:[#allocation24_spill] sm:$0xff]  ;;  %v3747_v55 = vsel %vm11098_vm8, %v3746_v21, %v3745_v16  ;;  %4745 = vmatpush.msrb.mxu0 %v2730_v56  ;;  %v1614_v20 = vsel %vm527_vm0, %v377_v36, 0.0  ;;  %v2127_v16 = vmul.f32 0.0625, %v11361_v41 }
 0x3b5   :  { %v4239_v47 = vsel %vm3631_vm6, %v4238_v0, %v4237_v9  ;;  %v2123_v50 = vmul.f32 0.0625, %v11353_v54  ;;  %v3749_v60 = vsel %vm11355_vm9, %v3748_v4, %v3747_v55  ;;  %v2125_v9 = vmul.f32 0.0625, %v11356_v27  ;;  %v379_v36 = vld [vmem:[%s11091_s0 + $0xb60] sm:$0xff]  ;;  %v11366_v27 = vld [vmem:[#allocation35_spill] sm:$0xff] }
 0x3b6   :  { %v1472_v51 = vpop.xlane.xlu2 %1471  ;;  %v1469_v63 = vpop.xlane.xlu1 %1468  ;;  %v4241_v12 = vsel %vm3635_vm7, %v4240_v33, %v4239_v47  ;;  %4746 = vmatpush.msrb.mxu0 %v2728_v1  ;;  %vm11358_vm9 = vcmask 720512   ;;  %v11359_v33 = vld [vmem:[#allocation27_spill] sm:$0xff]  ;;  %v2720_v56 = vld [vmem:[%s11092_s1 + $0x480] sm:$0xff]  ;;  %v3760_v19 = vperm.slane %v2127_v16, %v7316_v38  ;;  %v11367_v16 = vld [vmem:[#allocation34_spill] sm:$0xff] }
 0x3b7   :  { %v1466_v18 = vpop.xlane.xlu0 %1465  ;;  %v2377_v13 = vmul.f32 0.0625, %v1469_v63  ;;  %v2378_v35 = vmul.f32 0.0625, %v1472_v51  ;;  %v3752_v53 = vperm.slane %v2123_v50, %v7264_v61  ;;  %v3756_v47 = vperm.slane %v2125_v9, %v7293_v58 }
 0x3b8   :  { %v2376_v40 = vmul.f32 0.0625, %v1466_v18  ;;  %4747 = vmatpush.msrb.mxu0 %v2726_v6  ;;  %v11365_v6 = vld [vmem:[#allocation31_spill] sm:$0xff]  ;;  %v2130_v9 = vmul.f32 0.0625, %v11366_v27  ;;  %v384_v27 = vld [vmem:[%s11091_s0 + $0xb88] sm:$0xff] }
 0x3b9   :  { %v4244_v43 = vperm.slane %v2377_v13, %v7232_v62  ;;  %v4246_v51 = vperm.slane %v2378_v35, %v7250_v2  ;;  %v2126_v13 = vmul.f32 0.0625, %v11359_v33  ;;  %v380_v35 = vld [vmem:[%s11091_s0 + $0xb68] sm:$0xff]  ;;  %v383_v33 = vld [vmem:[%s11091_s0 + $0xb80] sm:$0xff] }
 0x3ba   :  { %v4242_v15 = vperm.slane %v2376_v40, %v7222_v39  ;;  %v3751_v40 = vsel %vm11358_vm9, %v3750_v28, %v3749_v60  ;;  %4748 = vmatpush.msrb.mxu0 %v2724_v57 }
 0x3bb   :  { %1606 = vadd.xlane.f32.xlu2 %v1605_v45  ;;  %1603 = vadd.xlane.f32.xlu1 %v1602_v17  ;;  %v3754_v45 = vperm.slane %v2124_v23, %v7274_v29  ;;  %v3758_v46 = vperm.slane %v2126_v13, %v7312_v7  ;;  %v1623_v23 = vsel %vm527_vm0, %v380_v35, 0.0  ;;  %v382_v13 = vld [vmem:[%s11091_s0 + $0xb78] sm:$0xff]  ;;  %v3765_v35 = vperm.slane %v2130_v9, %v7148_v32  ;;  %v2704_v9 = vld [vmem:[%s11092_s1 + $0x400] sm:$0xff] }
 0x3bc   :  { %1600 = vadd.xlane.f32.xlu0 %v1599_v10  ;;  %v4243_v42 = vsel %vm11098_vm8, %v4242_v15, %v4241_v12  ;;  %v3753_v15 = vsel %vm3651_vm11, %v3752_v53, %v3751_v40  ;;  %v378_v12 = vld [vmem:[%s11091_s0 + $0xb58] sm:$0xff]  ;;  %4749 = vmatpush.msrb.mxu0 %v2722_v34  ;;  %v2128_v53 = vmul.f32 0.0625, %v11365_v6 }
 0x3bd   :  { %v4245_v18 = vsel %vm11357_vm10, %v4244_v43, %v4243_v42  ;;  %vm11360_vm10 = vmmov %vm11358_vm9  ;;  %vm11362_vm9 = vcmask 851712   ;;  %v1620_v42 = vsel %vm527_vm0, %v379_v36, 0.0 }
 0x3be   :  { %v1481_v30 = vpop.xlane.xlu2 %1480  ;;  %v1478_v22 = vpop.xlane.xlu1 %1477  ;;  %v4247_v3 = vsel %vm11360_vm10, %v4246_v51, %v4245_v18  ;;  %v3755_v54 = vsel %vm11362_vm9, %v3754_v45, %v3753_v15  ;;  %vm11363_vm10 = vmmov %vm11362_vm9  ;;  %4750 = vmatpush.msrb.mxu0 %v2720_v56  ;;  %v2714_v45 = vld [vmem:[%s11092_s1 + $0x450] sm:$0xff]  ;;  %v3762_v41 = vperm.slane %v2128_v53, %v7124_v44  ;;  %vm11377_vm9 = vcmask 654912  }
 0x3bf   :  { %v1475_v0 = vpop.xlane.xlu0 %1474  ;;  %v2380_v63 = vmul.f32 0.0625, %v1478_v22  ;;  %v2381_v10 = vmul.f32 0.0625, %v1481_v30  ;;  %v2718_v22 = vld [vmem:[%s11092_s1 + $0x470] sm:$0xff] }
 0x3c0   :  { %v2379_v25 = vmul.f32 0.0625, %v1475_v0  ;;  %v1617_v0 = vsel %vm527_vm0, %v378_v12, 0.0  ;;  %4751 = vmatpush.msrb.mxu0 %v2718_v22  ;;  %v1629_v12 = vsel %vm527_vm0, %v382_v13, 0.0 }
 0x3c1   :  { %v4250_v21 = vperm.slane %v2380_v63, %v7274_v29  ;;  %v4252_v1 = vperm.slane %v2381_v10, %v7293_v58  ;;  %v2716_v63 = vld [vmem:[%s11092_s1 + $0x460] sm:$0xff] }
 0x3c2   :  { %v4248_v17 = vperm.slane %v2379_v25, %v7264_v61  ;;  %v11364_v25 = vld [vmem:[#allocation30_spill] sm:$0xff]  ;;  %4752 = vmatpush.msrb.mxu0 %v2716_v63  ;;  %v2712_v10 = vld [vmem:[%s11092_s1 + $0x440] sm:$0xff] }
 0x3c3   :  { %1615 = vadd.xlane.f32.xlu2 %v1614_v20  ;;  %1612 = vadd.xlane.f32.xlu1 %v1611_v37  ;;  %v3757_v20 = vsel %vm3659_vm13, %v3756_v47, %v3755_v54  ;;  %v2129_v37 = vmul.f32 0.0625, %v11364_v25  ;;  %v381_v47 = vld [vmem:[%s11091_s0 + $0xb70] sm:$0xff] }
 0x3c4   :  { %1609 = vadd.xlane.f32.xlu0 %v1608_v11  ;;  %v4249_v4 = vsel %vm3651_vm11, %v4248_v17, %v4247_v3  ;;  %v3759_v11 = vsel %vm3663_vm14, %v3758_v46, %v3757_v20  ;;  %4753 = vmatpush.msrb.mxu0 %v2714_v45  ;;  %v2710_v46 = vld [vmem:[%s11092_s1 + $0x430] sm:$0xff] }
 0x3c5   :  { %v4251_v30 = vsel %vm11363_vm10, %v4250_v21, %v4249_v4  ;;  %v3761_v17 = vsel %vm3667_vm15, %v3760_v19, %v3759_v11  ;;  %v3763_v15 = vperm.slane %v2129_v37, %v7131_v24  ;;  %v2131_v4 = vmul.f32 0.0625, %v11367_v16  ;;  %v2706_v20 = vld [vmem:[%s11092_s1 + $0x410] sm:$0xff]  ;;  %v11370_v11 = vld [vmem:[#allocation37_spill] sm:$0xff]  ;;  %v11371_v16 = vld [vmem:[#allocation36_spill] sm:$0xff] }
 0x3c6   :  { %v1490_v50 = vpop.xlane.xlu2 %1489  ;;  %v1487_v43 = vpop.xlane.xlu1 %1486  ;;  %v4253_v18 = vsel %vm3659_vm13, %v4252_v1, %v4251_v30  ;;  %4754 = vmatpush.msrb.mxu0 %v2712_v10  ;;  %v1626_v1 = vsel %vm527_vm0, %v381_v47, 0.0  ;;  %v385_v63 = vld [vmem:[%s11091_s0 + $0xb90] sm:$0xff]  ;;  %vm11379_vm10 = vcmask 720512  }
 0x3c7   :  { %v2383_v28 = vmul.f32 0.0625, %v1487_v43  ;;  %v1484_v55 = vpop.xlane.xlu0 %1483  ;;  %v2384_v56 = vmul.f32 0.0625, %v1490_v50  ;;  %v1632_v43 = vsel %vm527_vm0, %v383_v33, 0.0  ;;  %v3764_v50 = vsel %vm3611_vm1, %v3763_v15, %v3762_v41 }
 0x3c8   :  { %v2382_v5 = vmul.f32 0.0625, %v1484_v55  ;;  %4755 = vmatpush.msrb.mxu0 %v2710_v46  ;;  %v3766_v19 = vsel %vm3615_vm2, %v3765_v35, %v3764_v50 }
 0x3c9   :  { %v4256_v60 = vperm.slane %v2383_v28, %v7316_v38  ;;  %v11368_v28 = vld [vmem:[#allocation33_spill] sm:$0xff] }
 0x3ca   :  { %v4254_v51 = vperm.slane %v2382_v5, %v7312_v7  ;;  %v2132_v55 = vmul.f32 0.0625, %v11368_v28  ;;  %v2708_v5 = vld [vmem:[%s11092_s1 + $0x420] sm:$0xff]  ;;  %v388_v28 = vld [vmem:[%s11091_s0 + $0xba8] sm:$0xff] }
 0x3cb   :  { %1624 = vadd.xlane.f32.xlu2 %v1623_v23  ;;  %1621 = vadd.xlane.f32.xlu1 %v1620_v42  ;;  %v3767_v23 = vperm.slane %v2131_v4, %v7162_v14  ;;  %v11369_v42 = vld [vmem:[#allocation38_spill] sm:$0xff]  ;;  %v2135_v4 = vmul.f32 0.0625, %v11371_v16 }
 0x3cc   :  { %1618 = vadd.xlane.f32.xlu0 %v1617_v0  ;;  %v4255_v40 = vsel %vm3663_vm14, %v4254_v51, %v4253_v18  ;;  %v2133_v30 = vmul.f32 0.0625, %v11369_v42  ;;  %4756 = vmatpush.msrb.mxu0 %v2708_v5  ;;  %v386_v51 = vld [vmem:[%s11091_s0 + $0xb98] sm:$0xff]  ;;  %v3769_v25 = vperm.slane %v2132_v55, %v7181_v26  ;;  %v387_v42 = vld [vmem:[%s11091_s0 + $0xba0] sm:$0xff] }
 0x3cd   :  { %v4257_v57 = vsel %vm3667_vm15, %v4256_v60, %v4255_v40  ;;  %v4258_v60 = vperm.slane %v2384_v56, %v7124_v44  ;;  %v3768_v18 = vsel %vm3619_vm3, %v3767_v23, %v3766_v19  ;;  %v2134_v40 = vmul.f32 0.0625, %v11370_v11  ;;  %v11373_v19 = vld [vmem:[#allocation40_spill] sm:$0xff] }
 0x3ce   :  { %v1499_v21 = vpop.xlane.xlu2 %1498  ;;  %v1496_v3 = vpop.xlane.xlu1 %1495  ;;  %v7959_v34 = vsel %vm4630_vm12, %v4257_v57, %v3761_v17  ;;  %4757 = vmatpush.msrb.mxu0 %v2706_v20  ;;  %v3771_v45 = vperm.slane %v2133_v30, %v7184_v31  ;;  %v1641_v10 = vsel %vm527_vm0, %v386_v51, 0.0  ;;  %v3770_v47 = vsel %vm3623_vm4, %v3769_v25, %v3768_v18 }
 0x3cf   :  { %4739 = vmatmul.f32.vlgmr.msra.gmra.mxu3 %v7959_v34  ;;  %v1493_v36 = vpop.xlane.xlu0 %1492  ;;  %v2386_v22 = vmul.f32 0.0625, %v1496_v3  ;;  %v2387_v37 = vmul.f32 0.0625, %v1499_v21  ;;  %v1638_v21 = vsel %vm527_vm0, %v385_v63, 0.0  ;;  %v1635_v3 = vsel %vm527_vm0, %v384_v27, 0.0 }
 0x3d0   :  { %v2385_v54 = vmul.f32 0.0625, %v1493_v36  ;;  %4758 = vmatpush.msrb.mxu0 %v2704_v9  ;;  %v3773_v35 = vperm.slane %v2134_v40, %v7196_v52  ;;  %v3775_v30 = vperm.slane %v2135_v4, %v7212_v49  ;;  %v1644_v27 = vsel %vm527_vm0, %v387_v42, 0.0  ;;  %v11374_v9 = vld [vmem:[#allocation39_spill] sm:$0xff]  ;;  %v2764_v42 = vld [vmem:[%s11092_s1 + $0x5e0] sm:$0xff] }
 0x3d1   :  { %v4261_v17 = vperm.slane %v2386_v22, %v7148_v32  ;;  %v4263_v15 = vperm.slane %v2387_v37, %v7162_v14  ;;  %v1647_v37 = vsel %vm527_vm0, %v388_v28, 0.0  ;;  %v2138_v18 = vmul.f32 0.0625, %v11374_v9  ;;  %v11376_v4 = vld [vmem:[#allocation43_spill] sm:$0xff] }
 0x3d2   :  { %v4259_v0 = vperm.slane %v2385_v54, %v7131_v24  ;;  %v3772_v54 = vsel %vm3627_vm5, %v3771_v45, %v3770_v47 }
 0x3d3   :  { %1633 = vadd.xlane.f32.xlu2 %v1632_v43  ;;  %1630 = vadd.xlane.f32.xlu1 %v1629_v12  ;;  %v11372_v43 = vld [vmem:[#allocation41_spill] sm:$0xff]  ;;  %v3774_v22 = vsel %vm3631_vm6, %v3773_v35, %v3772_v54  ;;  %v3781_v16 = vperm.slane %v2138_v18, %v7250_v2  ;;  %v2140_v35 = vmul.f32 0.0625, %v11376_v4 }
 0x3d4   :  { %1627 = vadd.xlane.f32.xlu0 %v1626_v1  ;;  %v4260_v33 = vsel %vm3611_vm1, %v4259_v0, %v4258_v60  ;;  %v2136_v12 = vmul.f32 0.0625, %v11372_v43  ;;  %v389_v1 = vld [vmem:[%s11091_s0 + $0xbb0] sm:$0xff]  ;;  %v2137_v60 = vmul.f32 0.0625, %v11373_v19  ;;  %v390_v43 = vld [vmem:[%s11091_s0 + $0xbb8] sm:$0xff]  ;;  %v2760_v18 = vld [vmem:[%s11092_s1 + $0x5c0] sm:$0xff] }
 0x3d5   :  { %v4262_v36 = vsel %vm3615_vm2, %v4261_v17, %v4260_v33  ;;  %v1650_v25 = vsel %vm527_vm0, %v389_v1, 0.0  ;;  %v3776_v17 = vsel %vm3635_vm7, %v3775_v30, %v3774_v22  ;;  %v1653_v22 = vsel %vm527_vm0, %v390_v43, 0.0  ;;  %v11378_v19 = vld [vmem:[#allocation42_spill] sm:$0xff] }
 0x3d6   :  { %v1508_v6 = vpop.xlane.xlu2 %1507  ;;  %v1505_v53 = vpop.xlane.xlu1 %1504  ;;  %v4264_v5 = vsel %vm3619_vm3, %v4263_v15, %v4262_v36  ;;  %v3777_v51 = vperm.slane %v2136_v12, %v7222_v39  ;;  %v3779_v45 = vperm.slane %v2137_v60, %v7232_v62  ;;  %v391_v15 = vld [vmem:[%s11091_s0 + $0xbc0] sm:$0xff]  ;;  %v2141_v60 = vmul.f32 0.0625, %v11378_v19 }
 0x3d7   :  { %v1502_v57 = vpop.xlane.xlu0 %1501  ;;  %v2389_v41 = vmul.f32 0.0625, %v1505_v53  ;;  %v2390_v46 = vmul.f32 0.0625, %v1508_v6  ;;  %v2752_v19 = vld [vmem:[%s11092_s1 + $0x580] sm:$0xff] }
 0x3d8   :  { %v2388_v13 = vmul.f32 0.0625, %v1502_v57  ;;  %v11375_v57 = vld [vmem:[#allocation44_spill] sm:$0xff] }
 0x3d9   :  { %v4267_v55 = vperm.slane %v2389_v41, %v7184_v31  ;;  %v4269_v6 = vperm.slane %v2390_v46, %v7196_v52  ;;  %v2139_v33 = vmul.f32 0.0625, %v11375_v57  ;;  %v2766_v41 = vld [vmem:[%s11092_s1 + $0x5f0] sm:$0xff]  ;;  %v3787_v57 = vperm.slane %v2141_v60, %v7293_v58 }
 0x3da   :  { %v4265_v56 = vperm.slane %v2388_v13, %v7181_v26  ;;  %v3778_v13 = vsel %vm11098_vm8, %v3777_v51, %v3776_v17  ;;  %4763 = vmatpush.msrb.mxu1 %v2766_v41  ;;  %v2758_v17 = vld [vmem:[%s11092_s1 + $0x5b0] sm:$0xff] }
 0x3db   :  { %1642 = vadd.xlane.f32.xlu2 %v1641_v10  ;;  %1639 = vadd.xlane.f32.xlu1 %v1638_v21  ;;  %v392_v21 = vld [vmem:[%s11091_s0 + $0xbc8] sm:$0xff]  ;;  %v3780_v12 = vsel %vm11377_vm9, %v3779_v45, %v3778_v13  ;;  %v3783_v46 = vperm.slane %v2139_v33, %v7264_v61  ;;  %v394_v45 = vld [vmem:[%s11091_s0 + $0xbd8] sm:$0xff] }
 0x3dc   :  { %1636 = vadd.xlane.f32.xlu0 %v1635_v3  ;;  %v4266_v0 = vsel %vm3623_vm4, %v4265_v56, %v4264_v5  ;;  %v1659_v28 = vsel %vm527_vm0, %v392_v21, 0.0  ;;  %4764 = vmatpush.msrb.mxu1 %v2764_v42  ;;  %v11382_v13 = vld [vmem:[#allocation46_spill] sm:$0xff]  ;;  %v1665_v43 = vsel %vm527_vm0, %v394_v45, 0.0 }
 0x3dd   :  { %v4268_v11 = vsel %vm3627_vm5, %v4267_v55, %v4266_v0  ;;  %v3785_v0 = vperm.slane %v2140_v35, %v7274_v29 }
 0x3de   :  { %v1517_v50 = vpop.xlane.xlu2 %1516  ;;  %v1514_v23 = vpop.xlane.xlu1 %1513  ;;  %v4270_v47 = vsel %vm3631_vm6, %v4269_v6, %v4268_v11 }
 0x3df   :  { %v1511_v20 = vpop.xlane.xlu0 %1510  ;;  %v2392_v53 = vmul.f32 0.0625, %v1514_v23  ;;  %v2393_v10 = vmul.f32 0.0625, %v1517_v50  ;;  %v1656_v23 = vsel %vm527_vm0, %v391_v15, 0.0 }
 0x3e0   :  { %v2391_v63 = vmul.f32 0.0625, %v1511_v20  ;;  %v3782_v20 = vsel %vm11379_vm10, %v3781_v16, %v3780_v12  ;;  %v2756_v12 = vld [vmem:[%s11092_s1 + $0x5a0] sm:$0xff] }
 0x3e1   :  { %v4273_v3 = vperm.slane %v2392_v53, %v7222_v39  ;;  %v4275_v55 = vperm.slane %v2393_v10, %v7232_v62  ;;  %v2143_v10 = vmul.f32 0.0625, %v11382_v13 }
 0x3e2   :  { %v4271_v40 = vperm.slane %v2391_v63, %v7212_v49  ;;  %v2762_v63 = vld [vmem:[%s11092_s1 + $0x5d0] sm:$0xff] }
 0x3e3   :  { %1651 = vadd.xlane.f32.xlu2 %v1650_v25  ;;  %1648 = vadd.xlane.f32.xlu1 %v1647_v37  ;;  %v3784_v25 = vsel %vm3651_vm11, %v3783_v46, %v3782_v20  ;;  %v11380_v37 = vld [vmem:[#allocation47_spill] sm:$0xff] }
 0x3e4   :  { %1645 = vadd.xlane.f32.xlu0 %v1644_v27  ;;  %v4272_v36 = vsel %vm3635_vm7, %v4271_v40, %v4270_v47  ;;  %v2142_v6 = vmul.f32 0.0625, %v11380_v37  ;;  %4765 = vmatpush.msrb.mxu1 %v2762_v63  ;;  %v395_v40 = vld [vmem:[%s11091_s0 + $0xbe0] sm:$0xff]  ;;  %v393_v47 = vld [vmem:[%s11091_s0 + $0xbd0] sm:$0xff] }
 0x3e5   :  { %v4274_v30 = vsel %vm11098_vm8, %v4273_v3, %v4272_v36  ;;  %v397_v20 = vld [vmem:[%s11091_s0 + $0xbf0] sm:$0xff] }
 0x3e6   :  { %v1526_v56 = vpop.xlane.xlu2 %1525  ;;  %v1523_v54 = vpop.xlane.xlu1 %1522  ;;  %v4276_v9 = vsel %vm11377_vm9, %v4275_v55, %v4274_v30  ;;  %vm11381_vm9 = vcmask 851712   ;;  %4766 = vmatpush.msrb.mxu1 %v2760_v18  ;;  %v3789_v15 = vperm.slane %v2142_v6, %v7312_v7  ;;  %v11385_v18 = vld [vmem:[#allocation50_spill] sm:$0xff] }
 0x3e7   :  { %v1520_v1 = vpop.xlane.xlu0 %1519  ;;  %v2395_v5 = vmul.f32 0.0625, %v1523_v54  ;;  %v2396_v53 = vmul.f32 0.0625, %v1526_v56  ;;  %v3786_v33 = vsel %vm11381_vm9, %v3785_v0, %v3784_v25  ;;  %v1668_v54 = vsel %vm527_vm0, %v395_v40, 0.0  ;;  %v398_v0 = vld [vmem:[%s11091_s0 + $0xbf8] sm:$0xff] }
 0x3e8   :  { %v2394_v50 = vmul.f32 0.0625, %v1520_v1  ;;  %4767 = vmatpush.msrb.mxu1 %v2758_v17  ;;  %v1662_v1 = vsel %vm527_vm0, %v393_v47, 0.0  ;;  %v1677_v17 = vsel %vm527_vm0, %v398_v0, 0.0  ;;  %v11389_v0 = vld [vmem:[#allocation53_spill] sm:$0xff] }
 0x3e9   :  { %v4279_v27 = vperm.slane %v2395_v5, %v7264_v61  ;;  %v4281_v41 = vperm.slane %v2396_v53, %v7274_v29  ;;  %v396_v53 = vld [vmem:[%s11091_s0 + $0xbe8] sm:$0xff] }
 0x3ea   :  { %v4277_v51 = vperm.slane %v2394_v50, %v7250_v2  ;;  %v3788_v50 = vsel %vm3659_vm13, %v3787_v57, %v3786_v33  ;;  %4768 = vmatpush.msrb.mxu1 %v2756_v12  ;;  %v1674_v57 = vsel %vm527_vm0, %v397_v20, 0.0  ;;  %v2748_v33 = vld [vmem:[%s11092_s1 + $0x560] sm:$0xff]  ;;  %v1671_v13 = vsel %vm527_vm0, %v396_v53, 0.0 }
 0x3eb   :  { %1660 = vadd.xlane.f32.xlu2 %v1659_v28  ;;  %1657 = vadd.xlane.f32.xlu1 %v1656_v23  ;;  %v3791_v28 = vperm.slane %v2143_v10, %v7316_v38  ;;  %v2754_v23 = vld [vmem:[%s11092_s1 + $0x590] sm:$0xff]  ;;  %v3790_v30 = vsel %vm3663_vm14, %v3789_v15, %v3788_v50  ;;  %v2148_v20 = vmul.f32 0.0625, %v11389_v0 }
 0x3ec   :  { %1654 = vadd.xlane.f32.xlu0 %v1653_v22  ;;  %v4278_v11 = vsel %vm11379_vm10, %v4277_v51, %v4276_v9  ;;  %vm11383_vm10 = vmmov %vm11381_vm9  ;;  %4769 = vmatpush.msrb.mxu1 %v2754_v23  ;;  %v2750_v51 = vld [vmem:[%s11092_s1 + $0x570] sm:$0xff]  ;;  %vm11398_vm9 = vcmask 654912  }
 0x3ed   :  { %v4280_v36 = vsel %vm3651_vm11, %v4279_v27, %v4278_v11  ;;  %v3792_v37 = vsel %vm3667_vm15, %v3791_v28, %v3790_v30  ;;  %v11384_v27 = vld [vmem:[#allocation45_spill] sm:$0xff]  ;;  %v2145_v11 = vmul.f32 0.0625, %v11385_v18  ;;  %v2746_v10 = vld [vmem:[%s11092_s1 + $0x550] sm:$0xff] }
 0x3ee   :  { %v1535_v21 = vpop.xlane.xlu2 %1534  ;;  %v1532_v3 = vpop.xlane.xlu1 %1531  ;;  %v4282_v42 = vsel %vm11383_vm10, %v4281_v41, %v4280_v36  ;;  %4770 = vmatpush.msrb.mxu1 %v2752_v19  ;;  %v2144_v9 = vmul.f32 0.0625, %v11384_v27  ;;  %v400_v36 = vld [vmem:[%s11091_s0 + $0xc08] sm:$0xff]  ;;  %vm11400_vm10 = vmmov %vm11398_vm9 }
 0x3ef   :  { %v2399_v16 = vmul.f32 0.0625, %v1535_v21  ;;  %v2398_v4 = vmul.f32 0.0625, %v1532_v3  ;;  %v1529_v35 = vpop.xlane.xlu0 %1528  ;;  %v11387_v3 = vld [vmem:[#allocation49_spill] sm:$0xff]  ;;  %v3794_v15 = vperm.slane %v2145_v11, %v7131_v24  ;;  %v1683_v19 = vsel %vm527_vm0, %v400_v36, 0.0 }
 0x3f0   :  { %v2397_v56 = vmul.f32 0.0625, %v1529_v35  ;;  %4771 = vmatpush.msrb.mxu1 %v2750_v51  ;;  %v3793_v21 = vperm.slane %v2144_v9, %v7124_v44  ;;  %v2146_v47 = vmul.f32 0.0625, %v11387_v3  ;;  %v2744_v35 = vld [vmem:[%s11092_s1 + $0x540] sm:$0xff] }
 0x3f1   :  { %v4285_v46 = vperm.slane %v2398_v4, %v7312_v7  ;;  %v4287_v55 = vperm.slane %v2399_v16, %v7316_v38  ;;  %v401_v4 = vld [vmem:[%s11091_s0 + $0xc10] sm:$0xff] }
 0x3f2   :  { %v4283_v5 = vperm.slane %v2397_v56, %v7293_v58  ;;  %4772 = vmatpush.msrb.mxu1 %v2748_v33  ;;  %v2742_v56 = vld [vmem:[%s11092_s1 + $0x530] sm:$0xff]  ;;  %v3796_v28 = vperm.slane %v2146_v47, %v7148_v32  ;;  %v1686_v23 = vsel %vm527_vm0, %v401_v4, 0.0  ;;  %v403_v33 = vld [vmem:[%s11091_s0 + $0xc20] sm:$0xff] }
 0x3f3   :  { %1669 = vadd.xlane.f32.xlu2 %v1668_v54  ;;  %1666 = vadd.xlane.f32.xlu1 %v1665_v43  ;;  %v11388_v54 = vld [vmem:[#allocation48_spill] sm:$0xff] }
 0x3f4   :  { %v4284_v22 = vsel %vm3659_vm13, %v4283_v5, %v4282_v42  ;;  %1663 = vadd.xlane.f32.xlu0 %v1662_v1  ;;  %4773 = vmatpush.msrb.mxu1 %v2746_v10  ;;  %v2147_v43 = vmul.f32 0.0625, %v11388_v54  ;;  %v399_v1 = vld [vmem:[%s11091_s0 + $0xc00] sm:$0xff] }
 0x3f5   :  { %v4286_v60 = vsel %vm3663_vm14, %v4285_v46, %v4284_v22  ;;  %v1680_v51 = vsel %vm527_vm0, %v399_v1, 0.0  ;;  %v11392_v4 = vld [vmem:[#allocation56_spill] sm:$0xff]  ;;  %v1692_v1 = vsel %vm527_vm0, %v403_v33, 0.0 }
 0x3f6   :  { %v1544_v63 = vpop.xlane.xlu2 %1543  ;;  %v1541_v25 = vpop.xlane.xlu1 %1540  ;;  %v4288_v6 = vsel %vm3667_vm15, %v4287_v55, %v4286_v60  ;;  %4774 = vmatpush.msrb.mxu1 %v2744_v35  ;;  %v3795_v55 = vsel %vm3611_vm1, %v3794_v15, %v3793_v21  ;;  %v2740_v60 = vld [vmem:[%s11092_s1 + $0x520] sm:$0xff]  ;;  %v2151_v35 = vmul.f32 0.0625, %v11392_v4 }
 0x3f7   :  { %v1538_v40 = vpop.xlane.xlu0 %1537  ;;  %v8142_v45 = vsel %vm4630_vm12, %v4288_v6, %v3792_v37  ;;  %v2401_v41 = vmul.f32 0.0625, %v1541_v25  ;;  %v2402_v5 = vmul.f32 0.0625, %v1544_v63  ;;  %v3798_v63 = vperm.slane %v2147_v43, %v7162_v14  ;;  %v2738_v25 = vld [vmem:[%s11092_s1 + $0x510] sm:$0xff]  ;;  %v11390_v6 = vld [vmem:[#allocation52_spill] sm:$0xff] }
 0x3f8   :  { %11386 = vst [vmem:[#allocation5_spill] sm:$0xff] %v8142_v45  ;;  %4759 = vmatmul.f32.vlgmr.msrb.gmra.mxu0 %v8142_v45  ;;  %v2400_v16 = vmul.f32 0.0625, %v1538_v40  ;;  %4775 = vmatpush.msrb.mxu1 %v2742_v56  ;;  %v3797_v37 = vsel %vm3615_vm2, %v3796_v28, %v3795_v55  ;;  %v2149_v53 = vmul.f32 0.0625, %v11390_v6  ;;  %v2736_v40 = vld [vmem:[%s11092_s1 + $0x500] sm:$0xff]  ;;  %v3806_v0 = vperm.slane %v2151_v35, %v7212_v49 }
 0x3f9   :  { %v4290_v42 = vperm.slane %v2401_v41, %v7131_v24  ;;  %v4292_v27 = vperm.slane %v2402_v5, %v7148_v32  ;;  %v3799_v21 = vsel %vm3619_vm3, %v3798_v63, %v3797_v37  ;;  %v402_v41 = vld [vmem:[%s11091_s0 + $0xc18] sm:$0xff]  ;;  %v2796_v35 = vld [vmem:[%s11092_s1 + $0x6e0] sm:$0xff] }
 0x3fa   :  { %v4289_v30 = vperm.slane %v2400_v16, %v7124_v44  ;;  %4776 = vmatpush.msrb.mxu1 %v2740_v60  ;;  %v3802_v16 = vperm.slane %v2149_v53, %v7184_v31  ;;  %v1689_v55 = vsel %vm527_vm0, %v402_v41, 0.0  ;;  %v406_v63 = vld [vmem:[%s11091_s0 + $0xc38] sm:$0xff] }
 0x3fb   :  { %1678 = vadd.xlane.f32.xlu2 %v1677_v17  ;;  %1675 = vadd.xlane.f32.xlu1 %v1674_v57  ;;  %v3800_v17 = vperm.slane %v2148_v20, %v7181_v26  ;;  %v404_v57 = vld [vmem:[%s11091_s0 + $0xc28] sm:$0xff] }
 0x3fc   :  { %1672 = vadd.xlane.f32.xlu0 %v1671_v13  ;;  %v4291_v18 = vsel %vm3611_vm1, %v4290_v42, %v4289_v30  ;;  %4777 = vmatpush.msrb.mxu1 %v2738_v25  ;;  %v11391_v13 = vld [vmem:[#allocation51_spill] sm:$0xff]  ;;  %v11394_v25 = vld [vmem:[#allocation54_spill] sm:$0xff] }
 0x3fd   :  { %v2150_v10 = vmul.f32 0.0625, %v11391_v13  ;;  %v4293_v56 = vsel %vm3615_vm2, %v4292_v27, %v4291_v18  ;;  %v3801_v28 = vsel %vm3623_vm4, %v3800_v17, %v3799_v21  ;;  %v11393_v42 = vld [vmem:[#allocation55_spill] sm:$0xff]  ;;  %v2153_v37 = vmul.f32 0.0625, %v11394_v25 }
 0x3fe   :  { %v1553_v12 = vpop.xlane.xlu2 %1552  ;;  %v1550_v46 = vpop.xlane.xlu1 %1549  ;;  %4778 = vmatpush.msrb.mxu1 %v2736_v40  ;;  %v2152_v30 = vmul.f32 0.0625, %v11393_v42  ;;  %v3803_v60 = vsel %vm3627_vm5, %v3802_v16, %v3801_v28  ;;  %v405_v18 = vld [vmem:[%s11091_s0 + $0xc30] sm:$0xff] }
 0x3ff   :  { %v1547_v50 = vpop.xlane.xlu0 %1546  ;;  %v2404_v9 = vmul.f32 0.0625, %v1550_v46  ;;  %v2405_v3 = vmul.f32 0.0625, %v1553_v12  ;;  %v1695_v12 = vsel %vm527_vm0, %v404_v57, 0.0  ;;  %v11395_v17 = vld [vmem:[#allocation59_spill] sm:$0xff]  ;;  %v1698_v4 = vsel %vm527_vm0, %v405_v18, 0.0 }
 0x400   :  { %v2403_v22 = vmul.f32 0.0625, %v1547_v50  ;;  %v2154_v57 = vmul.f32 0.0625, %v11395_v17  ;;  %v2794_v28 = vld [vmem:[%s11092_s1 + $0x6d0] sm:$0xff] }
 0x401   :  { %v4296_v36 = vperm.slane %v2404_v9, %v7181_v26  ;;  %v4298_v5 = vperm.slane %v2405_v3, %v7184_v31  ;;  %v2790_v18 = vld [vmem:[%s11092_s1 + $0x6b0] sm:$0xff] }
 0x402   :  { %v4294_v11 = vperm.slane %v2403_v22, %v7162_v14 }
 0x403   :  { %1687 = vadd.xlane.f32.xlu2 %v1686_v23  ;;  %1684 = vadd.xlane.f32.xlu1 %v1683_v19  ;;  %v3804_v23 = vperm.slane %v2150_v10, %v7196_v52  ;;  %v2798_v10 = vld [vmem:[%s11092_s1 + $0x6f0] sm:$0xff] }
 0x404   :  { %1681 = vadd.xlane.f32.xlu0 %v1680_v51  ;;  %v4295_v43 = vsel %vm3619_vm3, %v4294_v11, %v4293_v56  ;;  %v407_v51 = vld [vmem:[%s11091_s0 + $0xc40] sm:$0xff]  ;;  %v3808_v11 = vperm.slane %v2152_v30, %v7222_v39  ;;  %4783 = vmatpush.msrb.mxu2 %v2798_v10  ;;  %v11396_v56 = vld [vmem:[#allocation58_spill] sm:$0xff] }
 0x405   :  { %v4297_v22 = vsel %vm3623_vm4, %v4296_v36, %v4295_v43  ;;  %v3805_v40 = vsel %vm3631_vm6, %v3804_v23, %v3803_v60  ;;  %v3810_v36 = vperm.slane %v2153_v37, %v7232_v62 }
 0x406   :  { %v1562_v47 = vpop.xlane.xlu2 %1561  ;;  %v1559_v15 = vpop.xlane.xlu1 %1558  ;;  %v4299_v53 = vsel %vm3627_vm5, %v4298_v5, %v4297_v22  ;;  %v3807_v21 = vsel %vm3635_vm7, %v3806_v0, %v3805_v40  ;;  %4784 = vmatpush.msrb.mxu2 %v2796_v35  ;;  %v410_v5 = vld [vmem:[%s11091_s0 + $0xc58] sm:$0xff]  ;;  %v409_v22 = vld [vmem:[%s11091_s0 + $0xc50] sm:$0xff] }
 0x407   :  { %v1556_v54 = vpop.xlane.xlu0 %1555  ;;  %v2407_v50 = vmul.f32 0.0625, %v1559_v15  ;;  %v2408_v20 = vmul.f32 0.0625, %v1562_v47  ;;  %v1704_v47 = vsel %vm527_vm0, %v407_v51, 0.0  ;;  %v1701_v15 = vsel %vm527_vm0, %v406_v63, 0.0 }
 0x408   :  { %v2406_v46 = vmul.f32 0.0625, %v1556_v54  ;;  %v2155_v54 = vmul.f32 0.0625, %v11396_v56  ;;  %4785 = vmatpush.msrb.mxu2 %v2794_v28  ;;  %v2786_v56 = vld [vmem:[%s11092_s1 + $0x690] sm:$0xff] }
 0x409   :  { %v4302_v6 = vperm.slane %v2407_v50, %v7212_v49  ;;  %v4304_v41 = vperm.slane %v2408_v20, %v7222_v39  ;;  %v11397_v50 = vld [vmem:[#allocation57_spill] sm:$0xff]  ;;  %v11399_v20 = vld [vmem:[#allocation62_spill] sm:$0xff] }
 0x40a   :  { %v4300_v19 = vperm.slane %v2406_v46, %v7196_v52  ;;  %v2156_v23 = vmul.f32 0.0625, %v11397_v50  ;;  %v3814_v60 = vperm.slane %v2155_v54, %v7264_v61  ;;  %v2157_v51 = vmul.f32 0.0625, %v11399_v20  ;;  %v413_v28 = vld [vmem:[%s11091_s0 + $0xc70] sm:$0xff] }
 0x40b   :  { %1696 = vadd.xlane.f32.xlu2 %v1695_v12  ;;  %1693 = vadd.xlane.f32.xlu1 %v1692_v1  ;;  %v3809_v12 = vsel %vm11098_vm8, %v3808_v11, %v3807_v21  ;;  %v3812_v1 = vperm.slane %v2154_v57, %v7250_v2  ;;  %v1710_v57 = vsel %vm527_vm0, %v409_v22, 0.0 }
 0x40c   :  { %1690 = vadd.xlane.f32.xlu0 %v1689_v55  ;;  %v4301_v33 = vsel %vm3631_vm6, %v4300_v19, %v4299_v53  ;;  %v2792_v19 = vld [vmem:[%s11092_s1 + $0x6c0] sm:$0xff]  ;;  %v3811_v0 = vsel %vm11398_vm9, %v3810_v36, %v3809_v12 }
 0x40d   :  { %v4303_v43 = vsel %vm3635_vm7, %v4302_v6, %v4301_v33  ;;  %v408_v6 = vld [vmem:[%s11091_s0 + $0xc48] sm:$0xff]  ;;  %4786 = vmatpush.msrb.mxu2 %v2792_v19  ;;  %v3816_v33 = vperm.slane %v2156_v23, %v7274_v29 }
 0x40e   :  { %v1571_v27 = vpop.xlane.xlu2 %1570  ;;  %v1568_v9 = vpop.xlane.xlu1 %1567  ;;  %v4305_v30 = vsel %vm11098_vm8, %v4304_v41, %v4303_v43  ;;  %vm11401_vm8 = vcmask 720512   ;;  %v3818_v41 = vperm.slane %v2157_v51, %v7293_v58  ;;  %v1722_v51 = vsel %vm527_vm0, %v413_v28, 0.0 }
 0x40f   :  { %v1565_v13 = vpop.xlane.xlu0 %1564  ;;  %v2410_v16 = vmul.f32 0.0625, %v1568_v9  ;;  %v2411_v55 = vmul.f32 0.0625, %v1571_v27  ;;  %v3813_v53 = vsel %vm11401_vm8, %v3812_v1, %v3811_v0  ;;  %v1713_v9 = vsel %vm527_vm0, %v410_v5, 0.0  ;;  %4787 = vmatpush.msrb.mxu2 %v2790_v18  ;;  %vm11403_vm9 = vmmov %vm11401_vm8  ;;  %v2784_v5 = vld [vmem:[%s11092_s1 + $0x680] sm:$0xff]  ;;  %v2782_v0 = vld [vmem:[%s11092_s1 + $0x670] sm:$0xff] }
 0x410   :  { %v2409_v3 = vmul.f32 0.0625, %v1565_v13  ;;  %v11402_v13 = vld [vmem:[#allocation61_spill] sm:$0xff]  ;;  %vm11405_vm8 = vcmask 851712  }
 0x411   :  { %v4308_v42 = vperm.slane %v2410_v16, %v7250_v2  ;;  %v4310_v11 = vperm.slane %v2411_v55, %v7264_v61  ;;  %v2158_v10 = vmul.f32 0.0625, %v11402_v13  ;;  %v412_v55 = vld [vmem:[%s11091_s0 + $0xc68] sm:$0xff] }
 0x412   :  { %v4306_v46 = vperm.slane %v2409_v3, %v7232_v62  ;;  %v1707_v3 = vsel %vm527_vm0, %v408_v6, 0.0  ;;  %v11408_v18 = vld [vmem:[#allocation65_spill] sm:$0xff] }
 0x413   :  { %1705 = vadd.xlane.f32.xlu2 %v1704_v47  ;;  %1702 = vadd.xlane.f32.xlu1 %v1701_v15  ;;  %v2788_v47 = vld [vmem:[%s11092_s1 + $0x6a0] sm:$0xff]  ;;  %v3815_v15 = vsel %vm3651_vm11, %v3814_v60, %v3813_v53 }
 0x414   :  { %1699 = vadd.xlane.f32.xlu0 %v1698_v4  ;;  %v4307_v63 = vsel %vm11400_vm10, %v4306_v46, %v4305_v30  ;;  %4788 = vmatpush.msrb.mxu2 %v2788_v47  ;;  %v11404_v4 = vld [vmem:[#allocation60_spill] sm:$0xff]  ;;  %v3820_v46 = vperm.slane %v2158_v10, %v7312_v7  ;;  %v3817_v12 = vsel %vm11405_vm8, %v3816_v33, %v3815_v15  ;;  %vm11406_vm10 = vmmov %vm11405_vm8  ;;  %v11410_v15 = vld [vmem:[#allocation63_spill] sm:$0xff] }
 0x415   :  { %v4309_v21 = vsel %vm11403_vm9, %v4308_v42, %v4307_v63  ;;  %v2159_v35 = vmul.f32 0.0625, %v11404_v4  ;;  %v3819_v50 = vsel %vm3659_vm13, %v3818_v41, %v3817_v12  ;;  %v411_v30 = vld [vmem:[%s11091_s0 + $0xc60] sm:$0xff]  ;;  %v1719_v63 = vsel %vm527_vm0, %v412_v55, 0.0  ;;  %v2774_v12 = vld [vmem:[%s11092_s1 + $0x630] sm:$0xff] }
 0x416   :  { %v1580_v25 = vpop.xlane.xlu2 %1579  ;;  %v1577_v37 = vpop.xlane.xlu1 %1576  ;;  %v4311_v43 = vsel %vm3651_vm11, %v4310_v11, %v4309_v21  ;;  %4789 = vmatpush.msrb.mxu2 %v2786_v56  ;;  %v3821_v6 = vsel %vm3663_vm14, %v3820_v46, %v3819_v50  ;;  %v2780_v53 = vld [vmem:[%s11092_s1 + $0x660] sm:$0xff]  ;;  %v2160_v11 = vmul.f32 0.0625, %v11408_v18  ;;  %v416_v21 = vld [vmem:[%s11091_s0 + $0xc88] sm:$0xff]  ;;  %v2162_v41 = vmul.f32 0.0625, %v11410_v15  ;;  %v414_v56 = vld [vmem:[%s11091_s0 + $0xc78] sm:$0xff] }
 0x417   :  { %v1574_v27 = vpop.xlane.xlu0 %1573  ;;  %v2413_v40 = vmul.f32 0.0625, %v1577_v37  ;;  %v2414_v36 = vmul.f32 0.0625, %v1580_v25  ;;  %v3822_v22 = vperm.slane %v2159_v35, %v7316_v38  ;;  %v1716_v37 = vsel %vm527_vm0, %v411_v30, 0.0  ;;  %v2776_v47 = vld [vmem:[%s11092_s1 + $0x640] sm:$0xff] }
 0x418   :  { %v2412_v17 = vmul.f32 0.0625, %v1574_v27  ;;  %4790 = vmatpush.msrb.mxu2 %v2784_v5  ;;  %v11407_v27 = vld [vmem:[#allocation64_spill] sm:$0xff]  ;;  %v3824_v4 = vperm.slane %v2160_v11, %v7124_v44  ;;  %v1731_v28 = vsel %vm527_vm0, %v416_v21, 0.0  ;;  %v1725_v30 = vsel %vm527_vm0, %v414_v56, 0.0  ;;  %v11414_v21 = vld [vmem:[#allocation71_spill] sm:$0xff] }
 0x419   :  { %v4314_v54 = vperm.slane %v2413_v40, %v7293_v58  ;;  %v4316_v19 = vperm.slane %v2414_v36, %v7312_v7  ;;  %v3823_v33 = vsel %vm3667_vm15, %v3822_v22, %v3821_v6  ;;  %v11411_v5 = vld [vmem:[#allocation68_spill] sm:$0xff]  ;;  %vm11420_vm9 = vcmask 589312  }
 0x41a   :  { %v4312_v16 = vperm.slane %v2412_v17, %v7274_v29  ;;  %4791 = vmatpush.msrb.mxu2 %v2782_v0  ;;  %v2163_v50 = vmul.f32 0.0625, %v11411_v5  ;;  %vm11422_vm8 = vmmov %vm11420_vm9 }
 0x41b   :  { %1714 = vadd.xlane.f32.xlu2 %v1713_v9  ;;  %1711 = vadd.xlane.f32.xlu1 %v1710_v57  ;;  %v2161_v9 = vmul.f32 0.0625, %v11407_v27  ;;  %v2778_v57 = vld [vmem:[%s11092_s1 + $0x650] sm:$0xff]  ;;  %v418_v27 = vld [vmem:[%s11091_s0 + $0xc98] sm:$0xff] }
 0x41c   :  { %1708 = vadd.xlane.f32.xlu0 %v1707_v3  ;;  %v4313_v1 = vsel %vm11406_vm10, %v4312_v16, %v4311_v43  ;;  %4792 = vmatpush.msrb.mxu2 %v2780_v53  ;;  %v415_v3 = vld [vmem:[%s11091_s0 + $0xc80] sm:$0xff]  ;;  %v3829_v6 = vperm.slane %v2163_v50, %v7162_v14  ;;  %vm11423_vm10 = vcmask 654912  }
 0x41d   :  { %v4315_v25 = vsel %vm3659_vm13, %v4314_v54, %v4313_v1  ;;  %v3825_v16 = vperm.slane %v2161_v9, %v7131_v24  ;;  %v1728_v55 = vsel %vm527_vm0, %v415_v3, 0.0  ;;  %v419_v53 = vld [vmem:[%s11091_s0 + $0xca0] sm:$0xff]  ;;  %v11413_v9 = vld [vmem:[#allocation66_spill] sm:$0xff]  ;;  %v2166_v3 = vmul.f32 0.0625, %v11414_v21 }
 0x41e   :  { %v1589_v23 = vpop.xlane.xlu2 %1588  ;;  %v1586_v42 = vpop.xlane.xlu1 %1585  ;;  %v4317_v17 = vsel %vm3663_vm14, %v4316_v19, %v4315_v25  ;;  %4793 = vmatpush.msrb.mxu2 %v2778_v57  ;;  %v2770_v19 = vld [vmem:[%s11092_s1 + $0x610] sm:$0xff]  ;;  %v2165_v18 = vmul.f32 0.0625, %v11413_v9 }
 0x41f   :  { %v1583_v60 = vpop.xlane.xlu0 %1582  ;;  %v2417_v54 = vmul.f32 0.0625, %v1589_v23  ;;  %v2416_v43 = vmul.f32 0.0625, %v1586_v42  ;;  %v2772_v23 = vld [vmem:[%s11092_s1 + $0x620] sm:$0xff]  ;;  %v3827_v42 = vperm.slane %v2162_v41, %v7148_v32  ;;  %v3826_v22 = vsel %vm3611_vm1, %v3825_v16, %v3824_v4 }
 0x420   :  { %v2415_v20 = vmul.f32 0.0625, %v1583_v60  ;;  %4794 = vmatpush.msrb.mxu2 %v2776_v47  ;;  %v11412_v60 = vld [vmem:[#allocation67_spill] sm:$0xff] }
 0x421   :  { %v2164_v0 = vmul.f32 0.0625, %v11412_v60  ;;  %v3828_v11 = vsel %vm3615_vm2, %v3827_v42, %v3826_v22  ;;  %v422_v42 = vld [vmem:[%s11091_s0 + $0xcb8] sm:$0xff]  ;;  %v421_v22 = vld [vmem:[%s11091_s0 + $0xcb0] sm:$0xff] }
 0x422   :  { %v4318_v40 = vperm.slane %v2415_v20, %v7316_v38  ;;  %4795 = vmatpush.msrb.mxu2 %v2774_v12  ;;  %v4321_v20 = vperm.slane %v2417_v54, %v7131_v24  ;;  %v3830_v56 = vsel %vm3619_vm3, %v3829_v6, %v3828_v11  ;;  %v3833_v12 = vperm.slane %v2165_v18, %v7184_v31 }
 0x423   :  { %1723 = vadd.xlane.f32.xlu2 %v1722_v51  ;;  %1720 = vadd.xlane.f32.xlu1 %v1719_v63  ;;  %v4320_v51 = vperm.slane %v2416_v43, %v7124_v44 }
 0x424   :  { %1717 = vadd.xlane.f32.xlu0 %v1716_v37  ;;  %v4319_v13 = vsel %vm3667_vm15, %v4318_v40, %v4317_v17  ;;  %4796 = vmatpush.msrb.mxu2 %v2772_v23  ;;  %v2768_v37 = vld [vmem:[%s11092_s1 + $0x600] sm:$0xff] }
 0x425   :  { %v8341_v10 = vsel %vm4630_vm12, %v4319_v13, %v3823_v33  ;;  %v417_v33 = vld [vmem:[%s11091_s0 + $0xc90] sm:$0xff]  ;;  %v3831_v13 = vperm.slane %v2164_v0, %v7181_v26  ;;  %v4322_v47 = vsel %vm3611_vm1, %v4321_v20, %v4320_v51 }
 0x426   :  { %11409 = vst [vmem:[#allocation8_spill] sm:$0xff] %v8341_v10  ;;  %4779 = vmatmul.f32.vlgmr.msrb.gmra.mxu1 %v8341_v10  ;;  %v1598_v35 = vpop.xlane.xlu2 %1597  ;;  %v1595_v36 = vpop.xlane.xlu1 %1594  ;;  %4797 = vmatpush.msrb.mxu2 %v2770_v19  ;;  %v1734_v54 = vsel %vm527_vm0, %v417_v33, 0.0  ;;  %v11416_v19 = vld [vmem:[#allocation69_spill] sm:$0xff]  ;;  %v2830_v33 = vld [vmem:[%s11092_s1 + $0x7f0] sm:$0xff] }
 0x427   :  { %v1592_v46 = vpop.xlane.xlu0 %1591  ;;  %v2419_v63 = vmul.f32 0.0625, %v1595_v36  ;;  %v2420_v40 = vmul.f32 0.0625, %v1598_v35  ;;  %v1740_v35 = vsel %vm527_vm0, %v419_v53, 0.0  ;;  %v1737_v36 = vsel %vm527_vm0, %v418_v27, 0.0  ;;  %v11417_v53 = vld [vmem:[#allocation74_spill] sm:$0xff]  ;;  %4803 = vmatpush.msrb.mxu3 %v2830_v33 }
 0x428   :  { %v2418_v1 = vmul.f32 0.0625, %v1592_v46  ;;  %4798 = vmatpush.msrb.mxu2 %v2768_v37  ;;  %v3832_v50 = vsel %vm3623_vm4, %v3831_v13, %v3830_v56  ;;  %v2168_v60 = vmul.f32 0.0625, %v11416_v19  ;;  %v2169_v27 = vmul.f32 0.0625, %v11417_v53 }
 0x429   :  { %v4325_v15 = vperm.slane %v2419_v63, %v7162_v14  ;;  %v4327_v43 = vperm.slane %v2420_v40, %v7181_v26  ;;  %v3834_v6 = vsel %vm3627_vm5, %v3833_v12, %v3832_v50  ;;  %v11419_v12 = vld [vmem:[#allocation72_spill] sm:$0xff] }
 0x42a   :  { %v4323_v25 = vperm.slane %v2418_v1, %v7148_v32  ;;  %v11415_v1 = vld [vmem:[#allocation70_spill] sm:$0xff]  ;;  %v3841_v56 = vperm.slane %v2169_v27, %v7232_v62  ;;  %v2824_v50 = vld [vmem:[%s11092_s1 + $0x7c0] sm:$0xff] }
 0x42b   :  { %1732 = vadd.xlane.f32.xlu2 %v1731_v28  ;;  %1729 = vadd.xlane.f32.xlu1 %v1728_v55  ;;  %v2167_v28 = vmul.f32 0.0625, %v11415_v1  ;;  %v2171_v1 = vmul.f32 0.0625, %v11419_v12  ;;  %v428_v12 = vld [vmem:[%s11091_s0 + $0xce8] sm:$0xff] }
 0x42c   :  { %1726 = vadd.xlane.f32.xlu0 %v1725_v30  ;;  %v4324_v16 = vsel %vm3615_vm2, %v4323_v25, %v4322_v47  ;;  %v3835_v30 = vperm.slane %v2166_v3, %v7196_v52  ;;  %v420_v25 = vld [vmem:[%s11091_s0 + $0xca8] sm:$0xff]  ;;  %v3839_v47 = vperm.slane %v2168_v60, %v7222_v39 }
 0x42d   :  { %v4326_v55 = vsel %vm3619_vm3, %v4325_v15, %v4324_v16  ;;  %v3837_v37 = vperm.slane %v2167_v28, %v7212_v49  ;;  %v1743_v3 = vsel %vm527_vm0, %v420_v25, 0.0  ;;  %v11418_v15 = vld [vmem:[#allocation73_spill] sm:$0xff] }
 0x42e   :  { %v1607_v17 = vpop.xlane.xlu2 %1606  ;;  %v1604_v57 = vpop.xlane.xlu1 %1603  ;;  %v4328_v20 = vsel %vm3623_vm4, %v4327_v43, %v4326_v55  ;;  %v3836_v11 = vsel %vm3631_vm6, %v3835_v30, %v3834_v6  ;;  %v425_v43 = vld [vmem:[%s11091_s0 + $0xcd0] sm:$0xff] }
 0x42f   :  { %v1601_v41 = vpop.xlane.xlu0 %1600  ;;  %v2422_v46 = vmul.f32 0.0625, %v1604_v57  ;;  %v2423_v23 = vmul.f32 0.0625, %v1607_v17  ;;  %v1749_v17 = vsel %vm527_vm0, %v422_v42, 0.0  ;;  %v1746_v57 = vsel %vm527_vm0, %v421_v22, 0.0  ;;  %v11421_v42 = vld [vmem:[#allocation77_spill] sm:$0xff] }
 0x430   :  { %v2421_v4 = vmul.f32 0.0625, %v1601_v41  ;;  %v2170_v41 = vmul.f32 0.0625, %v11418_v15  ;;  %v2172_v22 = vmul.f32 0.0625, %v11421_v42  ;;  %v1758_v25 = vsel %vm527_vm0, %v425_v43, 0.0 }
 0x431   :  { %v4331_v0 = vperm.slane %v2422_v46, %v7196_v52  ;;  %v4333_v13 = vperm.slane %v2423_v23, %v7212_v49  ;;  %v2826_v46 = vld [vmem:[%s11092_s1 + $0x7d0] sm:$0xff] }
 0x432   :  { %v4329_v5 = vperm.slane %v2421_v4, %v7184_v31  ;;  %v3843_v30 = vperm.slane %v2170_v41, %v7250_v2 }
 0x433   :  { %1741 = vadd.xlane.f32.xlu2 %v1740_v35  ;;  %1738 = vadd.xlane.f32.xlu1 %v1737_v36  ;;  %v2828_v35 = vld [vmem:[%s11092_s1 + $0x7e0] sm:$0xff]  ;;  %v3838_v36 = vsel %vm3635_vm7, %v3837_v37, %v3836_v11 }
 0x434   :  { %1735 = vadd.xlane.f32.xlu0 %v1734_v54  ;;  %v4330_v9 = vsel %vm3627_vm5, %v4329_v5, %v4328_v20  ;;  %4804 = vmatpush.msrb.mxu3 %v2828_v35  ;;  %v424_v5 = vld [vmem:[%s11091_s0 + $0xcc8] sm:$0xff]  ;;  %v3840_v23 = vsel %vm11420_vm9, %v3839_v47, %v3838_v36  ;;  %v423_v20 = vld [vmem:[%s11091_s0 + $0xcc0] sm:$0xff]  ;;  %vm11425_vm9 = vmmov %vm11423_vm10 }
 0x435   :  { %v4332_v16 = vsel %vm3631_vm6, %v4331_v0, %v4330_v9  ;;  %v1755_v27 = vsel %vm527_vm0, %v424_v5, 0.0  ;;  %v2822_v9 = vld [vmem:[%s11092_s1 + $0x7b0] sm:$0xff]  ;;  %v11424_v11 = vld [vmem:[#allocation76_spill] sm:$0xff] }
 0x436   :  { %v1616_v51 = vpop.xlane.xlu2 %1615  ;;  %v1613_v63 = vpop.xlane.xlu1 %1612  ;;  %v4334_v55 = vsel %vm3635_vm7, %v4333_v13, %v4332_v16  ;;  %4805 = vmatpush.msrb.mxu3 %v2826_v46  ;;  %v3847_v13 = vperm.slane %v2172_v22, %v7274_v29  ;;  %v11427_v47 = vld [vmem:[#allocation75_spill] sm:$0xff] }
 0x437   :  { %v1610_v18 = vpop.xlane.xlu0 %1609  ;;  %v2425_v21 = vmul.f32 0.0625, %v1613_v63  ;;  %v2426_v54 = vmul.f32 0.0625, %v1616_v51  ;;  %v3842_v51 = vsel %vm11423_vm10, %v3841_v56, %v3840_v23  ;;  %v2174_v15 = vmul.f32 0.0625, %v11427_v47  ;;  %v2818_v35 = vld [vmem:[%s11092_s1 + $0x790] sm:$0xff] }
 0x438   :  { %v2424_v40 = vmul.f32 0.0625, %v1610_v18  ;;  %4806 = vmatpush.msrb.mxu3 %v2824_v50  ;;  %v3845_v18 = vperm.slane %v2171_v1, %v7264_v61  ;;  %v427_v1 = vld [vmem:[%s11091_s0 + $0xce0] sm:$0xff]  ;;  %v2810_v47 = vld [vmem:[%s11092_s1 + $0x750] sm:$0xff] }
 0x439   :  { %v4337_v28 = vperm.slane %v2425_v21, %v7232_v62  ;;  %v4339_v37 = vperm.slane %v2426_v54, %v7250_v2  ;;  %v11429_v54 = vld [vmem:[#allocation80_spill] sm:$0xff]  ;;  %v3851_v23 = vperm.slane %v2174_v15, %v7312_v7 }
 0x43a   :  { %v4335_v4 = vperm.slane %v2424_v40, %v7222_v39  ;;  %v2173_v40 = vmul.f32 0.0625, %v11424_v11  ;;  %4807 = vmatpush.msrb.mxu3 %v2822_v9  ;;  %v2175_v43 = vmul.f32 0.0625, %v11429_v54  ;;  %v2812_v9 = vld [vmem:[%s11092_s1 + $0x760] sm:$0xff] }
 0x43b   :  { %1750 = vadd.xlane.f32.xlu2 %v1749_v17  ;;  %1747 = vadd.xlane.f32.xlu1 %v1746_v57  ;;  %v1752_v57 = vsel %vm527_vm0, %v423_v20, 0.0  ;;  %v1767_v20 = vsel %vm527_vm0, %v428_v12, 0.0 }
 0x43c   :  { %1744 = vadd.xlane.f32.xlu0 %v1743_v3  ;;  %v4336_v19 = vsel %vm11422_vm8, %v4335_v4, %v4334_v55  ;;  %vm11426_vm8 = vcmask 720512   ;;  %v2820_v3 = vld [vmem:[%s11092_s1 + $0x7a0] sm:$0xff]  ;;  %v3849_v36 = vperm.slane %v2173_v40, %v7293_v58  ;;  %v11433_v40 = vld [vmem:[#allocation79_spill] sm:$0xff] }
 0x43d   :  { %v4338_v17 = vsel %vm11425_vm9, %v4337_v28, %v4336_v19  ;;  %v3844_v33 = vsel %vm11426_vm8, %v3843_v30, %v3842_v51  ;;  %vm11428_vm10 = vmmov %vm11426_vm8  ;;  %4808 = vmatpush.msrb.mxu3 %v2820_v3  ;;  %v2816_v28 = vld [vmem:[%s11092_s1 + $0x780] sm:$0xff]  ;;  %vm11430_vm9 = vcmask 851712   ;;  %v426_v30 = vld [vmem:[%s11091_s0 + $0xcd8] sm:$0xff]  ;;  %v1764_v51 = vsel %vm527_vm0, %v427_v1, 0.0 }
 0x43e   :  { %v1625_v60 = vpop.xlane.xlu2 %1624  ;;  %v1622_v0 = vpop.xlane.xlu1 %1621  ;;  %v4340_v4 = vsel %vm11428_vm10, %v4339_v37, %v4338_v17  ;;  %v3846_v56 = vsel %vm3651_vm11, %v3845_v18, %v3844_v33  ;;  %vm11431_vm8 = vmmov %vm11430_vm9  ;;  %v11432_v18 = vld [vmem:[#allocation78_spill] sm:$0xff]  ;;  %v2176_v17 = vmul.f32 0.0625, %v11433_v40  ;;  %vm11445_vm10 = vcmask 589312  }
 0x43f   :  { %v1619_v63 = vpop.xlane.xlu0 %1618  ;;  %v2428_v6 = vmul.f32 0.0625, %v1622_v0  ;;  %v2429_v41 = vmul.f32 0.0625, %v1625_v60  ;;  %v3848_v55 = vsel %vm11430_vm9, %v3847_v13, %v3846_v56  ;;  %4809 = vmatpush.msrb.mxu3 %v2818_v35  ;;  %v2177_v11 = vmul.f32 0.0625, %v11432_v18  ;;  %v2808_v35 = vld [vmem:[%s11092_s1 + $0x740] sm:$0xff]  ;;  %v11436_v1 = vld [vmem:[#allocation82_spill] sm:$0xff] }
 0x440   :  { %v2427_v53 = vmul.f32 0.0625, %v1619_v63  ;;  %v2814_v63 = vld [vmem:[%s11092_s1 + $0x770] sm:$0xff]  ;;  %v3855_v12 = vperm.slane %v2176_v17, %v7124_v44  ;;  %vm11447_vm9 = vcmask 654912  }
 0x441   :  { %v4343_v16 = vperm.slane %v2428_v6, %v7274_v29  ;;  %v4345_v42 = vperm.slane %v2429_v41, %v7293_v58  ;;  %4810 = vmatpush.msrb.mxu3 %v2816_v28  ;;  %v1761_v6 = vsel %vm527_vm0, %v426_v30, 0.0  ;;  %v2179_v28 = vmul.f32 0.0625, %v11436_v1  ;;  %v2802_v18 = vld [vmem:[%s11092_s1 + $0x710] sm:$0xff] }
 0x442   :  { %v4341_v21 = vperm.slane %v2427_v53, %v7264_v61  ;;  %v3850_v53 = vsel %vm3659_vm13, %v3849_v36, %v3848_v55  ;;  %v433_v40 = vld [vmem:[%s11091_s0 + $0xd10] sm:$0xff] }
 0x443   :  { %1759 = vadd.xlane.f32.xlu2 %v1758_v25  ;;  %1756 = vadd.xlane.f32.xlu1 %v1755_v27  ;;  %v3853_v25 = vperm.slane %v2175_v43, %v7316_v38  ;;  %v429_v43 = vld [vmem:[%s11091_s0 + $0xcf0] sm:$0xff] }
 0x444   :  { %1753 = vadd.xlane.f32.xlu0 %v1752_v57  ;;  %v4342_v46 = vsel %vm3651_vm11, %v4341_v21, %v4340_v4  ;;  %4811 = vmatpush.msrb.mxu3 %v2814_v63  ;;  %v11434_v57 = vld [vmem:[#allocation83_spill] sm:$0xff]  ;;  %v3852_v21 = vsel %vm3663_vm14, %v3851_v23, %v3850_v53  ;;  %v3860_v63 = vperm.slane %v2179_v28, %v7162_v14 }
 0x445   :  { %v4344_v60 = vsel %vm11431_vm8, %v4343_v16, %v4342_v46  ;;  %v2178_v33 = vmul.f32 0.0625, %v11434_v57  ;;  %v3854_v15 = vsel %vm3667_vm15, %v3853_v25, %v3852_v21  ;;  %v431_v16 = vld [vmem:[%s11091_s0 + $0xd00] sm:$0xff]  ;;  %v430_v4 = vld [vmem:[%s11091_s0 + $0xcf8] sm:$0xff]  ;;  %v3856_v46 = vperm.slane %v2177_v11, %v7131_v24  ;;  %v11438_v25 = vld [vmem:[#allocation86_spill] sm:$0xff] }
 0x446   :  { %v1634_v5 = vpop.xlane.xlu2 %1633  ;;  %v1631_v50 = vpop.xlane.xlu1 %1630  ;;  %v4346_v13 = vsel %vm3659_vm13, %v4345_v42, %v4344_v60  ;;  %4812 = vmatpush.msrb.mxu3 %v2812_v9  ;;  %v1776_v42 = vsel %vm527_vm0, %v431_v16, 0.0  ;;  %v1770_v60 = vsel %vm527_vm0, %v429_v43, 0.0  ;;  %v434_v11 = vld [vmem:[%s11091_s0 + $0xd18] sm:$0xff]  ;;  %v432_v21 = vld [vmem:[%s11091_s0 + $0xd08] sm:$0xff]  ;;  %vm11448_vm8 = vmmov %vm11445_vm10 }
 0x447   :  { %v2431_v22 = vmul.f32 0.0625, %v1631_v50  ;;  %v1628_v19 = vpop.xlane.xlu0 %1627  ;;  %v3858_v55 = vperm.slane %v2178_v33, %v7148_v32  ;;  %v2432_v30 = vmul.f32 0.0625, %v1634_v5  ;;  %v3857_v5 = vsel %vm3611_vm1, %v3856_v46, %v3855_v12 }
 0x448   :  { %v2430_v0 = vmul.f32 0.0625, %v1628_v19  ;;  %4813 = vmatpush.msrb.mxu3 %v2810_v47  ;;  %v2806_v19 = vld [vmem:[%s11092_s1 + $0x730] sm:$0xff]  ;;  %v1785_v43 = vsel %vm527_vm0, %v434_v11, 0.0  ;;  %v1782_v46 = vsel %vm527_vm0, %v433_v40, 0.0  ;;  %v1779_v12 = vsel %vm527_vm0, %v432_v21, 0.0 }
 0x449   :  { %v4349_v37 = vperm.slane %v2431_v22, %v7316_v38  ;;  %v1773_v22 = vsel %vm527_vm0, %v430_v4, 0.0  ;;  %v3859_v53 = vsel %vm3615_vm2, %v3858_v55, %v3857_v5  ;;  %v436_v5 = vld [vmem:[%s11091_s0 + $0xd28] sm:$0xff] }
 0x44a   :  { %v4347_v27 = vperm.slane %v2430_v0, %v7312_v7  ;;  %4814 = vmatpush.msrb.mxu3 %v2808_v35  ;;  %v11437_v0 = vld [vmem:[#allocation81_spill] sm:$0xff]  ;;  %v3861_v47 = vsel %vm3619_vm3, %v3860_v63, %v3859_v53  ;;  %v1791_v21 = vsel %vm527_vm0, %v436_v5, 0.0 }
 0x44b   :  { %1768 = vadd.xlane.f32.xlu2 %v1767_v20  ;;  %1765 = vadd.xlane.f32.xlu1 %v1764_v51  ;;  %v2180_v20 = vmul.f32 0.0625, %v11437_v0  ;;  %v2804_v51 = vld [vmem:[%s11092_s1 + $0x720] sm:$0xff] }
 0x44c   :  { %1762 = vadd.xlane.f32.xlu0 %v1761_v6  ;;  %v4348_v3 = vsel %vm3663_vm14, %v4347_v27, %v4346_v13  ;;  %4815 = vmatpush.msrb.mxu3 %v2806_v19  ;;  %v4351_v27 = vperm.slane %v2432_v30, %v7124_v44  ;;  %v435_v53 = vld [vmem:[%s11091_s0 + $0xd20] sm:$0xff] }
 0x44d   :  { %v4350_v41 = vsel %vm3667_vm15, %v4349_v37, %v4348_v3  ;;  %v2181_v37 = vmul.f32 0.0625, %v11438_v25  ;;  %v3862_v17 = vperm.slane %v2180_v20, %v7181_v26  ;;  %v2800_v3 = vld [vmem:[%s11092_s1 + $0x700] sm:$0xff] }
 0x44e   :  { %v1643_v36 = vpop.xlane.xlu2 %1642  ;;  %v1640_v56 = vpop.xlane.xlu1 %1639  ;;  %v8541_v54 = vsel %vm4630_vm12, %v4350_v41, %v3854_v15  ;;  %4816 = vmatpush.msrb.mxu3 %v2804_v51  ;;  %v11439_v15 = vld [vmem:[#allocation85_spill] sm:$0xff]  ;;  %v437_v51 = vld [vmem:[%s11091_s0 + $0xd30] sm:$0xff] }
 0x44f   :  { %11435 = vst [vmem:[#allocation7_spill] sm:$0xff] %v8541_v54  ;;  %4799 = vmatmul.f32.vlgmr.msrb.gmra.mxu2 %v8541_v54  ;;  %v1637_v50 = vpop.xlane.xlu0 %1636  ;;  %v2434_v6 = vmul.f32 0.0625, %v1640_v56  ;;  %v2435_v57 = vmul.f32 0.0625, %v1643_v36  ;;  %v2182_v41 = vmul.f32 0.0625, %v11439_v15  ;;  %v3864_v16 = vperm.slane %v2181_v37, %v7184_v31 }
 0x450   :  { %v2433_v23 = vmul.f32 0.0625, %v1637_v50  ;;  %4817 = vmatpush.msrb.mxu3 %v2802_v18  ;;  %v3863_v1 = vsel %vm3623_vm4, %v3862_v17, %v3861_v47  ;;  %v11440_v50 = vld [vmem:[#allocation84_spill] sm:$0xff]  ;;  %v1788_v15 = vsel %vm527_vm0, %v435_v53, 0.0 }
 0x451   :  { %v4354_v4 = vperm.slane %v2434_v6, %v7148_v32  ;;  %v4356_v28 = vperm.slane %v2435_v57, %v7162_v14  ;;  %v2183_v30 = vmul.f32 0.0625, %v11440_v50  ;;  %v3865_v19 = vsel %vm3627_vm5, %v3864_v16, %v3863_v1  ;;  %v11442_v18 = vld [vmem:[#allocation88_spill] sm:$0xff] }
 0x452   :  { %v4352_v9 = vperm.slane %v2433_v23, %v7131_v24  ;;  %4818 = vmatpush.msrb.mxu3 %v2800_v3  ;;  %v3866_v23 = vperm.slane %v2182_v41, %v7196_v52  ;;  %v2185_v11 = vmul.f32 0.0625, %v11442_v18  ;;  %v11443_v41 = vld [vmem:[#allocation87_spill] sm:$0xff]  ;;  %v2860_v18 = vld [vmem:[%s11092_s1 + $0x8e0] sm:$0xff] }
 0x453   :  { %1777 = vadd.xlane.f32.xlu2 %v1776_v42  ;;  %1774 = vadd.xlane.f32.xlu1 %v1773_v22  ;;  %v2186_v16 = vmul.f32 0.0625, %v11443_v41 }
 0x454   :  { %1771 = vadd.xlane.f32.xlu0 %v1770_v60  ;;  %v4353_v36 = vsel %vm3611_vm1, %v4352_v9, %v4351_v27  ;;  %v11441_v60 = vld [vmem:[#allocation89_spill] sm:$0xff]  ;;  %v3868_v27 = vperm.slane %v2183_v30, %v7212_v49  ;;  %v3867_v9 = vsel %vm3631_vm6, %v3866_v23, %v3865_v19 }
 0x455   :  { %v4355_v42 = vsel %vm3615_vm2, %v4354_v4, %v4353_v36  ;;  %v2184_v0 = vmul.f32 0.0625, %v11441_v60  ;;  %v3872_v36 = vperm.slane %v2185_v11, %v7232_v62  ;;  %v448_v30 = vld [vmem:[%s11091_s0 + $0xd88] sm:$0xff]  ;;  %v3874_v23 = vperm.slane %v2186_v16, %v7250_v2 }
 0x456   :  { %v1652_v33 = vpop.xlane.xlu2 %1651  ;;  %v1649_v13 = vpop.xlane.xlu1 %1648  ;;  %v4357_v25 = vsel %vm3619_vm3, %v4356_v28, %v4355_v42  ;;  %v449_v28 = vld [vmem:[%s11091_s0 + $0xd90] sm:$0xff] }
 0x457   :  { %v1646_v35 = vpop.xlane.xlu0 %1645  ;;  %v2437_v55 = vmul.f32 0.0625, %v1649_v13  ;;  %v2438_v20 = vmul.f32 0.0625, %v1652_v33  ;;  %v3870_v57 = vperm.slane %v2184_v0, %v7222_v39  ;;  %v1794_v13 = vsel %vm527_vm0, %v437_v51, 0.0  ;;  %v11446_v42 = vld [vmem:[#allocation91_spill] sm:$0xff] }
 0x458   :  { %v2436_v56 = vmul.f32 0.0625, %v1646_v35  ;;  %v2862_v51 = vld [vmem:[%s11092_s1 + $0x8f0] sm:$0xff] }
 0x459   :  { %v4360_v63 = vperm.slane %v2437_v55, %v7184_v31  ;;  %v4362_v3 = vperm.slane %v2438_v20, %v7196_v52  ;;  %v447_v20 = vld [vmem:[%s11091_s0 + $0xd80] sm:$0xff]  ;;  %4823 = vmatpush.msra.mxu0 %v2862_v51 }
 0x45a   :  { %v4358_v22 = vperm.slane %v2436_v56, %v7181_v26  ;;  %v3869_v56 = vsel %vm3635_vm7, %v3868_v27, %v3867_v9  ;;  %v1827_v9 = vsel %vm527_vm0, %v448_v30, 0.0 }
 0x45b   :  { %1786 = vadd.xlane.f32.xlu2 %v1785_v43  ;;  %1783 = vadd.xlane.f32.xlu1 %v1782_v46  ;;  %v11444_v43 = vld [vmem:[#allocation92_spill] sm:$0xff] }
 0x45c   :  { %1780 = vadd.xlane.f32.xlu0 %v1779_v12  ;;  %v4359_v40 = vsel %vm3623_vm4, %v4358_v22, %v4357_v25  ;;  %v2187_v46 = vmul.f32 0.0625, %v11444_v43  ;;  %v3871_v12 = vsel %vm11445_vm10, %v3870_v57, %v3869_v56  ;;  %v2188_v22 = vmul.f32 0.0625, %v11446_v42  ;;  %4824 = vmatpush.msra.mxu0 %v2860_v18  ;;  %v438_v43 = vld [vmem:[%s11091_s0 + $0xd38] sm:$0xff]  ;;  %v2854_v42 = vld [vmem:[%s11092_s1 + $0x8b0] sm:$0xff] }
 0x45d   :  { %v4361_v4 = vsel %vm3627_vm5, %v4360_v63, %v4359_v40  ;;  %v3873_v5 = vsel %vm11447_vm9, %v3872_v36, %v3871_v12  ;;  %v1824_v40 = vsel %vm527_vm0, %v447_v20, 0.0  ;;  %vm11450_vm10 = vcmask 720512   ;;  %v2856_v36 = vld [vmem:[%s11092_s1 + $0x8c0] sm:$0xff] }
 0x45e   :  { %v1661_v37 = vpop.xlane.xlu2 %1660  ;;  %v1658_v6 = vpop.xlane.xlu1 %1657  ;;  %v4363_v50 = vsel %vm3631_vm6, %v4362_v3, %v4361_v4  ;;  %v3876_v63 = vperm.slane %v2187_v46, %v7264_v61  ;;  %v2858_v3 = vld [vmem:[%s11092_s1 + $0x8d0] sm:$0xff]  ;;  %v451_v46 = vld [vmem:[%s11091_s0 + $0xda0] sm:$0xff] }
 0x45f   :  { %v1655_v17 = vpop.xlane.xlu0 %1654  ;;  %v2440_v47 = vmul.f32 0.0625, %v1658_v6  ;;  %v2441_v1 = vmul.f32 0.0625, %v1661_v37  ;;  %v1830_v37 = vsel %vm527_vm0, %v449_v28, 0.0  ;;  %4825 = vmatpush.msra.mxu0 %v2858_v3  ;;  %v11454_v28 = vld [vmem:[#allocation94_spill] sm:$0xff] }
 0x460   :  { %v2439_v33 = vmul.f32 0.0625, %v1655_v17  ;;  %v11449_v17 = vld [vmem:[#allocation90_spill] sm:$0xff] }
 0x461   :  { %v4366_v55 = vperm.slane %v2440_v47, %v7222_v39  ;;  %v4368_v6 = vperm.slane %v2441_v1, %v7232_v62  ;;  %v2189_v57 = vmul.f32 0.0625, %v11449_v17  ;;  %4826 = vmatpush.msra.mxu0 %v2856_v36  ;;  %v453_v3 = vld [vmem:[%s11091_s0 + $0xdb0] sm:$0xff] }
 0x462   :  { %v4364_v35 = vperm.slane %v2439_v33, %v7212_v49  ;;  %v3878_v33 = vperm.slane %v2188_v22, %v7274_v29  ;;  %v2846_v36 = vld [vmem:[%s11092_s1 + $0x870] sm:$0xff] }
 0x463   :  { %1795 = vadd.xlane.f32.xlu2 %v1794_v13  ;;  %1792 = vadd.xlane.f32.xlu1 %v1791_v21  ;;  %v3875_v13 = vsel %vm11450_vm10, %v3874_v23, %v3873_v5  ;;  %v3880_v12 = vperm.slane %v2189_v57, %v7293_v58  ;;  %v450_v23 = vld [vmem:[%s11091_s0 + $0xd98] sm:$0xff] }
 0x464   :  { %1789 = vadd.xlane.f32.xlu0 %v1788_v15  ;;  %v4365_v19 = vsel %vm3635_vm7, %v4364_v35, %v4363_v50  ;;  %v3877_v47 = vsel %vm3651_vm11, %v3876_v63, %v3875_v13  ;;  %v11451_v15 = vld [vmem:[#allocation95_spill] sm:$0xff]  ;;  %v1797_v63 = vsel %vm527_vm0, %v438_v43, 0.0  ;;  %4827 = vmatpush.msra.mxu0 %v2854_v42  ;;  %v2848_v13 = vld [vmem:[%s11092_s1 + $0x880] sm:$0xff] }
 0x465   :  { %v4367_v11 = vsel %vm11448_vm8, %v4366_v55, %v4365_v19  ;;  %v2190_v41 = vmul.f32 0.0625, %v11451_v15  ;;  %vm11452_vm8 = vmmov %vm11450_vm10  ;;  %vm11453_vm10 = vcmask 851712   ;;  %v2191_v55 = vmul.f32 0.0625, %v11454_v28  ;;  %v2842_v42 = vld [vmem:[%s11092_s1 + $0x850] sm:$0xff] }
 0x466   :  { %v1670_v60 = vpop.xlane.xlu2 %1669  ;;  %v1667_v0 = vpop.xlane.xlu1 %1666  ;;  %v4369_v35 = vsel %vm11447_vm9, %v4368_v6, %v4367_v11  ;;  %v3879_v1 = vsel %vm11453_vm10, %v3878_v33, %v3877_v47  ;;  %vm11455_vm9 = vmmov %vm11453_vm10  ;;  %v439_v47 = vld [vmem:[%s11091_s0 + $0xd40] sm:$0xff] }
 0x467   :  { %v1664_v25 = vpop.xlane.xlu0 %1663  ;;  %v2443_v53 = vmul.f32 0.0625, %v1667_v0  ;;  %v2444_v16 = vmul.f32 0.0625, %v1670_v60  ;;  %v3882_v22 = vperm.slane %v2190_v41, %v7312_v7  ;;  %v3881_v11 = vsel %vm3659_vm13, %v3880_v12, %v3879_v1 }
 0x468   :  { %v2442_v27 = vmul.f32 0.0625, %v1664_v25  ;;  %v1836_v25 = vsel %vm527_vm0, %v451_v46, 0.0  ;;  %v11457_v46 = vld [vmem:[#allocation98_spill] sm:$0xff] }
 0x469   :  { %v4372_v4 = vperm.slane %v2443_v53, %v7264_v61  ;;  %v4374_v19 = vperm.slane %v2444_v16, %v7274_v29  ;;  %v1833_v53 = vsel %vm527_vm0, %v450_v23, 0.0  ;;  %v3883_v57 = vsel %vm3663_vm14, %v3882_v22, %v3881_v11 }
 0x46a   :  { %v4370_v21 = vperm.slane %v2442_v27, %v7250_v2  ;;  %v3884_v27 = vperm.slane %v2191_v55, %v7316_v38  ;;  %v2193_v12 = vmul.f32 0.0625, %v11457_v46  ;;  %v1842_v55 = vsel %vm527_vm0, %v453_v3, 0.0 }
 0x46b   :  { %1831 = vadd.xlane.f32.xlu2 %v1830_v37  ;;  %1828 = vadd.xlane.f32.xlu1 %v1827_v9  ;;  %v2852_v37 = vld [vmem:[%s11092_s1 + $0x8a0] sm:$0xff] }
 0x46c   :  { %1825 = vadd.xlane.f32.xlu0 %v1824_v40  ;;  %v4371_v56 = vsel %vm11452_vm8, %v4370_v21, %v4369_v35  ;;  %4828 = vmatpush.msra.mxu0 %v2852_v37  ;;  %v2850_v40 = vld [vmem:[%s11092_s1 + $0x890] sm:$0xff]  ;;  %v3885_v16 = vsel %vm3667_vm15, %v3884_v27, %v3883_v57  ;;  %v452_v35 = vld [vmem:[%s11091_s0 + $0xda8] sm:$0xff]  ;;  %v11460_v37 = vld [vmem:[#allocation96_spill] sm:$0xff]  ;;  %vm11469_vm8 = vcmask 589312  }
 0x46d   :  { %v4373_v51 = vsel %vm3651_vm11, %v4372_v4, %v4371_v56  ;;  %v11456_v56 = vld [vmem:[#allocation93_spill] sm:$0xff]  ;;  %v1839_v23 = vsel %vm527_vm0, %v452_v35, 0.0  ;;  %vm11471_vm10 = vmmov %vm11469_vm8 }
 0x46e   :  { %v1679_v50 = vpop.xlane.xlu2 %1678  ;;  %v1676_v30 = vpop.xlane.xlu1 %1675  ;;  %v4375_v17 = vsel %vm11455_vm9, %v4374_v19, %v4373_v51  ;;  %4829 = vmatpush.msra.mxu0 %v2850_v40  ;;  %v2192_v43 = vmul.f32 0.0625, %v11456_v56  ;;  %v11459_v19 = vld [vmem:[#allocation97_spill] sm:$0xff]  ;;  %vm11472_vm9 = vcmask 654912  }
 0x46f   :  { %v2447_v60 = vmul.f32 0.0625, %v1679_v50  ;;  %v2446_v0 = vmul.f32 0.0625, %v1676_v30  ;;  %v1673_v20 = vpop.xlane.xlu0 %1672  ;;  %v1800_v50 = vsel %vm527_vm0, %v439_v47, 0.0  ;;  %v2844_v30 = vld [vmem:[%s11092_s1 + $0x860] sm:$0xff] }
 0x470   :  { %v2445_v5 = vmul.f32 0.0625, %v1673_v20  ;;  %4830 = vmatpush.msra.mxu0 %v2848_v13  ;;  %v3886_v22 = vperm.slane %v2192_v43, %v7124_v44  ;;  %v11462_v43 = vld [vmem:[#allocation100_spill] sm:$0xff] }
 0x471   :  { %v4378_v6 = vperm.slane %v2446_v0, %v7312_v7  ;;  %v4380_v9 = vperm.slane %v2447_v60, %v7316_v38  ;;  %v2194_v60 = vmul.f32 0.0625, %v11459_v19  ;;  %v3887_v0 = vperm.slane %v2193_v12, %v7131_v24  ;;  %v11463_v19 = vld [vmem:[#allocation99_spill] sm:$0xff] }
 0x472   :  { %v4376_v18 = vperm.slane %v2445_v5, %v7293_v58  ;;  %4831 = vmatpush.msra.mxu0 %v2846_v36  ;;  %v495_v5 = vld [vmem:[%s11091_s0 + $0xf00] sm:$0xff]  ;;  %v2834_v36 = vld [vmem:[%s11092_s1 + $0x810] sm:$0xff]  ;;  %v2197_v46 = vmul.f32 0.0625, %v11462_v43  ;;  %v442_v43 = vld [vmem:[%s11091_s0 + $0xd58] sm:$0xff] }
 0x473   :  { %1798 = vadd.xlane.f32.xlu2 %v1797_v63  ;;  %1837 = vadd.xlane.f32.xlu1 %v1836_v25  ;;  %v2840_v63 = vld [vmem:[%s11092_s1 + $0x840] sm:$0xff]  ;;  %v454_v25 = vld [vmem:[%s11091_s0 + $0xdb8] sm:$0xff]  ;;  %v3889_v11 = vperm.slane %v2194_v60, %v7148_v32  ;;  %v3888_v40 = vsel %vm3611_vm1, %v3887_v0, %v3886_v22  ;;  %v441_v22 = vld [vmem:[%s11091_s0 + $0xd50] sm:$0xff]  ;;  %v2198_v60 = vmul.f32 0.0625, %v11463_v19 }
 0x474   :  { %v4377_v33 = vsel %vm3659_vm13, %v4376_v18, %v4375_v17  ;;  %1834 = vadd.xlane.f32.xlu0 %v1833_v53  ;;  %4832 = vmatpush.msra.mxu0 %v2844_v30  ;;  %v2838_v18 = vld [vmem:[%s11092_s1 + $0x830] sm:$0xff]  ;;  %v1845_v47 = vsel %vm527_vm0, %v454_v25, 0.0  ;;  %v2832_v30 = vld [vmem:[%s11092_s1 + $0x800] sm:$0xff]  ;;  %v3895_v25 = vperm.slane %v2197_v46, %v7184_v31 }
 0x475   :  { %v4379_v21 = vsel %vm3663_vm14, %v4378_v6, %v4377_v33  ;;  %v2195_v6 = vmul.f32 0.0625, %v11460_v37  ;;  %v1968_v33 = vsel %vm527_vm0, %v495_v5, 0.0  ;;  %v3890_v56 = vsel %vm3615_vm2, %v3889_v11, %v3888_v40  ;;  %v11464_v37 = vld [vmem:[#allocation104_spill] sm:$0xff]  ;;  %v11466_v46 = vld [vmem:[#allocation102_spill] sm:$0xff]  ;;  %v11467_v19 = vld [vmem:[#allocation107_spill] sm:$0xff] }
 0x476   :  { %v1688_v15 = vpop.xlane.xlu2 %1687  ;;  %v1685_v41 = vpop.xlane.xlu1 %1684  ;;  %v4381_v4 = vsel %vm3667_vm15, %v4380_v9, %v4379_v21  ;;  %4833 = vmatpush.msra.mxu0 %v2842_v42  ;;  %v440_v9 = vld [vmem:[%s11091_s0 + $0xd48] sm:$0xff]  ;;  %v455_v42 = vld [vmem:[%s11091_s0 + $0xdc0] sm:$0xff] }
 0x477   :  { %v1682_v1 = vpop.xlane.xlu0 %1681  ;;  %v8724_v28 = vsel %vm4630_vm12, %v4381_v4, %v3885_v16  ;;  %v2449_v20 = vmul.f32 0.0625, %v1685_v41  ;;  %v2450_v17 = vmul.f32 0.0625, %v1688_v15  ;;  %v2836_v41 = vld [vmem:[%s11092_s1 + $0x820] sm:$0xff]  ;;  %v1803_v35 = vsel %vm527_vm0, %v440_v9, 0.0 }
 0x478   :  { %11458 = vst [vmem:[#allocation6_spill] sm:$0xff] %v8724_v28  ;;  %4819 = vmatmul.f32.vlgmr.msrb.gmra.mxu3 %v8724_v28  ;;  %v2448_v51 = vmul.f32 0.0625, %v1682_v1  ;;  %4834 = vmatpush.msra.mxu0 %v2840_v63  ;;  %v11461_v16 = vld [vmem:[#allocation101_spill] sm:$0xff]  ;;  %v3891_v15 = vperm.slane %v2195_v6, %v7162_v14  ;;  %v2199_v6 = vmul.f32 0.0625, %v11464_v37  ;;  %v1809_v37 = vsel %vm527_vm0, %v442_v43, 0.0  ;;  %v11585_v28 = vld [vmem:[#allocation207_spill] sm:$0xff] }
 0x479   :  { %v4383_v13 = vperm.slane %v2449_v20, %v7131_v24  ;;  %v2196_v4 = vmul.f32 0.0625, %v11461_v16  ;;  %v4385_v12 = vperm.slane %v2450_v17, %v7148_v32  ;;  %v496_v63 = vld [vmem:[%s11091_s0 + $0xf08] sm:$0xff]  ;;  %v1806_v17 = vsel %vm527_vm0, %v441_v22, 0.0 }
 0x47a   :  { %v4382_v21 = vperm.slane %v2448_v51, %v7124_v44  ;;  %4835 = vmatpush.msra.mxu0 %v2838_v18  ;;  %v3892_v0 = vsel %vm3619_vm3, %v3891_v15, %v3890_v56  ;;  %v3899_v15 = vperm.slane %v2199_v6, %v7212_v49  ;;  %v456_v56 = vld [vmem:[%s11091_s0 + $0xdc8] sm:$0xff]  ;;  %v10081_v45 = vmul.f32 0.0625, %v11585_v28 }
 0x47b   :  { %1843 = vadd.xlane.f32.xlu2 %v1842_v55  ;;  %1801 = vadd.xlane.f32.xlu1 %v1800_v50 }
 0x47c   :  { %1840 = vadd.xlane.f32.xlu0 %v1839_v23  ;;  %4836 = vmatpush.msra.mxu0 %v2836_v41  ;;  %v4384_v55 = vsel %vm3611_vm1, %v4383_v13, %v4382_v21  ;;  %v3893_v23 = vperm.slane %v2196_v4, %v7181_v26 }
 0x47d   :  { %v4386_v9 = vsel %vm3615_vm2, %v4385_v12, %v4384_v55  ;;  %v2201_v12 = vmul.f32 0.0625, %v11466_v46  ;;  %v11473_v46 = vld [vmem:[#allocation110_spill] sm:$0xff] }
 0x47e   :  { %v1697_v53 = vpop.xlane.xlu2 %1696  ;;  %v1694_v27 = vpop.xlane.xlu1 %1693  ;;  %4837 = vmatpush.msra.mxu0 %v2834_v36 }
 0x47f   :  { %v1691_v57 = vpop.xlane.xlu0 %1690  ;;  %v2452_v1 = vmul.f32 0.0625, %v1694_v27  ;;  %v2453_v20 = vmul.f32 0.0625, %v1697_v53  ;;  %v1848_v53 = vsel %vm527_vm0, %v455_v42, 0.0 }
 0x480   :  { %v2451_v3 = vmul.f32 0.0625, %v1691_v57  ;;  %4838 = vmatpush.msra.mxu0 %v2832_v30  ;;  %v3894_v57 = vsel %vm3623_vm4, %v3893_v23, %v3892_v0  ;;  %v497_v23 = vld [vmem:[%s11091_s0 + $0xf10] sm:$0xff] }
 0x481   :  { %v4389_v27 = vperm.slane %v2452_v1, %v7181_v26  ;;  %v4391_v13 = vperm.slane %v2453_v20, %v7184_v31 }
 0x482   :  { %v4387_v50 = vperm.slane %v2451_v3, %v7162_v14  ;;  %v3897_v3 = vperm.slane %v2198_v60, %v7196_v52  ;;  %v2202_v60 = vmul.f32 0.0625, %v11467_v19  ;;  %v2886_v19 = vld [vmem:[%s11092_s1 + $0x9b0] sm:$0xff] }
 0x483   :  { %1969 = vadd.xlane.f32.xlu2 %v1968_v33  ;;  %1846 = vadd.xlane.f32.xlu1 %v1845_v47  ;;  %v1971_v33 = vsel %vm527_vm0, %v496_v63, 0.0  ;;  %v11465_v47 = vld [vmem:[#allocation103_spill] sm:$0xff] }
 0x484   :  { %1804 = vadd.xlane.f32.xlu0 %v1803_v35  ;;  %v4388_v11 = vsel %vm3619_vm3, %v4387_v50, %v4386_v9  ;;  %v2200_v41 = vmul.f32 0.0625, %v11465_v47  ;;  %v3896_v35 = vsel %vm3627_vm5, %v3895_v25, %v3894_v57  ;;  %v1851_v25 = vsel %vm527_vm0, %v456_v56, 0.0  ;;  %v498_v47 = vld [vmem:[%s11091_s0 + $0xf18] sm:$0xff] }
 0x485   :  { %v4390_v16 = vsel %vm3623_vm4, %v4389_v27, %v4388_v11  ;;  %v3898_v22 = vsel %vm3631_vm6, %v3897_v3, %v3896_v35  ;;  %v1974_v9 = vsel %vm527_vm0, %v497_v23, 0.0  ;;  %v3903_v11 = vperm.slane %v2201_v12, %v7232_v62 }
 0x486   :  { %v1706_v51 = vpop.xlane.xlu2 %1705  ;;  %v1703_v5 = vpop.xlane.xlu1 %1702  ;;  %v4392_v55 = vsel %vm3627_vm5, %v4391_v13, %v4390_v16  ;;  %v3901_v42 = vperm.slane %v2200_v41, %v7222_v39  ;;  %v3905_v13 = vperm.slane %v2202_v60, %v7250_v2  ;;  %v11470_v41 = vld [vmem:[#allocation105_spill] sm:$0xff]  ;;  %v2205_v12 = vmul.f32 0.0625, %v11473_v46 }
 0x487   :  { %v1700_v18 = vpop.xlane.xlu0 %1699  ;;  %v2455_v21 = vmul.f32 0.0625, %v1703_v5  ;;  %v2456_v36 = vmul.f32 0.0625, %v1706_v51  ;;  %v2894_v51 = vld [vmem:[%s11092_s1 + $0x9f0] sm:$0xff]  ;;  %v3900_v5 = vsel %vm3635_vm7, %v3899_v15, %v3898_v22  ;;  %v2204_v16 = vmul.f32 0.0625, %v11470_v41  ;;  %v464_v15 = vld [vmem:[%s11091_s0 + $0xe08] sm:$0xff]  ;;  %v443_v41 = vld [vmem:[%s11091_s0 + $0xd60] sm:$0xff] }
 0x488   :  { %v2454_v40 = vmul.f32 0.0625, %v1700_v18  ;;  %4843 = vmatpush.msra.mxu1 %v2894_v51  ;;  %v2892_v18 = vld [vmem:[%s11092_s1 + $0x9e0] sm:$0xff]  ;;  %v1977_v22 = vsel %vm527_vm0, %v498_v47, 0.0  ;;  %v1875_v51 = vsel %vm527_vm0, %v464_v15, 0.0 }
 0x489   :  { %v4395_v1 = vperm.slane %v2455_v21, %v7212_v49  ;;  %v4397_v6 = vperm.slane %v2456_v36, %v7222_v39  ;;  %v2890_v21 = vld [vmem:[%s11092_s1 + $0x9d0] sm:$0xff]  ;;  %v2888_v36 = vld [vmem:[%s11092_s1 + $0x9c0] sm:$0xff] }
 0x48a   :  { %v4393_v4 = vperm.slane %v2454_v40, %v7196_v52  ;;  %v11468_v40 = vld [vmem:[#allocation106_spill] sm:$0xff]  ;;  %4844 = vmatpush.msra.mxu1 %v2892_v18  ;;  %v3911_v18 = vperm.slane %v2205_v12, %v7293_v58 }
 0x48b   :  { %1849 = vadd.xlane.f32.xlu2 %v1848_v53  ;;  %1807 = vadd.xlane.f32.xlu1 %v1806_v17  ;;  %v2203_v53 = vmul.f32 0.0625, %v11468_v40  ;;  %v11478_v40 = vld [vmem:[#allocation108_spill] sm:$0xff] }
 0x48c   :  { %1972 = vadd.xlane.f32.xlu0 %v1971_v33  ;;  %v4394_v0 = vsel %vm3631_vm6, %v4393_v4, %v4392_v55  ;;  %v3902_v33 = vsel %vm11469_vm8, %v3901_v42, %v3900_v5  ;;  %4845 = vmatpush.msra.mxu1 %v2890_v21  ;;  %vm11474_vm8 = vmmov %vm11472_vm9  ;;  %v3909_v5 = vperm.slane %v2204_v16, %v7274_v29  ;;  %v512_v16 = vld [vmem:[%s11091_s0 + $0xf88] sm:$0xff] }
 0x48d   :  { %v4396_v17 = vsel %vm3635_vm7, %v4395_v1, %v4394_v0  ;;  %v3907_v56 = vperm.slane %v2203_v53, %v7264_v61  ;;  %v3904_v43 = vsel %vm11472_vm9, %v3903_v11, %v3902_v33  ;;  %v2207_v53 = vmul.f32 0.0625, %v11478_v40  ;;  %v11484_v40 = vld [vmem:[#allocation111_spill] sm:$0xff] }
 0x48e   :  { %v1715_v50 = vpop.xlane.xlu2 %1714  ;;  %v1712_v30 = vpop.xlane.xlu1 %1711  ;;  %v4398_v35 = vsel %vm11471_vm10, %v4397_v6, %v4396_v17  ;;  %4846 = vmatpush.msra.mxu1 %v2888_v36  ;;  %vm11475_vm10 = vcmask 720512  }
 0x48f   :  { %v1709_v20 = vpop.xlane.xlu0 %1708  ;;  %v2458_v27 = vmul.f32 0.0625, %v1712_v30  ;;  %v2459_v3 = vmul.f32 0.0625, %v1715_v50  ;;  %v463_v30 = vld [vmem:[%s11091_s0 + $0xe00] sm:$0xff]  ;;  %v3906_v23 = vsel %vm11475_vm10, %v3905_v13, %v3904_v43  ;;  %vm11477_vm9 = vmmov %vm11475_vm10  ;;  %v3915_v43 = vperm.slane %v2207_v53, %v7316_v38 }
 0x490   :  { %v2457_v63 = vmul.f32 0.0625, %v1709_v20  ;;  %4847 = vmatpush.msra.mxu1 %v2886_v19  ;;  %v1872_v6 = vsel %vm527_vm0, %v463_v30, 0.0  ;;  %v1812_v30 = vsel %vm527_vm0, %v443_v41, 0.0  ;;  %v2876_v19 = vld [vmem:[%s11092_s1 + $0x960] sm:$0xff]  ;;  %v2210_v53 = vmul.f32 0.0625, %v11484_v40  ;;  %v11488_v40 = vld [vmem:[#allocation119_spill] sm:$0xff] }
 0x491   :  { %v4401_v4 = vperm.slane %v2458_v27, %v7250_v2  ;;  %v4403_v60 = vperm.slane %v2459_v3, %v7264_v61  ;;  %v2884_v27 = vld [vmem:[%s11092_s1 + $0x9a0] sm:$0xff] }
 0x492   :  { %v4399_v57 = vperm.slane %v2457_v63, %v7232_v62  ;;  %v11476_v63 = vld [vmem:[#allocation109_spill] sm:$0xff]  ;;  %4848 = vmatpush.msra.mxu1 %v2884_v27 }
 0x493   :  { %1852 = vadd.xlane.f32.xlu2 %v1851_v25  ;;  %1810 = vadd.xlane.f32.xlu1 %v1809_v37  ;;  %v2206_v25 = vmul.f32 0.0625, %v11476_v63 }
 0x494   :  { %1975 = vadd.xlane.f32.xlu0 %v1974_v9  ;;  %v4400_v1 = vsel %vm11474_vm8, %v4399_v57, %v4398_v35  ;;  %v3908_v9 = vsel %vm3651_vm11, %v3907_v56, %v3906_v23  ;;  %v2882_v57 = vld [vmem:[%s11092_s1 + $0x990] sm:$0xff]  ;;  %vm11479_vm8 = vcmask 851712   ;;  %v511_v56 = vld [vmem:[%s11091_s0 + $0xf80] sm:$0xff]  ;;  %v2019_v23 = vsel %vm527_vm0, %v512_v16, 0.0 }
 0x495   :  { %v4402_v37 = vsel %vm11477_vm9, %v4401_v4, %v4400_v1  ;;  %4849 = vmatpush.msra.mxu1 %v2882_v57  ;;  %v3913_v21 = vperm.slane %v2206_v25, %v7312_v7  ;;  %v3910_v3 = vsel %vm11479_vm8, %v3909_v5, %v3908_v9  ;;  %vm11480_vm10 = vmmov %vm11479_vm8  ;;  %v2880_v4 = vld [vmem:[%s11092_s1 + $0x980] sm:$0xff]  ;;  %v2878_v1 = vld [vmem:[%s11092_s1 + $0x970] sm:$0xff]  ;;  %vm11494_vm9 = vcmask 589312  }
 0x496   :  { %v1724_v55 = vpop.xlane.xlu2 %1723  ;;  %v1721_v50 = vpop.xlane.xlu1 %1720  ;;  %v4404_v13 = vsel %vm3651_vm11, %v4403_v60, %v4402_v37  ;;  %v3912_v35 = vsel %vm3659_vm13, %v3911_v18, %v3910_v3  ;;  %v11481_v60 = vld [vmem:[#allocation112_spill] sm:$0xff]  ;;  %v2874_v25 = vld [vmem:[%s11092_s1 + $0x950] sm:$0xff]  ;;  %vm11496_vm8 = vmmov %vm11494_vm9 }
 0x497   :  { %v1718_v42 = vpop.xlane.xlu0 %1717  ;;  %v2461_v0 = vmul.f32 0.0625, %v1721_v50  ;;  %v2462_v17 = vmul.f32 0.0625, %v1724_v55  ;;  %4850 = vmatpush.msra.mxu1 %v2880_v4  ;;  %v499_v9 = vld [vmem:[%s11091_s0 + $0xf20] sm:$0xff]  ;;  %v465_v18 = vld [vmem:[%s11091_s0 + $0xe10] sm:$0xff] }
 0x498   :  { %v2460_v20 = vmul.f32 0.0625, %v1718_v42  ;;  %v2016_v42 = vsel %vm527_vm0, %v511_v56, 0.0  ;;  %v2870_v16 = vld [vmem:[%s11092_s1 + $0x930] sm:$0xff]  ;;  %v1878_v56 = vsel %vm527_vm0, %v465_v18, 0.0 }
 0x499   :  { %v4407_v33 = vperm.slane %v2461_v0, %v7293_v58  ;;  %v4409_v46 = vperm.slane %v2462_v17, %v7312_v7  ;;  %4851 = vmatpush.msra.mxu1 %v2878_v1  ;;  %v2209_v0 = vmul.f32 0.0625, %v11481_v60  ;;  %v2864_v60 = vld [vmem:[%s11092_s1 + $0x900] sm:$0xff]  ;;  %v513_v18 = vld [vmem:[%s11091_s0 + $0xf90] sm:$0xff] }
 0x49a   :  { %v4405_v11 = vperm.slane %v2460_v20, %v7274_v29  ;;  %v11482_v20 = vld [vmem:[#allocation113_spill] sm:$0xff] }
 0x49b   :  { %1978 = vadd.xlane.f32.xlu2 %v1977_v22  ;;  %1876 = vadd.xlane.f32.xlu1 %v1875_v51  ;;  %v3914_v22 = vsel %vm3663_vm14, %v3913_v21, %v3912_v35  ;;  %v2208_v51 = vmul.f32 0.0625, %v11482_v20  ;;  %v3918_v17 = vperm.slane %v2209_v0, %v7131_v24  ;;  %v457_v21 = vld [vmem:[%s11091_s0 + $0xdd0] sm:$0xff]  ;;  %v1980_v35 = vsel %vm527_vm0, %v499_v9, 0.0  ;;  %v458_v20 = vld [vmem:[%s11091_s0 + $0xdd8] sm:$0xff] }
 0x49c   :  { %1873 = vadd.xlane.f32.xlu0 %v1872_v6  ;;  %v4406_v47 = vsel %vm11480_vm10, %v4405_v11, %v4404_v13  ;;  %4852 = vmatpush.msra.mxu1 %v2876_v19  ;;  %v3916_v37 = vsel %vm3667_vm15, %v3915_v43, %v3914_v22  ;;  %v2872_v11 = vld [vmem:[%s11092_s1 + $0x940] sm:$0xff]  ;;  %v2866_v22 = vld [vmem:[%s11092_s1 + $0x910] sm:$0xff]  ;;  %vm11497_vm10 = vcmask 654912  }
 0x49d   :  { %v4408_v55 = vsel %vm3659_vm13, %v4407_v33, %v4406_v47  ;;  %v3917_v57 = vperm.slane %v2208_v51, %v7124_v44  ;;  %v11485_v43 = vld [vmem:[#allocation116_spill] sm:$0xff]  ;;  %v444_v51 = vld [vmem:[%s11091_s0 + $0xd68] sm:$0xff] }
 0x49e   :  { %v1733_v15 = vpop.xlane.xlu2 %1732  ;;  %v1730_v36 = vpop.xlane.xlu1 %1729  ;;  %v4410_v63 = vsel %vm3663_vm14, %v4409_v46, %v4408_v55  ;;  %4853 = vmatpush.msra.mxu1 %v2874_v25  ;;  %v2211_v46 = vmul.f32 0.0625, %v11485_v43  ;;  %v11486_v55 = vld [vmem:[#allocation115_spill] sm:$0xff]  ;;  %v11489_v43 = vld [vmem:[#allocation118_spill] sm:$0xff] }
 0x49f   :  { %v1727_v12 = vpop.xlane.xlu0 %1726  ;;  %v2465_v3 = vmul.f32 0.0625, %v1733_v15  ;;  %v2464_v47 = vmul.f32 0.0625, %v1730_v36  ;;  %v2868_v15 = vld [vmem:[%s11092_s1 + $0x920] sm:$0xff]  ;;  %v3920_v36 = vperm.slane %v2210_v53, %v7148_v32  ;;  %v3919_v1 = vsel %vm3611_vm1, %v3918_v17, %v3917_v57 }
 0x4a0   :  { %v2463_v50 = vmul.f32 0.0625, %v1727_v12  ;;  %4854 = vmatpush.msra.mxu1 %v2872_v11  ;;  %v1854_v12 = vsel %vm527_vm0, %v457_v21, 0.0  ;;  %v3922_v0 = vperm.slane %v2211_v46, %v7162_v14  ;;  %v2214_v53 = vmul.f32 0.0625, %v11488_v40 }
 0x4a1   :  { %v3921_v25 = vsel %vm3615_vm2, %v3920_v36, %v3919_v1  ;;  %v2215_v46 = vmul.f32 0.0625, %v11489_v43 }
 0x4a2   :  { %v4411_v5 = vperm.slane %v2463_v50, %v7316_v38  ;;  %4855 = vmatpush.msra.mxu1 %v2870_v16  ;;  %v2212_v50 = vmul.f32 0.0625, %v11486_v55  ;;  %v2022_v16 = vsel %vm527_vm0, %v513_v18, 0.0  ;;  %v3928_v1 = vperm.slane %v2214_v53, %v7196_v52 }
 0x4a3   :  { %1813 = vadd.xlane.f32.xlu2 %v1812_v30  ;;  %2020 = vadd.xlane.f32.xlu1 %v2019_v23  ;;  %v4414_v30 = vperm.slane %v2465_v3, %v7131_v24  ;;  %v4413_v23 = vperm.slane %v2464_v47, %v7124_v44  ;;  %v1815_v47 = vsel %vm527_vm0, %v444_v51, 0.0  ;;  %v3930_v51 = vperm.slane %v2215_v46, %v7212_v49 }
 0x4a4   :  { %2017 = vadd.xlane.f32.xlu0 %v2016_v42  ;;  %v4412_v6 = vsel %vm3667_vm15, %v4411_v5, %v4410_v63  ;;  %4856 = vmatpush.msra.mxu1 %v2868_v15  ;;  %v11487_v5 = vld [vmem:[#allocation114_spill] sm:$0xff]  ;;  %v3924_v11 = vperm.slane %v2212_v50, %v7181_v26 }
 0x4a5   :  { %v8923_v27 = vsel %vm4630_vm12, %v4412_v6, %v3916_v37  ;;  %v2213_v63 = vmul.f32 0.0625, %v11487_v5  ;;  %v4415_v17 = vsel %vm3611_vm1, %v4414_v30, %v4413_v23  ;;  %v480_v50 = vld [vmem:[%s11091_s0 + $0xe88] sm:$0xff]  ;;  %v479_v30 = vld [vmem:[%s11091_s0 + $0xe80] sm:$0xff] }
 0x4a6   :  { %11483 = vst [vmem:[#allocation11_spill] sm:$0xff] %v8923_v27  ;;  %4839 = vmatmul.f32.vlgmr.msra.gmra.mxu0 %v8923_v27  ;;  %v1742_v33 = vpop.xlane.xlu2 %1741  ;;  %v1739_v13 = vpop.xlane.xlu1 %1738  ;;  %4857 = vmatpush.msra.mxu1 %v2866_v22  ;;  %v11490_v23 = vld [vmem:[#allocation117_spill] sm:$0xff]  ;;  %v1920_v40 = vsel %vm527_vm0, %v479_v30, 0.0 }
 0x4a7   :  { %v1736_v41 = vpop.xlane.xlu0 %1735  ;;  %v2467_v42 = vmul.f32 0.0625, %v1739_v13  ;;  %v2468_v37 = vmul.f32 0.0625, %v1742_v33  ;;  %v1857_v33 = vsel %vm527_vm0, %v458_v20, 0.0  ;;  %v466_v20 = vld [vmem:[%s11091_s0 + $0xe18] sm:$0xff] }
 0x4a8   :  { %v2466_v4 = vmul.f32 0.0625, %v1736_v41  ;;  %4858 = vmatpush.msra.mxu1 %v2864_v60  ;;  %v3923_v41 = vsel %vm3619_vm3, %v3922_v0, %v3921_v25 }
 0x4a9   :  { %v4418_v57 = vperm.slane %v2467_v42, %v7162_v14  ;;  %v3925_v36 = vsel %vm3623_vm4, %v3924_v11, %v3923_v41  ;;  %v2216_v42 = vmul.f32 0.0625, %v11490_v23  ;;  %v1923_v11 = vsel %vm527_vm0, %v480_v50, 0.0 }
 0x4aa   :  { %v4416_v19 = vperm.slane %v2466_v4, %v7148_v32  ;;  %v4420_v4 = vperm.slane %v2468_v37, %v7181_v26 }
 0x4ab   :  { %1981 = vadd.xlane.f32.xlu2 %v1980_v35  ;;  %1879 = vadd.xlane.f32.xlu1 %v1878_v56  ;;  %v3926_v56 = vperm.slane %v2213_v63, %v7184_v31  ;;  %v11491_v63 = vld [vmem:[#allocation122_spill] sm:$0xff] }
 0x4ac   :  { %1855 = vadd.xlane.f32.xlu0 %v1854_v12  ;;  %v4417_v21 = vsel %vm3615_vm2, %v4416_v19, %v4415_v17  ;;  %v2217_v25 = vmul.f32 0.0625, %v11491_v63 }
 0x4ad   :  { %v4419_v12 = vsel %vm3619_vm3, %v4418_v57, %v4417_v21  ;;  %v3927_v5 = vsel %vm3627_vm5, %v3926_v56, %v3925_v36  ;;  %v1881_v57 = vsel %vm527_vm0, %v466_v20, 0.0  ;;  %v11492_v21 = vld [vmem:[#allocation121_spill] sm:$0xff]  ;;  %v11493_v56 = vld [vmem:[#allocation120_spill] sm:$0xff] }
 0x4ae   :  { %v1751_v6 = vpop.xlane.xlu2 %1750  ;;  %v1748_v9 = vpop.xlane.xlu1 %1747  ;;  %v4421_v19 = vsel %vm3623_vm4, %v4420_v4, %v4419_v12  ;;  %v2219_v43 = vmul.f32 0.0625, %v11493_v56  ;;  %v467_v56 = vld [vmem:[%s11091_s0 + $0xe20] sm:$0xff] }
 0x4af   :  { %v1745_v13 = vpop.xlane.xlu0 %1744  ;;  %v2470_v35 = vmul.f32 0.0625, %v1748_v9  ;;  %v2471_v55 = vmul.f32 0.0625, %v1751_v6  ;;  %v3929_v9 = vsel %vm3631_vm6, %v3928_v1, %v3927_v5 }
 0x4b0   :  { %v2469_v3 = vmul.f32 0.0625, %v1745_v13  ;;  %v3932_v13 = vperm.slane %v2216_v42, %v7222_v39  ;;  %v3931_v41 = vsel %vm3635_vm7, %v3930_v51, %v3929_v9 }
 0x4b1   :  { %v4424_v22 = vperm.slane %v2470_v35, %v7196_v52  ;;  %v4426_v53 = vperm.slane %v2471_v55, %v7212_v49  ;;  %v445_v35 = vld [vmem:[%s11091_s0 + $0xd70] sm:$0xff]  ;;  %v11495_v55 = vld [vmem:[#allocation125_spill] sm:$0xff] }
 0x4b2   :  { %v4422_v15 = vperm.slane %v2469_v3, %v7184_v31  ;;  %v2218_v3 = vmul.f32 0.0625, %v11492_v21  ;;  %v3933_v1 = vsel %vm11494_vm9, %v3932_v13, %v3931_v41  ;;  %v2220_v50 = vmul.f32 0.0625, %v11495_v55  ;;  %vm11499_vm9 = vmmov %vm11497_vm10  ;;  %v11503_v41 = vld [vmem:[#allocation128_spill] sm:$0xff] }
 0x4b3   :  { %1858 = vadd.xlane.f32.xlu2 %v1857_v33  ;;  %1816 = vadd.xlane.f32.xlu1 %v1815_v47 }
 0x4b4   :  { %2023 = vadd.xlane.f32.xlu0 %v2022_v16  ;;  %v4423_v37 = vsel %vm3627_vm5, %v4422_v15, %v4421_v19  ;;  %v3934_v16 = vperm.slane %v2217_v25, %v7232_v62  ;;  %v514_v15 = vld [vmem:[%s11091_s0 + $0xf98] sm:$0xff]  ;;  %v3936_v36 = vperm.slane %v2218_v3, %v7250_v2  ;;  %v3938_v25 = vperm.slane %v2219_v43, %v7264_v61 }
 0x4b5   :  { %v4425_v33 = vsel %vm3631_vm6, %v4424_v22, %v4423_v37  ;;  %v500_v22 = vld [vmem:[%s11091_s0 + $0xf28] sm:$0xff]  ;;  %v2025_v63 = vsel %vm527_vm0, %v514_v15, 0.0  ;;  %v11498_v37 = vld [vmem:[#allocation124_spill] sm:$0xff] }
 0x4b6   :  { %v1760_v60 = vpop.xlane.xlu2 %1759  ;;  %v1757_v0 = vpop.xlane.xlu1 %1756  ;;  %v4427_v12 = vsel %vm3635_vm7, %v4426_v53, %v4425_v33  ;;  %v3935_v19 = vsel %vm11497_vm10, %v3934_v16, %v3933_v1  ;;  %v2223_v16 = vmul.f32 0.0625, %v11503_v41  ;;  %v459_v15 = vld [vmem:[%s11091_s0 + $0xde0] sm:$0xff] }
 0x4b7   :  { %v1754_v6 = vpop.xlane.xlu0 %1753  ;;  %v2473_v17 = vmul.f32 0.0625, %v1757_v0  ;;  %v2474_v4 = vmul.f32 0.0625, %v1760_v60  ;;  %v1818_v0 = vsel %vm527_vm0, %v445_v35, 0.0  ;;  %v481_v35 = vld [vmem:[%s11091_s0 + $0xe90] sm:$0xff] }
 0x4b8   :  { %v2472_v18 = vmul.f32 0.0625, %v1754_v6  ;;  %v2221_v6 = vmul.f32 0.0625, %v11498_v37 }
 0x4b9   :  { %v4430_v46 = vperm.slane %v2473_v17, %v7232_v62  ;;  %v4432_v20 = vperm.slane %v2474_v4, %v7250_v2  ;;  %v11501_v17 = vld [vmem:[#allocation123_spill] sm:$0xff] }
 0x4ba   :  { %v4428_v47 = vperm.slane %v2472_v18, %v7222_v39  ;;  %v1983_v18 = vsel %vm527_vm0, %v500_v22, 0.0  ;;  %v3942_v33 = vperm.slane %v2221_v6, %v7293_v58  ;;  %v1884_v22 = vsel %vm527_vm0, %v467_v56, 0.0 }
 0x4bb   :  { %1924 = vadd.xlane.f32.xlu2 %v1923_v11  ;;  %1921 = vadd.xlane.f32.xlu1 %v1920_v40  ;;  %v3940_v40 = vperm.slane %v2220_v50, %v7274_v29 }
 0x4bc   :  { %1882 = vadd.xlane.f32.xlu0 %v1881_v57  ;;  %v4429_v30 = vsel %vm11496_vm8, %v4428_v47, %v4427_v12  ;;  %vm11500_vm8 = vcmask 720512   ;;  %v2222_v57 = vmul.f32 0.0625, %v11501_v17 }
 0x4bd   :  { %v4431_v9 = vsel %vm11499_vm9, %v4430_v46, %v4429_v30  ;;  %v3937_v11 = vsel %vm11500_vm8, %v3936_v36, %v3935_v19  ;;  %vm11502_vm10 = vmmov %vm11500_vm8  ;;  %vm11504_vm9 = vcmask 851712   ;;  %v3946_v19 = vperm.slane %v2223_v16, %v7316_v38 }
 0x4be   :  { %v1769_v23 = vpop.xlane.xlu2 %1768  ;;  %v1766_v42 = vpop.xlane.xlu1 %1765  ;;  %v4433_v3 = vsel %vm11502_vm10, %v4432_v20, %v4431_v9  ;;  %v3939_v47 = vsel %vm3651_vm11, %v3938_v25, %v3937_v11  ;;  %v3944_v36 = vperm.slane %v2222_v57, %v7312_v7  ;;  %vm11505_vm8 = vmmov %vm11504_vm9  ;;  %v515_v11 = vld [vmem:[%s11091_s0 + $0xfa0] sm:$0xff]  ;;  %v501_v57 = vld [vmem:[%s11091_s0 + $0xf30] sm:$0xff]  ;;  %vm11507_vm10 = vcmask 589312  }
 0x4bf   :  { %v1763_v60 = vpop.xlane.xlu0 %1762  ;;  %v2476_v51 = vmul.f32 0.0625, %v1766_v42  ;;  %v2477_v13 = vmul.f32 0.0625, %v1769_v23  ;;  %v3941_v43 = vsel %vm11504_vm9, %v3940_v40, %v3939_v47  ;;  %v1926_v42 = vsel %vm527_vm0, %v481_v35, 0.0 }
 0x4c0   :  { %v2475_v5 = vmul.f32 0.0625, %v1763_v60  ;;  %v3943_v20 = vsel %vm3659_vm13, %v3942_v33, %v3941_v43  ;;  %v2028_v16 = vsel %vm527_vm0, %v515_v11, 0.0  ;;  %v1986_v35 = vsel %vm527_vm0, %v501_v57, 0.0 }
 0x4c1   :  { %v4436_v21 = vperm.slane %v2476_v51, %v7274_v29  ;;  %v4438_v1 = vperm.slane %v2477_v13, %v7293_v58  ;;  %v3945_v37 = vsel %vm3663_vm14, %v3944_v36, %v3943_v20  ;;  %v468_v36 = vld [vmem:[%s11091_s0 + $0xe28] sm:$0xff]  ;;  %vm11508_vm9 = vcmask 654912  }
 0x4c2   :  { %v4434_v53 = vperm.slane %v2475_v5, %v7264_v61  ;;  %v3947_v6 = vsel %vm3667_vm15, %v3946_v19, %v3945_v37 }
 0x4c3   :  { %1819 = vadd.xlane.f32.xlu2 %v1818_v0  ;;  %2026 = vadd.xlane.f32.xlu1 %v2025_v63  ;;  %v1860_v0 = vsel %vm527_vm0, %v459_v15, 0.0  ;;  %v482_v15 = vld [vmem:[%s11091_s0 + $0xe98] sm:$0xff] }
 0x4c4   :  { %1984 = vadd.xlane.f32.xlu0 %v1983_v18  ;;  %v4435_v4 = vsel %vm3651_vm11, %v4434_v53, %v4433_v3  ;;  %v446_v18 = vld [vmem:[%s11091_s0 + $0xd78] sm:$0xff] }
 0x4c5   :  { %v4437_v30 = vsel %vm11505_vm8, %v4436_v21, %v4435_v4  ;;  %v1821_v41 = vsel %vm527_vm0, %v446_v18, 0.0  ;;  %vm11509_vm8 = vmmov %vm11507_vm10 }
 0x4c6   :  { %v1778_v46 = vpop.xlane.xlu2 %1777  ;;  %v1775_v12 = vpop.xlane.xlu1 %1774  ;;  %v4439_v5 = vsel %vm3659_vm13, %v4438_v1, %v4437_v30  ;;  %v460_v30 = vld [vmem:[%s11091_s0 + $0xde8] sm:$0xff] }
 0x4c7   :  { %v2479_v55 = vmul.f32 0.0625, %v1775_v12  ;;  %v1772_v50 = vpop.xlane.xlu0 %1771  ;;  %v2480_v63 = vmul.f32 0.0625, %v1778_v46 }
 0x4c8   :  { %v2478_v23 = vmul.f32 0.0625, %v1772_v50 }
 0x4c9   :  { %v4442_v60 = vperm.slane %v2479_v55, %v7316_v38  ;;  %v4444_v33 = vperm.slane %v2480_v63, %v7124_v44 }
 0x4ca   :  { %v4440_v51 = vperm.slane %v2478_v23, %v7312_v7 }
 0x4cb   :  { %1927 = vadd.xlane.f32.xlu2 %v1926_v42  ;;  %1885 = vadd.xlane.f32.xlu1 %v1884_v22 }
 0x4cc   :  { %v4441_v25 = vsel %vm3663_vm14, %v4440_v51, %v4439_v5  ;;  %1861 = vadd.xlane.f32.xlu0 %v1860_v0  ;;  %v1887_v0 = vsel %vm527_vm0, %v468_v36, 0.0  ;;  %v1863_v51 = vsel %vm527_vm0, %v460_v30, 0.0 }
 0x4cd   :  { %v4443_v9 = vsel %vm3667_vm15, %v4442_v60, %v4441_v25  ;;  %v1929_v60 = vsel %vm527_vm0, %v482_v15, 0.0 }
 0x4ce   :  { %v1787_v40 = vpop.xlane.xlu2 %1786  ;;  %v1784_v53 = vpop.xlane.xlu1 %1783  ;;  %v9084_v17 = vsel %vm4630_vm12, %v4443_v9, %v3947_v6  ;;  %v461_v6 = vld [vmem:[%s11091_s0 + $0xdf0] sm:$0xff]  ;;  %v516_v9 = vld [vmem:[%s11091_s0 + $0xfa8] sm:$0xff] }
 0x4cf   :  { %11506 = vst [vmem:[#allocation10_spill] sm:$0xff] %v9084_v17  ;;  %v2483_v13 = vmul.f32 0.0625, %v1787_v40  ;;  %v2482_v21 = vmul.f32 0.0625, %v1784_v53  ;;  %4859 = vmatmul.f32.vlgmr.msra.gmra.mxu1 %v9084_v17  ;;  %v1781_v3 = vpop.xlane.xlu0 %1780  ;;  %v502_v40 = vld [vmem:[%s11091_s0 + $0xf38] sm:$0xff] }
 0x4d0   :  { %v2481_v47 = vmul.f32 0.0625, %v1781_v3  ;;  %v2695_v17 = vld [vmem:[%s11092_s1 + $0x3b8] sm:$0xff] }
 0x4d1   :  { %v4447_v4 = vperm.slane %v2482_v21, %v7148_v32  ;;  %v4449_v56 = vperm.slane %v2483_v13, %v7162_v14 }
 0x4d2   :  { %v4445_v43 = vperm.slane %v2481_v47, %v7131_v24  ;;  %v2031_v47 = vsel %vm527_vm0, %v516_v9, 0.0 }
 0x4d3   :  { %1822 = vadd.xlane.f32.xlu2 %v1821_v41  ;;  %2029 = vadd.xlane.f32.xlu1 %v2028_v16 }
 0x4d4   :  { %v4446_v46 = vsel %vm3611_vm1, %v4445_v43, %v4444_v33  ;;  %1987 = vadd.xlane.f32.xlu0 %v1986_v35  ;;  %v1866_v33 = vsel %vm527_vm0, %v461_v6, 0.0 }
 0x4d5   :  { %v4448_v12 = vsel %vm3615_vm2, %v4447_v4, %v4446_v46  ;;  %v1989_v4 = vsel %vm527_vm0, %v502_v40, 0.0  ;;  %v503_v46 = vld [vmem:[%s11091_s0 + $0xf40] sm:$0xff] }
 0x4d6   :  { %v1796_v1 = vpop.xlane.xlu2 %1795  ;;  %v1793_v55 = vpop.xlane.xlu1 %1792  ;;  %v4450_v50 = vsel %vm3619_vm3, %v4449_v56, %v4448_v12  ;;  %v483_v12 = vld [vmem:[%s11091_s0 + $0xea0] sm:$0xff] }
 0x4d7   :  { %v2486_v23 = vmul.f32 0.0625, %v1796_v1  ;;  %v2485_v42 = vmul.f32 0.0625, %v1793_v55  ;;  %v1790_v22 = vpop.xlane.xlu0 %1789  ;;  %v469_v1 = vld [vmem:[%s11091_s0 + $0xe30] sm:$0xff] }
 0x4d8   :  { %v2484_v19 = vmul.f32 0.0625, %v1790_v22  ;;  %v1932_v22 = vsel %vm527_vm0, %v483_v12, 0.0 }
 0x4d9   :  { %v4453_v20 = vperm.slane %v2485_v42, %v7184_v31  ;;  %v4455_v5 = vperm.slane %v2486_v23, %v7196_v52  ;;  %v1992_v42 = vsel %vm527_vm0, %v503_v46, 0.0 }
 0x4da   :  { %v4451_v63 = vperm.slane %v2484_v19, %v7181_v26 }
 0x4db   :  { %1930 = vadd.xlane.f32.xlu2 %v1929_v60  ;;  %1888 = vadd.xlane.f32.xlu1 %v1887_v0  ;;  %v1890_v0 = vsel %vm527_vm0, %v469_v1, 0.0 }
 0x4dc   :  { %v4452_v25 = vsel %vm3623_vm4, %v4451_v63, %v4450_v50  ;;  %1864 = vadd.xlane.f32.xlu0 %v1863_v51 }
 0x4dd   :  { %v4454_v37 = vsel %vm3627_vm5, %v4453_v20, %v4452_v25  ;;  %v470_v25 = vld [vmem:[%s11091_s0 + $0xe38] sm:$0xff] }
 0x4de   :  { %v1832_v18 = vpop.xlane.xlu2 %1831  ;;  %v1829_v11 = vpop.xlane.xlu1 %1828  ;;  %v4456_v53 = vsel %vm3631_vm6, %v4455_v5, %v4454_v37  ;;  %v462_v37 = vld [vmem:[%s11091_s0 + $0xdf8] sm:$0xff] }
 0x4df   :  { %v2498_v57 = vmul.f32 0.0625, %v1832_v18  ;;  %v2497_v13 = vmul.f32 0.0625, %v1829_v11  ;;  %v1826_v21 = vpop.xlane.xlu0 %1825  ;;  %v517_v18 = vld [vmem:[%s11091_s0 + $0xfb0] sm:$0xff] }
 0x4e0   :  { %v2496_v3 = vmul.f32 0.0625, %v1826_v21  ;;  %v1869_v21 = vsel %vm527_vm0, %v462_v37, 0.0 }
 0x4e1   :  { %v4478_v41 = vperm.slane %v2498_v57, %v7148_v32  ;;  %v4476_v16 = vperm.slane %v2497_v13, %v7131_v24  ;;  %v1893_v13 = vsel %vm527_vm0, %v470_v25, 0.0  ;;  %v471_v25 = vld [vmem:[%s11091_s0 + $0xe40] sm:$0xff] }
 0x4e2   :  { %v4475_v35 = vperm.slane %v2496_v3, %v7124_v44 }
 0x4e3   :  { %1867 = vadd.xlane.f32.xlu2 %v1866_v33  ;;  %2032 = vadd.xlane.f32.xlu1 %v2031_v47  ;;  %v2034_v47 = vsel %vm527_vm0, %v517_v18, 0.0 }
 0x4e4   :  { %v4477_v56 = vsel %vm3611_vm1, %v4476_v16, %v4475_v35  ;;  %1990 = vadd.xlane.f32.xlu0 %v1989_v4 }
 0x4e5   :  { %v4479_v43 = vsel %vm3615_vm2, %v4478_v41, %v4477_v56  ;;  %v518_v56 = vld [vmem:[%s11091_s0 + $0xfb8] sm:$0xff] }
 0x4e6   :  { %v1799_v15 = vpop.xlane.xlu2 %1798  ;;  %v1838_v36 = vpop.xlane.xlu1 %1837 }
 0x4e7   :  { %v2487_v55 = vmul.f32 0.0625, %v1799_v15  ;;  %v2500_v50 = vmul.f32 0.0625, %v1838_v36  ;;  %v1835_v30 = vpop.xlane.xlu0 %1834  ;;  %v484_v15 = vld [vmem:[%s11091_s0 + $0xea8] sm:$0xff] }
 0x4e8   :  { %v2499_v23 = vmul.f32 0.0625, %v1835_v30 }
 0x4e9   :  { %v4457_v19 = vperm.slane %v2487_v55, %v7212_v49  ;;  %v4482_v60 = vperm.slane %v2500_v50, %v7181_v26  ;;  %v2037_v50 = vsel %vm527_vm0, %v518_v56, 0.0 }
 0x4ea   :  { %v4480_v20 = vperm.slane %v2499_v23, %v7162_v14 }
 0x4eb   :  { %v4458_v51 = vsel %vm3635_vm7, %v4457_v19, %v4456_v53  ;;  %1993 = vadd.xlane.f32.xlu2 %v1992_v42  ;;  %1933 = vadd.xlane.f32.xlu1 %v1932_v22  ;;  %v1935_v42 = vsel %vm527_vm0, %v484_v15, 0.0 }
 0x4ec   :  { %v4481_v5 = vsel %vm3619_vm3, %v4480_v20, %v4479_v43  ;;  %1891 = vadd.xlane.f32.xlu0 %v1890_v0  ;;  %v504_v43 = vld [vmem:[%s11091_s0 + $0xf48] sm:$0xff]  ;;  %v505_v20 = vld [vmem:[%s11091_s0 + $0xf50] sm:$0xff] }
 0x4ed   :  { %v4483_v63 = vsel %vm3623_vm4, %v4482_v60, %v4481_v5  ;;  %v1995_v30 = vsel %vm527_vm0, %v504_v43, 0.0  ;;  %v519_v43 = vld [vmem:[%s11091_s0 + $0xfc0] sm:$0xff] }
 0x4ee   :  { %v1844_v6 = vpop.xlane.xlu2 %1843  ;;  %v1802_v9 = vpop.xlane.xlu1 %1801 }
 0x4ef   :  { %v2502_v11 = vmul.f32 0.0625, %v1844_v6  ;;  %v2488_v40 = vmul.f32 0.0625, %v1802_v9  ;;  %v1841_v53 = vpop.xlane.xlu0 %1840 }
 0x4f0   :  { %v2501_v57 = vmul.f32 0.0625, %v1841_v53 }
 0x4f1   :  { %v4486_v3 = vperm.slane %v2502_v11, %v7196_v52  ;;  %v4459_v33 = vperm.slane %v2488_v40, %v7222_v39  ;;  %v1998_v40 = vsel %vm527_vm0, %v505_v20, 0.0  ;;  %v506_v20 = vld [vmem:[%s11091_s0 + $0xf58] sm:$0xff] }
 0x4f2   :  { %v4484_v41 = vperm.slane %v2501_v57, %v7184_v31 }
 0x4f3   :  { %v4460_v16 = vsel %vm11507_vm10, %v4459_v33, %v4458_v51  ;;  %1894 = vadd.xlane.f32.xlu2 %v1893_v13  ;;  %1870 = vadd.xlane.f32.xlu1 %v1869_v21  ;;  %v485_v51 = vld [vmem:[%s11091_s0 + $0xeb0] sm:$0xff]  ;;  %v1896_v21 = vsel %vm527_vm0, %v471_v25, 0.0  ;;  %vm11510_vm10 = vcmask 720512  }
 0x4f4   :  { %v4485_v4 = vsel %vm3627_vm5, %v4484_v41, %v4483_v63  ;;  %2035 = vadd.xlane.f32.xlu0 %v2034_v47  ;;  %v1938_v53 = vsel %vm527_vm0, %v485_v51, 0.0  ;;  %v2926_v51 = vld [vmem:[%s11092_s1 + $0xaf0] sm:$0xff] }
 0x4f5   :  { %v4487_v35 = vsel %vm3631_vm6, %v4486_v3, %v4485_v4  ;;  %v472_v4 = vld [vmem:[%s11091_s0 + $0xe48] sm:$0xff]  ;;  %4863 = vmatpush.msra.mxu2 %v2926_v51 }
 0x4f6   :  { %v1970_v46 = vpop.xlane.xlu2 %1969  ;;  %v1847_v12 = vpop.xlane.xlu1 %1846 }
 0x4f7   :  { %v2503_v36 = vmul.f32 0.0625, %v1847_v12  ;;  %v1805_v1 = vpop.xlane.xlu0 %1804  ;;  %v2544_v60 = vmul.f32 0.0625, %v1970_v46 }
 0x4f8   :  { %v2489_v55 = vmul.f32 0.0625, %v1805_v1  ;;  %v1899_v1 = vsel %vm527_vm0, %v472_v4, 0.0  ;;  %v11511_v4 = vld [vmem:[#allocation126_spill] sm:$0xff] }
 0x4f9   :  { %v4488_v23 = vperm.slane %v2503_v36, %v7212_v49  ;;  %v4568_v18 = vperm.slane %v2544_v60, %v7124_v44 }
 0x4fa   :  { %v4461_v22 = vperm.slane %v2489_v55, %v7232_v62 }
 0x4fb   :  { %v4489_v19 = vsel %vm3635_vm7, %v4488_v23, %v4487_v35  ;;  %2038 = vadd.xlane.f32.xlu2 %v2037_v50  ;;  %1996 = vadd.xlane.f32.xlu1 %v1995_v30  ;;  %v2040_v50 = vsel %vm527_vm0, %v519_v43, 0.0  ;;  %v11512_v43 = vld [vmem:[#allocation127_spill] sm:$0xff] }
 0x4fc   :  { %v4462_v0 = vsel %vm11508_vm9, %v4461_v22, %v4460_v16  ;;  %1936 = vadd.xlane.f32.xlu0 %v1935_v42  ;;  %v486_v16 = vld [vmem:[%s11091_s0 + $0xeb8] sm:$0xff]  ;;  %v473_v22 = vld [vmem:[%s11091_s0 + $0xe50] sm:$0xff] }
 0x4fd   :  { %v1941_v36 = vsel %vm527_vm0, %v486_v16, 0.0  ;;  %v507_v16 = vld [vmem:[%s11091_s0 + $0xf60] sm:$0xff] }
 0x4fe   :  { %v1850_v5 = vpop.xlane.xlu2 %1849  ;;  %v1808_v63 = vpop.xlane.xlu1 %1807 }
 0x4ff   :  { %v2504_v37 = vmul.f32 0.0625, %v1850_v5  ;;  %v2490_v6 = vmul.f32 0.0625, %v1808_v63  ;;  %v1973_v9 = vpop.xlane.xlu0 %1972 }
 0x500   :  { %v2545_v11 = vmul.f32 0.0625, %v1973_v9 }
 0x501   :  { %v4490_v57 = vperm.slane %v2504_v37, %v7222_v39  ;;  %v4463_v13 = vperm.slane %v2490_v6, %v7250_v2  ;;  %v1902_v6 = vsel %vm527_vm0, %v473_v22, 0.0 }
 0x502   :  { %v4569_v3 = vperm.slane %v2545_v11, %v7131_v24 }
 0x503   :  { %v4491_v33 = vsel %vm11509_vm8, %v4490_v57, %v4489_v19  ;;  %v9205_v47 = vsel %vm11510_vm10, %v4463_v13, %v4462_v0  ;;  %1999 = vadd.xlane.f32.xlu2 %v1998_v40  ;;  %1939 = vadd.xlane.f32.xlu1 %v1938_v53  ;;  %v520_v19 = vld [vmem:[%s11091_s0 + $0xfc8] sm:$0xff]  ;;  %v2001_v53 = vsel %vm527_vm0, %v506_v20, 0.0  ;;  %v2922_v13 = vld [vmem:[%s11092_s1 + $0xad0] sm:$0xff]  ;;  %vm11518_vm8 = vmmov %vm11510_vm10  ;;  %vm11524_vm10 = vcmask 589312  }
 0x504   :  { %v4570_v41 = vsel %vm3611_vm1, %v4569_v3, %v4568_v18  ;;  %1897 = vadd.xlane.f32.xlu0 %v1896_v21  ;;  %v2043_v9 = vsel %vm527_vm0, %v520_v19, 0.0  ;;  %v2924_v18 = vld [vmem:[%s11092_s1 + $0xae0] sm:$0xff] }
 0x505   :  { %4864 = vmatpush.msra.mxu2 %v2924_v18 }
 0x506   :  { %v1853_v35 = vpop.xlane.xlu2 %1852  ;;  %v9214_v56 = vpop.xlane.xlu1 %1810 }
 0x507   :  { %v2505_v46 = vmul.f32 0.0625, %v1853_v35  ;;  %v1976_v12 = vpop.xlane.xlu0 %1975  ;;  %4865 = vmatpush.msra.mxu2 %v2922_v13  ;;  %v2225_v35 = vmul.f32 0.0625, %v11511_v4 }
 0x508   :  { %v2546_v15 = vmul.f32 0.0625, %v1976_v12 }
 0x509   :  { %v4492_v55 = vperm.slane %v2505_v46, %v7232_v62  ;;  %v2224_v46 = vmul.f32 0.0625, %v11512_v43  ;;  %v474_v43 = vld [vmem:[%s11091_s0 + $0xe58] sm:$0xff] }
 0x50a   :  { %v4571_v30 = vperm.slane %v2546_v15, %v7148_v32 }
 0x50b   :  { %v9225_v23 = vsel %vm11508_vm9, %v4492_v55, %v4491_v33  ;;  %1942 = vadd.xlane.f32.xlu2 %v1941_v36  ;;  %1900 = vadd.xlane.f32.xlu1 %v1899_v1  ;;  %v2920_v33 = vld [vmem:[%s11092_s1 + $0xac0] sm:$0xff]  ;;  %v2918_v1 = vld [vmem:[%s11092_s1 + $0xab0] sm:$0xff] }
 0x50c   :  { %v4572_v42 = vsel %vm3615_vm2, %v4571_v30, %v4570_v41  ;;  %2041 = vadd.xlane.f32.xlu0 %v2040_v50  ;;  %v521_v41 = vld [vmem:[%s11091_s0 + $0xfd0] sm:$0xff]  ;;  %v487_v36 = vld [vmem:[%s11091_s0 + $0xec0] sm:$0xff]  ;;  %4866 = vmatpush.msra.mxu2 %v2920_v33 }
 0x50d   :  { %v11513_v55 = vld [vmem:[#allocation131_spill] sm:$0xff]  ;;  %v2046_v19 = vsel %vm527_vm0, %v521_v41, 0.0  ;;  %v1944_v51 = vsel %vm527_vm0, %v487_v36, 0.0  ;;  %v11515_v33 = vld [vmem:[#allocation129_spill] sm:$0xff]  ;;  %v11516_v36 = vld [vmem:[#allocation134_spill] sm:$0xff] }
 0x50e   :  { %v1979_v60 = vpop.xlane.xlu2 %1978  ;;  %v1877_v0 = vpop.xlane.xlu1 %1876  ;;  %v2226_v50 = vmul.f32 0.0625, %v11513_v55  ;;  %4867 = vmatpush.msra.mxu2 %v2918_v1  ;;  %v2228_v41 = vmul.f32 0.0625, %v11515_v33  ;;  %v2229_v1 = vmul.f32 0.0625, %v11516_v36  ;;  %v11519_v33 = vld [vmem:[#allocation132_spill] sm:$0xff] }
 0x50f   :  { %v2547_v5 = vmul.f32 0.0625, %v1979_v60  ;;  %v2513_v63 = vmul.f32 0.0625, %v1877_v0  ;;  %v1874_v25 = vpop.xlane.xlu0 %1873  ;;  %v2004_v60 = vsel %vm527_vm0, %v507_v16, 0.0  ;;  %v2916_v0 = vld [vmem:[%s11092_s1 + $0xaa0] sm:$0xff] }
 0x510   :  { %v2512_v37 = vmul.f32 0.0625, %v1874_v25  ;;  %v11514_v25 = vld [vmem:[#allocation130_spill] sm:$0xff]  ;;  %4868 = vmatpush.msra.mxu2 %v2916_v0  ;;  %v3951_v18 = vperm.slane %v2226_v50, %v7148_v32 }
 0x511   :  { %v4573_v11 = vperm.slane %v2547_v5, %v7162_v14  ;;  %v4507_v40 = vperm.slane %v2513_v63, %v7131_v24  ;;  %v3949_v5 = vperm.slane %v2225_v35, %v7131_v24  ;;  %v3948_v63 = vperm.slane %v2224_v46, %v7124_v44  ;;  %v2910_v46 = vld [vmem:[%s11092_s1 + $0xa70] sm:$0xff] }
 0x512   :  { %v4506_v57 = vperm.slane %v2512_v37, %v7124_v44  ;;  %v2227_v37 = vmul.f32 0.0625, %v11514_v25 }
 0x513   :  { %v9253_v21 = vsel %vm3619_vm3, %v4573_v11, %v4572_v42  ;;  %1903 = vadd.xlane.f32.xlu2 %v1902_v6  ;;  %2044 = vadd.xlane.f32.xlu1 %v2043_v9  ;;  %v2914_v9 = vld [vmem:[%s11092_s1 + $0xa90] sm:$0xff]  ;;  %v3950_v13 = vsel %vm3611_vm1, %v3949_v5, %v3948_v63  ;;  %v3955_v5 = vperm.slane %v2228_v41, %v7181_v26  ;;  %v2231_v41 = vmul.f32 0.0625, %v11519_v33 }
 0x514   :  { %v9256_v3 = vsel %vm3611_vm1, %v4507_v40, %v4506_v57  ;;  %2002 = vadd.xlane.f32.xlu0 %v2001_v53  ;;  %4869 = vmatpush.msra.mxu2 %v2914_v9  ;;  %v2912_v40 = vld [vmem:[%s11092_s1 + $0xa80] sm:$0xff]  ;;  %v508_v53 = vld [vmem:[%s11091_s0 + $0xf68] sm:$0xff]  ;;  %v3953_v16 = vperm.slane %v2227_v37, %v7162_v14  ;;  %v2906_v37 = vld [vmem:[%s11092_s1 + $0xa50] sm:$0xff] }
 0x515   :  { %v488_v57 = vld [vmem:[%s11091_s0 + $0xec8] sm:$0xff] }
 0x516   :  { %v9269_v12 = vpop.xlane.xlu2 %1813  ;;  %v2021_v15 = vpop.xlane.xlu1 %2020  ;;  %4870 = vmatpush.msra.mxu2 %v2912_v40 }
 0x517   :  { %v2561_v30 = vmul.f32 0.0625, %v2021_v15  ;;  %v2018_v42 = vpop.xlane.xlu0 %2017  ;;  %v3952_v15 = vsel %vm3615_vm2, %v3951_v18, %v3950_v13  ;;  %v3957_v18 = vperm.slane %v2229_v1, %v7184_v31  ;;  %v2904_v13 = vld [vmem:[%s11092_s1 + $0xa40] sm:$0xff] }
 0x518   :  { %v2560_v22 = vmul.f32 0.0625, %v2018_v42  ;;  %4871 = vmatpush.msra.mxu2 %v2910_v46  ;;  %v3954_v63 = vsel %vm3619_vm3, %v3953_v16, %v3952_v15  ;;  %v11520_v1 = vld [vmem:[#allocation137_spill] sm:$0xff] }
 0x519   :  { %v4600_v20 = vperm.slane %v2561_v30, %v7131_v24  ;;  %v3956_v16 = vsel %vm3623_vm4, %v3955_v5, %v3954_v63  ;;  %v11521_v5 = vld [vmem:[#allocation136_spill] sm:$0xff] }
 0x51a   :  { %v4599_v6 = vperm.slane %v2560_v22, %v7124_v44  ;;  %v2007_v22 = vsel %vm527_vm0, %v508_v53, 0.0  ;;  %v3958_v15 = vsel %vm3627_vm5, %v3957_v18, %v3956_v16  ;;  %v2233_v63 = vmul.f32 0.0625, %v11521_v5  ;;  %v523_v18 = vld [vmem:[%s11091_s0 + $0xfe0] sm:$0xff]  ;;  %v2958_v16 = vld [vmem:[%s11092_s1 + $0xbf0] sm:$0xff] }
 0x51b   :  { %2047 = vadd.xlane.f32.xlu2 %v2046_v19  ;;  %2005 = vadd.xlane.f32.xlu1 %v2004_v60  ;;  %v1947_v19 = vsel %vm527_vm0, %v488_v57, 0.0  ;;  %v2908_v60 = vld [vmem:[%s11092_s1 + $0xa60] sm:$0xff]  ;;  %v2954_v5 = vld [vmem:[%s11092_s1 + $0xbd0] sm:$0xff] }
 0x51c   :  { %v9294_v11 = vsel %vm3611_vm1, %v4600_v20, %v4599_v6  ;;  %1945 = vadd.xlane.f32.xlu0 %v1944_v51  ;;  %v1905_v51 = vsel %vm527_vm0, %v474_v43, 0.0  ;;  %4872 = vmatpush.msra.mxu2 %v2908_v60  ;;  %v11517_v6 = vld [vmem:[#allocation133_spill] sm:$0xff]  ;;  %v2902_v43 = vld [vmem:[%s11092_s1 + $0xa30] sm:$0xff]  ;;  %v3961_v60 = vperm.slane %v2231_v41, %v7212_v49 }
 0x51d   :  { %v2230_v9 = vmul.f32 0.0625, %v11517_v6  ;;  %v2896_v6 = vld [vmem:[%s11092_s1 + $0xa00] sm:$0xff]  ;;  %v509_v41 = vld [vmem:[%s11091_s0 + $0xf70] sm:$0xff]  ;;  %4883 = vmatpush.msra.mxu3 %v2958_v16 }
 0x51e   :  { %v1982_v4 = vpop.xlane.xlu2 %1981  ;;  %v1880_v35 = vpop.xlane.xlu1 %1879  ;;  %4873 = vmatpush.msra.mxu2 %v2906_v37 }
 0x51f   :  { %v2548_v55 = vmul.f32 0.0625, %v1982_v4  ;;  %v2514_v50 = vmul.f32 0.0625, %v1880_v35  ;;  %v1856_v30 = vpop.xlane.xlu0 %1855  ;;  %v522_v35 = vld [vmem:[%s11091_s0 + $0xfd8] sm:$0xff]  ;;  %v3959_v46 = vperm.slane %v2230_v9, %v7196_v52  ;;  %v476_v9 = vld [vmem:[%s11091_s0 + $0xe68] sm:$0xff] }
 0x520   :  { %v2506_v42 = vmul.f32 0.0625, %v1856_v30  ;;  %4874 = vmatpush.msra.mxu2 %v2904_v13  ;;  %v11522_v13 = vld [vmem:[#allocation135_spill] sm:$0xff] }
 0x521   :  { %v4575_v0 = vperm.slane %v2548_v55, %v7181_v26  ;;  %v4509_v20 = vperm.slane %v2514_v50, %v7148_v32  ;;  %v2232_v55 = vmul.f32 0.0625, %v11520_v1 }
 0x522   :  { %v4494_v25 = vperm.slane %v2506_v42, %v7250_v2  ;;  %4875 = vmatpush.msra.mxu2 %v2902_v43  ;;  %v11523_v43 = vld [vmem:[#allocation140_spill] sm:$0xff] }
 0x523   :  { %v9334_v40 = vsel %vm3623_vm4, %v4575_v0, %v9253_v21  ;;  %v9338_v53 = vsel %vm3615_vm2, %v4509_v20, %v9256_v3  ;;  %2008 = vadd.xlane.f32.xlu2 %v2007_v22  ;;  %1948 = vadd.xlane.f32.xlu1 %v1947_v19  ;;  %v489_v21 = vld [vmem:[%s11091_s0 + $0xed0] sm:$0xff]  ;;  %v475_v3 = vld [vmem:[%s11091_s0 + $0xe60] sm:$0xff]  ;;  %v2049_v19 = vsel %vm527_vm0, %v522_v35, 0.0  ;;  %v3965_v35 = vperm.slane %v2233_v63, %v7232_v62 }
 0x524   :  { %v9342_v57 = vsel %vm11518_vm8, %v4494_v25, %v9225_v23  ;;  %1906 = vadd.xlane.f32.xlu0 %v1905_v51  ;;  %v1950_v30 = vsel %vm527_vm0, %v489_v21, 0.0  ;;  %v1908_v42 = vsel %vm527_vm0, %v475_v3, 0.0  ;;  %v2900_v22 = vld [vmem:[%s11092_s1 + $0xa20] sm:$0xff]  ;;  %v2898_v20 = vld [vmem:[%s11092_s1 + $0xa10] sm:$0xff]  ;;  %v3960_v51 = vsel %vm3631_vm6, %v3959_v46, %v3958_v15 }
 0x525   :  { %4876 = vmatpush.msra.mxu2 %v2900_v22  ;;  %v3963_v25 = vperm.slane %v2232_v55, %v7222_v39  ;;  %v2234_v21 = vmul.f32 0.0625, %v11522_v13  ;;  %v3962_v3 = vsel %vm3635_vm7, %v3961_v60, %v3960_v51  ;;  %v2235_v46 = vmul.f32 0.0625, %v11523_v43  ;;  %v2956_v22 = vld [vmem:[%s11092_s1 + $0xbe0] sm:$0xff]  ;;  %v490_v43 = vld [vmem:[%s11091_s0 + $0xed8] sm:$0xff] }
 0x526   :  { %v9355_v23 = vpop.xlane.xlu2 %1858  ;;  %v9357_v4 = vpop.xlane.xlu1 %1816  ;;  %4884 = vmatpush.msra.mxu3 %v2956_v22 }
 0x527   :  { %v2024_v36 = vpop.xlane.xlu0 %2023  ;;  %4877 = vmatpush.msra.mxu2 %v2898_v20  ;;  %v3964_v55 = vsel %vm11524_vm10, %v3963_v25, %v3962_v3  ;;  %v3967_v20 = vperm.slane %v2234_v21, %v7250_v2  ;;  %v11525_v25 = vld [vmem:[#allocation139_spill] sm:$0xff]  ;;  %v2952_v21 = vld [vmem:[%s11092_s1 + $0xbc0] sm:$0xff]  ;;  %v524_v3 = vld [vmem:[%s11091_s0 + $0xfe8] sm:$0xff]  ;;  %vm11529_vm10 = vcmask 851712  }
 0x528   :  { %v2562_v50 = vmul.f32 0.0625, %v2024_v36  ;;  %v3966_v63 = vsel %vm11508_vm9, %v3965_v35, %v3964_v55  ;;  %4885 = vmatpush.msra.mxu3 %v2954_v5  ;;  %v2055_v22 = vsel %vm527_vm0, %v524_v3, 0.0  ;;  %v11528_v5 = vld [vmem:[#allocation141_spill] sm:$0xff]  ;;  %vm11535_vm9 = vmmov %vm11529_vm10 }
 0x529   :  { %4878 = vmatpush.msra.mxu2 %v2896_v6  ;;  %v2236_v6 = vmul.f32 0.0625, %v11525_v25  ;;  %v3968_v16 = vsel %vm11518_vm8, %v3967_v20, %v3966_v63  ;;  %v1953_v20 = vsel %vm527_vm0, %v490_v43, 0.0  ;;  %v2240_v63 = vmul.f32 0.0625, %v11528_v5 }
 0x52a   :  { %v4602_v0 = vperm.slane %v2562_v50, %v7148_v32  ;;  %4886 = vmatpush.msra.mxu3 %v2952_v21  ;;  %v11530_v21 = vld [vmem:[#allocation142_spill] sm:$0xff]  ;;  %vm11546_vm8 = vcmask 654912  }
 0x52b   :  { %1951 = vadd.xlane.f32.xlu2 %v1950_v30  ;;  %1909 = vadd.xlane.f32.xlu1 %v1908_v42  ;;  %v1911_v30 = vsel %vm527_vm0, %v476_v9, 0.0  ;;  %v2052_v42 = vsel %vm527_vm0, %v523_v18, 0.0  ;;  %v3969_v9 = vperm.slane %v2235_v46, %v7264_v61  ;;  %v2950_v46 = vld [vmem:[%s11092_s1 + $0xbb0] sm:$0xff]  ;;  %v2239_v3 = vmul.f32 0.0625, %v11530_v21 }
 0x52c   :  { %v9384_v37 = vsel %vm3615_vm2, %v4602_v0, %v9294_v11  ;;  %2050 = vadd.xlane.f32.xlu0 %v2049_v19  ;;  %v2010_v0 = vsel %vm527_vm0, %v509_v41, 0.0  ;;  %4887 = vmatpush.msra.mxu3 %v2950_v46  ;;  %v3979_v43 = vperm.slane %v2240_v63, %v7124_v44  ;;  %v11531_v46 = vld [vmem:[#allocation146_spill] sm:$0xff]  ;;  %v2940_v63 = vld [vmem:[%s11092_s1 + $0xb60] sm:$0xff] }
 0x52e   :  { %v1925_v11 = vpop.xlane.xlu2 %1924  ;;  %v1922_v33 = vpop.xlane.xlu1 %1921 }
 0x52f   :  { %v2529_v15 = vmul.f32 0.0625, %v1925_v11  ;;  %v2528_v36 = vmul.f32 0.0625, %v1922_v33  ;;  %v1883_v1 = vpop.xlane.xlu0 %1882  ;;  %v510_v11 = vld [vmem:[%s11091_s0 + $0xf78] sm:$0xff]  ;;  %v11526_v33 = vld [vmem:[#allocation138_spill] sm:$0xff] }
 0x530   :  { %v2515_v50 = vmul.f32 0.0625, %v1883_v1  ;;  %v2237_v41 = vmul.f32 0.0625, %v11526_v33 }
 0x531   :  { %v4538_v19 = vperm.slane %v2529_v15, %v7131_v24  ;;  %v4537_v60 = vperm.slane %v2528_v36, %v7124_v44  ;;  %v3971_v15 = vperm.slane %v2236_v6, %v7274_v29  ;;  %v3970_v36 = vsel %vm3651_vm11, %v3969_v9, %v3968_v16  ;;  %v2946_v6 = vld [vmem:[%s11092_s1 + $0xb90] sm:$0xff]  ;;  %v2944_v16 = vld [vmem:[%s11092_s1 + $0xb80] sm:$0xff] }
 0x532   :  { %v4511_v51 = vperm.slane %v2515_v50, %v7162_v14  ;;  %v11527_v50 = vld [vmem:[#allocation143_spill] sm:$0xff] }
 0x533   :  { %v9423_v18 = vsel %vm3611_vm1, %v4538_v19, %v4537_v60  ;;  %1912 = vadd.xlane.f32.xlu2 %v1911_v30  ;;  %2053 = vadd.xlane.f32.xlu1 %v2052_v42  ;;  %v2238_v30 = vmul.f32 0.0625, %v11527_v50  ;;  %v2013_v19 = vsel %vm527_vm0, %v510_v11, 0.0  ;;  %v2948_v60 = vld [vmem:[%s11092_s1 + $0xba0] sm:$0xff]  ;;  %v3972_v9 = vsel %vm11529_vm10, %v3971_v15, %v3970_v36  ;;  %v2942_v50 = vld [vmem:[%s11092_s1 + $0xb70] sm:$0xff] }
 0x534   :  { %v9427_v13 = vsel %vm3619_vm3, %v4511_v51, %v9338_v53  ;;  %2011 = vadd.xlane.f32.xlu0 %v2010_v0  ;;  %v3973_v51 = vperm.slane %v2237_v41, %v7293_v58  ;;  %4888 = vmatpush.msra.mxu3 %v2948_v60  ;;  %v2241_v15 = vmul.f32 0.0625, %v11531_v46  ;;  %vm11547_vm10 = vcmask 720512  }
 0x535   :  { %v3975_v33 = vperm.slane %v2238_v30, %v7312_v7  ;;  %v3977_v30 = vperm.slane %v2239_v3, %v7316_v38  ;;  %v11533_v3 = vld [vmem:[#allocation145_spill] sm:$0xff] }
 0x536   :  { %v1820_v53 = vpop.xlane.xlu2 %1819  ;;  %v2027_v35 = vpop.xlane.xlu1 %2026  ;;  %4889 = vmatpush.msra.mxu3 %v2946_v6 }
 0x537   :  { %v2563_v1 = vmul.f32 0.0625, %v2027_v35  ;;  %v1985_v55 = vpop.xlane.xlu0 %1984  ;;  %v525_v35 = vld [vmem:[%s11091_s0 + $0xff0] sm:$0xff] }
 0x538   :  { %v2549_v42 = vmul.f32 0.0625, %v1985_v55  ;;  %v3974_v55 = vsel %vm3659_vm13, %v3973_v51, %v3972_v9  ;;  %4890 = vmatpush.msra.mxu3 %v2944_v16  ;;  %v2242_v16 = vmul.f32 0.0625, %v11533_v3  ;;  %v2932_v3 = vld [vmem:[%s11092_s1 + $0xb20] sm:$0xff] }
 0x539   :  { %v4604_v0 = vperm.slane %v2563_v1, %v7162_v14  ;;  %v477_v1 = vld [vmem:[%s11091_s0 + $0xe70] sm:$0xff]  ;;  %v3976_v51 = vsel %vm3663_vm14, %v3975_v33, %v3974_v55  ;;  %v3980_v33 = vperm.slane %v2241_v15, %v7131_v24 }
 0x53a   :  { %v4577_v25 = vperm.slane %v2549_v42, %v7184_v31  ;;  %v2491_v42 = vmul.f32 0.0625, %v9214_v56  ;;  %4891 = vmatpush.msra.mxu3 %v2942_v50  ;;  %v1914_v9 = vsel %vm527_vm0, %v477_v1, 0.0  ;;  %v3978_v1 = vsel %vm3667_vm15, %v3977_v30, %v3976_v51  ;;  %v2934_v30 = vld [vmem:[%s11092_s1 + $0xb30] sm:$0xff] }
 0x53b   :  { %v9466_v11 = vsel %vm3619_vm3, %v4604_v0, %v9384_v37  ;;  %2056 = vadd.xlane.f32.xlu2 %v2055_v22  ;;  %2014 = vadd.xlane.f32.xlu1 %v2013_v19  ;;  %v491_v37 = vld [vmem:[%s11091_s0 + $0xee0] sm:$0xff]  ;;  %v2492_v0 = vmul.f32 0.0625, %v9269_v12  ;;  %v3982_v50 = vperm.slane %v2242_v16, %v7148_v32 }
 0x53c   :  { %v9471_v41 = vsel %vm3627_vm5, %v4577_v25, %v9334_v40  ;;  %1954 = vadd.xlane.f32.xlu0 %v1953_v20  ;;  %v2058_v20 = vsel %vm527_vm0, %v525_v35, 0.0  ;;  %v1956_v5 = vsel %vm527_vm0, %v491_v37, 0.0  ;;  %v2493_v25 = vmul.f32 0.0625, %v9357_v4  ;;  %v11532_v12 = vld [vmem:[#allocation144_spill] sm:$0xff]  ;;  %4892 = vmatpush.msra.mxu3 %v2940_v63  ;;  %v2938_v37 = vld [vmem:[%s11092_s1 + $0xb50] sm:$0xff] }
 0x53d   :  { %v9507_v21 = vmul.f32 0.0625, %v11532_v12  ;;  %v2494_v35 = vmul.f32 0.0625, %v1820_v53  ;;  %v4465_v4 = vperm.slane %v2491_v42, %v7264_v61  ;;  %v4467_v15 = vperm.slane %v2492_v0, %v7274_v29  ;;  %v2936_v53 = vld [vmem:[%s11092_s1 + $0xb40] sm:$0xff] }
 0x53e   :  { %v1928_v40 = vpop.xlane.xlu2 %1927  ;;  %v1886_v36 = vpop.xlane.xlu1 %1885  ;;  %4893 = vmatpush.msra.mxu3 %v2938_v37  ;;  %v3981_v42 = vsel %vm3611_vm1, %v3980_v33, %v3979_v43 }
 0x53f   :  { %v2530_v22 = vmul.f32 0.0625, %v1928_v40  ;;  %v2516_v19 = vmul.f32 0.0625, %v1886_v36  ;;  %v9493_v60 = vpop.xlane.xlu0 %1861  ;;  %v4469_v36 = vperm.slane %v2493_v25, %v7293_v58  ;;  %v3984_v55 = vperm.slane %v9507_v21, %v7162_v14 }
 0x540   :  { %4894 = vmatpush.msra.mxu3 %v2936_v53  ;;  %v4466_v63 = vsel %vm3651_vm11, %v4465_v4, %v9205_v47  ;;  %v3983_v37 = vsel %vm3615_vm2, %v3982_v50, %v3981_v42  ;;  %v11536_v4 = vld [vmem:[#allocation148_spill] sm:$0xff]  ;;  %v11537_v42 = vld [vmem:[#allocation147_spill] sm:$0xff] }
 0x541   :  { %v4540_v56 = vperm.slane %v2530_v22, %v7148_v32  ;;  %v4513_v6 = vperm.slane %v2516_v19, %v7181_v26  ;;  %v4471_v22 = vperm.slane %v2494_v35, %v7312_v7 }
 0x542   :  { %4895 = vmatpush.msra.mxu3 %v2934_v30  ;;  %v2928_v30 = vld [vmem:[%s11092_s1 + $0xb00] sm:$0xff] }
 0x543   :  { %v9517_v46 = vsel %vm3615_vm2, %v4540_v56, %v9423_v18  ;;  %v9521_v40 = vsel %vm3623_vm4, %v4513_v6, %v9427_v13  ;;  %2059 = vadd.xlane.f32.xlu2 %v2058_v20  ;;  %1957 = vadd.xlane.f32.xlu1 %v1956_v5  ;;  %v526_v18 = vld [vmem:[%s11091_s0 + $0xff8] sm:$0xff]  ;;  %v492_v13 = vld [vmem:[%s11091_s0 + $0xee8] sm:$0xff]  ;;  %v4468_v6 = vsel %vm11535_vm9, %v4467_v15, %v4466_v63  ;;  %v2245_v15 = vmul.f32 0.0625, %v11536_v4 }
 0x544   :  { %1915 = vadd.xlane.f32.xlu0 %v1914_v9  ;;  %v478_v20 = vld [vmem:[%s11091_s0 + $0xe78] sm:$0xff]  ;;  %v11534_v5 = vld [vmem:[#allocation149_spill] sm:$0xff]  ;;  %v2061_v12 = vsel %vm527_vm0, %v526_v18, 0.0  ;;  %v1959_v21 = vsel %vm527_vm0, %v492_v13, 0.0  ;;  %v4470_v16 = vsel %vm3659_vm13, %v4469_v36, %v4468_v6  ;;  %4896 = vmatpush.msra.mxu3 %v2932_v3  ;;  %v2930_v13 = vld [vmem:[%s11092_s1 + $0xb10] sm:$0xff] }
 0x545   :  { %v2244_v51 = vmul.f32 0.0625, %v11534_v5  ;;  %v1917_v35 = vsel %vm527_vm0, %v478_v20, 0.0  ;;  %v4472_v53 = vsel %vm3663_vm14, %v4471_v22, %v4470_v16  ;;  %v3988_v5 = vperm.slane %v2245_v15, %v7184_v31  ;;  %v11540_v16 = vld [vmem:[#allocation151_spill] sm:$0xff] }
 0x546   :  { %v1823_v19 = vpop.xlane.xlu2 %1822  ;;  %v2030_v0 = vpop.xlane.xlu1 %2029  ;;  %4897 = vmatpush.msra.mxu3 %v2930_v13 }
 0x547   :  { %v2495_v25 = vmul.f32 0.0625, %v1823_v19  ;;  %v2564_v43 = vmul.f32 0.0625, %v2030_v0  ;;  %v1988_v56 = vpop.xlane.xlu0 %1987  ;;  %v3986_v36 = vperm.slane %v2244_v51, %v7181_v26  ;;  %v2246_v0 = vmul.f32 0.0625, %v11537_v42  ;;  %v11542_v42 = vld [vmem:[#allocation155_spill] sm:$0xff] }
 0x548   :  { %v2550_v9 = vmul.f32 0.0625, %v1988_v56  ;;  %v3985_v51 = vsel %vm3619_vm3, %v3984_v55, %v3983_v37  ;;  %4898 = vmatpush.msra.mxu3 %v2928_v30  ;;  %v2248_v55 = vmul.f32 0.0625, %v11540_v16 }
 0x549   :  { %v4473_v33 = vperm.slane %v2495_v25, %v7316_v38  ;;  %v4606_v47 = vperm.slane %v2564_v43, %v7181_v26  ;;  %v493_v43 = vld [vmem:[%s11091_s0 + $0xef0] sm:$0xff]  ;;  %v3987_v56 = vsel %vm3623_vm4, %v3986_v36, %v3985_v51 }
 0x54a   :  { %v4579_v18 = vperm.slane %v2550_v9, %v7196_v52  ;;  %v3989_v37 = vsel %vm3627_vm5, %v3988_v5, %v3987_v56  ;;  %v3994_v36 = vperm.slane %v2248_v55, %v7222_v39 }
 0x54b   :  { %v4607_v19 = vsel %vm3623_vm4, %v4606_v47, %v9466_v11  ;;  %2062 = vadd.xlane.f32.xlu2 %v2061_v12  ;;  %1960 = vadd.xlane.f32.xlu1 %v1959_v21  ;;  %v4474_v50 = vsel %vm3667_vm15, %v4473_v33, %v4472_v53  ;;  %v494_v11 = vld [vmem:[%s11091_s0 + $0xef8] sm:$0xff]  ;;  %v3990_v21 = vperm.slane %v2246_v0, %v7196_v52  ;;  %v2250_v0 = vmul.f32 0.0625, %v11542_v42  ;;  %s5317_s0 = sshll.u32 %s11094_s3, 4  ;;  %s5318_s0 = int_to_ptr.hbm [resolvable:$true] %s5317_s0 }
 0x54c   :  { %v4580_v22 = vsel %vm3631_vm6, %v4579_v18, %v9471_v41  ;;  %1918 = vadd.xlane.f32.xlu0 %v1917_v35  ;;  %v9574_v20 = vsel %vm4630_vm12, %v4474_v50, %v3978_v1  ;;  %v11539_v41 = vld [vmem:[#allocation152_spill] sm:$0xff]  ;;  %v1965_v3 = vsel %vm527_vm0, %v494_v11, 0.0  ;;  %v1962_v35 = vsel %vm527_vm0, %v493_v43, 0.0  ;;  %v11541_v18 = vld [vmem:[#allocation150_spill] sm:$0xff] }
 0x54d   :  { %11538 = vst [vmem:[#allocation9_spill] sm:$0xff] %v9574_v20  ;;  %4879 = vmatmul.f32.vlgmr.msra.gmra.mxu2 %v9574_v20  ;;  %v2247_v63 = vmul.f32 0.0625, %v11539_v41  ;;  %v2249_v13 = vmul.f32 0.0625, %v11541_v18  ;;  %v3991_v50 = vsel %vm3631_vm6, %v3990_v21, %v3989_v37  ;;  %vm11544_vm0 = vcmask 589312   ;;  %v2637_v20 = vld [vmem:[%s11092_s1 + $0x1e8] sm:$0xff] }
 0x54e   :  { %v1931_v25 = vpop.xlane.xlu2 %1930  ;;  %v1889_v1 = vpop.xlane.xlu1 %1888  ;;  %v3998_v56 = vperm.slane %v2250_v0, %v7250_v2  ;;  %v2507_v0 = vmul.f32 0.0625, %v9355_v23  ;;  %vm11551_vm9 = vmmov %vm11544_vm0 }
 0x54f   :  { %v2531_v6 = vmul.f32 0.0625, %v1931_v25  ;;  %v2517_v9 = vmul.f32 0.0625, %v1889_v1  ;;  %v1865_v12 = vpop.xlane.xlu0 %1864  ;;  %v3992_v4 = vperm.slane %v2247_v63, %v7212_v49  ;;  %v3996_v41 = vperm.slane %v2249_v13, %v7232_v62  ;;  %v11543_v63 = vld [vmem:[#allocation154_spill] sm:$0xff] }
 0x550   :  { %v2251_v25 = vmul.f32 0.0625, %v11543_v63  ;;  %v11548_v13 = vld [vmem:[#allocation158_spill] sm:$0xff]  ;;  %v2508_v63 = vmul.f32 0.0625, %v9493_v60  ;;  %v4496_v60 = vperm.slane %v2507_v0, %v7264_v61 }
 0x551   :  { %v4542_v33 = vperm.slane %v2531_v6, %v7162_v14  ;;  %v4515_v47 = vperm.slane %v2517_v9, %v7184_v31  ;;  %v3993_v30 = vsel %vm3635_vm7, %v3992_v4, %v3991_v50  ;;  %v3052_v9 = vld [vmem:[%s11092_s1 + $0xee0] sm:$0xff] }
 0x552   :  { %v3995_v43 = vsel %vm11544_vm0, %v3994_v36, %v3993_v30  ;;  %v3048_v4 = vld [vmem:[%s11092_s1 + $0xec0] sm:$0xff]  ;;  %vm11552_vm0 = vcmask 851712   ;;  %v4497_v0 = vsel %vm3651_vm11, %v4496_v60, %v9342_v57  ;;  %v2986_v60 = vld [vmem:[%s11092_s1 + $0xcd0] sm:$0xff] }
 0x553   :  { %v4543_v15 = vsel %vm3619_vm3, %v4542_v33, %v9517_v46  ;;  %v9602_v53 = vsel %vm3627_vm5, %v4515_v47, %v9521_v40  ;;  %1966 = vadd.xlane.f32.xlu1 %v1965_v3  ;;  %v3054_v40 = vld [vmem:[%s11092_s1 + $0xef0] sm:$0xff]  ;;  %v11545_v3 = vld [vmem:[#allocation153_spill] sm:$0xff]  ;;  %v4000_v47 = vperm.slane %v2251_v25, %v7264_v61 }
 0x554   :  { %1963 = vadd.xlane.f32.xlu0 %v1962_v35  ;;  %4943 = vmatpush.msrb.mxu2 %v3054_v40  ;;  %v2252_v16 = vmul.f32 0.0625, %v11545_v3  ;;  %v3050_v33 = vld [vmem:[%s11092_s1 + $0xed0] sm:$0xff]  ;;  %v3997_v35 = vsel %vm11546_vm8, %v3996_v41, %v3995_v43  ;;  %v11549_v40 = vld [vmem:[#allocation157_spill] sm:$0xff]  ;;  %v2509_v43 = vmul.f32 0.0625, %v1865_v12  ;;  %v11550_v3 = vld [vmem:[#allocation156_spill] sm:$0xff] }
 0x555   :  { %v3999_v18 = vsel %vm11547_vm10, %v3998_v56, %v3997_v35  ;;  %v2254_v41 = vmul.f32 0.0625, %v11549_v40  ;;  %vm11553_vm8 = vmmov %vm11552_vm0 }
 0x556   :  { %v1868_v11 = vpop.xlane.xlu2 %1867  ;;  %v2033_v5 = vpop.xlane.xlu1 %2032  ;;  %4944 = vmatpush.msrb.mxu2 %v3052_v9  ;;  %v4002_v42 = vperm.slane %v2252_v16, %v7274_v29  ;;  %v2255_v16 = vmul.f32 0.0625, %v11550_v3  ;;  %vm11562_vm10 = vmmov %vm11551_vm9 }
 0x557   :  { %v2565_v51 = vmul.f32 0.0625, %v2033_v5  ;;  %v1991_v46 = vpop.xlane.xlu0 %1990  ;;  %v2510_v9 = vmul.f32 0.0625, %v1868_v11  ;;  %v4006_v35 = vperm.slane %v2254_v41, %v7312_v7 }
 0x558   :  { %v2551_v1 = vmul.f32 0.0625, %v1991_v46  ;;  %4945 = vmatpush.msrb.mxu2 %v3050_v33  ;;  %v4001_v46 = vsel %vm3651_vm11, %v4000_v47, %v3999_v18  ;;  %v3042_v47 = vld [vmem:[%s11092_s1 + $0xe90] sm:$0xff] }
 0x559   :  { %v4608_v6 = vperm.slane %v2565_v51, %v7184_v31  ;;  %v4003_v11 = vsel %vm11552_vm0, %v4002_v42, %v4001_v46  ;;  %v4008_v42 = vperm.slane %v2255_v16, %v7316_v38  ;;  %v3086_v46 = vld [vmem:[%s11092_s1 + $0xff0] sm:$0xff]  ;;  %vm11570_vm0 = vcmask 654912  }
 0x55a   :  { %v4581_v21 = vperm.slane %v2551_v1, %v7212_v49  ;;  %4946 = vmatpush.msrb.mxu2 %v3048_v4  ;;  %v4498_v4 = vperm.slane %v2508_v63, %v7274_v29  ;;  %4963 = vmatpush.msrb.mxu3 %v3086_v46  ;;  %v3022_v46 = vld [vmem:[%s11092_s1 + $0xdf0] sm:$0xff] }
 0x55b   :  { %v9623_v55 = vsel %vm3627_vm5, %v4608_v6, %v4607_v19  ;;  %v2253_v19 = vmul.f32 0.0625, %v11548_v13  ;;  %v3044_v6 = vld [vmem:[%s11092_s1 + $0xea0] sm:$0xff]  ;;  %v4500_v13 = vperm.slane %v2509_v43, %v7293_v58  ;;  %4923 = vmatpush.msrb.mxu1 %v3022_v46  ;;  %v2974_v46 = vld [vmem:[%s11092_s1 + $0xc70] sm:$0xff] }
 0x55c   :  { %v4582_v37 = vsel %vm3635_vm7, %v4581_v21, %v4580_v22  ;;  %v3046_v22 = vld [vmem:[%s11092_s1 + $0xeb0] sm:$0xff]  ;;  %v4499_v40 = vsel %vm11553_vm8, %v4498_v4, %v4497_v0  ;;  %v2988_v43 = vld [vmem:[%s11092_s1 + $0xce0] sm:$0xff]  ;;  %vm11572_vm8 = vcmask 720512  }
 0x55d   :  { %4947 = vmatpush.msrb.mxu2 %v3046_v22  ;;  %v4004_v1 = vperm.slane %v2253_v19, %v7293_v58  ;;  %v4502_v19 = vperm.slane %v2510_v9, %v7312_v7  ;;  %v3038_v22 = vld [vmem:[%s11092_s1 + $0xe70] sm:$0xff]  ;;  %v4501_v63 = vsel %vm3659_vm13, %v4500_v13, %v4499_v40 }
 0x55e   :  { %v1994_v36 = vpop.xlane.xlu2 %1993  ;;  %v1934_v50 = vpop.xlane.xlu1 %1933 }
 0x55f   :  { %v2552_v30 = vmul.f32 0.0625, %v1994_v36  ;;  %v2532_v5 = vmul.f32 0.0625, %v1934_v50  ;;  %v1892_v51 = vpop.xlane.xlu0 %1891  ;;  %4948 = vmatpush.msrb.mxu2 %v3044_v6  ;;  %v4503_v6 = vsel %vm3663_vm14, %v4502_v19, %v4501_v63  ;;  %v11555_v19 = vld [vmem:[#allocation160_spill] sm:$0xff] }
 0x560   :  { %v2518_v25 = vmul.f32 0.0625, %v1892_v51  ;;  %v2990_v51 = vld [vmem:[%s11092_s1 + $0xcf0] sm:$0xff]  ;;  %v3076_v63 = vld [vmem:[%s11092_s1 + $0xfa0] sm:$0xff] }
 0x561   :  { %v4583_v23 = vperm.slane %v2552_v30, %v7222_v39  ;;  %v4544_v56 = vperm.slane %v2532_v5, %v7181_v26  ;;  %4949 = vmatpush.msrb.mxu2 %v3042_v47  ;;  %4903 = vmatpush.msrb.mxu0 %v2990_v51  ;;  %v3034_v47 = vld [vmem:[%s11092_s1 + $0xe50] sm:$0xff] }
 0x562   :  { %v4517_v21 = vperm.slane %v2518_v25, %v7196_v52  ;;  %v3078_v51 = vld [vmem:[%s11092_s1 + $0xfb0] sm:$0xff] }
 0x563   :  { %v9654_v33 = vsel %vm11551_vm9, %v4583_v23, %v4582_v37  ;;  %v9657_v12 = vsel %vm3623_vm4, %v4544_v56, %v4543_v15  ;;  %v3040_v37 = vld [vmem:[%s11092_s1 + $0xe80] sm:$0xff]  ;;  %v4005_v15 = vsel %vm3659_vm13, %v4004_v1, %v4003_v11  ;;  %4904 = vmatpush.msrb.mxu0 %v2988_v43 }
 0x564   :  { %v4518_v18 = vsel %vm3631_vm6, %v4517_v21, %v9602_v53  ;;  %4950 = vmatpush.msrb.mxu2 %v3040_v37  ;;  %v4007_v57 = vsel %vm3663_vm14, %v4006_v35, %v4005_v15  ;;  %v3036_v23 = vld [vmem:[%s11092_s1 + $0xe60] sm:$0xff]  ;;  %v3082_v35 = vld [vmem:[%s11092_s1 + $0xfd0] sm:$0xff] }
 0x565   :  { %v3084_v56 = vld [vmem:[%s11092_s1 + $0xfe0] sm:$0xff]  ;;  %v4009_v3 = vsel %vm3667_vm15, %v4008_v42, %v4007_v57  ;;  %4905 = vmatpush.msrb.mxu0 %v2986_v60  ;;  %v2978_v60 = vld [vmem:[%s11092_s1 + $0xc90] sm:$0xff] }
 0x566   :  { %v1895_v36 = vpop.xlane.xlu2 %1894  ;;  %v1871_v50 = vpop.xlane.xlu1 %1870  ;;  %4951 = vmatpush.msrb.mxu2 %v3038_v22  ;;  %4964 = vmatpush.msrb.mxu3 %v3084_v56  ;;  %v3032_v37 = vld [vmem:[%s11092_s1 + $0xe40] sm:$0xff] }
 0x567   :  { %v2519_v53 = vmul.f32 0.0625, %v1895_v36  ;;  %v2511_v30 = vmul.f32 0.0625, %v1871_v50  ;;  %v2036_v5 = vpop.xlane.xlu0 %2035  ;;  %v3080_v15 = vld [vmem:[%s11092_s1 + $0xfc0] sm:$0xff]  ;;  %v2257_v36 = vmul.f32 0.0625, %v11555_v19  ;;  %v11559_v19 = vld [vmem:[#allocation163_spill] sm:$0xff] }
 0x568   :  { %v2566_v41 = vmul.f32 0.0625, %v2036_v5  ;;  %4952 = vmatpush.msrb.mxu2 %v3036_v23  ;;  %4965 = vmatpush.msrb.mxu3 %v3082_v35  ;;  %v11556_v50 = vld [vmem:[#allocation161_spill] sm:$0xff]  ;;  %v3030_v5 = vld [vmem:[%s11092_s1 + $0xe30] sm:$0xff] }
 0x569   :  { %v4519_v25 = vperm.slane %v2519_v53, %v7212_v49  ;;  %v4504_v1 = vperm.slane %v2511_v30, %v7316_v38  ;;  %v2256_v42 = vmul.f32 0.0625, %v11556_v50  ;;  %v2982_v30 = vld [vmem:[%s11092_s1 + $0xcb0] sm:$0xff]  ;;  %v3028_v57 = vld [vmem:[%s11092_s1 + $0xe20] sm:$0xff]  ;;  %v4011_v56 = vperm.slane %v2257_v36, %v7131_v24 }
 0x56a   :  { %v4610_v9 = vperm.slane %v2566_v41, %v7196_v52  ;;  %4953 = vmatpush.msrb.mxu2 %v3034_v47  ;;  %4966 = vmatpush.msrb.mxu3 %v3080_v15  ;;  %v2980_v41 = vld [vmem:[%s11092_s1 + $0xca0] sm:$0xff]  ;;  %v3026_v47 = vld [vmem:[%s11092_s1 + $0xe10] sm:$0xff]  ;;  %v2260_v36 = vmul.f32 0.0625, %v11559_v19 }
 0x56b   :  { %v9702_v21 = vsel %vm3635_vm7, %v4519_v25, %v4518_v18  ;;  %v4505_v16 = vsel %vm3667_vm15, %v4504_v1, %v4503_v6  ;;  %v2984_v18 = vld [vmem:[%s11092_s1 + $0xcc0] sm:$0xff]  ;;  %v11557_v25 = vld [vmem:[#allocation159_spill] sm:$0xff]  ;;  %v4010_v6 = vperm.slane %v2256_v42, %v7124_v44 }
 0x56c   :  { %v4611_v11 = vsel %vm3631_vm6, %v4610_v9, %v9623_v55  ;;  %v9718_v4 = vsel %vm4630_vm12, %v4505_v16, %v4009_v3  ;;  %4906 = vmatpush.msrb.mxu0 %v2984_v18  ;;  %4954 = vmatpush.msrb.mxu2 %v3032_v37  ;;  %v2258_v1 = vmul.f32 0.0625, %v11557_v25  ;;  %v3020_v23 = vld [vmem:[%s11092_s1 + $0xde0] sm:$0xff]  ;;  %v3074_v35 = vld [vmem:[%s11092_s1 + $0xf90] sm:$0xff] }
 0x56d   :  { %11554 = vst [vmem:[#allocation14_spill] sm:$0xff] %v9718_v4  ;;  %4899 = vmatmul.f32.vlgmr.msra.gmra.mxu3 %v9718_v4  ;;  %v11558_v9 = vld [vmem:[#allocation164_spill] sm:$0xff]  ;;  %4924 = vmatpush.msrb.mxu1 %v3020_v23  ;;  %v11560_v25 = vld [vmem:[#allocation162_spill] sm:$0xff] }
 0x56e   :  { %v2039_v55 = vpop.xlane.xlu2 %2038  ;;  %v9730_v13 = vpop.xlane.xlu1 %1996  ;;  %4907 = vmatpush.msrb.mxu0 %v2982_v30  ;;  %4955 = vmatpush.msrb.mxu2 %v3030_v5  ;;  %v2259_v3 = vmul.f32 0.0625, %v11558_v9  ;;  %v2976_v37 = vld [vmem:[%s11092_s1 + $0xc80] sm:$0xff]  ;;  %v4012_v30 = vsel %vm3611_vm1, %v4011_v56, %v4010_v6  ;;  %v4017_v6 = vperm.slane %v2260_v36, %v7181_v26  ;;  %v2665_v36 = vld [vmem:[%s11092_s1 + $0x2c8] sm:$0xff] }
 0x56f   :  { %v2567_v0 = vmul.f32 0.0625, %v2039_v55  ;;  %v1937_v53 = vpop.xlane.xlu0 %1936  ;;  %4967 = vmatpush.msrb.mxu3 %v3078_v51  ;;  %v3024_v15 = vld [vmem:[%s11092_s1 + $0xe00] sm:$0xff]  ;;  %v4013_v55 = vperm.slane %v2258_v1, %v7148_v32  ;;  %v2261_v1 = vmul.f32 0.0625, %v11560_v25  ;;  %v2966_v25 = vld [vmem:[%s11092_s1 + $0xc30] sm:$0xff] }
 0x570   :  { %v2533_v22 = vmul.f32 0.0625, %v1937_v53  ;;  %4908 = vmatpush.msrb.mxu0 %v2980_v41  ;;  %4956 = vmatpush.msrb.mxu2 %v3028_v57  ;;  %v2671_v53 = vld [vmem:[%s11092_s1 + $0x2f8] sm:$0xff]  ;;  %v4015_v5 = vperm.slane %v2259_v3, %v7162_v14  ;;  %v3014_v57 = vld [vmem:[%s11092_s1 + $0xdb0] sm:$0xff]  ;;  %v2972_v23 = vld [vmem:[%s11092_s1 + $0xc60] sm:$0xff] }
 0x571   :  { %v4612_v40 = vperm.slane %v2567_v0, %v7212_v49  ;;  %4968 = vmatpush.msrb.mxu3 %v3076_v63  ;;  %v3016_v0 = vld [vmem:[%s11092_s1 + $0xdc0] sm:$0xff]  ;;  %v2669_v63 = vld [vmem:[%s11092_s1 + $0x2e8] sm:$0xff]  ;;  %v4014_v9 = vsel %vm3615_vm2, %v4013_v55, %v4012_v30  ;;  %v11561_v3 = vld [vmem:[#allocation167_spill] sm:$0xff] }
 0x572   :  { %v4546_v43 = vperm.slane %v2533_v22, %v7184_v31  ;;  %4909 = vmatpush.msrb.mxu0 %v2978_v60  ;;  %4957 = vmatpush.msrb.mxu2 %v3026_v47  ;;  %v3068_v56 = vld [vmem:[%s11092_s1 + $0xf60] sm:$0xff]  ;;  %v2262_v60 = vmul.f32 0.0625, %v11561_v3  ;;  %v3066_v55 = vld [vmem:[%s11092_s1 + $0xf50] sm:$0xff] }
 0x573   :  { %v9765_v16 = vsel %vm3635_vm7, %v4612_v40, %v4611_v11  ;;  %v3018_v11 = vld [vmem:[%s11092_s1 + $0xdd0] sm:$0xff]  ;;  %4969 = vmatpush.msrb.mxu3 %v3074_v35  ;;  %v3012_v35 = vld [vmem:[%s11092_s1 + $0xda0] sm:$0xff] }
 0x574   :  { %v4547_v18 = vsel %vm3627_vm5, %v4546_v43, %v9657_v12  ;;  %4925 = vmatpush.msrb.mxu1 %v3018_v11  ;;  %v3072_v12 = vld [vmem:[%s11092_s1 + $0xf80] sm:$0xff]  ;;  %4910 = vmatpush.msrb.mxu0 %v2976_v37  ;;  %v3070_v40 = vld [vmem:[%s11092_s1 + $0xf70] sm:$0xff]  ;;  %v2667_v11 = vld [vmem:[%s11092_s1 + $0x2d8] sm:$0xff]  ;;  %v4016_v37 = vsel %vm3619_vm3, %v4015_v5, %v4014_v9 }
 0x575   :  { %4958 = vmatpush.msrb.mxu2 %v3024_v15  ;;  %4970 = vmatpush.msrb.mxu3 %v3072_v12  ;;  %v2970_v12 = vld [vmem:[%s11092_s1 + $0xc50] sm:$0xff]  ;;  %v4018_v5 = vsel %vm3623_vm4, %v4017_v6, %v4016_v37  ;;  %v2661_v6 = vld [vmem:[%s11092_s1 + $0x2a8] sm:$0xff]  ;;  %v3060_v37 = vld [vmem:[%s11092_s1 + $0xf20] sm:$0xff] }
 0x576   :  { %v9792_v50 = vpop.xlane.xlu2 %1999  ;;  %v1940_v42 = vpop.xlane.xlu1 %1939  ;;  %4926 = vmatpush.msrb.mxu1 %v3016_v0  ;;  %4911 = vmatpush.msrb.mxu0 %v2974_v46  ;;  %v4019_v0 = vperm.slane %v2261_v1, %v7184_v31  ;;  %v3062_v1 = vld [vmem:[%s11092_s1 + $0xf30] sm:$0xff]  ;;  %v11583_v4 = vld [vmem:[#allocation172_spill] sm:$0xff] }
 0x577   :  { %v2534_v51 = vmul.f32 0.0625, %v1940_v42  ;;  %v1898_v22 = vpop.xlane.xlu0 %1897  ;;  %5023 = vmatpush.msra.mxu2 %v2671_v53  ;;  %4971 = vmatpush.msrb.mxu3 %v3070_v40  ;;  %v2968_v42 = vld [vmem:[%s11092_s1 + $0xc40] sm:$0xff]  ;;  %v11563_v53 = vld [vmem:[#allocation166_spill] sm:$0xff]  ;;  %v10063_v27 = vmul.f32 0.0625, %v11583_v4 }
 0x578   :  { %v2520_v41 = vmul.f32 0.0625, %v1898_v22  ;;  %4927 = vmatpush.msrb.mxu1 %v3014_v57  ;;  %4912 = vmatpush.msrb.mxu0 %v2972_v23  ;;  %v2263_v30 = vmul.f32 0.0625, %v11563_v53  ;;  %v3008_v40 = vld [vmem:[%s11092_s1 + $0xd80] sm:$0xff]  ;;  %v4020_v3 = vsel %vm3627_vm5, %v4019_v0, %v4018_v5  ;;  %v3058_v0 = vld [vmem:[%s11092_s1 + $0xf10] sm:$0xff]  ;;  %v2657_v5 = vld [vmem:[%s11092_s1 + $0x288] sm:$0xff] }
 0x579   :  { %v4548_v43 = vperm.slane %v2534_v51, %v7196_v52  ;;  %5024 = vmatpush.msra.mxu2 %v2669_v63  ;;  %4972 = vmatpush.msrb.mxu3 %v3068_v56  ;;  %v4021_v51 = vperm.slane %v2262_v60, %v7196_v52  ;;  %v3006_v56 = vld [vmem:[%s11092_s1 + $0xd70] sm:$0xff] }
 0x57a   :  { %v4521_v47 = vperm.slane %v2520_v41, %v7222_v39  ;;  %4928 = vmatpush.msrb.mxu1 %v3012_v35  ;;  %4913 = vmatpush.msrb.mxu0 %v2970_v12  ;;  %v2663_v41 = vld [vmem:[%s11092_s1 + $0x2b8] sm:$0xff]  ;;  %v4023_v9 = vperm.slane %v2263_v30, %v7212_v49  ;;  %v11565_v60 = vld [vmem:[#allocation170_spill] sm:$0xff]  ;;  %v11566_v30 = vld [vmem:[#allocation169_spill] sm:$0xff] }
 0x57b   :  { %v4549_v15 = vsel %vm3631_vm6, %v4548_v43, %v4547_v18  ;;  %5025 = vmatpush.msra.mxu2 %v2667_v11  ;;  %v3010_v18 = vld [vmem:[%s11092_s1 + $0xd90] sm:$0xff]  ;;  %4973 = vmatpush.msrb.mxu3 %v3066_v55  ;;  %v11564_v43 = vld [vmem:[#allocation165_spill] sm:$0xff]  ;;  %v4022_v12 = vsel %vm3631_vm6, %v4021_v51, %v4020_v3 }
 0x57c   :  { %v9842_v19 = vsel %vm11562_vm10, %v4521_v47, %v9702_v21  ;;  %4929 = vmatpush.msrb.mxu1 %v3010_v18  ;;  %v3064_v21 = vld [vmem:[%s11092_s1 + $0xf40] sm:$0xff]  ;;  %4914 = vmatpush.msrb.mxu0 %v2968_v42  ;;  %v2264_v23 = vmul.f32 0.0625, %v11564_v43  ;;  %v2265_v47 = vmul.f32 0.0625, %v11565_v60  ;;  %v2659_v18 = vld [vmem:[%s11092_s1 + $0x298] sm:$0xff]  ;;  %v2962_v42 = vld [vmem:[%s11092_s1 + $0xc10] sm:$0xff] }
 0x57d   :  { %5026 = vmatpush.msra.mxu2 %v2665_v36  ;;  %4974 = vmatpush.msrb.mxu3 %v3064_v21  ;;  %v2964_v11 = vld [vmem:[%s11092_s1 + $0xc20] sm:$0xff]  ;;  %v2266_v21 = vmul.f32 0.0625, %v11566_v30  ;;  %v2607_v43 = vld [vmem:[%s11092_s1 + $0xf8] sm:$0xff]  ;;  %v11569_v60 = vld [vmem:[#allocation194_spill] sm:$0xff] }
 0x57e   :  { %v1943_v22 = vpop.xlane.xlu2 %1942  ;;  %v9860_v46 = vpop.xlane.xlu1 %1900  ;;  %4930 = vmatpush.msrb.mxu1 %v3008_v40  ;;  %4915 = vmatpush.msrb.mxu0 %v2966_v25  ;;  %v3004_v55 = vld [vmem:[%s11092_s1 + $0xd60] sm:$0xff]  ;;  %v4025_v53 = vperm.slane %v2264_v23, %v7222_v39  ;;  %v4027_v40 = vperm.slane %v2265_v47, %v7232_v62  ;;  %v2655_v23 = vld [vmem:[%s11092_s1 + $0x278] sm:$0xff]  ;;  %v2289_v47 = vmul.f32 0.0625, %v11569_v60 }
 0x57f   :  { %v2535_v57 = vmul.f32 0.0625, %v1943_v22  ;;  %v9868_v63 = vpop.xlane.xlu0 %2041  ;;  %5027 = vmatpush.msra.mxu2 %v2663_v41  ;;  %4975 = vmatpush.msrb.mxu3 %v3062_v1  ;;  %v2960_v51 = vld [vmem:[%s11092_s1 + $0xc00] sm:$0xff]  ;;  %v4024_v22 = vsel %vm3635_vm7, %v4023_v9, %v4022_v12 }
 0x580   :  { %4931 = vmatpush.msrb.mxu1 %v3006_v56  ;;  %4916 = vmatpush.msrb.mxu0 %v2964_v11  ;;  %v3056_v41 = vld [vmem:[%s11092_s1 + $0xf00] sm:$0xff]  ;;  %v2703_v11 = vld [vmem:[%s11092_s1 + $0x3f8] sm:$0xff]  ;;  %v4026_v12 = vsel %vm11551_vm9, %v4025_v53, %v4024_v22  ;;  %v2701_v53 = vld [vmem:[%s11092_s1 + $0x3e8] sm:$0xff] }
 0x581   :  { %v4550_v35 = vperm.slane %v2535_v57, %v7212_v49  ;;  %5028 = vmatpush.msra.mxu2 %v2661_v6  ;;  %4976 = vmatpush.msrb.mxu3 %v3060_v37  ;;  %v3000_v1 = vld [vmem:[%s11092_s1 + $0xd40] sm:$0xff]  ;;  %v4029_v37 = vperm.slane %v2266_v21, %v7250_v2 }
 0x582   :  { %4932 = vmatpush.msrb.mxu1 %v3004_v55  ;;  %4917 = vmatpush.msrb.mxu0 %v2962_v42  ;;  %v11567_v56 = vld [vmem:[#allocation168_spill] sm:$0xff]  ;;  %v11568_v9 = vld [vmem:[#allocation189_spill] sm:$0xff]  ;;  %v2998_v55 = vld [vmem:[%s11092_s1 + $0xd30] sm:$0xff] }
 0x583   :  { %v9901_v36 = vsel %vm3635_vm7, %v4550_v35, %v4549_v15  ;;  %5029 = vmatpush.msra.mxu2 %v2659_v18  ;;  %v3002_v15 = vld [vmem:[%s11092_s1 + $0xd50] sm:$0xff]  ;;  %4977 = vmatpush.msrb.mxu3 %v3058_v0  ;;  %v2267_v6 = vmul.f32 0.0625, %v11567_v56  ;;  %v2288_v3 = vmul.f32 0.0625, %v11568_v9  ;;  %v2605_v18 = vld [vmem:[%s11092_s1 + $0xe8] sm:$0xff]  ;;  %v4028_v0 = vsel %vm11570_vm0, %v4027_v40, %v4026_v12  ;;  %v11576_v12 = vld [vmem:[#allocation192_spill] sm:$0xff] }
 0x584   :  { %4933 = vmatpush.msrb.mxu1 %v3002_v15  ;;  %4918 = vmatpush.msrb.mxu0 %v2960_v51  ;;  %v2653_v42 = vld [vmem:[%s11092_s1 + $0x268] sm:$0xff]  ;;  %v2996_v15 = vld [vmem:[%s11092_s1 + $0xd20] sm:$0xff]  ;;  %v2651_v51 = vld [vmem:[%s11092_s1 + $0x258] sm:$0xff] }
 0x585   :  { %5030 = vmatpush.msra.mxu2 %v2657_v5  ;;  %4978 = vmatpush.msrb.mxu3 %v3056_v41  ;;  %v11571_v30 = vld [vmem:[#allocation193_spill] sm:$0xff]  ;;  %v2603_v5 = vld [vmem:[%s11092_s1 + $0xd8] sm:$0xff]  ;;  %v4031_v22 = vperm.slane %v2267_v6, %v7264_v61  ;;  %v4072_v40 = vperm.slane %v2288_v3, %v7124_v44  ;;  %v4073_v41 = vperm.slane %v2289_v47, %v7131_v24  ;;  %v2994_v6 = vld [vmem:[%s11092_s1 + $0xd10] sm:$0xff] }
 0x586   :  { %v9925_v57 = vpop.xlane.xlu2 %1903  ;;  %v9927_v25 = vpop.xlane.xlu1 %2044  ;;  %4934 = vmatpush.msrb.mxu1 %v3000_v1  ;;  %4983 = vmatpush.msra.mxu0 %v2607_v43  ;;  %v9962_v21 = vmul.f32 0.0625, %v11571_v30  ;;  %v2699_v1 = vld [vmem:[%s11092_s1 + $0x3d8] sm:$0xff]  ;;  %v4030_v43 = vsel %vm11572_vm8, %v4029_v37, %v4028_v0  ;;  %v2601_v3 = vld [vmem:[%s11092_s1 + $0xc8] sm:$0xff] }
 0x587   :  { %v9941_v35 = vpop.xlane.xlu0 %2002  ;;  %5031 = vmatpush.msra.mxu2 %v2655_v23  ;;  %5043 = vmatpush.msra.mxu3 %v2703_v11  ;;  %v11573_v23 = vld [vmem:[#allocation174_spill] sm:$0xff]  ;;  %v11574_v9 = vld [vmem:[#allocation175_spill] sm:$0xff]  ;;  %v11578_v30 = vld [vmem:[#allocation197_spill] sm:$0xff] }
 0x588   :  { %4935 = vmatpush.msrb.mxu1 %v2998_v55  ;;  %4984 = vmatpush.msra.mxu0 %v2605_v18  ;;  %v9981_v56 = vmul.f32 0.0625, %v11573_v23  ;;  %v9984_v60 = vmul.f32 0.0625, %v11574_v9  ;;  %v2649_v47 = vld [vmem:[%s11092_s1 + $0x248] sm:$0xff]  ;;  %v11575_v11 = vld [vmem:[#allocation179_spill] sm:$0xff]  ;;  %v9999_v55 = vmul.f32 0.0625, %v11576_v12  ;;  %v10026_v9 = vsel %vm3651_vm11, %v4031_v22, %v4030_v43  ;;  %v11579_v12 = vld [vmem:[#allocation208_spill] sm:$0xff] }
 0x589   :  { %5032 = vmatpush.msra.mxu2 %v2653_v42  ;;  %5044 = vmatpush.msra.mxu3 %v2701_v53  ;;  %v9996_v37 = vmul.f32 0.0625, %v11575_v11  ;;  %v2697_v18 = vld [vmem:[%s11092_s1 + $0x3c8] sm:$0xff]  ;;  %v11577_v42 = vld [vmem:[#allocation171_spill] sm:$0xff]  ;;  %v4075_v53 = vperm.slane %v9962_v21, %v7148_v32  ;;  %v4074_v11 = vsel %vm3611_vm1, %v4073_v41, %v4072_v40 }
 0x58a   :  { %4936 = vmatpush.msrb.mxu1 %v2996_v15  ;;  %4985 = vmatpush.msra.mxu0 %v2603_v5  ;;  %v10005_v0 = vmul.f32 0.0625, %v11577_v42  ;;  %v10010_v15 = vmul.f32 0.0625, %v11578_v30  ;;  %v2647_v21 = vld [vmem:[%s11092_s1 + $0x238] sm:$0xff]  ;;  %v11581_v43 = vld [vmem:[#allocation173_spill] sm:$0xff]  ;;  %v4042_v41 = vperm.slane %v9981_v56, %v7131_v24 }
 0x58b   :  { %5033 = vmatpush.msra.mxu2 %v2651_v51  ;;  %5045 = vmatpush.msra.mxu3 %v2699_v1  ;;  %v2992_v51 = vld [vmem:[%s11092_s1 + $0xd00] sm:$0xff]  ;;  %v2599_v1 = vld [vmem:[%s11092_s1 + $0xb8] sm:$0xff]  ;;  %v10044_v40 = vmul.f32 0.0625, %v11581_v43  ;;  %v2645_v43 = vld [vmem:[%s11092_s1 + $0x228] sm:$0xff]  ;;  %v4076_v4 = vsel %vm3615_vm2, %v4075_v53, %v4074_v11 }
 0x58c   :  { %4937 = vmatpush.msrb.mxu1 %v2994_v6  ;;  %4986 = vmatpush.msra.mxu0 %v2601_v3  ;;  %v10030_v6 = vmul.f32 0.0625, %v11579_v12  ;;  %v11580_v3 = vld [vmem:[#allocation209_spill] sm:$0xff]  ;;  %v2639_v22 = vld [vmem:[%s11092_s1 + $0x1f8] sm:$0xff]  ;;  %v4041_v12 = vperm.slane %v9984_v60, %v7124_v44  ;;  %v4044_v60 = vperm.slane %v9996_v37, %v7148_v32  ;;  %v4079_v37 = vperm.slane %v10010_v15, %v7181_v26 }
 0x58d   :  { %v10033_v42 = vmul.f32 0.0625, %v11580_v3  ;;  %5034 = vmatpush.msra.mxu2 %v2649_v47  ;;  %5046 = vmatpush.msra.mxu3 %v2697_v18  ;;  %v11582_v3 = vld [vmem:[#allocation178_spill] sm:$0xff]  ;;  %v2691_v53 = vld [vmem:[%s11092_s1 + $0x398] sm:$0xff]  ;;  %v4033_v10 = vperm.slane %v10044_v40, %v7274_v29 }
 0x58e   :  { %v10012_v5 = vpop.xlane.xlu2 %2047  ;;  %v10014_v23 = vpop.xlane.xlu1 %2005  ;;  %v10051_v47 = vmul.f32 0.0625, %v11582_v3  ;;  %4938 = vmatpush.msrb.mxu1 %v2992_v51  ;;  %4987 = vmatpush.msra.mxu0 %v2599_v1  ;;  %v2597_v18 = vld [vmem:[%s11092_s1 + $0xa8] sm:$0xff]  ;;  %v4077_v51 = vperm.slane %v9999_v55, %v7162_v14  ;;  %v11584_v1 = vld [vmem:[#allocation196_spill] sm:$0xff]  ;;  %v4104_v28 = vperm.slane %v10030_v6, %v7131_v24  ;;  %v11588_v6 = vld [vmem:[#allocation195_spill] sm:$0xff] }
 0x58f   :  { %v10035_v30 = vpop.xlane.xlu0 %1945  ;;  %v2693_v56 = vld [vmem:[%s11092_s1 + $0x3a8] sm:$0xff]  ;;  %v10070_v3 = vmul.f32 0.0625, %v11584_v1  ;;  %5035 = vmatpush.msra.mxu2 %v2647_v21  ;;  %5047 = vmatpush.msra.mxu3 %v2695_v17  ;;  %v2595_v17 = vld [vmem:[%s11092_s1 + $0x98] sm:$0xff]  ;;  %v4103_v15 = vperm.slane %v10033_v42, %v7124_v44  ;;  %v2294_v8 = vmul.f32 0.0625, %v11588_v6 }
 0x590   :  { %5003 = vmatpush.msra.mxu1 %v2639_v22  ;;  %4988 = vmatpush.msra.mxu0 %v2597_v18  ;;  %v2643_v55 = vld [vmem:[%s11092_s1 + $0x218] sm:$0xff]  ;;  %v11586_v21 = vld [vmem:[#allocation177_spill] sm:$0xff]  ;;  %v4046_v24 = vperm.slane %v10051_v47, %v7162_v14 }
 0x591   :  { %v10093_v11 = vmul.f32 0.0625, %v11586_v21  ;;  %v11587_v22 = vld [vmem:[#allocation212_spill] sm:$0xff]  ;;  %5036 = vmatpush.msra.mxu2 %v2645_v43  ;;  %5048 = vmatpush.msra.mxu3 %v2693_v56  ;;  %v4043_v21 = vsel %vm3611_vm1, %v4042_v41, %v4041_v12  ;;  %v2593_v44 = vld [vmem:[%s11092_s1 + $0x88] sm:$0xff]  ;;  %v4081_v12 = vperm.slane %v10070_v3, %v7184_v31 }
 0x592   :  { %v10100_v18 = vmul.f32 0.0625, %v11587_v22  ;;  %v2635_v1 = vld [vmem:[%s11092_s1 + $0x1d8] sm:$0xff]  ;;  %5004 = vmatpush.msra.mxu1 %v2637_v20  ;;  %4989 = vmatpush.msra.mxu0 %v2595_v17  ;;  %v2641_v42 = vld [vmem:[%s11092_s1 + $0x208] sm:$0xff]  ;;  %v4045_v41 = vsel %vm3615_vm2, %v4044_v60, %v4043_v21  ;;  %v4078_v20 = vsel %vm3619_vm3, %v4077_v51, %v4076_v4  ;;  %v4106_v60 = vperm.slane %v10081_v45, %v7148_v32 }
 0x593   :  { %v2689_v40 = vld [vmem:[%s11092_s1 + $0x388] sm:$0xff]  ;;  %v11589_v47 = vld [vmem:[#allocation200_spill] sm:$0xff]  ;;  %5037 = vmatpush.msra.mxu2 %v2643_v55  ;;  %5049 = vmatpush.msra.mxu3 %v2691_v53  ;;  %v4080_v6 = vsel %vm3623_vm4, %v4079_v37, %v4078_v20  ;;  %v11591_v21 = vld [vmem:[#allocation211_spill] sm:$0xff]  ;;  %v4048_v37 = vperm.slane %v10093_v11, %v7181_v26  ;;  %v4105_v32 = vsel %vm3611_vm1, %v4104_v28, %v4103_v15  ;;  %vm11596_vm1 = vcmask 851712  }
 0x594   :  { %v2295_v43 = vmul.f32 0.0625, %v11589_v47  ;;  %v2633_v56 = vld [vmem:[%s11092_s1 + $0x1c8] sm:$0xff]  ;;  %v2308_v54 = vmul.f32 0.0625, %v11591_v21  ;;  %5005 = vmatpush.msra.mxu1 %v2635_v1  ;;  %4990 = vmatpush.msra.mxu0 %v2593_v44  ;;  %v2591_v4 = vld [vmem:[%s11092_s1 + $0x78] sm:$0xff]  ;;  %v4108_v45 = vperm.slane %v10100_v18, %v7162_v14  ;;  %v4035_v44 = vperm.slane %v10063_v27, %v7293_v58 }
 0x595   :  { %v11590_v17 = vld [vmem:[#allocation182_spill] sm:$0xff]  ;;  %v2687_v55 = vld [vmem:[%s11092_s1 + $0x378] sm:$0xff]  ;;  %5038 = vmatpush.msra.mxu2 %v2641_v42  ;;  %5050 = vmatpush.msra.mxu3 %v2689_v40  ;;  %v4047_v20 = vsel %vm3619_vm3, %v4046_v24, %v4045_v41  ;;  %v4083_v11 = vperm.slane %v2294_v8, %v7196_v52  ;;  %v11593_v18 = vld [vmem:[#allocation181_spill] sm:$0xff]  ;;  %v4082_v27 = vsel %vm3627_vm5, %v4081_v12, %v4080_v6 }
 0x596   :  { %v2277_v22 = vmul.f32 0.0625, %v11590_v17  ;;  %v10133_v3 = vpop.xlane.xlu2 %2008  ;;  %v10135_v51 = vpop.xlane.xlu1 %1948  ;;  %v2631_v1 = vld [vmem:[%s11092_s1 + $0x1b8] sm:$0xff]  ;;  %5006 = vmatpush.msra.mxu1 %v2633_v56  ;;  %4991 = vmatpush.msra.mxu0 %v2591_v4  ;;  %v2589_v14 = vld [vmem:[%s11092_s1 + $0x68] sm:$0xff]  ;;  %v2278_v42 = vmul.f32 0.0625, %v11593_v18  ;;  %v4085_v24 = vperm.slane %v2295_v43, %v7212_v49  ;;  %v4110_v17 = vperm.slane %v2308_v54, %v7181_v26 }
 0x597   :  { %v10148_v53 = vpop.xlane.xlu0 %1906  ;;  %v11592_v47 = vld [vmem:[#allocation199_spill] sm:$0xff]  ;;  %v2685_v15 = vld [vmem:[%s11092_s1 + $0x368] sm:$0xff]  ;;  %5051 = vmatpush.msra.mxu3 %v2687_v55  ;;  %v4107_v21 = vsel %vm3615_vm2, %v4106_v60, %v4105_v32  ;;  %v4034_v6 = vsel %vm11596_vm1, %v4033_v10, %v10026_v9  ;;  %v11598_v32 = vld [vmem:[#allocation180_spill] sm:$0xff]  ;;  %v4084_v18 = vsel %vm3631_vm6, %v4083_v11, %v4082_v27 }
 0x598   :  { %v2296_v28 = vmul.f32 0.0625, %v11592_v47  ;;  %v11594_v40 = vld [vmem:[#allocation210_spill] sm:$0xff]  ;;  %v4050_v56 = vperm.slane %v2277_v22, %v7184_v31  ;;  %v11595_v4 = vld [vmem:[#allocation215_spill] sm:$0xff]  ;;  %5007 = vmatpush.msra.mxu1 %v2631_v1  ;;  %4992 = vmatpush.msra.mxu0 %v2589_v14  ;;  %v4049_v22 = vsel %vm3623_vm4, %v4048_v37, %v4047_v20  ;;  %v4109_v60 = vsel %vm3619_vm3, %v4108_v45, %v4107_v21  ;;  %vm11603_vm2 = vmmov %vm11551_vm9 }
 0x599   :  { %v2309_v8 = vmul.f32 0.0625, %v11594_v40  ;;  %v2629_v41 = vld [vmem:[%s11092_s1 + $0x1a8] sm:$0xff]  ;;  %v2310_v47 = vmul.f32 0.0625, %v11595_v4  ;;  %v2587_v12 = vld [vmem:[%s11092_s1 + $0x58] sm:$0xff]  ;;  %5052 = vmatpush.msra.mxu3 %v2685_v15  ;;  %v2279_v1 = vmul.f32 0.0625, %v11598_v32  ;;  %v4052_v37 = vperm.slane %v2278_v42, %v7196_v52  ;;  %vm11609_vm3 = vmmov %vm11570_vm0 }
 0x59a   :  { %v2683_v43 = vld [vmem:[%s11092_s1 + $0x358] sm:$0xff]  ;;  %v11597_v26 = vld [vmem:[#allocation198_spill] sm:$0xff]  ;;  %v4087_v14 = vperm.slane %v2296_v28, %v7222_v39  ;;  %5008 = vmatpush.msra.mxu1 %v2629_v41  ;;  %4993 = vmatpush.msra.mxu0 %v2587_v12  ;;  %v4086_v45 = vsel %vm3635_vm7, %v4085_v24, %v4084_v18  ;;  %v4051_v27 = vsel %vm3627_vm5, %v4050_v56, %v4049_v22  ;;  %v11604_v18 = vld [vmem:[#allocation213_spill] sm:$0xff] }
 0x59b   :  { %v2297_v54 = vmul.f32 0.0625, %v11597_v26  ;;  %v2627_v55 = vld [vmem:[%s11092_s1 + $0x198] sm:$0xff]  ;;  %v2585_v10 = vld [vmem:[%s11092_s1 + $0x48] sm:$0xff]  ;;  %v4112_v20 = vperm.slane %v2309_v8, %v7184_v31  ;;  %5053 = vmatpush.msra.mxu3 %v2683_v43  ;;  %v4111_v41 = vsel %vm3623_vm4, %v4110_v17, %v4109_v60  ;;  %v4114_v21 = vperm.slane %v2310_v47, %v7196_v52  ;;  %vm11610_vm4 = vmmov %vm11572_vm8 }
 0x59c   :  { %v11599_v40 = vld [vmem:[#allocation203_spill] sm:$0xff]  ;;  %v2681_v9 = vld [vmem:[%s11092_s1 + $0x348] sm:$0xff]  ;;  %5009 = vmatpush.msra.mxu1 %v2627_v55  ;;  %4994 = vmatpush.msra.mxu0 %v2585_v10  ;;  %v11601_v8 = vld [vmem:[#allocation176_spill] sm:$0xff]  ;;  %v4036_v26 = vsel %vm3659_vm13, %v4035_v44, %v4034_v6  ;;  %v4054_v60 = vperm.slane %v2279_v1, %v7212_v49  ;;  %v4088_v55 = vsel %vm11603_vm2, %v4087_v14, %v4086_v45 }
 0x59d   :  { %v2298_v4 = vmul.f32 0.0625, %v11599_v40  ;;  %v11600_v28 = vld [vmem:[#allocation214_spill] sm:$0xff]  ;;  %v2583_v31 = vld [vmem:[%s11092_s1 + $0x38] sm:$0xff]  ;;  %v10220_v56 = vmul.f32 0.0625, %v11601_v8  ;;  %v4089_v17 = vperm.slane %v2297_v54, %v7232_v62  ;;  %5054 = vmatpush.msra.mxu3 %v2681_v9  ;;  %v2312_v40 = vmul.f32 0.0625, %v11604_v18  ;;  %vm11623_vm10 = vmmov %vm11610_vm4 }
 0x59e   :  { %v2311_v11 = vmul.f32 0.0625, %v11600_v28  ;;  %v2625_v15 = vld [vmem:[%s11092_s1 + $0x188] sm:$0xff]  ;;  %v10209_v12 = vpop.xlane.xlu2 %1951  ;;  %v10211_v42 = vpop.xlane.xlu1 %1909  ;;  %v2679_v24 = vld [vmem:[%s11092_s1 + $0x338] sm:$0xff]  ;;  %4995 = vmatpush.msra.mxu0 %v2583_v31  ;;  %v4053_v44 = vsel %vm3631_vm6, %v4052_v37, %v4051_v27  ;;  %v4113_v1 = vsel %vm3627_vm5, %v4112_v20, %v4111_v41  ;;  %v11607_v20 = vperm.slane %v10005_v0, %v7312_v7  ;;  %vm11617_vm5 = vmmov %vm11603_vm2 }
 0x59f   :  { %v11602_v52 = vld [vmem:[#allocation202_spill] sm:$0xff]  ;;  %v10224_v43 = vpop.xlane.xlu0 %2050  ;;  %v2623_v22 = vld [vmem:[%s11092_s1 + $0x178] sm:$0xff]  ;;  %v4091_v32 = vperm.slane %v2298_v4, %v7250_v2  ;;  %5010 = vmatpush.msra.mxu1 %v2625_v15  ;;  %5055 = vmatpush.msra.mxu3 %v2679_v24  ;;  %v4115_v45 = vsel %vm3631_vm6, %v4114_v21, %v4113_v1  ;;  %v4039_v27 = vperm.slane %v10220_v56, %v7316_v38  ;;  %v11608_v41 = vld [vmem:[#allocation201_spill] sm:$0xff] }
 0x5a0   :  { %v2299_v47 = vmul.f32 0.0625, %v11602_v52  ;;  %v2581_v54 = vld [vmem:[%s11092_s1 + $0x28] sm:$0xff]  ;;  %v4116_v6 = vperm.slane %v2311_v11, %v7212_v49  ;;  %v11605_v4 = vld [vmem:[#allocation184_spill] sm:$0xff]  ;;  %v10261_v11 = vsel %vm3663_vm14, %v11607_v20, %v4036_v26  ;;  %v2300_v21 = vmul.f32 0.0625, %v11608_v41  ;;  %vm11619_vm6 = vmmov %vm11570_vm0 }
 0x5a1   :  { %v2677_v10 = vld [vmem:[%s11092_s1 + $0x328] sm:$0xff]  ;;  %v10247_v9 = vmul.f32 0.0625, %v11605_v4  ;;  %5011 = vmatpush.msra.mxu1 %v2623_v22  ;;  %4996 = vmatpush.msra.mxu0 %v2581_v54  ;;  %v2579_v49 = vld [vmem:[%s11092_s1 + $0x18] sm:$0xff]  ;;  %v4090_v24 = vsel %vm11609_vm3, %v4089_v17, %v4088_v55  ;;  %v4055_v52 = vsel %vm3635_vm7, %v4054_v60, %v4053_v44  ;;  %v4118_v18 = vperm.slane %v2312_v40, %v7222_v39  ;;  %vm11624_vm9 = vmmov %vm11570_vm0 }
 0x5a2   :  { %v2621_v14 = vld [vmem:[%s11092_s1 + $0x168] sm:$0xff]  ;;  %v2675_v37 = vld [vmem:[%s11092_s1 + $0x318] sm:$0xff]  ;;  %v4093_v31 = vperm.slane %v2299_v47, %v7264_v61  ;;  %5056 = vmatpush.msra.mxu3 %v2677_v10  ;;  %v4092_v0 = vsel %vm11610_vm4, %v4091_v32, %v4090_v24  ;;  %v4117_v60 = vsel %vm3635_vm7, %v4116_v6, %v4115_v45  ;;  %v2553_v44 = vmul.f32 0.0625, %v9730_v13  ;;  %vm11621_vm7 = vmmov %vm11596_vm1 }
 0x5a3   :  { %v11606_v28 = vld [vmem:[#allocation218_spill] sm:$0xff]  ;;  %v2619_v8 = vld [vmem:[%s11092_s1 + $0x158] sm:$0xff]  ;;  %5012 = vmatpush.msra.mxu1 %v2621_v14  ;;  %4997 = vmatpush.msra.mxu0 %v2579_v49  ;;  %v11613_v32 = vld [vmem:[#allocation217_spill] sm:$0xff]  ;;  %v4058_v1 = vperm.slane %v10247_v9, %v7232_v62  ;;  %v2554_v49 = vmul.f32 0.0625, %v9792_v50  ;;  %v4095_v13 = vperm.slane %v2300_v21, %v7274_v29  ;;  %v2555_v24 = vmul.f32 0.0625, %v9941_v35 }
 0x5a4   :  { %v2313_v15 = vmul.f32 0.0625, %v11606_v28  ;;  %v11611_v22 = vld [vmem:[#allocation206_spill] sm:$0xff]  ;;  %v11612_v55 = vld [vmem:[#allocation183_spill] sm:$0xff]  ;;  %v2314_v10 = vmul.f32 0.0625, %v11613_v32  ;;  %5057 = vmatpush.msra.mxu3 %v2675_v37  ;;  %v11614_v14 = vld [vmem:[#allocation185_spill] sm:$0xff]  ;;  %v4094_v45 = vsel %vm3651_vm11, %v4093_v31, %v4092_v0  ;;  %v4119_v32 = vsel %vm11617_vm5, %v4118_v18, %v4117_v60 }
 0x5a5   :  { %v2301_v26 = vmul.f32 0.0625, %v11611_v22  ;;  %v2577_v47 = vld [vmem:[%s11092_s1 + $0x8] sm:$0xff]  ;;  %v10282_v54 = vmul.f32 0.0625, %v11612_v55  ;;  %v2280_v4 = vmul.f32 0.0625, %v11614_v14  ;;  %5013 = vmatpush.msra.mxu1 %v2619_v8  ;;  %v11616_v55 = vld [vmem:[#allocation216_spill] sm:$0xff]  ;;  %v2556_v14 = vmul.f32 0.0625, %v10014_v23  ;;  %vm11625_vm0 = vmmov %vm11603_vm2 }
 0x5a6   :  { %v2673_v17 = vld [vmem:[%s11092_s1 + $0x308] sm:$0xff]  ;;  %v4120_v28 = vperm.slane %v2313_v15, %v7232_v62  ;;  %v10295_v20 = vpop.xlane.xlu2 %1912  ;;  %v10297_v6 = vpop.xlane.xlu1 %2053  ;;  %4998 = vmatpush.msra.mxu0 %v2577_v47  ;;  %v2315_v50 = vmul.f32 0.0625, %v11616_v55  ;;  %v2615_v21 = vld [vmem:[%s11092_s1 + $0x138] sm:$0xff]  ;;  %v4122_v31 = vperm.slane %v2314_v10, %v7250_v2  ;;  %v4585_v35 = vperm.slane %v2553_v44, %v7232_v62  ;;  %vm11627_vm8 = vmmov %vm11610_vm4 }
 0x5a7   :  { %v2617_v40 = vld [vmem:[%s11092_s1 + $0x148] sm:$0xff]  ;;  %v2012_v22 = vpop.xlane.xlu0 %2011  ;;  %5058 = vmatpush.msra.mxu3 %v2673_v17  ;;  %v4097_v15 = vperm.slane %v2301_v26, %v7293_v58  ;;  %v2557_v47 = vmul.f32 0.0625, %v10133_v3  ;;  %v4056_v26 = vperm.slane %v2280_v4, %v7222_v39  ;;  %v4587_v18 = vperm.slane %v2554_v49, %v7250_v2  ;;  %v11622_v55 = vld [vmem:[#allocation220_spill] sm:$0xff]  ;;  %vm11629_vm2 = vmmov %vm11596_vm1 }
 0x5a8   :  { %v11615_v37 = vld [vmem:[#allocation205_spill] sm:$0xff]  ;;  %5014 = vmatpush.msra.mxu1 %v2617_v40  ;;  %v4121_v17 = vsel %vm11619_vm6, %v4120_v28, %v4119_v32  ;;  %v2558_v23 = vmul.f32 0.0625, %v2012_v22  ;;  %v11620_v40 = vld [vmem:[#allocation204_spill] sm:$0xff]  ;;  %v4096_v44 = vsel %vm11621_vm7, %v4095_v13, %v4094_v45  ;;  %v4589_v3 = vperm.slane %v2555_v24, %v7264_v61  ;;  %vm11634_vm5 = vmmov %vm11609_vm3 }
 0x5a9   :  { %v2302_v41 = vmul.f32 0.0625, %v11615_v37  ;;  %v11618_v8 = vld [vmem:[#allocation221_spill] sm:$0xff]  ;;  %v2303_v10 = vmul.f32 0.0625, %v11620_v40  ;;  %v4098_v4 = vsel %vm3659_vm13, %v4097_v15, %v4096_v44  ;;  %v4124_v28 = vperm.slane %v2315_v50, %v7264_v61  ;;  %v2611_v32 = vld [vmem:[%s11092_s1 + $0x118] sm:$0xff]  ;;  %vm11635_vm6 = vmmov %vm11625_vm0 }
 0x5aa   :  { %v2316_v0 = vmul.f32 0.0625, %v11618_v8  ;;  %5015 = vmatpush.msra.mxu1 %v2615_v21  ;;  %v2613_v60 = vld [vmem:[%s11092_s1 + $0x128] sm:$0xff]  ;;  %v2317_v49 = vmul.f32 0.0625, %v11622_v55  ;;  %v4591_v22 = vperm.slane %v2556_v14, %v7274_v29  ;;  %v4123_v21 = vsel %vm11623_vm10, %v4122_v31, %v4121_v17  ;;  %v11626_v15 = vld [vmem:[#allocation188_spill] sm:$0xff]  ;;  %vm11636_vm7 = vmmov %vm11610_vm4 }
 0x5ab   :  { %v4099_v37 = vperm.slane %v2302_v41, %v7312_v7  ;;  %v4586_v13 = vsel %vm11624_vm9, %v4585_v35, %v9654_v33  ;;  %v4593_v45 = vperm.slane %v2557_v47, %v7293_v58  ;;  %v4057_v24 = vsel %vm11625_vm0, %v4056_v26, %v4055_v52  ;;  %v2609_v31 = vld [vmem:[%s11092_s1 + $0x108] sm:$0xff]  ;;  %v11628_v33 = vld [vmem:[#allocation219_spill] sm:$0xff]  ;;  %vm11637_vm10 = vmmov %vm11609_vm3 }
 0x5ac   :  { %5016 = vmatpush.msra.mxu1 %v2613_v60  ;;  %v4126_v41 = vperm.slane %v2316_v0, %v7274_v29  ;;  %v2283_v50 = vmul.f32 0.0625, %v11626_v15  ;;  %v4588_v14 = vsel %vm11627_vm8, %v4587_v18, %v4586_v13  ;;  %v4595_v8 = vperm.slane %v2558_v23, %v7312_v7  ;;  %v2799_v9 = vld [vmem:[%s11092_s1 + $0x6f8] sm:$0xff]  ;;  %vm11638_vm9 = vmmov %vm11610_vm4 }
 0x5ad   :  { %v4101_v0 = vperm.slane %v2303_v10, %v7316_v38  ;;  %v2318_v35 = vmul.f32 0.0625, %v11628_v33  ;;  %v4590_v47 = vsel %vm3651_vm11, %v4589_v3, %v4588_v14  ;;  %v4128_v17 = vperm.slane %v2317_v49, %v7293_v58  ;;  %vm11639_vm0 = vmmov %vm11596_vm1 }
 0x5ae   :  { %v2057_v60 = vpop.xlane.xlu2 %2056  ;;  %v2015_v40 = vpop.xlane.xlu1 %2014  ;;  %5017 = vmatpush.msra.mxu1 %v2611_v32  ;;  %v4125_v18 = vsel %vm3651_vm11, %v4124_v28, %v4123_v21  ;;  %v4592_v23 = vsel %vm11596_vm1, %v4591_v22, %v4590_v47  ;;  %v4100_v44 = vsel %vm3663_vm14, %v4099_v37, %v4098_v4  ;;  %v4060_v55 = vperm.slane %v10282_v54, %v7250_v2  ;;  %v11630_v28 = vld [vmem:[#allocation187_spill] sm:$0xff]  ;;  %v11631_v22 = vld [vmem:[#allocation222_spill] sm:$0xff]  ;;  %vm11640_vm8 = vmmov %vm11639_vm0 }
 0x5af   :  { %v2559_v52 = vmul.f32 0.0625, %v2015_v40  ;;  %v10346_v26 = vpop.xlane.xlu0 %1954  ;;  %v4127_v10 = vsel %vm11629_vm2, %v4126_v41, %v4125_v18  ;;  %v4594_v32 = vsel %vm3659_vm13, %v4593_v45, %v4592_v23  ;;  %v4059_v49 = vsel %vm11609_vm3, %v4058_v1, %v4057_v24  ;;  %v2797_v40 = vld [vmem:[%s11092_s1 + $0x6e8] sm:$0xff]  ;;  %vm11641_vm1 = vmmov %vm11639_vm0 }
 0x5b0   :  { %5018 = vmatpush.msra.mxu1 %v2609_v31  ;;  %v10362_v21 = vmul.f32 0.0625, %v11630_v28  ;;  %v4062_v37 = vperm.slane %v2283_v50, %v7264_v61  ;;  %v4596_v4 = vsel %vm3663_vm14, %v4595_v8, %v4594_v32  ;;  %v4130_v54 = vperm.slane %v2318_v35, %v7312_v7  ;;  %vm11643_vm2 = vmmov %vm11635_vm6 }
 0x5b1   :  { %v4597_v3 = vperm.slane %v2559_v52, %v7316_v38  ;;  %v2319_v41 = vmul.f32 0.0625, %v11631_v22  ;;  %v4102_v13 = vsel %vm3667_vm15, %v4101_v0, %v4100_v44  ;;  %v2521_v1 = vmul.f32 0.0625, %v9860_v46  ;;  %v2795_v52 = vld [vmem:[%s11092_s1 + $0x6d8] sm:$0xff] }
 0x5b2   :  { %v2568_v24 = vmul.f32 0.0625, %v9868_v63  ;;  %v4129_v50 = vsel %vm3659_vm13, %v4128_v17, %v4127_v10  ;;  %v2522_v14 = vmul.f32 0.0625, %v9925_v57  ;;  %v2569_v8 = vmul.f32 0.0625, %v9927_v25  ;;  %v11632_v63 = vld [vmem:[#allocation186_spill] sm:$0xff] }
 0x5b3   :  { %v4598_v45 = vsel %vm3667_vm15, %v4597_v3, %v4596_v4  ;;  %v10390_v46 = vsel %vm3667_vm15, %v4039_v27, %v10261_v11  ;;  %v10393_v31 = vmul.f32 0.0625, %v11632_v63  ;;  %v4064_v57 = vperm.slane %v10362_v21, %v7274_v29  ;;  %v2793_v3 = vld [vmem:[%s11092_s1 + $0x6c8] sm:$0xff] }
 0x5b4   :  { %v10376_v15 = vsel %vm4630_vm12, %v4598_v45, %v4102_v13  ;;  %v4061_v25 = vsel %vm11610_vm4, %v4060_v55, %v4059_v49  ;;  %v2570_v0 = vmul.f32 0.0625, %v10012_v5  ;;  %v4132_v56 = vperm.slane %v2319_v41, %v7316_v38 }
 0x5b5   :  { %4959 = vmatmul.f32.vlgmr.msrb.gmra.mxu2 %v10376_v15  ;;  %v10402_v47 = vsel %vm3651_vm11, %v4062_v37, %v4061_v25  ;;  %v2571_v11 = vmul.f32 0.0625, %v10224_v43  ;;  %v4131_v17 = vsel %vm3663_vm14, %v4130_v54, %v4129_v50  ;;  %v4523_v5 = vperm.slane %v2521_v1, %v7232_v62  ;;  %v11633_v37 = vld [vmem:[#allocation191_spill] sm:$0xff] }
 0x5b6   :  { %5103 = vmatpush.msrb.mxu2 %v2799_v9  ;;  %v2060_v33 = vpop.xlane.xlu2 %2059  ;;  %v10399_v35 = vpop.xlane.xlu1 %1957  ;;  %v4614_v18 = vperm.slane %v2568_v24, %v7222_v39  ;;  %v2523_v23 = vmul.f32 0.0625, %v10148_v53  ;;  %v2572_v44 = vmul.f32 0.0625, %v10297_v6  ;;  %v4525_v55 = vperm.slane %v2522_v14, %v7250_v2 }
 0x5b7   :  { %v1916_v27 = vpop.xlane.xlu0 %1915  ;;  %v4616_v43 = vperm.slane %v2569_v8, %v7232_v62  ;;  %v2524_v10 = vmul.f32 0.0625, %v10211_v42  ;;  %v2573_v32 = vmul.f32 0.0625, %v2057_v60  ;;  %v4618_v49 = vperm.slane %v2570_v0, %v7250_v2  ;;  %v2791_v60 = vld [vmem:[%s11092_s1 + $0x6b8] sm:$0xff] }
 0x5b8   :  { %5104 = vmatpush.msrb.mxu2 %v2797_v40  ;;  %v10422_v28 = vmul.f32 0.0625, %v10035_v30  ;;  %v2525_v53 = vmul.f32 0.0625, %v10295_v20  ;;  %v2574_v6 = vmul.f32 0.0625, %v2060_v33  ;;  %v10426_v4 = vmul.f32 0.0625, %v11633_v37 }
 0x5b9   :  { %v4620_v54 = vperm.slane %v2571_v11, %v7264_v61  ;;  %v2526_v42 = vmul.f32 0.0625, %v1916_v27  ;;  %v4133_v22 = vsel %vm3667_vm15, %v4132_v56, %v4131_v17  ;;  %v4524_v30 = vsel %vm11634_vm5, %v4523_v5, %v9842_v19  ;;  %v2789_v19 = vld [vmem:[%s11092_s1 + $0x6a8] sm:$0xff]  ;;  %v2787_v11 = vld [vmem:[%s11092_s1 + $0x698] sm:$0xff]  ;;  %vm11644_vm5 = vmmov %vm11639_vm0 }
 0x5ba   :  { %5105 = vmatpush.msrb.mxu2 %v2795_v52  ;;  %v4615_v20 = vsel %vm11635_vm6, %v4614_v18, %v9765_v16  ;;  %v4527_v41 = vperm.slane %v2523_v23, %v7264_v61  ;;  %v4622_v13 = vperm.slane %v2572_v44, %v7274_v29  ;;  %v4526_v45 = vsel %vm11636_vm7, %v4525_v55, %v4524_v30  ;;  %v2785_v44 = vld [vmem:[%s11092_s1 + $0x688] sm:$0xff] }
 0x5bb   :  { %v4617_v9 = vsel %vm11637_vm10, %v4616_v43, %v4615_v20  ;;  %v4529_v1 = vperm.slane %v2524_v10, %v7274_v29  ;;  %v4624_v24 = vperm.slane %v2573_v32, %v7293_v58  ;;  %v4552_v50 = vperm.slane %v10422_v28, %v7222_v39  ;;  %v2783_v28 = vld [vmem:[%s11092_s1 + $0x678] sm:$0xff]  ;;  %v2781_v30 = vld [vmem:[%s11092_s1 + $0x668] sm:$0xff] }
 0x5bc   :  { %5106 = vmatpush.msrb.mxu2 %v2793_v3  ;;  %v4619_v16 = vsel %vm11638_vm9, %v4618_v49, %v4617_v9  ;;  %v4531_v14 = vperm.slane %v2525_v53, %v7293_v58  ;;  %v4626_v8 = vperm.slane %v2574_v6, %v7312_v7  ;;  %v2537_v25 = vmul.f32 0.0625, %v10135_v51 }
 0x5bd   :  { %5039 = vmatmul.f32.vlgmr.msra.gmra.mxu2 %v7762_v48  ;;  %v4621_v48 = vsel %vm3651_vm11, %v4620_v54, %v4619_v16  ;;  %v4533_v0 = vperm.slane %v2526_v42, %v7312_v7  ;;  %v4528_v39 = vsel %vm3651_vm11, %v4527_v41, %v4526_v45  ;;  %v2538_v27 = vmul.f32 0.0625, %v10209_v12  ;;  %v2831_v54 = vld [vmem:[%s11092_s1 + $0x7f8] sm:$0xff] }
 0x5be   :  { %5107 = vmatpush.msrb.mxu2 %v2791_v60  ;;  %v2063_v40 = vpop.xlane.xlu2 %2062  ;;  %v1961_v63 = vpop.xlane.xlu1 %1960  ;;  %v4623_v52 = vsel %vm11639_vm0, %v4622_v13, %v4621_v48  ;;  %v4530_v51 = vsel %vm11640_vm8, %v4529_v1, %v4528_v39  ;;  %v2539_v18 = vmul.f32 0.0625, %v10346_v26  ;;  %v2540_v43 = vmul.f32 0.0625, %v10399_v35  ;;  %v2779_v13 = vld [vmem:[%s11092_s1 + $0x658] sm:$0xff] }
 0x5bf   :  { %v2575_v33 = vmul.f32 0.0625, %v2063_v40  ;;  %v1919_v56 = vpop.xlane.xlu0 %1918  ;;  %v4625_v5 = vsel %vm3659_vm13, %v4624_v24, %v4623_v52  ;;  %v4532_v55 = vsel %vm3659_vm13, %v4531_v14, %v4530_v51  ;;  %v4554_v32 = vperm.slane %v2537_v25, %v7232_v62  ;;  %v2735_v62 = vld [vmem:[%s11092_s1 + $0x4f8] sm:$0xff]  ;;  %v2777_v14 = vld [vmem:[%s11092_s1 + $0x648] sm:$0xff] }
 0x5c0   :  { %v2527_v17 = vmul.f32 0.0625, %v1919_v56  ;;  %5108 = vmatpush.msrb.mxu2 %v2789_v19  ;;  %v4627_v12 = vsel %vm3663_vm14, %v4626_v8, %v4625_v5  ;;  %v4534_v3 = vsel %vm3663_vm14, %v4533_v0, %v4532_v55  ;;  %v2541_v26 = vmul.f32 0.0625, %v1961_v63  ;;  %v2731_v1 = vld [vmem:[%s11092_s1 + $0x4d8] sm:$0xff]  ;;  %v2729_v63 = vld [vmem:[%s11092_s1 + $0x4c8] sm:$0xff] }
 0x5c1   :  { %v4628_v23 = vperm.slane %v2575_v33, %v7316_v38  ;;  %v4066_v53 = vperm.slane %v10393_v31, %v7293_v58  ;;  %v4556_v6 = vperm.slane %v2538_v27, %v7250_v2  ;;  %v4065_v2 = vsel %vm11641_vm1, %v4064_v57, %v10402_v47  ;;  %v11642_v31 = vld [vmem:[#allocation190_spill] sm:$0xff]  ;;  %v2775_v33 = vld [vmem:[%s11092_s1 + $0x638] sm:$0xff] }
 0x5c2   :  { %v4535_v10 = vperm.slane %v2527_v17, %v7316_v38  ;;  %5109 = vmatpush.msrb.mxu2 %v2787_v11  ;;  %v2287_v42 = vmul.f32 0.0625, %v11642_v31  ;;  %v4558_v60 = vperm.slane %v2539_v18, %v7264_v61  ;;  %v4068_v20 = vperm.slane %v10426_v4, %v7312_v7  ;;  %v2829_v47 = vld [vmem:[%s11092_s1 + $0x7e8] sm:$0xff]  ;;  %v2823_v56 = vld [vmem:[%s11092_s1 + $0x7b8] sm:$0xff] }
 0x5c3   :  { %v4629_v49 = vsel %vm3667_vm15, %v4628_v23, %v4627_v12  ;;  %v4553_v21 = vsel %vm11643_vm2, %v4552_v50, %v9901_v36  ;;  %v4560_v57 = vperm.slane %v2540_v43, %v7274_v29  ;;  %v4562_v4 = vperm.slane %v2541_v26, %v7293_v58  ;;  %v2827_v58 = vld [vmem:[%s11092_s1 + $0x7d8] sm:$0xff]  ;;  %v2825_v25 = vld [vmem:[%s11092_s1 + $0x7c8] sm:$0xff] }
 0x5c4   :  { %5110 = vmatpush.msrb.mxu2 %v2785_v44  ;;  %v4536_v35 = vsel %vm3667_vm15, %v4535_v10, %v4534_v3  ;;  %v10483_v37 = vsel %vm4630_vm12, %v4629_v49, %v4133_v22  ;;  %v4555_v41 = vsel %vm11609_vm3, %v4554_v32, %v4553_v21  ;;  %v4067_v24 = vsel %vm3659_vm13, %v4066_v53, %v4065_v2  ;;  %v2767_v52 = vld [vmem:[%s11092_s1 + $0x5f8] sm:$0xff]  ;;  %v2725_v17 = vld [vmem:[%s11092_s1 + $0x4a8] sm:$0xff] }
 0x5c5   :  { %v10500_v22 = vsel %vm4630_vm12, %v4536_v35, %v10390_v46  ;;  %4979 = vmatmul.f32.vlgmr.msrb.gmra.mxu3 %v10483_v37  ;;  %v2733_v46 = vld [vmem:[%s11092_s1 + $0x4e8] sm:$0xff]  ;;  %v4557_v45 = vsel %vm11610_vm4, %v4556_v6, %v4555_v41  ;;  %v4070_v19 = vperm.slane %v2287_v42, %v7316_v38  ;;  %v2723_v5 = vld [vmem:[%s11092_s1 + $0x498] sm:$0xff] }
 0x5c6   :  { %4919 = vmatmul.f32.vlgmr.msrb.gmra.mxu0 %v10500_v22  ;;  %5111 = vmatpush.msrb.mxu2 %v2783_v28  ;;  %v1967_v61 = vpop.xlane.xlu1 %1966  ;;  %v4559_v16 = vsel %vm3651_vm11, %v4558_v60, %v4557_v45  ;;  %v2773_v51 = vld [vmem:[%s11092_s1 + $0x628] sm:$0xff]  ;;  %v2771_v18 = vld [vmem:[%s11092_s1 + $0x618] sm:$0xff]  ;;  %vm5306_vm11 = vcmask 1041408  }
 0x5c7   :  { %5063 = vmatpush.msrb.mxu0 %v2735_v62  ;;  %5123 = vmatpush.msrb.mxu3 %v2831_v54  ;;  %v1964_v36 = vpop.xlane.xlu0 %1963  ;;  %v2543_v29 = vmul.f32 0.0625, %v1967_v61  ;;  %v4561_v8 = vsel %vm11644_vm5, %v4560_v57, %v4559_v16  ;;  %v2819_v23 = vld [vmem:[%s11092_s1 + $0x798] sm:$0xff]  ;;  %v2721_v55 = vld [vmem:[%s11092_s1 + $0x488] sm:$0xff] }
 0x5c8   :  { %v2542_v9 = vmul.f32 0.0625, %v1964_v36  ;;  %5112 = vmatpush.msrb.mxu2 %v2781_v30  ;;  %v4563_v48 = vsel %vm3659_vm13, %v4562_v4, %v4561_v8  ;;  %v2763_v44 = vld [vmem:[%s11092_s1 + $0x5d8] sm:$0xff]  ;;  %v2769_v12 = vld [vmem:[%s11092_s1 + $0x608] sm:$0xff] }
 0x5c9   :  { %v4566_v50 = vperm.slane %v2543_v29, %v7316_v38  ;;  %5064 = vmatpush.msrb.mxu0 %v2733_v46  ;;  %5124 = vmatpush.msrb.mxu3 %v2829_v47  ;;  %v4069_v38 = vsel %vm3663_vm14, %v4068_v20, %v4067_v24  ;;  %v2817_v43 = vld [vmem:[%s11092_s1 + $0x788] sm:$0xff]  ;;  %v2927_v32 = vld [vmem:[%s11092_s1 + $0xaf8] sm:$0xff] }
 0x5ca   :  { %v4564_v40 = vperm.slane %v2542_v9, %v7312_v7  ;;  %5113 = vmatpush.msrb.mxu2 %v2779_v13  ;;  %v2727_v7 = vld [vmem:[%s11092_s1 + $0x4b8] sm:$0xff]  ;;  %v4071_v11 = vsel %vm3667_vm15, %v4070_v19, %v4069_v38  ;;  %v2761_v10 = vld [vmem:[%s11092_s1 + $0x5c8] sm:$0xff] }
 0x5cb   :  { %5065 = vmatpush.msrb.mxu0 %v2731_v1  ;;  %5125 = vmatpush.msrb.mxu3 %v2827_v58  ;;  %v2719_v3 = vld [vmem:[%s11092_s1 + $0x478] sm:$0xff]  ;;  %v2925_v53 = vld [vmem:[%s11092_s1 + $0xae8] sm:$0xff] }
 0x5cc   :  { %v4565_v0 = vsel %vm3663_vm14, %v4564_v40, %v4563_v48  ;;  %5114 = vmatpush.msrb.mxu2 %v2777_v14  ;;  %v2815_v26 = vld [vmem:[%s11092_s1 + $0x778] sm:$0xff]  ;;  %v2717_v6 = vld [vmem:[%s11092_s1 + $0x468] sm:$0xff] }
 0x5cd   :  { %5066 = vmatpush.msrb.mxu0 %v2729_v63  ;;  %5126 = vmatpush.msrb.mxu3 %v2825_v25  ;;  %v4567_v39 = vsel %vm3667_vm15, %v4566_v50, %v4565_v0  ;;  %v11645_v49 = vld [vmem:[#allocation7_spill] sm:$0xff]  ;;  %v2813_v35 = vld [vmem:[%s11092_s1 + $0x768] sm:$0xff] }
 0x5ce   :  { %4999 = vmatmul.f32.vlgmr.msra.gmra.mxu0 %v7377_v59  ;;  %5059 = vmatmul.f32.vlgmr.msra.gmra.mxu3 %v7959_v34  ;;  %v10562_v27 = vsel %vm4630_vm12, %v4567_v39, %v4071_v11  ;;  %v2821_v59 = vld [vmem:[%s11092_s1 + $0x7a8] sm:$0xff]  ;;  %v2759_v28 = vld [vmem:[%s11092_s1 + $0x5b8] sm:$0xff] }
 0x5cf   :  { %5067 = vmatpush.msrb.mxu0 %v2727_v7  ;;  %5115 = vmatpush.msrb.mxu2 %v2775_v33  ;;  %v2765_v34 = vld [vmem:[%s11092_s1 + $0x5e8] sm:$0xff]  ;;  %v11646_v62 = vld [vmem:[#allocation223_spill] sm:$0xff] }
 0x5d0   :  { %5127 = vmatpush.msrb.mxu3 %v2823_v56  ;;  %4939 = vmatmul.f32.vlgmr.msrb.gmra.mxu1 %v10562_v27  ;;  %v2757_v54 = vld [vmem:[%s11092_s1 + $0x5a8] sm:$0xff]  ;;  %v2923_v2 = vld [vmem:[%s11092_s1 + $0xad8] sm:$0xff] }
 0x5d1   :  { %5083 = vmatpush.msrb.mxu1 %v2767_v52  ;;  %5068 = vmatpush.msrb.mxu0 %v2725_v17  ;;  %v2715_v31 = vld [vmem:[%s11092_s1 + $0x458] sm:$0xff]  ;;  %v2921_v30 = vld [vmem:[%s11092_s1 + $0xac8] sm:$0xff] }
 0x5d2   :  { %5116 = vmatpush.msrb.mxu2 %v2773_v51  ;;  %5128 = vmatpush.msrb.mxu3 %v2821_v59  ;;  %v2811_v42 = vld [vmem:[%s11092_s1 + $0x758] sm:$0xff]  ;;  %v2713_v20 = vld [vmem:[%s11092_s1 + $0x448] sm:$0xff] }
 0x5d3   :  { %5084 = vmatpush.msrb.mxu1 %v2765_v34  ;;  %5069 = vmatpush.msrb.mxu0 %v2723_v5  ;;  %v2755_v60 = vld [vmem:[%s11092_s1 + $0x598] sm:$0xff]  ;;  %v2809_v21 = vld [vmem:[%s11092_s1 + $0x748] sm:$0xff] }
 0x5d4   :  { %5117 = vmatpush.msrb.mxu2 %v2771_v18  ;;  %5129 = vmatpush.msrb.mxu3 %v2819_v23  ;;  %v2753_v57 = vld [vmem:[%s11092_s1 + $0x588] sm:$0xff]  ;;  %v2919_v61 = vld [vmem:[%s11092_s1 + $0xab8] sm:$0xff] }
 0x5d5   :  { %5085 = vmatpush.msrb.mxu1 %v2763_v44  ;;  %5070 = vmatpush.msrb.mxu0 %v2721_v55  ;;  %v2711_v46 = vld [vmem:[%s11092_s1 + $0x438] sm:$0xff]  ;;  %v2917_v4 = vld [vmem:[%s11092_s1 + $0xaa8] sm:$0xff] }
 0x5d6   :  { %5118 = vmatpush.msrb.mxu2 %v2769_v12  ;;  %5130 = vmatpush.msrb.mxu3 %v2817_v43  ;;  %v2807_v47 = vld [vmem:[%s11092_s1 + $0x738] sm:$0xff]  ;;  %v2709_v36 = vld [vmem:[%s11092_s1 + $0x428] sm:$0xff] }
 0x5d7   :  { %5086 = vmatpush.msrb.mxu1 %v2761_v10  ;;  %5119 = vmatmul.f32.vlgmr.msrb.gmra.mxu2 %v11645_v49  ;;  %v2751_v41 = vld [vmem:[%s11092_s1 + $0x578] sm:$0xff]  ;;  %v2805_v29 = vld [vmem:[%s11092_s1 + $0x728] sm:$0xff] }
 0x5d8   :  { %5183 = vmatpush.msra.mxu2 %v2927_v32  ;;  %5071 = vmatpush.msrb.mxu0 %v2719_v3  ;;  %v2749_v13 = vld [vmem:[%s11092_s1 + $0x568] sm:$0xff]  ;;  %v2915_v45 = vld [vmem:[%s11092_s1 + $0xa98] sm:$0xff] }
 0x5d9   :  { %5131 = vmatpush.msrb.mxu3 %v2815_v26  ;;  %5019 = vmatmul.f32.vlgmr.msra.gmra.mxu1 %v11646_v62  ;;  %v2707_v9 = vld [vmem:[%s11092_s1 + $0x418] sm:$0xff]  ;;  %v2913_v24 = vld [vmem:[%s11092_s1 + $0xa88] sm:$0xff] }
 0x5da   :  { %5087 = vmatpush.msrb.mxu1 %v2759_v28  ;;  %5184 = vmatpush.msra.mxu2 %v2925_v53  ;;  %v2803_v1 = vld [vmem:[%s11092_s1 + $0x718] sm:$0xff]  ;;  %v2705_v19 = vld [vmem:[%s11092_s1 + $0x408] sm:$0xff] }
 0x5db   :  { %5072 = vmatpush.msrb.mxu0 %v2717_v6  ;;  %5132 = vmatpush.msrb.mxu3 %v2813_v35  ;;  %v2747_v58 = vld [vmem:[%s11092_s1 + $0x558] sm:$0xff]  ;;  %v2801_v16 = vld [vmem:[%s11092_s1 + $0x708] sm:$0xff] }
 0x5dc   :  { %5088 = vmatpush.msrb.mxu1 %v2757_v54  ;;  %5185 = vmatpush.msra.mxu2 %v2923_v2  ;;  %v2745_v50 = vld [vmem:[%s11092_s1 + $0x548] sm:$0xff]  ;;  %v2863_v14 = vld [vmem:[%s11092_s1 + $0x8f8] sm:$0xff] }
 0x5dd   :  { %5073 = vmatpush.msrb.mxu0 %v2715_v31  ;;  %5133 = vmatpush.msrb.mxu3 %v2811_v42  ;;  %v2911_v8 = vld [vmem:[%s11092_s1 + $0xa78] sm:$0xff]  ;;  %v11647_v63 = vld [vmem:[#allocation5_spill] sm:$0xff]  ;;  %v11648_v48 = vld [vmem:[#allocation6_spill] sm:$0xff] }
 0x5de   :  { %5089 = vmatpush.msrb.mxu1 %v2755_v60  ;;  %5186 = vmatpush.msra.mxu2 %v2921_v30  ;;  %v2959_v40 = vld [vmem:[%s11092_s1 + $0xbf8] sm:$0xff]  ;;  %v2861_v38 = vld [vmem:[%s11092_s1 + $0x8e8] sm:$0xff] }
 0x5df   :  { %5074 = vmatpush.msrb.mxu0 %v2713_v20  ;;  %5134 = vmatpush.msrb.mxu3 %v2809_v21  ;;  %v2743_v25 = vld [vmem:[%s11092_s1 + $0x538] sm:$0xff]  ;;  %v2909_v0 = vld [vmem:[%s11092_s1 + $0xa68] sm:$0xff] }
 0x5e0   :  { %5090 = vmatpush.msrb.mxu1 %v2753_v57  ;;  %5187 = vmatpush.msra.mxu2 %v2919_v61  ;;  %v2957_v7 = vld [vmem:[%s11092_s1 + $0xbe8] sm:$0xff]  ;;  %v2859_v56 = vld [vmem:[%s11092_s1 + $0x8d8] sm:$0xff] }
 0x5e1   :  { %5075 = vmatpush.msrb.mxu0 %v2711_v46  ;;  %5135 = vmatpush.msrb.mxu3 %v2807_v47  ;;  %v2741_v33 = vld [vmem:[%s11092_s1 + $0x528] sm:$0xff]  ;;  %v2907_v11 = vld [vmem:[%s11092_s1 + $0xa58] sm:$0xff] }
 0x5e2   :  { %5091 = vmatpush.msrb.mxu1 %v2751_v41  ;;  %5188 = vmatpush.msra.mxu2 %v2917_v4  ;;  %v2955_v39 = vld [vmem:[%s11092_s1 + $0xbd8] sm:$0xff]  ;;  %v2857_v17 = vld [vmem:[%s11092_s1 + $0x8c8] sm:$0xff] }
 0x5e3   :  { %5076 = vmatpush.msrb.mxu0 %v2709_v36  ;;  %5136 = vmatpush.msrb.mxu3 %v2805_v29  ;;  %v2739_v52 = vld [vmem:[%s11092_s1 + $0x518] sm:$0xff]  ;;  %v2905_v51 = vld [vmem:[%s11092_s1 + $0xa48] sm:$0xff] }
 0x5e4   :  { %5092 = vmatpush.msrb.mxu1 %v2749_v13  ;;  %5189 = vmatpush.msra.mxu2 %v2915_v45  ;;  %v2953_v59 = vld [vmem:[%s11092_s1 + $0xbc8] sm:$0xff]  ;;  %v2855_v5 = vld [vmem:[%s11092_s1 + $0x8b8] sm:$0xff] }
 0x5e5   :  { %5077 = vmatpush.msrb.mxu0 %v2707_v9  ;;  %5137 = vmatpush.msrb.mxu3 %v2803_v1  ;;  %v2737_v34 = vld [vmem:[%s11092_s1 + $0x508] sm:$0xff]  ;;  %v2903_v18 = vld [vmem:[%s11092_s1 + $0xa38] sm:$0xff] }
 0x5e6   :  { %5093 = vmatpush.msrb.mxu1 %v2747_v58  ;;  %5190 = vmatpush.msra.mxu2 %v2913_v24  ;;  %v2951_v23 = vld [vmem:[%s11092_s1 + $0xbb8] sm:$0xff]  ;;  %v2853_v44 = vld [vmem:[%s11092_s1 + $0x8a8] sm:$0xff] }
 0x5e7   :  { %5078 = vmatpush.msrb.mxu0 %v2705_v19  ;;  %5138 = vmatpush.msrb.mxu3 %v2801_v16  ;;  %v2895_v55 = vld [vmem:[%s11092_s1 + $0x9f8] sm:$0xff]  ;;  %v2901_v12 = vld [vmem:[%s11092_s1 + $0xa28] sm:$0xff] }
 0x5e8   :  { %5079 = vmatmul.f32.vlgmr.msrb.gmra.mxu0 %v11647_v63  ;;  %5094 = vmatpush.msrb.mxu1 %v2745_v50  ;;  %v2949_v43 = vld [vmem:[%s11092_s1 + $0xba8] sm:$0xff]  ;;  %v2851_v10 = vld [vmem:[%s11092_s1 + $0x898] sm:$0xff] }
 0x5e9   :  { %5139 = vmatmul.f32.vlgmr.msrb.gmra.mxu3 %v11648_v48  ;;  %5143 = vmatpush.msra.mxu0 %v2863_v14  ;;  %v11649_v32 = vld [vmem:[#allocation8_spill] sm:$0xff]  ;;  %v2893_v3 = vld [vmem:[%s11092_s1 + $0x9e8] sm:$0xff] }
 0x5ea   :  { %5191 = vmatpush.msra.mxu2 %v2911_v8  ;;  %5203 = vmatpush.msra.mxu3 %v2959_v40  ;;  %v2899_v26 = vld [vmem:[%s11092_s1 + $0xa18] sm:$0xff]  ;;  %v2849_v28 = vld [vmem:[%s11092_s1 + $0x888] sm:$0xff] }
 0x5eb   :  { %5095 = vmatpush.msrb.mxu1 %v2743_v25  ;;  %5144 = vmatpush.msra.mxu0 %v2861_v38  ;;  %v2947_v49 = vld [vmem:[%s11092_s1 + $0xb98] sm:$0xff]  ;;  %v2897_v6 = vld [vmem:[%s11092_s1 + $0xa08] sm:$0xff] }
 0x5ec   :  { %5192 = vmatpush.msra.mxu2 %v2909_v0  ;;  %5204 = vmatpush.msra.mxu3 %v2957_v7  ;;  %v2891_v53 = vld [vmem:[%s11092_s1 + $0x9d8] sm:$0xff]  ;;  %v2945_v35 = vld [vmem:[%s11092_s1 + $0xb88] sm:$0xff] }
 0x5ed   :  { %5096 = vmatpush.msrb.mxu1 %v2741_v33  ;;  %5145 = vmatpush.msra.mxu0 %v2859_v56  ;;  %v2889_v62 = vld [vmem:[%s11092_s1 + $0x9c8] sm:$0xff]  ;;  %v3055_v54 = vld [vmem:[%s11092_s1 + $0xef8] sm:$0xff] }
 0x5ee   :  { %5193 = vmatpush.msra.mxu2 %v2907_v11  ;;  %5205 = vmatpush.msra.mxu3 %v2955_v39  ;;  %v2847_v2 = vld [vmem:[%s11092_s1 + $0x878] sm:$0xff]  ;;  %v11650_v42 = vld [vmem:[#allocation9_spill] sm:$0xff] }
 0x5ef   :  { %5097 = vmatpush.msrb.mxu1 %v2739_v52  ;;  %5146 = vmatpush.msra.mxu0 %v2857_v17  ;;  %v2943_v31 = vld [vmem:[%s11092_s1 + $0xb78] sm:$0xff]  ;;  %v3053_v30 = vld [vmem:[%s11092_s1 + $0xee8] sm:$0xff] }
 0x5f0   :  { %5194 = vmatpush.msra.mxu2 %v2905_v51  ;;  %5206 = vmatpush.msra.mxu3 %v2953_v59  ;;  %v2887_v60 = vld [vmem:[%s11092_s1 + $0x9b8] sm:$0xff]  ;;  %v2845_v20 = vld [vmem:[%s11092_s1 + $0x868] sm:$0xff] }
 0x5f1   :  { %5098 = vmatpush.msrb.mxu1 %v2737_v34  ;;  %5147 = vmatpush.msra.mxu0 %v2855_v5  ;;  %v2941_v21 = vld [vmem:[%s11092_s1 + $0xb68] sm:$0xff]  ;;  %v3051_v61 = vld [vmem:[%s11092_s1 + $0xed8] sm:$0xff] }
 0x5f2   :  { %5195 = vmatpush.msra.mxu2 %v2903_v18  ;;  %5207 = vmatpush.msra.mxu3 %v2951_v23  ;;  %v2885_v57 = vld [vmem:[%s11092_s1 + $0x9a8] sm:$0xff]  ;;  %v2843_v46 = vld [vmem:[%s11092_s1 + $0x858] sm:$0xff] }
 0x5f3   :  { %5099 = vmatmul.f32.vlgmr.msrb.gmra.mxu1 %v11649_v32  ;;  %5148 = vmatpush.msra.mxu0 %v2853_v44  ;;  %v2939_v47 = vld [vmem:[%s11092_s1 + $0xb58] sm:$0xff]  ;;  %v3049_v4 = vld [vmem:[%s11092_s1 + $0xec8] sm:$0xff] }
 0x5f4   :  { %5163 = vmatpush.msra.mxu1 %v2895_v55  ;;  %5196 = vmatpush.msra.mxu2 %v2901_v12  ;;  %v2883_v41 = vld [vmem:[%s11092_s1 + $0x998] sm:$0xff]  ;;  %v2841_v36 = vld [vmem:[%s11092_s1 + $0x848] sm:$0xff] }
 0x5f5   :  { %5208 = vmatpush.msra.mxu3 %v2949_v43  ;;  %5149 = vmatpush.msra.mxu0 %v2851_v10  ;;  %v2937_v29 = vld [vmem:[%s11092_s1 + $0xb48] sm:$0xff]  ;;  %v3047_v45 = vld [vmem:[%s11092_s1 + $0xeb8] sm:$0xff] }
 0x5f6   :  { %5164 = vmatpush.msra.mxu1 %v2893_v3  ;;  %5197 = vmatpush.msra.mxu2 %v2899_v26  ;;  %v2881_v13 = vld [vmem:[%s11092_s1 + $0x988] sm:$0xff]  ;;  %v2839_v9 = vld [vmem:[%s11092_s1 + $0x838] sm:$0xff] }
 0x5f7   :  { %5209 = vmatpush.msra.mxu3 %v2947_v49  ;;  %5150 = vmatpush.msra.mxu0 %v2849_v28  ;;  %v2935_v1 = vld [vmem:[%s11092_s1 + $0xb38] sm:$0xff]  ;;  %v3045_v24 = vld [vmem:[%s11092_s1 + $0xea8] sm:$0xff] }
 0x5f8   :  { %5165 = vmatpush.msra.mxu1 %v2891_v53  ;;  %5198 = vmatpush.msra.mxu2 %v2897_v6  ;;  %v2879_v58 = vld [vmem:[%s11092_s1 + $0x978] sm:$0xff]  ;;  %v2837_v19 = vld [vmem:[%s11092_s1 + $0x828] sm:$0xff] }
 0x5f9   :  { %5210 = vmatpush.msra.mxu3 %v2945_v35  ;;  %5199 = vmatmul.f32.vlgmr.msra.gmra.mxu2 %v11650_v42  ;;  %v2933_v16 = vld [vmem:[%s11092_s1 + $0xb28] sm:$0xff]  ;;  %v3043_v14 = vld [vmem:[%s11092_s1 + $0xe98] sm:$0xff] }
 0x5fa   :  { %5166 = vmatpush.msra.mxu1 %v2889_v62  ;;  %5263 = vmatpush.msrb.mxu2 %v3055_v54  ;;  %v2877_v50 = vld [vmem:[%s11092_s1 + $0x968] sm:$0xff]  ;;  %v2835_v8 = vld [vmem:[%s11092_s1 + $0x818] sm:$0xff] }
 0x5fb   :  { %5151 = vmatpush.msra.mxu0 %v2847_v2  ;;  %5211 = vmatpush.msra.mxu3 %v2943_v31  ;;  %v2931_v40 = vld [vmem:[%s11092_s1 + $0xb18] sm:$0xff]  ;;  %v3041_v25 = vld [vmem:[%s11092_s1 + $0xe88] sm:$0xff] }
 0x5fc   :  { %5167 = vmatpush.msra.mxu1 %v2887_v60  ;;  %5264 = vmatpush.msrb.mxu2 %v3053_v30  ;;  %v2875_v63 = vld [vmem:[%s11092_s1 + $0x958] sm:$0xff]  ;;  %v2833_v38 = vld [vmem:[%s11092_s1 + $0x808] sm:$0xff] }
 0x5fd   :  { %5152 = vmatpush.msra.mxu0 %v2845_v20  ;;  %5212 = vmatpush.msra.mxu3 %v2941_v21  ;;  %v2929_v48 = vld [vmem:[%s11092_s1 + $0xb08] sm:$0xff]  ;;  %v2991_v7 = vld [vmem:[%s11092_s1 + $0xcf8] sm:$0xff] }
 0x5fe   :  { %5168 = vmatpush.msra.mxu1 %v2885_v57  ;;  %5265 = vmatpush.msrb.mxu2 %v3051_v61  ;;  %v2873_v0 = vld [vmem:[%s11092_s1 + $0x948] sm:$0xff]  ;;  %v3039_v33 = vld [vmem:[%s11092_s1 + $0xe78] sm:$0xff] }
 0x5ff   :  { %5153 = vmatpush.msra.mxu0 %v2843_v46  ;;  %5213 = vmatpush.msra.mxu3 %v2939_v47  ;;  %v3087_v56 = vld [vmem:[%s11092_s1 + $0xff8] sm:$0xff]  ;;  %v2989_v52 = vld [vmem:[%s11092_s1 + $0xce8] sm:$0xff] }
 0x600   :  { %5169 = vmatpush.msra.mxu1 %v2883_v41  ;;  %5266 = vmatpush.msrb.mxu2 %v3049_v4  ;;  %v11651_v11 = vld [vmem:[#allocation11_spill] sm:$0xff]  ;;  %v11652_v17 = vld [vmem:[#allocation14_spill] sm:$0xff] }
 0x601   :  { %5154 = vmatpush.msra.mxu0 %v2841_v36  ;;  %5214 = vmatpush.msra.mxu3 %v2937_v29  ;;  %v2871_v39 = vld [vmem:[%s11092_s1 + $0x938] sm:$0xff]  ;;  %v3037_v51 = vld [vmem:[%s11092_s1 + $0xe68] sm:$0xff] }
 0x602   :  { %5170 = vmatpush.msra.mxu1 %v2881_v13  ;;  %5267 = vmatpush.msrb.mxu2 %v3047_v45  ;;  %v3085_v59 = vld [vmem:[%s11092_s1 + $0xfe8] sm:$0xff]  ;;  %v2987_v5 = vld [vmem:[%s11092_s1 + $0xcd8] sm:$0xff] }
 0x603   :  { %5155 = vmatpush.msra.mxu0 %v2839_v9  ;;  %5215 = vmatpush.msra.mxu3 %v2935_v1  ;;  %v2869_v34 = vld [vmem:[%s11092_s1 + $0x928] sm:$0xff]  ;;  %v3035_v18 = vld [vmem:[%s11092_s1 + $0xe58] sm:$0xff] }
 0x604   :  { %5171 = vmatpush.msra.mxu1 %v2879_v58  ;;  %5268 = vmatpush.msrb.mxu2 %v3045_v24  ;;  %v3083_v23 = vld [vmem:[%s11092_s1 + $0xfd8] sm:$0xff]  ;;  %v2985_v55 = vld [vmem:[%s11092_s1 + $0xcc8] sm:$0xff] }
 0x605   :  { %5156 = vmatpush.msra.mxu0 %v2837_v19  ;;  %5216 = vmatpush.msra.mxu3 %v2933_v16  ;;  %v2867_v44 = vld [vmem:[%s11092_s1 + $0x918] sm:$0xff]  ;;  %v3033_v12 = vld [vmem:[%s11092_s1 + $0xe48] sm:$0xff] }
 0x606   :  { %5172 = vmatpush.msra.mxu1 %v2877_v50  ;;  %5269 = vmatpush.msrb.mxu2 %v3043_v14  ;;  %v3081_v43 = vld [vmem:[%s11092_s1 + $0xfc8] sm:$0xff]  ;;  %v2983_v32 = vld [vmem:[%s11092_s1 + $0xcb8] sm:$0xff] }
 0x607   :  { %5157 = vmatpush.msra.mxu0 %v2835_v8  ;;  %5217 = vmatpush.msra.mxu3 %v2931_v40  ;;  %v2865_v10 = vld [vmem:[%s11092_s1 + $0x908] sm:$0xff]  ;;  %v3031_v3 = vld [vmem:[%s11092_s1 + $0xe38] sm:$0xff] }
 0x608   :  { %5173 = vmatpush.msra.mxu1 %v2875_v63  ;;  %5270 = vmatpush.msrb.mxu2 %v3041_v25  ;;  %v3079_v26 = vld [vmem:[%s11092_s1 + $0xfb8] sm:$0xff]  ;;  %v2981_v49 = vld [vmem:[%s11092_s1 + $0xca8] sm:$0xff] }
 0x609   :  { %5158 = vmatpush.msra.mxu0 %v2833_v38  ;;  %5218 = vmatpush.msra.mxu3 %v2929_v48  ;;  %v3023_v28 = vld [vmem:[%s11092_s1 + $0xdf8] sm:$0xff]  ;;  %v3029_v53 = vld [vmem:[%s11092_s1 + $0xe28] sm:$0xff] }
 0x60a   :  { %5159 = vmatmul.f32.vlgmr.msra.gmra.mxu0 %v11651_v11  ;;  %5174 = vmatpush.msra.mxu1 %v2873_v0  ;;  %v3077_v6 = vld [vmem:[%s11092_s1 + $0xfa8] sm:$0xff]  ;;  %v2979_v35 = vld [vmem:[%s11092_s1 + $0xc98] sm:$0xff] }
 0x60b   :  { %5219 = vmatmul.f32.vlgmr.msra.gmra.mxu3 %v11652_v17  ;;  %5223 = vmatpush.msrb.mxu0 %v2991_v7  ;;  %v11653_v62 = vld [vmem:[#allocation10_spill] sm:$0xff]  ;;  %v3027_v2 = vld [vmem:[%s11092_s1 + $0xe18] sm:$0xff] }
 0x60c   :  { %5271 = vmatpush.msrb.mxu2 %v3039_v33  ;;  %5283 = vmatpush.msrb.mxu3 %v3087_v56  ;;  %v3021_v54 = vld [vmem:[%s11092_s1 + $0xde8] sm:$0xff]  ;;  %v3075_v31 = vld [vmem:[%s11092_s1 + $0xf98] sm:$0xff]  ;;  %v4680_v33 = vpop.f32.mrf.mxu0  ;;  %v4720_v56 = vpop.f32.mrf.mxu2 }
 0x60d   :  { %5175 = vmatpush.msra.mxu1 %v2871_v39  ;;  %5224 = vmatpush.msrb.mxu0 %v2989_v52  ;;  %v2977_v42 = vld [vmem:[%s11092_s1 + $0xc88] sm:$0xff]  ;;  %v3019_v60 = vld [vmem:[%s11092_s1 + $0xdd8] sm:$0xff]  ;;  %v4740_v52 = vpop.f32.mrf.mxu3 }
 0x60e   :  { %5272 = vmatpush.msrb.mxu2 %v3037_v51  ;;  %5284 = vmatpush.msrb.mxu3 %v3085_v59  ;;  %v3025_v30 = vld [vmem:[%s11092_s1 + $0xe08] sm:$0xff]  ;;  %v2975_v57 = vld [vmem:[%s11092_s1 + $0xc78] sm:$0xff] }
 0x60f   :  { %5176 = vmatpush.msra.mxu1 %v2869_v34  ;;  %5225 = vmatpush.msrb.mxu0 %v2987_v5  ;;  %v3073_v20 = vld [vmem:[%s11092_s1 + $0xf88] sm:$0xff]  ;;  %v3071_v61 = vld [vmem:[%s11092_s1 + $0xf78] sm:$0xff] }
 0x610   :  { %5273 = vmatpush.msrb.mxu2 %v3035_v18  ;;  %5285 = vmatpush.msrb.mxu3 %v3083_v23  ;;  %v3017_v21 = vld [vmem:[%s11092_s1 + $0xdc8] sm:$0xff]  ;;  %v3015_v46 = vld [vmem:[%s11092_s1 + $0xdb8] sm:$0xff] }
 0x611   :  { %5177 = vmatpush.msra.mxu1 %v2867_v44  ;;  %5226 = vmatpush.msrb.mxu0 %v2985_v55  ;;  %v2973_v47 = vld [vmem:[%s11092_s1 + $0xc68] sm:$0xff]  ;;  %v3067_v36 = vld [vmem:[%s11092_s1 + $0xf58] sm:$0xff]  ;;  %v3088_v55 = vld [vmem:[%s11093_s2] sm:$0x3]  ;;  %s5353_s2 = smov [#allocation2]  }
 0x612   :  { %5274 = vmatpush.msrb.mxu2 %v3033_v12  ;;  %5286 = vmatpush.msrb.mxu3 %v3081_v43  ;;  %v3069_v41 = vld [vmem:[%s11092_s1 + $0xf68] sm:$0xff]  ;;  %v3011_v29 = vld [vmem:[%s11092_s1 + $0xd98] sm:$0xff]  ;;  %s5315_s13 = sshll.u32 %s5353_s2, 4  ;;  %s5316_s13 = int_to_ptr.vmem [resolvable:$true] %s5315_s13 }
 0x613   :  { %5178 = vmatpush.msra.mxu1 %v2865_v10  ;;  %5227 = vmatpush.msrb.mxu0 %v2983_v32  ;;  %v3013_v4 = vld [vmem:[%s11092_s1 + $0xda8] sm:$0xff]  ;;  %v2967_v1 = vld [vmem:[%s11092_s1 + $0xc38] sm:$0xff] }
 0x614   :  { %5275 = vmatpush.msrb.mxu2 %v3031_v3  ;;  %5287 = vmatpush.msrb.mxu3 %v3079_v26  ;;  %v2969_v13 = vld [vmem:[%s11092_s1 + $0xc48] sm:$0xff]  ;;  %v3063_v58 = vld [vmem:[%s11092_s1 + $0xf38] sm:$0xff]  ;;  %v4760_v11 = vpop.f32.mrf.mxu0  ;;  %v4800_v17 = vpop.f32.mrf.mxu2 }
 0x615   :  { %5179 = vmatmul.f32.vlgmr.msra.gmra.mxu1 %v11653_v62  ;;  %5228 = vmatpush.msrb.mxu0 %v2981_v49  ;;  %v3065_v45 = vld [vmem:[%s11092_s1 + $0xf48] sm:$0xff]  ;;  %v3007_v24 = vld [vmem:[%s11092_s1 + $0xd78] sm:$0xff]  ;;  %v4820_v34 = vpop.f32.mrf.mxu3 }
 0x616   :  { %5243 = vmatpush.msrb.mxu1 %v3023_v28  ;;  %5276 = vmatpush.msrb.mxu2 %v3029_v53  ;;  %v3009_v9 = vld [vmem:[%s11092_s1 + $0xd88] sm:$0xff]  ;;  %v2963_v14 = vld [vmem:[%s11092_s1 + $0xc18] sm:$0xff]  ;;  %v3090_v28 = vperm.slane %v3088_v55, 0 }
 0x617   :  { %5288 = vmatpush.msrb.mxu3 %v3077_v6  ;;  %5229 = vmatpush.msrb.mxu0 %v2979_v35  ;;  %v2965_v19 = vld [vmem:[%s11092_s1 + $0xc28] sm:$0xff]  ;;  %v3059_v8 = vld [vmem:[%s11092_s1 + $0xf18] sm:$0xff] }
 0x618   :  { %5244 = vmatpush.msrb.mxu1 %v3021_v54  ;;  %5277 = vmatpush.msrb.mxu2 %v3027_v2  ;;  %v3061_v16 = vld [vmem:[%s11092_s1 + $0xf28] sm:$0xff]  ;;  %v3003_v40 = vld [vmem:[%s11092_s1 + $0xd58] sm:$0xff]  ;;  %v4681_v62 = vadd.f32 %v4680_v33, %v3090_v28 }
 0x619   :  { %5289 = vmatpush.msrb.mxu3 %v3075_v31  ;;  %5230 = vmatpush.msrb.mxu0 %v2977_v42  ;;  %v3005_v50 = vld [vmem:[%s11092_s1 + $0xd68] sm:$0xff]  ;;  %v2999_v48 = vld [vmem:[%s11092_s1 + $0xd38] sm:$0xff] }
 0x61a   :  { %5245 = vmatpush.msrb.mxu1 %v3019_v60  ;;  %5278 = vmatpush.msrb.mxu2 %v3025_v30  ;;  %v2961_v63 = vld [vmem:[%s11092_s1 + $0xc08] sm:$0xff]  ;;  %v2995_v7 = vld [vmem:[%s11092_s1 + $0xd18] sm:$0xff] }
 0x61b   :  { %5290 = vmatpush.msrb.mxu3 %v3073_v20  ;;  %5279 = vmatmul.f32.vlgmr.msrb.gmra.mxu2 %v10376_v15  ;;  %v2971_v15 = vld [vmem:[%s11092_s1 + $0xc58] sm:$0xff]  ;;  %v3057_v25 = vld [vmem:[%s11092_s1 + $0xf08] sm:$0xff] }
 0x61c   :  { %5246 = vmatpush.msrb.mxu1 %v3017_v21  ;;  %5231 = vmatpush.msrb.mxu0 %v2975_v57  ;;  %v3001_v38 = vld [vmem:[%s11092_s1 + $0xd48] sm:$0xff]  ;;  %v4840_v51 = vpop.f32.mrf.mxu0  ;;  %v4880_v5 = vpop.f32.mrf.mxu2 }
 0x61d   :  { %5291 = vmatpush.msrb.mxu3 %v3071_v61  ;;  %v2997_v0 = vld [vmem:[%s11092_s1 + $0xd28] sm:$0xff]  ;;  %v4900_v44 = vpop.f32.mrf.mxu3 }
 0x61e   :  { %5247 = vmatpush.msrb.mxu1 %v3015_v46  ;;  %5232 = vmatpush.msrb.mxu0 %v2973_v47 }
 0x61f   :  { %5292 = vmatpush.msrb.mxu3 %v3069_v41 }
 0x620   :  { %5248 = vmatpush.msrb.mxu1 %v3013_v4  ;;  %5233 = vmatpush.msrb.mxu0 %v2971_v15 }
 0x621   :  { %5293 = vmatpush.msrb.mxu3 %v3067_v36 }
 0x622   :  { %5249 = vmatpush.msrb.mxu1 %v3011_v29  ;;  %5234 = vmatpush.msrb.mxu0 %v2969_v13 }
 0x623   :  { %5294 = vmatpush.msrb.mxu3 %v3065_v45 }
 0x624   :  { %5250 = vmatpush.msrb.mxu1 %v3009_v9  ;;  %5235 = vmatpush.msrb.mxu0 %v2967_v1 }
 0x625   :  { %5295 = vmatpush.msrb.mxu3 %v3063_v58 }
 0x626   :  { %5251 = vmatpush.msrb.mxu1 %v3007_v24  ;;  %5236 = vmatpush.msrb.mxu0 %v2965_v19 }
 0x627   :  { %5296 = vmatpush.msrb.mxu3 %v3061_v16 }
 0x628   :  { %5252 = vmatpush.msrb.mxu1 %v3005_v50  ;;  %5237 = vmatpush.msrb.mxu0 %v2963_v14 }
 0x629   :  { %5297 = vmatpush.msrb.mxu3 %v3059_v8 }
 0x62a   :  { %5253 = vmatpush.msrb.mxu1 %v3003_v40  ;;  %5238 = vmatpush.msrb.mxu0 %v2961_v63 }
 0x62b   :  { %5298 = vmatpush.msrb.mxu3 %v3057_v25  ;;  %5239 = vmatmul.f32.vlgmr.msrb.gmra.mxu0 %v10500_v22  ;;  %v2993_v22 = vld [vmem:[%s11092_s1 + $0xd08] sm:$0xff] }
 0x62c   :  { %5254 = vmatpush.msrb.mxu1 %v3001_v38  ;;  %5299 = vmatmul.f32.vlgmr.msrb.gmra.mxu3 %v10483_v37  ;;  %v4700_v37 = vpop.f32.mrf.mxu1 }
 0x62d   :  { %v4701_v31 = vadd.f32 %v4700_v37, %v4681_v62 }
 0x62e   :  { %5255 = vmatpush.msrb.mxu1 %v2999_v48 }
 0x62f   :  { %v4721_v60 = vadd.f32 %v4720_v56, %v4701_v31 }
 0x630   :  { %5256 = vmatpush.msrb.mxu1 %v2997_v0 }
 0x631   :  { %v4741_v20 = vadd.f32 %v4740_v52, %v4721_v60 }
 0x632   :  { %5257 = vmatpush.msrb.mxu1 %v2995_v7 }
 0x633   :  { %v4761_v57 = vadd.f32 %v4760_v11, %v4741_v20 }
 0x634   :  { %5258 = vmatpush.msrb.mxu1 %v2993_v22  ;;  %v4780_v39 = vpop.f32.mrf.mxu1 }
 0x635   :  { %5259 = vmatmul.f32.vlgmr.msrb.gmra.mxu1 %v10562_v27  ;;  %v3091_v27 = vperm.slane %v3088_v55, 1  ;;  %v4781_v46 = vadd.f32 %v4780_v39, %v4761_v57 }
 0x637   :  { %v4801_v4 = vadd.f32 %v4800_v17, %v4781_v46 }
 0x638   :  { %v4960_v12 = vpop.f32.mrf.mxu2 }
 0x639   :  { %v4821_v29 = vadd.f32 %v4820_v34, %v4801_v4 }
 0x63b   :  { %v4841_v45 = vadd.f32 %v4840_v51, %v4821_v29 }
 0x63c   :  { %v4860_v59 = vpop.f32.mrf.mxu1 }
 0x63d   :  { %v4861_v1 = vadd.f32 %v4860_v59, %v4841_v45 }
 0x63f   :  { %v4881_v24 = vadd.f32 %v4880_v5, %v4861_v1 }
 0x640   :  { %v5040_v49 = vpop.f32.mrf.mxu2 }
 0x641   :  { %v4901_v16 = vadd.f32 %v4900_v44, %v4881_v24 }
 0x643   :  { %v4920_v18 = vpop.f32.mrf.mxu0 }
 0x644   :  { %v4921_v8 = vadd.f32 %v4920_v18, %v4901_v16 }
 0x648   :  { %v4980_v10 = vpop.f32.mrf.mxu3 }
 0x64b   :  { %v5000_v43 = vpop.f32.mrf.mxu0 }
 0x64c   :  { %v5001_v3 = vadd.f32 %v5000_v43, %v3091_v27 }
 0x64d   :  { %v4940_v23 = vpop.f32.mrf.mxu1 }
 0x64e   :  { %v4941_v63 = vadd.f32 %v4940_v23, %v4921_v8 }
 0x650   :  { %v4961_v7 = vadd.f32 %v4960_v12, %v4941_v63 }
 0x651   :  { %v5060_v6 = vpop.f32.mrf.mxu3 }
 0x652   :  { %v4981_v56 = vadd.f32 %v4980_v10, %v4961_v7 }
 0x656   :  { %v5020_v32 = vpop.f32.mrf.mxu1 }
 0x657   :  { %v5021_v26 = vadd.f32 %v5020_v32, %v5001_v3 }
 0x659   :  { %v5041_v53 = vadd.f32 %v5040_v49, %v5021_v26 }
 0x65a   :  { %v5120_v21 = vpop.f32.mrf.mxu2 }
 0x65b   :  { %v5061_v54 = vadd.f32 %v5060_v6, %v5041_v53 }
 0x665   :  { %v5080_v35 = vpop.f32.mrf.mxu0 }
 0x666   :  { %v5081_v42 = vadd.f32 %v5080_v35, %v5061_v54 }
 0x66c   :  { %v5140_v47 = vpop.f32.mrf.mxu3 }
 0x670   :  { %v5100_v2 = vpop.f32.mrf.mxu1 }
 0x671   :  { %v5101_v30 = vadd.f32 %v5100_v2, %v5081_v42 }
 0x673   :  { %v5121_v61 = vadd.f32 %v5120_v21, %v5101_v30 }
 0x675   :  { %v5141_v15 = vadd.f32 %v5140_v47, %v5121_v61 }
 0x67c   :  { %v5200_v58 = vpop.f32.mrf.mxu2 }
 0x687   :  { %v5160_v41 = vpop.f32.mrf.mxu0 }
 0x688   :  { %v5161_v13 = vadd.f32 %v5160_v41, %v5141_v15 }
 0x68e   :  { %v5220_v50 = vpop.f32.mrf.mxu3 }
 0x692   :  { %v5180_v36 = vpop.f32.mrf.mxu1 }
 0x693   :  { %v5181_v9 = vadd.f32 %v5180_v36, %v5161_v13 }
 0x695   :  { %v5201_v19 = vadd.f32 %v5200_v58, %v5181_v9 }
 0x697   :  { %v5221_v40 = vadd.f32 %v5220_v50, %v5201_v19 }
 0x69e   :  { %v5280_v0 = vpop.f32.mrf.mxu2 }
 0x6a8   :  { %v5240_v14 = vpop.f32.mrf.mxu0 }
 0x6a9   :  { %v5241_v25 = vadd.f32 %v5240_v14, %v5221_v40 }
 0x6af   :  { %v5300_v33 = vpop.f32.mrf.mxu3 }
 0x6b2   :  { %v5260_v38 = vpop.f32.mrf.mxu1 }
 0x6b3   :  { %v5261_v48 = vadd.f32 %v5260_v38, %v5241_v25 }
 0x6b5   :  { %v5281_v22 = vadd.f32 %v5280_v0, %v5261_v48 }
 0x6b7   :  { %v5301_v37 = vadd.f32 %v5300_v33, %v5281_v22 }
 0x6b9   :  { %v5305_v11 = vrot.slane %v5301_v37, 6 }
 0x6bb   :  { %v5307_v39 = vsel %vm5306_vm11, %v4981_v56, %v5305_v11 }
 0x6bc   :  { %5309 = vst [vmem:[#allocation2] sm:$0xf] %v5307_v39 }
 0x6bd   :  { %5320 = dma.vmem_to_hbm [thread:$0]  %s5316_s13, 64, %s5318_s0, [#allocation3]  }
 0x6be   :  { %5351 = dma.done.wait [#allocation3], 64  }
 0x6bf   :  { %5352 = vsyncadd [#allocation3], 4294967232 }
 0x6c0   :  { %5325 = vsyncpa [#allocation3], 1 }

</bundles_post_ra>
